<compile_context>
chip_gen: v7x
topology: tpu7x:2x2x1
jax: 0.10.0
libtpu: 0.0.40
codegen_flags: <defaults>
</compile_context>

<pallas_src>
import jax
import jax.numpy as jnp
from jax.experimental import pallas as pl
from jax.experimental.pallas import tpu as pltpu


# ------------------------------ small helpers ------------------------------ #

def _round_up(x: int, m: int) -> int:
    return (x + m - 1) // m * m


def _pick_k_tile(k_padded: int) -> int:
    for cand in (512, 256, 128):
        if k_padded % cand == 0:
            return cand
    return k_padded  # unreachable: k_padded is always a multiple of 128


def _largest_divisor_leq(n: int, cap: int) -> int:
    d = min(n, cap)
    while n % d:
        d -= 1
    return d


# Conservative scoped-VMEM request valid on v5e / v6e / v7x; all tiles below are
# sized far under this so double-buffering never spills.
_VMEM_LIMIT = 32 * 1024 * 1024


# ------------------------ fused conv3x3 + bias + ReLU ----------------------- #

def _make_conv3x3_relu_kernel(W: int, tn: int):
    def kernel(x_ref, w_ref, b_ref, o_ref):
        # x_ref: (H+2, W+2, Cinp) bf16  -- whole padded image, VMEM-resident per n
        # w_ref: (9, Cinp, tn)   bf16   -- resident per Cout tile
        # b_ref: (1, tn)         f32
        # o_ref: (W, tn)         bf16   -- one output row, one Cout tile
        h = pl.program_id(2)
        acc = jnp.zeros((W, tn), jnp.float32)
        for t in range(9):                       # static unroll over the 3x3 taps
            di, dj = t // 3, t % 3
            lhs = x_ref[h + di, pl.ds(dj, W), :]            # (W, Cinp) bf16
            acc += jnp.dot(lhs, w_ref[t],
                           preferred_element_type=jnp.float32)
        o_ref[...] = jnp.maximum(acc + b_ref[...], 0.0).astype(o_ref.dtype)
    return kernel


def conv3x3_relu_nhwc(x, w, b, out_dtype=jnp.bfloat16):
    """3x3 / stride-1 / pad-1 conv + bias + ReLU (NHWC) as one fused Pallas kernel.

    x: (N, H, W, Cin); w: (Cout, Cin, 3, 3) PyTorch layout; b: (Cout,)
    No im2col matrix is materialized in HBM: the padded image stays resident in
    VMEM and the 9-tap reduction runs fully in-kernel on the MXU.
    """
    N, H, W, Cin = x.shape
    Cout = w.shape[0]
    Cinp = _round_up(max(Cin, 8), 8)
    Coutp = _round_up(Cout, 8) if Cout < 128 else _round_up(Cout, 128)
    tn = min(128, Coutp)

    # Zero-pad: spatial halo (pad=1) + channel padding (exactly preserves the conv).
    xp = jnp.pad(x, ((0, 0), (1, 1), (1, 1), (0, Cinp - Cin))).astype(jnp.bfloat16)
    wmat = jnp.transpose(w, (2, 3, 1, 0)).reshape(9, Cin, Cout)   # tap-major, (ci, co)
    wp = jnp.pad(wmat, ((0, 0), (0, Cinp - Cin), (0, Coutp - Cout))).astype(jnp.bfloat16)
    bp = jnp.pad(b.reshape(1, -1).astype(jnp.float32), ((0, 0), (0, Coutp - Cout)))

    # Grid: (image, Cout-tile, output-row). Row axis is fastest so the padded
    # image block (depends on n) and the weight block (depends on co) both stay
    # resident across the inner row loop — one DMA per image / per weight tile.
    grid = (N, Coutp // tn, H)
    out = pl.pallas_call(
        _make_conv3x3_relu_kernel(W, tn),
        out_shape=jax.ShapeDtypeStruct((N, H, W, Coutp), out_dtype),
        grid=grid,
        in_specs=[
            pl.BlockSpec((None, H + 2, W + 2, Cinp), lambda n, co, h: (n, 0, 0, 0)),
            pl.BlockSpec((9, Cinp, tn), lambda n, co, h: (0, 0, co)),
            pl.BlockSpec((1, tn), lambda n, co, h: (0, co)),
        ],
        out_specs=pl.BlockSpec((None, None, W, tn), lambda n, co, h: (n, h, 0, co)),
        compiler_params=pltpu.CompilerParams(
            dimension_semantics=("parallel", "parallel", "parallel"),
            vmem_limit_bytes=_VMEM_LIMIT),
        cost_estimate=pl.CostEstimate(
            flops=2 * N * H * W * Coutp * 9 * Cinp,
            transcendentals=0,
            bytes_accessed=2 * (N * (H + 2) * (W + 2) * Cinp + 9 * Cinp * Coutp)
                           + N * H * W * Coutp * jnp.dtype(out_dtype).itemsize),
    )(xp, wp, bp)
    if Coutp != Cout:
        out = out[..., :Cout]
    return out


# ------------------------------ 2x2 max pooling ----------------------------- #

def _maxpool2x2_kernel(x_ref, o_ref):
    # x: (bm, 2, Wo, 2, C) -> elementwise max over the 2x2 window -> (bm, Wo, C)
    v = x_ref[...]
    hmax = jnp.maximum(v[:, 0], v[:, 1])   # max over the H pair  -> (bm, Wo, 2, C)
    o_ref[...] = jnp.max(hmax, axis=2)     # max over the W pair  -> (bm, Wo, C)


def maxpool2x2_nhwc(x):
    """2x2 / stride-2 max pool on an NHWC tensor as a single-read Pallas kernel."""
    N, H, W, C = x.shape
    assert H % 2 == 0 and W % 2 == 0, "VGG-style pooling expects even H/W"
    Ho, Wo = H // 2, W // 2
    R = N * Ho
    xr = x.reshape(R, 2, Wo, 2, C)          # free row-major reshape, no data movement
    bm = _largest_divisor_leq(R, 256)
    out = pl.pallas_call(
        _maxpool2x2_kernel,
        out_shape=jax.ShapeDtypeStruct((R, Wo, C), x.dtype),
        grid=(R // bm,),
        in_specs=[pl.BlockSpec((bm, 2, Wo, 2, C), lambda r: (r, 0, 0, 0, 0))],
        out_specs=pl.BlockSpec((bm, Wo, C), lambda r: (r, 0, 0)),
        compiler_params=pltpu.CompilerParams(
            dimension_semantics=("parallel",),
            vmem_limit_bytes=_VMEM_LIMIT),
    )(xr)
    return out.reshape(N, Ho, Wo, C)


# ------------------------- fused Linear + Softmax --------------------------- #

def _linear_softmax_kernel(x_ref, w_ref, b_ref, o_ref, acc_ref):
    # x: (tm, tk) bf16, w: (tk, Np) bf16, b: (1, Np) f32 -> softmax(x @ w + b, axis=1)
    k = pl.program_id(1)

    @pl.when(k == 0)
    def _():
        acc_ref[...] = jnp.zeros_like(acc_ref)

    acc_ref[...] += jnp.dot(x_ref[...], w_ref[...],
                            preferred_element_type=jnp.float32)

    @pl.when(k == pl.num_programs(1) - 1)
    def _():
        # Padded class columns carry a -1e30 "bias" -> exp() underflows to 0, so
        # padding never dilutes the probabilities (classes stay in ONE lane tile,
        # so the row max/sum see the full class dimension).
        logits = acc_ref[...] + b_ref[...]
        m = jnp.max(logits, axis=1, keepdims=True)
        e = jnp.exp(logits - m)
        denom = jnp.sum(e, axis=1, keepdims=True)
        r = pl.reciprocal(denom, approx=True)   # EUP slot, essentially free
        r = r * (2.0 - denom * r)               # one Newton step -> ~f32-exact 1/denom
        o_ref[...] = (e * r).astype(o_ref.dtype)


def linear_softmax(x, w, b):
    """softmax(x @ w + b, axis=1); w is pre-transposed (in_features, classes)."""
    B, K = x.shape
    Kw, N = w.shape
    assert Kw == K
    Np = _round_up(N, 128)            # 102 -> 128: lane-dense, single class tile
    Kp = _round_up(K, 128)
    tk = _pick_k_tile(Kp)
    tm = min(128, _round_up(B, 8))    # pad tiny batch to >= 8 sublanes
    Mp = _round_up(B, tm)

    xp = jnp.pad(x, ((0, Mp - B), (0, Kp - K))).astype(jnp.bfloat16)
    wp = jnp.pad(w, ((0, Kp - K), (0, Np - N))).astype(jnp.bfloat16)
    # padded class columns get a -1e30 bias so they are masked out of the softmax
    bp = jnp.pad(b.reshape(1, -1).astype(jnp.float32), ((0, 0), (0, Np - N)),
                 constant_values=-1e30)

    grid = (Mp // tm, Kp // tk)
    out = pl.pallas_call(
        _linear_softmax_kernel,
        out_shape=jax.ShapeDtypeStruct((Mp, Np), jnp.float32),
        grid_spec=pltpu.PrefetchScalarGridSpec(
            num_scalar_prefetch=0,
            grid=grid,
            in_specs=[pl.BlockSpec((tm, tk), lambda i, k: (i, k)),
                      pl.BlockSpec((tk, Np), lambda i, k: (k, 0)),
                      pl.BlockSpec((1, Np), lambda i, k: (0, 0))],
            out_specs=pl.BlockSpec((tm, Np), lambda i, k: (i, 0)),
            scratch_shapes=[pltpu.VMEM((tm, Np), jnp.float32)]),
        compiler_params=pltpu.CompilerParams(
            dimension_semantics=("parallel", "arbitrary"),
            vmem_limit_bytes=_VMEM_LIMIT),
        cost_estimate=pl.CostEstimate(
            flops=2 * Mp * Kp * Np,
            transcendentals=Mp * Np,
            bytes_accessed=2 * (Mp * Kp + Kp * Np) + 4 * Mp * Np),
    )(xp, wp, bp)
    return out[:B, :N]


# ------------------------------- model glue -------------------------------- #

def flower_classifier_forward(x_nchw, params):
    """FlowerClassifier.forward: pretrained features -> flatten(1) -> Linear -> Softmax."""
    # External interface stays NCHW (PyTorch); go channels-last + bf16 once up front.
    x = jnp.transpose(x_nchw, (0, 2, 3, 1)).astype(jnp.bfloat16)
    h = conv3x3_relu_nhwc(x, params['conv1_w'], params['conv1_b'])
    h = maxpool2x2_nhwc(h)
    h = conv3x3_relu_nhwc(h, params['conv2_w'], params['conv2_b'])
    h = maxpool2x2_nhwc(h)
    feats = h.reshape(h.shape[0], -1)   # torch.flatten(x, 1); the stand-in fc weight
                                        # is defined in this (NHWC) feature order.
    # classifier = nn.Linear(in_features, 102) + nn.Softmax(dim=1); fc weight stored
    # pre-transposed (in_features, classes) so no per-forward HBM transpose.
    return linear_softmax(feats, params['fc_w_t'], params['fc_b'])


# ---------------------------------- main ----------------------------------- #

if __name__ == "__main__":
    key = jax.random.PRNGKey(0)
    kx, k1, k2, k3, k4, k5, k6 = jax.random.split(key, 7)

    N, Cin, H, W = 2, 3, 16, 16       # small stand-in for (N, 3, 224, 224)
    C1, C2 = 8, 16                    # small stand-in for VGG channel widths
    num_classes = 102                 # 102 flower categories (as in the module)
    feat_dim = C2 * (H // 4) * (W // 4)   # stand-in for 25088 = 512*7*7

    x = jax.random.normal(kx, (N, Cin, H, W), jnp.float32)

    params = {
        # conv weights in PyTorch layout (Cout, Cin, kH, kW)
        'conv1_w': 0.1 * jax.random.normal(k1, (C1, Cin, 3, 3), jnp.float32),
        'conv1_b': 0.1 * jax.random.normal(k2, (C1,), jnp.float32),
        'conv2_w': 0.1 * jax.random.normal(k3, (C2, C1, 3, 3), jnp.float32),
        'conv2_b': 0.1 * jax.random.normal(k4, (C2,), jnp.float32),
        # Linear weight stored pre-transposed as (in_features, out_features)
        'fc_w_t': 0.1 * jax.random.normal(k5, (feat_dim, num_classes), jnp.float32),
        'fc_b': 0.1 * jax.random.normal(k6, (num_classes,), jnp.float32),
    }

    out = jax.jit(flower_classifier_forward)(x, params)
    out = jax.block_until_ready(out)

    assert out.shape == (N, num_classes), out.shape
    # forward returns probabilities (softmax) -> rows sum to 1
    assert bool(jnp.allclose(jnp.sum(out, axis=1), 1.0, atol=1e-3))
    assert bool(jnp.all(out >= 0.0))

    print("KERNEL_OK")
</pallas_src>

<mosaic_0001>
module attributes {stable_mosaic.version = 11 : i64} {
  func.func @kernel(%arg0: i32, %arg1: i32, %arg2: i32, %arg3: memref<1x18x18x8xbf16, #tpu.memory_space<vmem>>, %arg4: memref<9x8x8xbf16, #tpu.memory_space<vmem>>, %arg5: memref<1x8xf32, #tpu.memory_space<vmem>>, %arg6: memref<1x1x16x8xbf16, #tpu.memory_space<vmem>>) attributes {dimension_semantics = [#tpu.dimension_semantics<parallel>, #tpu.dimension_semantics<parallel>, #tpu.dimension_semantics<parallel>], iteration_bounds = array<i64: 2, 1, 16>, scalar_prefetch = 0 : i64, scratch_operands = 0 : i64, tpu.core_type = #tpu.core_type<tc>, window_params = [{transform_indices = @transform_0, window_bounds = array<i64: 1, 18, 18, 8>}, {transform_indices = @transform_1, window_bounds = array<i64: 9, 8, 8>}, {transform_indices = @transform_2, window_bounds = array<i64: 1, 8>}, {transform_indices = @transform_3, window_bounds = array<i64: 1, 1, 16, 8>}]} {
    %cst = arith.constant 0.000000e+00 : f32
    %0 = vector.broadcast %cst : f32 to vector<16x8xf32>
    %c0_i32 = arith.constant 0 : i32
    %1 = arith.addi %arg2, %c0_i32 : i32
    %c0 = arith.constant 0 : index
    %2 = arith.index_cast %1 : i32 to index
    %c0_0 = arith.constant 0 : index
    %c0_1 = arith.constant 0 : index
    %3 = vector.load %arg3[%c0, %2, %c0_0, %c0_1] : memref<1x18x18x8xbf16, #tpu.memory_space<vmem>>, vector<1x1x16x8xbf16>
    %4 = vector.shape_cast %3 : vector<1x1x16x8xbf16> to vector<16x8xbf16>
    %c0_2 = arith.constant 0 : index
    %c0_3 = arith.constant 0 : index
    %c0_4 = arith.constant 0 : index
    %5 = vector.load %arg4[%c0_2, %c0_3, %c0_4] : memref<9x8x8xbf16, #tpu.memory_space<vmem>>, vector<1x8x8xbf16>
    %6 = vector.shape_cast %5 : vector<1x8x8xbf16> to vector<8x8xbf16>
    %cst_5 = arith.constant dense<0.000000e+00> : vector<16x8xf32>
    %7 = tpu.matmul %4, %6, %cst_5 {dimension_numbers = #tpu.dot_dimension_numbers<[1], [0], [0], [1], [0, 0, 1, 1], [], []>} : vector<16x8xbf16>, vector<8x8xbf16>, vector<16x8xf32> -> vector<16x8xf32>
    %8 = arith.addf %0, %7 : vector<16x8xf32>
    %c0_i32_6 = arith.constant 0 : i32
    %9 = arith.addi %arg2, %c0_i32_6 : i32
    %c0_7 = arith.constant 0 : index
    %10 = arith.index_cast %9 : i32 to index
    %c1 = arith.constant 1 : index
    %c0_8 = arith.constant 0 : index
    %11 = vector.load %arg3[%c0_7, %10, %c1, %c0_8] : memref<1x18x18x8xbf16, #tpu.memory_space<vmem>>, vector<1x1x16x8xbf16>
    %12 = vector.shape_cast %11 : vector<1x1x16x8xbf16> to vector<16x8xbf16>
    %c1_9 = arith.constant 1 : index
    %c0_10 = arith.constant 0 : index
    %c0_11 = arith.constant 0 : index
    %13 = vector.load %arg4[%c1_9, %c0_10, %c0_11] : memref<9x8x8xbf16, #tpu.memory_space<vmem>>, vector<1x8x8xbf16>
    %14 = vector.shape_cast %13 : vector<1x8x8xbf16> to vector<8x8xbf16>
    %cst_12 = arith.constant dense<0.000000e+00> : vector<16x8xf32>
    %15 = tpu.matmul %12, %14, %cst_12 {dimension_numbers = #tpu.dot_dimension_numbers<[1], [0], [0], [1], [0, 0, 1, 1], [], []>} : vector<16x8xbf16>, vector<8x8xbf16>, vector<16x8xf32> -> vector<16x8xf32>
    %16 = arith.addf %8, %15 : vector<16x8xf32>
    %c0_i32_13 = arith.constant 0 : i32
    %17 = arith.addi %arg2, %c0_i32_13 : i32
    %c0_14 = arith.constant 0 : index
    %18 = arith.index_cast %17 : i32 to index
    %c2 = arith.constant 2 : index
    %c0_15 = arith.constant 0 : index
    %19 = vector.load %arg3[%c0_14, %18, %c2, %c0_15] : memref<1x18x18x8xbf16, #tpu.memory_space<vmem>>, vector<1x1x16x8xbf16>
    %20 = vector.shape_cast %19 : vector<1x1x16x8xbf16> to vector<16x8xbf16>
    %c2_16 = arith.constant 2 : index
    %c0_17 = arith.constant 0 : index
    %c0_18 = arith.constant 0 : index
    %21 = vector.load %arg4[%c2_16, %c0_17, %c0_18] : memref<9x8x8xbf16, #tpu.memory_space<vmem>>, vector<1x8x8xbf16>
    %22 = vector.shape_cast %21 : vector<1x8x8xbf16> to vector<8x8xbf16>
    %cst_19 = arith.constant dense<0.000000e+00> : vector<16x8xf32>
    %23 = tpu.matmul %20, %22, %cst_19 {dimension_numbers = #tpu.dot_dimension_numbers<[1], [0], [0], [1], [0, 0, 1, 1], [], []>} : vector<16x8xbf16>, vector<8x8xbf16>, vector<16x8xf32> -> vector<16x8xf32>
    %24 = arith.addf %16, %23 : vector<16x8xf32>
    %c1_i32 = arith.constant 1 : i32
    %25 = arith.addi %arg2, %c1_i32 : i32
    %c0_20 = arith.constant 0 : index
    %26 = arith.index_cast %25 : i32 to index
    %c0_21 = arith.constant 0 : index
    %c0_22 = arith.constant 0 : index
    %27 = vector.load %arg3[%c0_20, %26, %c0_21, %c0_22] : memref<1x18x18x8xbf16, #tpu.memory_space<vmem>>, vector<1x1x16x8xbf16>
    %28 = vector.shape_cast %27 : vector<1x1x16x8xbf16> to vector<16x8xbf16>
    %c3 = arith.constant 3 : index
    %c0_23 = arith.constant 0 : index
    %c0_24 = arith.constant 0 : index
    %29 = vector.load %arg4[%c3, %c0_23, %c0_24] : memref<9x8x8xbf16, #tpu.memory_space<vmem>>, vector<1x8x8xbf16>
    %30 = vector.shape_cast %29 : vector<1x8x8xbf16> to vector<8x8xbf16>
    %cst_25 = arith.constant dense<0.000000e+00> : vector<16x8xf32>
    %31 = tpu.matmul %28, %30, %cst_25 {dimension_numbers = #tpu.dot_dimension_numbers<[1], [0], [0], [1], [0, 0, 1, 1], [], []>} : vector<16x8xbf16>, vector<8x8xbf16>, vector<16x8xf32> -> vector<16x8xf32>
    %32 = arith.addf %24, %31 : vector<16x8xf32>
    %c1_i32_26 = arith.constant 1 : i32
    %33 = arith.addi %arg2, %c1_i32_26 : i32
    %c0_27 = arith.constant 0 : index
    %34 = arith.index_cast %33 : i32 to index
    %c1_28 = arith.constant 1 : index
    %c0_29 = arith.constant 0 : index
    %35 = vector.load %arg3[%c0_27, %34, %c1_28, %c0_29] : memref<1x18x18x8xbf16, #tpu.memory_space<vmem>>, vector<1x1x16x8xbf16>
    %36 = vector.shape_cast %35 : vector<1x1x16x8xbf16> to vector<16x8xbf16>
    %c4 = arith.constant 4 : index
    %c0_30 = arith.constant 0 : index
    %c0_31 = arith.constant 0 : index
    %37 = vector.load %arg4[%c4, %c0_30, %c0_31] : memref<9x8x8xbf16, #tpu.memory_space<vmem>>, vector<1x8x8xbf16>
    %38 = vector.shape_cast %37 : vector<1x8x8xbf16> to vector<8x8xbf16>
    %cst_32 = arith.constant dense<0.000000e+00> : vector<16x8xf32>
    %39 = tpu.matmul %36, %38, %cst_32 {dimension_numbers = #tpu.dot_dimension_numbers<[1], [0], [0], [1], [0, 0, 1, 1], [], []>} : vector<16x8xbf16>, vector<8x8xbf16>, vector<16x8xf32> -> vector<16x8xf32>
    %40 = arith.addf %32, %39 : vector<16x8xf32>
    %c1_i32_33 = arith.constant 1 : i32
    %41 = arith.addi %arg2, %c1_i32_33 : i32
    %c0_34 = arith.constant 0 : index
    %42 = arith.index_cast %41 : i32 to index
    %c2_35 = arith.constant 2 : index
    %c0_36 = arith.constant 0 : index
    %43 = vector.load %arg3[%c0_34, %42, %c2_35, %c0_36] : memref<1x18x18x8xbf16, #tpu.memory_space<vmem>>, vector<1x1x16x8xbf16>
    %44 = vector.shape_cast %43 : vector<1x1x16x8xbf16> to vector<16x8xbf16>
    %c5 = arith.constant 5 : index
    %c0_37 = arith.constant 0 : index
    %c0_38 = arith.constant 0 : index
    %45 = vector.load %arg4[%c5, %c0_37, %c0_38] : memref<9x8x8xbf16, #tpu.memory_space<vmem>>, vector<1x8x8xbf16>
    %46 = vector.shape_cast %45 : vector<1x8x8xbf16> to vector<8x8xbf16>
    %cst_39 = arith.constant dense<0.000000e+00> : vector<16x8xf32>
    %47 = tpu.matmul %44, %46, %cst_39 {dimension_numbers = #tpu.dot_dimension_numbers<[1], [0], [0], [1], [0, 0, 1, 1], [], []>} : vector<16x8xbf16>, vector<8x8xbf16>, vector<16x8xf32> -> vector<16x8xf32>
    %48 = arith.addf %40, %47 : vector<16x8xf32>
    %c2_i32 = arith.constant 2 : i32
    %49 = arith.addi %arg2, %c2_i32 : i32
    %c0_40 = arith.constant 0 : index
    %50 = arith.index_cast %49 : i32 to index
    %c0_41 = arith.constant 0 : index
    %c0_42 = arith.constant 0 : index
    %51 = vector.load %arg3[%c0_40, %50, %c0_41, %c0_42] : memref<1x18x18x8xbf16, #tpu.memory_space<vmem>>, vector<1x1x16x8xbf16>
    %52 = vector.shape_cast %51 : vector<1x1x16x8xbf16> to vector<16x8xbf16>
    %c6 = arith.constant 6 : index
    %c0_43 = arith.constant 0 : index
    %c0_44 = arith.constant 0 : index
    %53 = vector.load %arg4[%c6, %c0_43, %c0_44] : memref<9x8x8xbf16, #tpu.memory_space<vmem>>, vector<1x8x8xbf16>
    %54 = vector.shape_cast %53 : vector<1x8x8xbf16> to vector<8x8xbf16>
    %cst_45 = arith.constant dense<0.000000e+00> : vector<16x8xf32>
    %55 = tpu.matmul %52, %54, %cst_45 {dimension_numbers = #tpu.dot_dimension_numbers<[1], [0], [0], [1], [0, 0, 1, 1], [], []>} : vector<16x8xbf16>, vector<8x8xbf16>, vector<16x8xf32> -> vector<16x8xf32>
    %56 = arith.addf %48, %55 : vector<16x8xf32>
    %c2_i32_46 = arith.constant 2 : i32
    %57 = arith.addi %arg2, %c2_i32_46 : i32
    %c0_47 = arith.constant 0 : index
    %58 = arith.index_cast %57 : i32 to index
    %c1_48 = arith.constant 1 : index
    %c0_49 = arith.constant 0 : index
    %59 = vector.load %arg3[%c0_47, %58, %c1_48, %c0_49] : memref<1x18x18x8xbf16, #tpu.memory_space<vmem>>, vector<1x1x16x8xbf16>
    %60 = vector.shape_cast %59 : vector<1x1x16x8xbf16> to vector<16x8xbf16>
    %c7 = arith.constant 7 : index
    %c0_50 = arith.constant 0 : index
    %c0_51 = arith.constant 0 : index
    %61 = vector.load %arg4[%c7, %c0_50, %c0_51] : memref<9x8x8xbf16, #tpu.memory_space<vmem>>, vector<1x8x8xbf16>
    %62 = vector.shape_cast %61 : vector<1x8x8xbf16> to vector<8x8xbf16>
    %cst_52 = arith.constant dense<0.000000e+00> : vector<16x8xf32>
    %63 = tpu.matmul %60, %62, %cst_52 {dimension_numbers = #tpu.dot_dimension_numbers<[1], [0], [0], [1], [0, 0, 1, 1], [], []>} : vector<16x8xbf16>, vector<8x8xbf16>, vector<16x8xf32> -> vector<16x8xf32>
    %64 = arith.addf %56, %63 : vector<16x8xf32>
    %c2_i32_53 = arith.constant 2 : i32
    %65 = arith.addi %arg2, %c2_i32_53 : i32
    %c0_54 = arith.constant 0 : index
    %66 = arith.index_cast %65 : i32 to index
    %c2_55 = arith.constant 2 : index
    %c0_56 = arith.constant 0 : index
    %67 = vector.load %arg3[%c0_54, %66, %c2_55, %c0_56] : memref<1x18x18x8xbf16, #tpu.memory_space<vmem>>, vector<1x1x16x8xbf16>
    %68 = vector.shape_cast %67 : vector<1x1x16x8xbf16> to vector<16x8xbf16>
    %c8 = arith.constant 8 : index
    %c0_57 = arith.constant 0 : index
    %c0_58 = arith.constant 0 : index
    %69 = vector.load %arg4[%c8, %c0_57, %c0_58] : memref<9x8x8xbf16, #tpu.memory_space<vmem>>, vector<1x8x8xbf16>
    %70 = vector.shape_cast %69 : vector<1x8x8xbf16> to vector<8x8xbf16>
    %cst_59 = arith.constant dense<0.000000e+00> : vector<16x8xf32>
    %71 = tpu.matmul %68, %70, %cst_59 {dimension_numbers = #tpu.dot_dimension_numbers<[1], [0], [0], [1], [0, 0, 1, 1], [], []>} : vector<16x8xbf16>, vector<8x8xbf16>, vector<16x8xf32> -> vector<16x8xf32>
    %72 = arith.addf %64, %71 : vector<16x8xf32>
    %c0_60 = arith.constant 0 : index
    %c0_61 = arith.constant 0 : index
    %73 = vector.load %arg5[%c0_60, %c0_61] : memref<1x8xf32, #tpu.memory_space<vmem>>, vector<1x8xf32>
    %74 = vector.broadcast %73 : vector<1x8xf32> to vector<16x8xf32>
    %75 = arith.addf %72, %74 : vector<16x8xf32>
    %cst_62 = arith.constant 0.000000e+00 : f32
    %76 = vector.broadcast %cst_62 : f32 to vector<16x8xf32>
    %77 = arith.maximumf %75, %76 : vector<16x8xf32>
    %78 = arith.truncf %77 : vector<16x8xf32> to vector<16x8xbf16>
    %c0_63 = arith.constant 0 : index
    %c0_64 = arith.constant 0 : index
    %c0_65 = arith.constant 0 : index
    %c0_66 = arith.constant 0 : index
    %79 = vector.load %arg6[%c0_63, %c0_64, %c0_65, %c0_66] : memref<1x1x16x8xbf16, #tpu.memory_space<vmem>>, vector<1x1x16x8xbf16>
    %80 = vector.shape_cast %79 : vector<1x1x16x8xbf16> to vector<16x8xbf16>
    %81 = vector.shape_cast %78 : vector<16x8xbf16> to vector<1x1x16x8xbf16>
    tpu.vector_store %arg6[%c0_63, %c0_64, %c0_65, %c0_66], %81 {strides = array<i32>} : memref<1x1x16x8xbf16, #tpu.memory_space<vmem>>, vector<1x1x16x8xbf16>,
    return
  }
  func.func @transform_0(%arg0: i32, %arg1: i32, %arg2: i32) -> (i32, i32, i32, i32) {
    %c0_i32 = arith.constant 0 : i32
    %c0_i32_0 = arith.constant 0 : i32
    %c0_i32_1 = arith.constant 0 : i32
    %c0_i32_2 = arith.constant 0 : i32
    return %arg0, %c0_i32, %c0_i32_0, %c0_i32_1 : i32, i32, i32, i32
  }
  func.func @transform_1(%arg0: i32, %arg1: i32, %arg2: i32) -> (i32, i32, i32) {
    %c0_i32 = arith.constant 0 : i32
    %c0_i32_0 = arith.constant 0 : i32
    %c0_i32_1 = arith.constant 0 : i32
    return %c0_i32, %c0_i32_0, %arg1 : i32, i32, i32
  }
  func.func @transform_2(%arg0: i32, %arg1: i32, %arg2: i32) -> (i32, i32) {
    %c0_i32 = arith.constant 0 : i32
    %c0_i32_0 = arith.constant 0 : i32
    return %c0_i32, %arg1 : i32, i32
  }
  func.func @transform_3(%arg0: i32, %arg1: i32, %arg2: i32) -> (i32, i32, i32, i32) {
    %c0_i32 = arith.constant 0 : i32
    %c0_i32_0 = arith.constant 0 : i32
    return %arg0, %arg2, %c0_i32, %arg1 : i32, i32, i32, i32
  }
}

module attributes {stable_mosaic.version = 11 : i64} {
  func.func @_maxpool2x2_kernel(%arg0: i32, %arg1: memref<16x2x8x2x8xbf16, #tpu.memory_space<vmem>>, %arg2: memref<16x8x8xbf16, #tpu.memory_space<vmem>>) attributes {dimension_semantics = [#tpu.dimension_semantics<parallel>], iteration_bounds = array<i64: 1>, scalar_prefetch = 0 : i64, scratch_operands = 0 : i64, tpu.core_type = #tpu.core_type<tc>, window_params = [{transform_indices = @transform_0, window_bounds = array<i64: 16, 2, 8, 2, 8>}, {transform_indices = @transform_1, window_bounds = array<i64: 16, 8, 8>}]} {
    %c0 = arith.constant 0 : index
    %c0_0 = arith.constant 0 : index
    %c0_1 = arith.constant 0 : index
    %c0_2 = arith.constant 0 : index
    %c0_3 = arith.constant 0 : index
    %0 = vector.load %arg1[%c0, %c0_0, %c0_1, %c0_2, %c0_3] : memref<16x2x8x2x8xbf16, #tpu.memory_space<vmem>>, vector<16x2x8x2x8xbf16>
    %1 = vector.extract_strided_slice %0 {offsets = [0, 0, 0, 0, 0], sizes = [16, 1, 8, 2, 8], strides = [1, 1, 1, 1, 1]} : vector<16x2x8x2x8xbf16> to vector<16x1x8x2x8xbf16>
    %2 = vector.shape_cast %1 : vector<16x1x8x2x8xbf16> to vector<16x8x2x8xbf16>
    %3 = vector.extract_strided_slice %0 {offsets = [0, 1, 0, 0, 0], sizes = [16, 1, 8, 2, 8], strides = [1, 1, 1, 1, 1]} : vector<16x2x8x2x8xbf16> to vector<16x1x8x2x8xbf16>
    %4 = vector.shape_cast %3 : vector<16x1x8x2x8xbf16> to vector<16x8x2x8xbf16>
    %5 = arith.maximumf %2, %4 : vector<16x8x2x8xbf16>
    %cst = arith.constant dense<0xFF80> : vector<16x8x8xbf16>
    %6 = vector.multi_reduction <maximumf>, %5, %cst [2] : vector<16x8x2x8xbf16> to vector<16x8x8xbf16>
    %c0_4 = arith.constant 0 : index
    %c0_5 = arith.constant 0 : index
    %c0_6 = arith.constant 0 : index
    %7 = vector.load %arg2[%c0_4, %c0_5, %c0_6] : memref<16x8x8xbf16, #tpu.memory_space<vmem>>, vector<16x8x8xbf16>
    tpu.vector_store %arg2[%c0_4, %c0_5, %c0_6], %6 {strides = array<i32>} : memref<16x8x8xbf16, #tpu.memory_space<vmem>>, vector<16x8x8xbf16>,
    return
  }
  func.func @transform_0(%arg0: i32) -> (i32, i32, i32, i32, i32) {
    %c0_i32 = arith.constant 0 : i32
    %c0_i32_0 = arith.constant 0 : i32
    %c0_i32_1 = arith.constant 0 : i32
    %c0_i32_2 = arith.constant 0 : i32
    %c0_i32_3 = arith.constant 0 : i32
    return %arg0, %c0_i32, %c0_i32_0, %c0_i32_1, %c0_i32_2 : i32, i32, i32, i32, i32
  }
  func.func @transform_1(%arg0: i32) -> (i32, i32, i32) {
    %c0_i32 = arith.constant 0 : i32
    %c0_i32_0 = arith.constant 0 : i32
    %c0_i32_1 = arith.constant 0 : i32
    return %arg0, %c0_i32, %c0_i32_0 : i32, i32, i32
  }
}

module attributes {stable_mosaic.version = 11 : i64} {
  func.func @kernel(%arg0: i32, %arg1: i32, %arg2: i32, %arg3: memref<1x10x10x8xbf16, #tpu.memory_space<vmem>>, %arg4: memref<9x8x16xbf16, #tpu.memory_space<vmem>>, %arg5: memref<1x16xf32, #tpu.memory_space<vmem>>, %arg6: memref<1x1x8x16xbf16, #tpu.memory_space<vmem>>) attributes {dimension_semantics = [#tpu.dimension_semantics<parallel>, #tpu.dimension_semantics<parallel>, #tpu.dimension_semantics<parallel>], iteration_bounds = array<i64: 2, 1, 8>, scalar_prefetch = 0 : i64, scratch_operands = 0 : i64, tpu.core_type = #tpu.core_type<tc>, window_params = [{transform_indices = @transform_0, window_bounds = array<i64: 1, 10, 10, 8>}, {transform_indices = @transform_1, window_bounds = array<i64: 9, 8, 16>}, {transform_indices = @transform_2, window_bounds = array<i64: 1, 16>}, {transform_indices = @transform_3, window_bounds = array<i64: 1, 1, 8, 16>}]} {
    %cst = arith.constant 0.000000e+00 : f32
    %0 = vector.broadcast %cst : f32 to vector<8x16xf32>
    %c0_i32 = arith.constant 0 : i32
    %1 = arith.addi %arg2, %c0_i32 : i32
    %c0 = arith.constant 0 : index
    %2 = arith.index_cast %1 : i32 to index
    %c0_0 = arith.constant 0 : index
    %c0_1 = arith.constant 0 : index
    %3 = vector.load %arg3[%c0, %2, %c0_0, %c0_1] : memref<1x10x10x8xbf16, #tpu.memory_space<vmem>>, vector<1x1x8x8xbf16>
    %4 = vector.shape_cast %3 : vector<1x1x8x8xbf16> to vector<8x8xbf16>
    %c0_2 = arith.constant 0 : index
    %c0_3 = arith.constant 0 : index
    %c0_4 = arith.constant 0 : index
    %5 = vector.load %arg4[%c0_2, %c0_3, %c0_4] : memref<9x8x16xbf16, #tpu.memory_space<vmem>>, vector<1x8x16xbf16>
    %6 = vector.shape_cast %5 : vector<1x8x16xbf16> to vector<8x16xbf16>
    %cst_5 = arith.constant dense<0.000000e+00> : vector<8x16xf32>
    %7 = tpu.matmul %4, %6, %cst_5 {dimension_numbers = #tpu.dot_dimension_numbers<[1], [0], [0], [1], [0, 0, 1, 1], [], []>} : vector<8x8xbf16>, vector<8x16xbf16>, vector<8x16xf32> -> vector<8x16xf32>
    %8 = arith.addf %0, %7 : vector<8x16xf32>
    %c0_i32_6 = arith.constant 0 : i32
    %9 = arith.addi %arg2, %c0_i32_6 : i32
    %c0_7 = arith.constant 0 : index
    %10 = arith.index_cast %9 : i32 to index
    %c1 = arith.constant 1 : index
    %c0_8 = arith.constant 0 : index
    %11 = vector.load %arg3[%c0_7, %10, %c1, %c0_8] : memref<1x10x10x8xbf16, #tpu.memory_space<vmem>>, vector<1x1x8x8xbf16>
    %12 = vector.shape_cast %11 : vector<1x1x8x8xbf16> to vector<8x8xbf16>
    %c1_9 = arith.constant 1 : index
    %c0_10 = arith.constant 0 : index
    %c0_11 = arith.constant 0 : index
    %13 = vector.load %arg4[%c1_9, %c0_10, %c0_11] : memref<9x8x16xbf16, #tpu.memory_space<vmem>>, vector<1x8x16xbf16>
    %14 = vector.shape_cast %13 : vector<1x8x16xbf16> to vector<8x16xbf16>
    %cst_12 = arith.constant dense<0.000000e+00> : vector<8x16xf32>
    %15 = tpu.matmul %12, %14, %cst_12 {dimension_numbers = #tpu.dot_dimension_numbers<[1], [0], [0], [1], [0, 0, 1, 1], [], []>} : vector<8x8xbf16>, vector<8x16xbf16>, vector<8x16xf32> -> vector<8x16xf32>
    %16 = arith.addf %8, %15 : vector<8x16xf32>
    %c0_i32_13 = arith.constant 0 : i32
    %17 = arith.addi %arg2, %c0_i32_13 : i32
    %c0_14 = arith.constant 0 : index
    %18 = arith.index_cast %17 : i32 to index
    %c2 = arith.constant 2 : index
    %c0_15 = arith.constant 0 : index
    %19 = vector.load %arg3[%c0_14, %18, %c2, %c0_15] : memref<1x10x10x8xbf16, #tpu.memory_space<vmem>>, vector<1x1x8x8xbf16>
    %20 = vector.shape_cast %19 : vector<1x1x8x8xbf16> to vector<8x8xbf16>
    %c2_16 = arith.constant 2 : index
    %c0_17 = arith.constant 0 : index
    %c0_18 = arith.constant 0 : index
    %21 = vector.load %arg4[%c2_16, %c0_17, %c0_18] : memref<9x8x16xbf16, #tpu.memory_space<vmem>>, vector<1x8x16xbf16>
    %22 = vector.shape_cast %21 : vector<1x8x16xbf16> to vector<8x16xbf16>
    %cst_19 = arith.constant dense<0.000000e+00> : vector<8x16xf32>
    %23 = tpu.matmul %20, %22, %cst_19 {dimension_numbers = #tpu.dot_dimension_numbers<[1], [0], [0], [1], [0, 0, 1, 1], [], []>} : vector<8x8xbf16>, vector<8x16xbf16>, vector<8x16xf32> -> vector<8x16xf32>
    %24 = arith.addf %16, %23 : vector<8x16xf32>
    %c1_i32 = arith.constant 1 : i32
    %25 = arith.addi %arg2, %c1_i32 : i32
    %c0_20 = arith.constant 0 : index
    %26 = arith.index_cast %25 : i32 to index
    %c0_21 = arith.constant 0 : index
    %c0_22 = arith.constant 0 : index
    %27 = vector.load %arg3[%c0_20, %26, %c0_21, %c0_22] : memref<1x10x10x8xbf16, #tpu.memory_space<vmem>>, vector<1x1x8x8xbf16>
    %28 = vector.shape_cast %27 : vector<1x1x8x8xbf16> to vector<8x8xbf16>
    %c3 = arith.constant 3 : index
    %c0_23 = arith.constant 0 : index
    %c0_24 = arith.constant 0 : index
    %29 = vector.load %arg4[%c3, %c0_23, %c0_24] : memref<9x8x16xbf16, #tpu.memory_space<vmem>>, vector<1x8x16xbf16>
    %30 = vector.shape_cast %29 : vector<1x8x16xbf16> to vector<8x16xbf16>
    %cst_25 = arith.constant dense<0.000000e+00> : vector<8x16xf32>
    %31 = tpu.matmul %28, %30, %cst_25 {dimension_numbers = #tpu.dot_dimension_numbers<[1], [0], [0], [1], [0, 0, 1, 1], [], []>} : vector<8x8xbf16>, vector<8x16xbf16>, vector<8x16xf32> -> vector<8x16xf32>
    %32 = arith.addf %24, %31 : vector<8x16xf32>
    %c1_i32_26 = arith.constant 1 : i32
    %33 = arith.addi %arg2, %c1_i32_26 : i32
    %c0_27 = arith.constant 0 : index
    %34 = arith.index_cast %33 : i32 to index
    %c1_28 = arith.constant 1 : index
    %c0_29 = arith.constant 0 : index
    %35 = vector.load %arg3[%c0_27, %34, %c1_28, %c0_29] : memref<1x10x10x8xbf16, #tpu.memory_space<vmem>>, vector<1x1x8x8xbf16>
    %36 = vector.shape_cast %35 : vector<1x1x8x8xbf16> to vector<8x8xbf16>
    %c4 = arith.constant 4 : index
    %c0_30 = arith.constant 0 : index
    %c0_31 = arith.constant 0 : index
    %37 = vector.load %arg4[%c4, %c0_30, %c0_31] : memref<9x8x16xbf16, #tpu.memory_space<vmem>>, vector<1x8x16xbf16>
    %38 = vector.shape_cast %37 : vector<1x8x16xbf16> to vector<8x16xbf16>
    %cst_32 = arith.constant dense<0.000000e+00> : vector<8x16xf32>
    %39 = tpu.matmul %36, %38, %cst_32 {dimension_numbers = #tpu.dot_dimension_numbers<[1], [0], [0], [1], [0, 0, 1, 1], [], []>} : vector<8x8xbf16>, vector<8x16xbf16>, vector<8x16xf32> -> vector<8x16xf32>
    %40 = arith.addf %32, %39 : vector<8x16xf32>
    %c1_i32_33 = arith.constant 1 : i32
    %41 = arith.addi %arg2, %c1_i32_33 : i32
    %c0_34 = arith.constant 0 : index
    %42 = arith.index_cast %41 : i32 to index
    %c2_35 = arith.constant 2 : index
    %c0_36 = arith.constant 0 : index
    %43 = vector.load %arg3[%c0_34, %42, %c2_35, %c0_36] : memref<1x10x10x8xbf16, #tpu.memory_space<vmem>>, vector<1x1x8x8xbf16>
    %44 = vector.shape_cast %43 : vector<1x1x8x8xbf16> to vector<8x8xbf16>
    %c5 = arith.constant 5 : index
    %c0_37 = arith.constant 0 : index
    %c0_38 = arith.constant 0 : index
    %45 = vector.load %arg4[%c5, %c0_37, %c0_38] : memref<9x8x16xbf16, #tpu.memory_space<vmem>>, vector<1x8x16xbf16>
    %46 = vector.shape_cast %45 : vector<1x8x16xbf16> to vector<8x16xbf16>
    %cst_39 = arith.constant dense<0.000000e+00> : vector<8x16xf32>
    %47 = tpu.matmul %44, %46, %cst_39 {dimension_numbers = #tpu.dot_dimension_numbers<[1], [0], [0], [1], [0, 0, 1, 1], [], []>} : vector<8x8xbf16>, vector<8x16xbf16>, vector<8x16xf32> -> vector<8x16xf32>
    %48 = arith.addf %40, %47 : vector<8x16xf32>
    %c2_i32 = arith.constant 2 : i32
    %49 = arith.addi %arg2, %c2_i32 : i32
    %c0_40 = arith.constant 0 : index
    %50 = arith.index_cast %49 : i32 to index
    %c0_41 = arith.constant 0 : index
    %c0_42 = arith.constant 0 : index
    %51 = vector.load %arg3[%c0_40, %50, %c0_41, %c0_42] : memref<1x10x10x8xbf16, #tpu.memory_space<vmem>>, vector<1x1x8x8xbf16>
    %52 = vector.shape_cast %51 : vector<1x1x8x8xbf16> to vector<8x8xbf16>
    %c6 = arith.constant 6 : index
    %c0_43 = arith.constant 0 : index
    %c0_44 = arith.constant 0 : index
    %53 = vector.load %arg4[%c6, %c0_43, %c0_44] : memref<9x8x16xbf16, #tpu.memory_space<vmem>>, vector<1x8x16xbf16>
    %54 = vector.shape_cast %53 : vector<1x8x16xbf16> to vector<8x16xbf16>
    %cst_45 = arith.constant dense<0.000000e+00> : vector<8x16xf32>
    %55 = tpu.matmul %52, %54, %cst_45 {dimension_numbers = #tpu.dot_dimension_numbers<[1], [0], [0], [1], [0, 0, 1, 1], [], []>} : vector<8x8xbf16>, vector<8x16xbf16>, vector<8x16xf32> -> vector<8x16xf32>
    %56 = arith.addf %48, %55 : vector<8x16xf32>
    %c2_i32_46 = arith.constant 2 : i32
    %57 = arith.addi %arg2, %c2_i32_46 : i32
    %c0_47 = arith.constant 0 : index
    %58 = arith.index_cast %57 : i32 to index
    %c1_48 = arith.constant 1 : index
    %c0_49 = arith.constant 0 : index
    %59 = vector.load %arg3[%c0_47, %58, %c1_48, %c0_49] : memref<1x10x10x8xbf16, #tpu.memory_space<vmem>>, vector<1x1x8x8xbf16>
    %60 = vector.shape_cast %59 : vector<1x1x8x8xbf16> to vector<8x8xbf16>
    %c7 = arith.constant 7 : index
    %c0_50 = arith.constant 0 : index
    %c0_51 = arith.constant 0 : index
    %61 = vector.load %arg4[%c7, %c0_50, %c0_51] : memref<9x8x16xbf16, #tpu.memory_space<vmem>>, vector<1x8x16xbf16>
    %62 = vector.shape_cast %61 : vector<1x8x16xbf16> to vector<8x16xbf16>
    %cst_52 = arith.constant dense<0.000000e+00> : vector<8x16xf32>
    %63 = tpu.matmul %60, %62, %cst_52 {dimension_numbers = #tpu.dot_dimension_numbers<[1], [0], [0], [1], [0, 0, 1, 1], [], []>} : vector<8x8xbf16>, vector<8x16xbf16>, vector<8x16xf32> -> vector<8x16xf32>
    %64 = arith.addf %56, %63 : vector<8x16xf32>
    %c2_i32_53 = arith.constant 2 : i32
    %65 = arith.addi %arg2, %c2_i32_53 : i32
    %c0_54 = arith.constant 0 : index
    %66 = arith.index_cast %65 : i32 to index
    %c2_55 = arith.constant 2 : index
    %c0_56 = arith.constant 0 : index
    %67 = vector.load %arg3[%c0_54, %66, %c2_55, %c0_56] : memref<1x10x10x8xbf16, #tpu.memory_space<vmem>>, vector<1x1x8x8xbf16>
    %68 = vector.shape_cast %67 : vector<1x1x8x8xbf16> to vector<8x8xbf16>
    %c8 = arith.constant 8 : index
    %c0_57 = arith.constant 0 : index
    %c0_58 = arith.constant 0 : index
    %69 = vector.load %arg4[%c8, %c0_57, %c0_58] : memref<9x8x16xbf16, #tpu.memory_space<vmem>>, vector<1x8x16xbf16>
    %70 = vector.shape_cast %69 : vector<1x8x16xbf16> to vector<8x16xbf16>
    %cst_59 = arith.constant dense<0.000000e+00> : vector<8x16xf32>
    %71 = tpu.matmul %68, %70, %cst_59 {dimension_numbers = #tpu.dot_dimension_numbers<[1], [0], [0], [1], [0, 0, 1, 1], [], []>} : vector<8x8xbf16>, vector<8x16xbf16>, vector<8x16xf32> -> vector<8x16xf32>
    %72 = arith.addf %64, %71 : vector<8x16xf32>
    %c0_60 = arith.constant 0 : index
    %c0_61 = arith.constant 0 : index
    %73 = vector.load %arg5[%c0_60, %c0_61] : memref<1x16xf32, #tpu.memory_space<vmem>>, vector<1x16xf32>
    %74 = vector.broadcast %73 : vector<1x16xf32> to vector<8x16xf32>
    %75 = arith.addf %72, %74 : vector<8x16xf32>
    %cst_62 = arith.constant 0.000000e+00 : f32
    %76 = vector.broadcast %cst_62 : f32 to vector<8x16xf32>
    %77 = arith.maximumf %75, %76 : vector<8x16xf32>
    %78 = arith.truncf %77 : vector<8x16xf32> to vector<8x16xbf16>
    %c0_63 = arith.constant 0 : index
    %c0_64 = arith.constant 0 : index
    %c0_65 = arith.constant 0 : index
    %c0_66 = arith.constant 0 : index
    %79 = vector.load %arg6[%c0_63, %c0_64, %c0_65, %c0_66] : memref<1x1x8x16xbf16, #tpu.memory_space<vmem>>, vector<1x1x8x16xbf16>
    %80 = vector.shape_cast %79 : vector<1x1x8x16xbf16> to vector<8x16xbf16>
    %81 = vector.shape_cast %78 : vector<8x16xbf16> to vector<1x1x8x16xbf16>
    tpu.vector_store %arg6[%c0_63, %c0_64, %c0_65, %c0_66], %81 {strides = array<i32>} : memref<1x1x8x16xbf16, #tpu.memory_space<vmem>>, vector<1x1x8x16xbf16>,
    return
  }
  func.func @transform_0(%arg0: i32, %arg1: i32, %arg2: i32) -> (i32, i32, i32, i32) {
    %c0_i32 = arith.constant 0 : i32
    %c0_i32_0 = arith.constant 0 : i32
    %c0_i32_1 = arith.constant 0 : i32
    %c0_i32_2 = arith.constant 0 : i32
    return %arg0, %c0_i32, %c0_i32_0, %c0_i32_1 : i32, i32, i32, i32
  }
  func.func @transform_1(%arg0: i32, %arg1: i32, %arg2: i32) -> (i32, i32, i32) {
    %c0_i32 = arith.constant 0 : i32
    %c0_i32_0 = arith.constant 0 : i32
    %c0_i32_1 = arith.constant 0 : i32
    return %c0_i32, %c0_i32_0, %arg1 : i32, i32, i32
  }
  func.func @transform_2(%arg0: i32, %arg1: i32, %arg2: i32) -> (i32, i32) {
    %c0_i32 = arith.constant 0 : i32
    %c0_i32_0 = arith.constant 0 : i32
    return %c0_i32, %arg1 : i32, i32
  }
  func.func @transform_3(%arg0: i32, %arg1: i32, %arg2: i32) -> (i32, i32, i32, i32) {
    %c0_i32 = arith.constant 0 : i32
    %c0_i32_0 = arith.constant 0 : i32
    return %arg0, %arg2, %c0_i32, %arg1 : i32, i32, i32, i32
  }
}

module attributes {stable_mosaic.version = 11 : i64} {
  func.func @_maxpool2x2_kernel(%arg0: i32, %arg1: memref<8x2x4x2x16xbf16, #tpu.memory_space<vmem>>, %arg2: memref<8x4x16xbf16, #tpu.memory_space<vmem>>) attributes {dimension_semantics = [#tpu.dimension_semantics<parallel>], iteration_bounds = array<i64: 1>, scalar_prefetch = 0 : i64, scratch_operands = 0 : i64, tpu.core_type = #tpu.core_type<tc>, window_params = [{transform_indices = @transform_0, window_bounds = array<i64: 8, 2, 4, 2, 16>}, {transform_indices = @transform_1, window_bounds = array<i64: 8, 4, 16>}]} {
    %c0 = arith.constant 0 : index
    %c0_0 = arith.constant 0 : index
    %c0_1 = arith.constant 0 : index
    %c0_2 = arith.constant 0 : index
    %c0_3 = arith.constant 0 : index
    %0 = vector.load %arg1[%c0, %c0_0, %c0_1, %c0_2, %c0_3] : memref<8x2x4x2x16xbf16, #tpu.memory_space<vmem>>, vector<8x2x4x2x16xbf16>
    %1 = vector.extract_strided_slice %0 {offsets = [0, 0, 0, 0, 0], sizes = [8, 1, 4, 2, 16], strides = [1, 1, 1, 1, 1]} : vector<8x2x4x2x16xbf16> to vector<8x1x4x2x16xbf16>
    %2 = vector.shape_cast %1 : vector<8x1x4x2x16xbf16> to vector<8x4x2x16xbf16>
    %3 = vector.extract_strided_slice %0 {offsets = [0, 1, 0, 0, 0], sizes = [8, 1, 4, 2, 16], strides = [1, 1, 1, 1, 1]} : vector<8x2x4x2x16xbf16> to vector<8x1x4x2x16xbf16>
    %4 = vector.shape_cast %3 : vector<8x1x4x2x16xbf16> to vector<8x4x2x16xbf16>
    %5 = arith.maximumf %2, %4 : vector<8x4x2x16xbf16>
    %cst = arith.constant dense<0xFF80> : vector<8x4x16xbf16>
    %6 = vector.multi_reduction <maximumf>, %5, %cst [2] : vector<8x4x2x16xbf16> to vector<8x4x16xbf16>
    %c0_4 = arith.constant 0 : index
    %c0_5 = arith.constant 0 : index
    %c0_6 = arith.constant 0 : index
    %7 = vector.load %arg2[%c0_4, %c0_5, %c0_6] : memref<8x4x16xbf16, #tpu.memory_space<vmem>>, vector<8x4x16xbf16>
    tpu.vector_store %arg2[%c0_4, %c0_5, %c0_6], %6 {strides = array<i32>} : memref<8x4x16xbf16, #tpu.memory_space<vmem>>, vector<8x4x16xbf16>,
    return
  }
  func.func @transform_0(%arg0: i32) -> (i32, i32, i32, i32, i32) {
    %c0_i32 = arith.constant 0 : i32
    %c0_i32_0 = arith.constant 0 : i32
    %c0_i32_1 = arith.constant 0 : i32
    %c0_i32_2 = arith.constant 0 : i32
    %c0_i32_3 = arith.constant 0 : i32
    return %arg0, %c0_i32, %c0_i32_0, %c0_i32_1, %c0_i32_2 : i32, i32, i32, i32, i32
  }
  func.func @transform_1(%arg0: i32) -> (i32, i32, i32) {
    %c0_i32 = arith.constant 0 : i32
    %c0_i32_0 = arith.constant 0 : i32
    %c0_i32_1 = arith.constant 0 : i32
    return %arg0, %c0_i32, %c0_i32_0 : i32, i32, i32
  }
}

module attributes {stable_mosaic.version = 11 : i64} {
  func.func @_linear_softmax_kernel(%arg0: i32, %arg1: i32, %arg2: memref<8x256xbf16, #tpu.memory_space<vmem>>, %arg3: memref<256x128xbf16, #tpu.memory_space<vmem>>, %arg4: memref<1x128xf32, #tpu.memory_space<vmem>>, %arg5: memref<8x128xf32, #tpu.memory_space<vmem>>, %arg6: memref<8x128xf32, #tpu.memory_space<vmem>>) attributes {dimension_semantics = [#tpu.dimension_semantics<parallel>, #tpu.dimension_semantics<arbitrary>], iteration_bounds = array<i64: 1, 1>, scalar_prefetch = 0 : i64, scratch_operands = 1 : i64, tpu.core_type = #tpu.core_type<tc>, window_params = [{transform_indices = @transform_0, window_bounds = array<i64: 8, 256>}, {transform_indices = @transform_1, window_bounds = array<i64: 256, 128>}, {pipeline_mode = #tpu.pipeline_mode<synchronous>, transform_indices = @transform_2, window_bounds = array<i64: 1, 128>}, {transform_indices = @transform_3, window_bounds = array<i64: 8, 128>}]} {
    %c0_i32 = arith.constant 0 : i32
    %0 = arith.cmpi eq, %arg1, %c0_i32 : i32
    %1 = arith.extui %0 : i1 to i32
    %c0_i32_0 = arith.constant 0 : i32
    %2 = arith.cmpi ne, %1, %c0_i32_0 : i32
    scf.if %2 {
      %cst_10 = arith.constant 0.000000e+00 : f32
      %12 = vector.broadcast %cst_10 : f32 to vector<8x128xf32>
      %c0_11 = arith.constant 0 : index
      %c0_12 = arith.constant 0 : index
      %13 = vector.load %arg6[%c0_11, %c0_12] : memref<8x128xf32, #tpu.memory_space<vmem>>, vector<8x128xf32>
      tpu.vector_store %arg6[%c0_11, %c0_12], %12 {strides = array<i32>} : memref<8x128xf32, #tpu.memory_space<vmem>>, vector<8x128xf32>,
    } else {
    }
    %c0 = arith.constant 0 : index
    %c0_1 = arith.constant 0 : index
    %3 = vector.load %arg6[%c0, %c0_1] : memref<8x128xf32, #tpu.memory_space<vmem>>, vector<8x128xf32>
    %c0_2 = arith.constant 0 : index
    %c0_3 = arith.constant 0 : index
    %4 = vector.load %arg2[%c0_2, %c0_3] : memref<8x256xbf16, #tpu.memory_space<vmem>>, vector<8x256xbf16>
    %c0_4 = arith.constant 0 : index
    %c0_5 = arith.constant 0 : index
    %5 = vector.load %arg3[%c0_4, %c0_5] : memref<256x128xbf16, #tpu.memory_space<vmem>>, vector<256x128xbf16>
    %cst = arith.constant dense<0.000000e+00> : vector<8x128xf32>
    %6 = tpu.matmul %4, %5, %cst {dimension_numbers = #tpu.dot_dimension_numbers<[1], [0], [0], [1], [0, 0, 1, 1], [], []>} : vector<8x256xbf16>, vector<256x128xbf16>, vector<8x128xf32> -> vector<8x128xf32>
    %7 = arith.addf %3, %6 : vector<8x128xf32>
    %c0_6 = arith.constant 0 : index
    %c0_7 = arith.constant 0 : index
    %8 = vector.load %arg6[%c0_6, %c0_7] : memref<8x128xf32, #tpu.memory_space<vmem>>, vector<8x128xf32>
    tpu.vector_store %arg6[%c0_6, %c0_7], %7 {strides = array<i32>} : memref<8x128xf32, #tpu.memory_space<vmem>>, vector<8x128xf32>,
    %c0_i32_8 = arith.constant 0 : i32
    %9 = arith.cmpi eq, %arg1, %c0_i32_8 : i32
    %10 = arith.extui %9 : i1 to i32
    %c0_i32_9 = arith.constant 0 : i32
    %11 = arith.cmpi ne, %10, %c0_i32_9 : i32
    scf.if %11 {
      %c0_10 = arith.constant 0 : index
      %c0_11 = arith.constant 0 : index
      %12 = vector.load %arg6[%c0_10, %c0_11] : memref<8x128xf32, #tpu.memory_space<vmem>>, vector<8x128xf32>
      %c0_12 = arith.constant 0 : index
      %c0_13 = arith.constant 0 : index
      %13 = vector.load %arg4[%c0_12, %c0_13] : memref<1x128xf32, #tpu.memory_space<vmem>>, vector<1x128xf32>
      %14 = vector.broadcast %13 : vector<1x128xf32> to vector<8x128xf32>
      %15 = arith.addf %12, %14 : vector<8x128xf32>
      %cst_14 = arith.constant dense<0xFF800000> : vector<8xf32>
      %16 = vector.multi_reduction <maximumf>, %15, %cst_14 [1] : vector<8x128xf32> to vector<8xf32>
      %17 = vector.shape_cast %16 : vector<8xf32> to vector<8x1xf32>
      %18 = vector.broadcast %17 : vector<8x1xf32> to vector<8x128xf32>
      %19 = arith.subf %15, %18 : vector<8x128xf32>
      %20 = math.exp %19 : vector<8x128xf32>
      %cst_15 = arith.constant dense<0.000000e+00> : vector<8xf32>
      %21 = vector.multi_reduction <add>, %20, %cst_15 [1] : vector<8x128xf32> to vector<8xf32>
      %22 = vector.shape_cast %21 : vector<8xf32> to vector<8x1xf32>
      %23 = tpu.reciprocal %22 {approx = true} : vector<8x1xf32> -> vector<8x1xf32>
      %24 = arith.mulf %22, %23 : vector<8x1xf32>
      %cst_16 = arith.constant 2.000000e+00 : f32
      %25 = vector.broadcast %cst_16 : f32 to vector<8x1xf32>
      %26 = arith.subf %25, %24 : vector<8x1xf32>
      %27 = arith.mulf %23, %26 : vector<8x1xf32>
      %28 = vector.broadcast %27 : vector<8x1xf32> to vector<8x128xf32>
      %29 = arith.mulf %20, %28 : vector<8x128xf32>
      %c0_17 = arith.constant 0 : index
      %c0_18 = arith.constant 0 : index
      %30 = vector.load %arg5[%c0_17, %c0_18] : memref<8x128xf32, #tpu.memory_space<vmem>>, vector<8x128xf32>
      tpu.vector_store %arg5[%c0_17, %c0_18], %29 {strides = array<i32>} : memref<8x128xf32, #tpu.memory_space<vmem>>, vector<8x128xf32>,
    } else {
    }
    return
  }
  func.func @transform_0(%arg0: i32, %arg1: i32) -> (i32, i32) {
    %c0_i32 = arith.constant 0 : i32
    return %arg0, %arg1 : i32, i32
  }
  func.func @transform_1(%arg0: i32, %arg1: i32) -> (i32, i32) {
    %c0_i32 = arith.constant 0 : i32
    %c0_i32_0 = arith.constant 0 : i32
    return %arg1, %c0_i32 : i32, i32
  }
  func.func @transform_2(%arg0: i32, %arg1: i32) -> (i32, i32) {
    %c0_i32 = arith.constant 0 : i32
    %c0_i32_0 = arith.constant 0 : i32
    %c0_i32_1 = arith.constant 0 : i32
    return %c0_i32, %c0_i32_0 : i32, i32
  }
  func.func @transform_3(%arg0: i32, %arg1: i32) -> (i32, i32) {
    %c0_i32 = arith.constant 0 : i32
    %c0_i32_0 = arith.constant 0 : i32
    return %arg0, %c0_i32 : i32, i32
  }
}

</mosaic_0001>

<bundles_post_ra>
// kernel: flower_classifier_forward.7
= control target key start
LH: loop header
LB: loop body
LE: loop exit
PB: predicated region body
PF: predicated region fallthrough
CT: control target
= control target key end

     0   :  { %s1121_s12 = smov 0   ;;  %s1123_s13 = smov 0   ;;  %s1269_s0 = inlined_call_operand.vmem [shape: bf16[2,10,10,8], index: 0, kind: input, shape index: {}]   ;;  %s1270_s1 = inlined_call_operand.vmem [shape: bf16[9,8,16], index: 1, kind: input, shape index: {}]   ;;  %s1271_s2 = inlined_call_operand.vmem [shape: f32[1,16], index: 2, kind: input, shape index: {}]   ;;  %s1272_s3 = inlined_call_operand.vmem [shape: bf16[2,8,8,16], index: 3, kind: output, shape index: {}]  }
   0x1   :  { %s1125_s14 = smov 0   ;;  %s1127_s15 = smov 0  }
   0x2   :  { %s1129_s16 = smov 0  }
   0x3 LB: > { %s25_s17 = sadd.s32 1, %s1089_s14  ;;  %s32_s18 = sadd.s32 1, %s1093_s15  ;;  %s1097_s16 = sphi %s1129_s16, %s13_s16   ;;  %s1093_s15 = sphi %s1127_s15, %s1276_s15   ;;  %s1089_s14 = sphi %s1125_s14, %s1275_s14   ;;  %s1085_s13 = sphi %s1123_s13, %s1274_s13   ;;  %s1081_s12 = sphi %s1121_s12, %s1273_s12  }
   0x4   : > { %p26_p0 = scmp.ge.s32.totalorder %s25_s17, 8  ;;  %p895_p1 = scmp.ge.s32.totalorder %s1097_s16, 1 }
   0x5   : > { %p177_p2 = scmp.lt.s32.totalorder %s1097_s16, 17 }
   0x6   : > { %s1278_s17 = smov (%p26_p0, %s25_s17), 0  ;;  %s1280_s18 = smov (!%p26_p0, %s32_s18), %s1093_s15 }
   0x7   : > { %p178_p3 = pnand %p895_p1, %p177_p2  ;;  %p34_p4 = scmp.ge.s32.totalorder %s1280_s18, 2 }
   0x8   : > { %v901_v0 = vld [vmem:[%s1270_s1 + $0x4] sm:$0xf] (!%p178_p3)  ;;  %vm262_vm0 = vcmask (!%p178_p3), 1043456   ;;  %v242_v1 = vld [vmem:[%s1270_s1] sm:$0xf] (!%p178_p3)  ;;  %v1099_v2 = vmov (!%p178_p3), 0.0  }
   0x9   : > { %s1282_s18 = smov (%p34_p4, %s1280_s18), 0  ;;  %181 = sbr.rel (%p178_p3) target bundleno = 283 (0x11b), region = 32 }
   0xa   : > { %956 = vmatprep.subr.bf16.mxu0 (!%p178_p3), %v1099_v2  ;;  %v264_v3 = vsel (!%p178_p3), %vm262_vm0, %v901_v0, 0  ;;  %962 = vmatprep.subr.bf16.mxu1 (!%p178_p3), %v1099_v2  ;;  %v310_v4 = vsel (!%p178_p3), %vm262_vm0, %v242_v1, 0  ;;  %p214_p5 = scmp.lt.s32.totalorder (!%p178_p3), %s1085_s13, 1  ;;  %vm1100_vm1 = vmmov (!%p178_p3), 0   ;;  %s937_s24 = sshll.u32 (!%p178_p3), %s1081_s12, 3  ;;  %vm258_vm2 = vcmask (!%p178_p3), 64512  }
   0xb   : > { %957 = vmatpush3.bf16.msra.mxu0 (!%p178_p3), %v264_v3  ;;  %963 = vmatpush3.bf16.msra.mxu1 (!%p178_p3), %v310_v4  ;;  %v910_v5 = vld [vmem:[%s1270_s1 + $0xc] sm:$0xf] (!%p178_p3)  ;;  %v905_v12 = vld [vmem:[%s1270_s1 + $0x8] sm:$0xf] (!%p178_p3)  ;;  %v918_v15 = vld [vmem:[%s1270_s1 + $0x14] sm:$0xf] (!%p178_p3) }
   0xc   : > { %958 = vmatprep.mubr.msk.bf16.mxu0 (!%p178_p3), %vm1100_vm1, %v1099_v2  ;;  %964 = vmatprep.mubr.msk.bf16.mxu1 (!%p178_p3), %vm1100_vm1, %v1099_v2  ;;  %v417_v6 = vsel (!%p178_p3), %vm262_vm0, %v910_v5, 0  ;;  %v363_v23 = vsel (!%p178_p3), %vm262_vm0, %v905_v12, 0  ;;  %v534_v25 = vsel (!%p178_p3), %vm262_vm0, %v918_v15, 0  ;;  %v914_v29 = vld [vmem:[%s1270_s1 + $0x10] sm:$0xf] (!%p178_p3)  ;;  %p228_p6 = scmp.lt.s32.totalorder (!%p178_p3), %s1081_s12, 7 }
   0xd   : > { %968 = vmatprep.subr.bf16.mxu0 (!%p178_p3), %v1099_v2  ;;  %974 = vmatprep.subr.bf16.mxu1 (!%p178_p3), %v1099_v2  ;;  %v927_v33 = vld [vmem:[%s1270_s1 + $0x1c] sm:$0xf] (!%p178_p3)  ;;  %v480_v35 = vsel (!%p178_p3), %vm262_vm0, %v914_v29, 0  ;;  %v923_v41 = vld [vmem:[%s1270_s1 + $0x18] sm:$0xf] (!%p178_p3)  ;;  %vm758_vm3 = vcmask (!%p178_p3), 125952  }
   0xe   : > { %v651_v36 = vsel (!%p178_p3), %vm262_vm0, %v927_v33, 0  ;;  %v588_v44 = vsel (!%p178_p3), %vm262_vm0, %v923_v41, 0  ;;  %v931_v45 = vld [vmem:[%s1270_s1 + $0x20] sm:$0xf] (!%p178_p3) }
   0xf   : > { %v705_v48 = vsel (!%p178_p3), %vm262_vm0, %v931_v45, 0 }
  0x10   : > { %s1284_s13 = smov (!%p214_p5, %s1085_s13), 1  ;;  %s1286_s12 = smov (!%p228_p6, %s1081_s12), 7 }
  0x11   : > { %s1010_s23 = smul.u32 80, %s1284_s13 }
  0x13   : > { %s218_s29 = scalar_lea.vmem %s1269_s0, %s1010_s23  ;;  %s897_s23 = sshll.u32 %s1284_s13, 3 }
  0x14   : > { %s1179_s30 = scalar_lea.vmem %s218_s29, %s937_s24  ;;  %s234_s24 = sadd.s32 %s897_s23, %s1286_s12 }
  0x15   : > { %v241_v7 = vld [vmem:[%s1179_s30] sm:$0xf]  ;;  %v243_v8 = vld [vmem:[%s1179_s30 + $0x4] sm:$0x1]  ;;  %v909_v14 = vld [vmem:[%s1179_s30 + $0x8] sm:$0xf] }
  0x16   : > { %v902_v9 = vcombine.low %v241_v7, %v243_v8  ;;  %965 = vmatmul.mubr.msk.bf16.vlgmr.msra.gmra.mrb[0].mxu1 %vm258_vm2, %v241_v7  ;;  %v352_v13 = vld [vmem:[%s1179_s30] sm:$0xe]  ;;  %v912_v17 = vld [vmem:[%s1179_s30 + $0x8] sm:$0xf]  ;;  %v913_v18 = vld [vmem:[%s1179_s30 + $0xc] sm:$0x1] }
  0x17   : > { %975 = vmatpush3.bf16.msra.mxu1 %v417_v6  ;;  %976 = vmatprep.mubr.msk.bf16.mxu1 %vm1100_vm1, %v1099_v2  ;;  %v917_v19 = vld [vmem:[%s1179_s30 + $0x8] sm:$0xe]  ;;  %v925_v20 = vld [vmem:[%s1179_s30 + $0x10] sm:$0xf]  ;;  %v926_v21 = vld [vmem:[%s1179_s30 + $0x14] sm:$0x1]  ;;  %v906_v24 = vcombine.low %v352_v13, %v243_v8  ;;  %v915_v26 = vcombine.low %v912_v17, %v913_v18 }
  0x18   : > { %v252_v10 = vshrl.u32 %v902_v9, 16  ;;  %v254_v11 = vshll.u32 %v902_v9, 16  ;;  %986 = vmatprep.subr.bf16.mxu1 %v1099_v2  ;;  %v919_v27 = vcombine.low %v917_v19, %v913_v18  ;;  %v928_v28 = vcombine.low %v925_v20, %v926_v21  ;;  %v922_v46 = vld [vmem:[%s1179_s30 + $0x10] sm:$0xf]  ;;  %s898_s27 = sshll.u32 %s234_s24, 2 }
  0x19   : > { %v358_v30 = vrot.slane %v906_v24, 1  ;;  %v472_v31 = vshll.u32 %v915_v26, 16  ;;  %v470_v37 = vshrl.u32 %v915_v26, 16  ;;  %v930_v47 = vld [vmem:[%s1179_s30 + $0x10] sm:$0xe]  ;;  %s236_s30 = scalar_lea.vmem %s1272_s3, %s898_s27 }
  0x1a   : > { %v256_v16 = vrot.slane %v254_v11, 1  ;;  %v529_v32 = vrot.slane %v919_v27, 1  ;;  %v643_v34 = vshll.u32 %v928_v28, 16  ;;  %v641_v39 = vshrl.u32 %v928_v28, 16  ;;  %v934_v27 = vld [vmem:[%s1271_s2] ss:$0 sm:$0xff] }
  0x1b   : > { %v474_v38 = vrot.slane %v472_v31, 1  ;;  %v932_v49 = vcombine.low %v930_v47, %v926_v21 }
  0x1c   : > { %v257_v22 = vor.u32 %v256_v16, %v252_v10  ;;  %v645_v40 = vrot.slane %v643_v34, 1 }
  0x1d   : > { %v475_v42 = vor.u32 %v474_v38, %v470_v37  ;;  %v700_v50 = vrot.slane %v932_v49, 1 }
  0x1e   : > { %959 = vmatmul.mubr.msk.bf16.vlgmr.msra.gmra.mrb[0].mxu0 %vm258_vm2, %v257_v22  ;;  %977 = vmatmul.mubr.msk.bf16.vlgmr.msra.gmra.mrb[4].mxu1 %vm258_vm2, %v909_v14  ;;  %v646_v43 = vor.u32 %v645_v40, %v641_v39 }
  0x1f   : > { %969 = vmatpush3.bf16.msra.mxu0 %v363_v23  ;;  %970 = vmatprep.mubr.msk.bf16.mxu0 %vm1100_vm1, %v1099_v2 }
  0x20   : > { %980 = vmatprep.subr.bf16.mxu0 %v1099_v2  ;;  %987 = vmatpush3.bf16.msra.mxu1 %v534_v25 }
  0x21   : > { %988 = vmatprep.mubr.msk.bf16.mxu1 %vm1100_vm1, %v1099_v2  ;;  %998 = vmatprep.subr.bf16.mxu1 %v1099_v2 }
  0x26   : > { %971 = vmatmul.mubr.msk.bf16.vlgmr.msra.gmra.mrb[4].mxu0 %vm258_vm2, %v358_v30  ;;  %989 = vmatmul.mubr.msk.bf16.vlgmr.msra.gmra.mrb[8].mxu1 %vm258_vm2, %v529_v32 }
  0x27   : > { %981 = vmatpush3.bf16.msra.mxu0 %v480_v35  ;;  %982 = vmatprep.mubr.msk.bf16.mxu0 %vm1100_vm1, %v1099_v2 }
  0x28   : > { %992 = vmatprep.subr.bf16.mxu0 %v1099_v2  ;;  %999 = vmatpush3.bf16.msra.mxu1 %v651_v36 }
  0x29   : > { %1000 = vmatprep.mubr.msk.bf16.mxu1 %vm1100_vm1, %v1099_v2 }
  0x2e   : > { %983 = vmatmul.mubr.msk.bf16.vlgmr.msra.gmra.mrb[8].mxu0 %vm258_vm2, %v475_v42  ;;  %1001 = vmatmul.mubr.msk.bf16.vlgmr.msra.gmra.mrb[12].mxu1 %vm258_vm2, %v646_v43 }
  0x2f   : > { %993 = vmatpush3.bf16.msra.mxu0 %v588_v44  ;;  %994 = vmatprep.mubr.msk.bf16.mxu0 %vm1100_vm1, %v1099_v2 }
  0x30   : > { %1004 = vmatprep.subr.bf16.mxu0 %v1099_v2 }
  0x36   : > { %995 = vmatmul.mubr.msk.bf16.vlgmr.msra.gmra.mrb[12].mxu0 %vm258_vm2, %v922_v46 }
  0x37   : > { %1005 = vmatpush3.bf16.msra.mxu0 %v705_v48  ;;  %1006 = vmatprep.mubr.msk.bf16.mxu0 %vm1100_vm1, %v1099_v2 }
  0x3e   : > { %1007 = vmatmul.mubr.msk.bf16.vlgmr.msra.gmra.mrb[16].mxu0 %vm258_vm2, %v700_v50 }
  0xe9   : > { %v346_v51 = vpop.f32.mrb[0].mxu1 }
  0xea   : > { %v966_v52 = vpop.f32.mrb[1].mxu1 }
  0xeb   : > { %v349_v53 = vpop.f32.mrb[2].mxu1 }
  0xec   : > { %v967_v54 = vpop.f32.mrb[3].mxu1 }
  0xf1   : > { %v300_v55 = vpop.f32.mrb[0].mxu0  ;;  %v453_v56 = vpop.f32.mrb[4].mxu1 }
  0xf2   : > { %v347_v57 = vadd.f32 %v346_v51, %v300_v55  ;;  %v960_v58 = vpop.f32.mrb[1].mxu0  ;;  %v978_v59 = vpop.f32.mrb[5].mxu1 }
  0xf3   : > { %v303_v60 = vpop.f32.mrb[2].mxu0  ;;  %v456_v61 = vpop.f32.mrb[6].mxu1 }
  0xf4   : > { %v961_v62 = vpop.f32.mrb[3].mxu0  ;;  %v979_v63 = vpop.f32.mrb[7].mxu1 }
  0xf9   : > { %v399_v0 = vpop.f32.mrb[4].mxu0  ;;  %v570_v1 = vpop.f32.mrb[8].mxu1 }
  0xfa   : > { %v405_v3 = vadd.f32 %v399_v0, %v347_v57  ;;  %v972_v2 = vpop.f32.mrb[5].mxu0  ;;  %v990_v4 = vpop.f32.mrb[9].mxu1 }
  0xfb   : > { %v402_v5 = vpop.f32.mrb[6].mxu0  ;;  %v573_v6 = vpop.f32.mrb[10].mxu1 }
  0xfc   : > { %v459_v7 = vadd.f32 %v453_v56, %v405_v3  ;;  %v973_v8 = vpop.f32.mrb[7].mxu0  ;;  %v991_v9 = vpop.f32.mrb[11].mxu1 }
 0x101   : > { %v516_v10 = vpop.f32.mrb[8].mxu0  ;;  %v687_v11 = vpop.f32.mrb[12].mxu1 }
 0x102   : > { %v522_v12 = vadd.f32 %v516_v10, %v459_v7  ;;  %v984_v13 = vpop.f32.mrb[9].mxu0  ;;  %v1002_v14 = vpop.f32.mrb[13].mxu1 }
 0x103   : > { %v519_v15 = vpop.f32.mrb[10].mxu0  ;;  %v690_v16 = vpop.f32.mrb[14].mxu1 }
 0x104   : > { %v576_v17 = vadd.f32 %v570_v1, %v522_v12  ;;  %v985_v18 = vpop.f32.mrb[11].mxu0  ;;  %v1003_v19 = vpop.f32.mrb[15].mxu1 }
 0x109   : > { %v624_v20 = vpop.f32.mrb[12].mxu0 }
 0x10a   : > { %v630_v21 = vadd.f32 %v624_v20, %v576_v17  ;;  %v996_v22 = vpop.f32.mrb[13].mxu0 }
 0x10b   : > { %v627_v23 = vpop.f32.mrb[14].mxu0 }
 0x10c   : > { %v693_v24 = vadd.f32 %v687_v11, %v630_v21  ;;  %v997_v25 = vpop.f32.mrb[15].mxu0 }
 0x111   : > { %v741_v26 = vpop.f32.mrb[16].mxu0 }
 0x112   : > { %v747_v28 = vadd.f32 %v741_v26, %v693_v24  ;;  %v1008_v29 = vpop.f32.mrb[17].mxu0 }
 0x113   : > { %v744_v30 = vpop.f32.mrb[18].mxu0 }
 0x114   : > { %v755_v31 = vadd.f32 %v934_v27, %v747_v28  ;;  %v1009_v32 = vpop.f32.mrb[19].mxu0 }
 0x116   : > { %v756_v33 = vmax.f32 %v755_v31, 0.0 }
 0x118   : > { %v757_v34 = vpack.c.bf16 %v756_v33, %v756_v33 }
 0x11a   : > { %759 = vst.msk [vmem:[%s236_s30] sm:$0xf] %vm758_vm3, %v757_v34 }
 0x11b PF: > { %s13_s16 = sadd.s32 1, %s1097_s16   ;;  %s1273_s12 = smov %s1089_s14 }
 0x11c   : > { %p10_p7 = scmp.ge.s32.totalorder %s13_s16, 18   ;;  %s1274_s13 = smov %s1093_s15 }
 0x11d   : > { %s1275_s14 = smov %s1278_s17  ;;  %s1276_s15 = smov %s1282_s18 }
 0x11e   :  { %12 = sbr.rel (!%p10_p7) target bundleno = 3 (0x3), region = 79 }

// kernel: flower_classifier_forward.5
= control target key start
LH: loop header
LB: loop body
LE: loop exit
PB: predicated region body
PF: predicated region fallthrough
CT: control target
= control target key end

     0   :  { %s1217_s12 = smov 0   ;;  %s1219_s13 = smov 0   ;;  %s1378_s0 = inlined_call_operand.vmem [shape: bf16[2,18,18,8], index: 0, kind: input, shape index: {}]   ;;  %s1379_s1 = inlined_call_operand.vmem [shape: bf16[9,8,8], index: 1, kind: input, shape index: {}]   ;;  %s1380_s2 = inlined_call_operand.vmem [shape: f32[1,8], index: 2, kind: input, shape index: {}]   ;;  %s1381_s3 = inlined_call_operand.vmem [shape: bf16[2,16,16,8], index: 3, kind: output, shape index: {}]  }
   0x1   :  { %s1221_s14 = smov 0   ;;  %s1223_s15 = smov 0  }
   0x2   :  { %s1225_s16 = smov 0  }
   0x3 LB: > { %s25_s17 = sadd.s32 1, %s1185_s14  ;;  %s32_s18 = sadd.s32 1, %s1189_s15  ;;  %s1193_s16 = sphi %s1225_s16, %s13_s16   ;;  %s1189_s15 = sphi %s1223_s15, %s1385_s15   ;;  %s1185_s14 = sphi %s1221_s14, %s1384_s14   ;;  %s1181_s13 = sphi %s1219_s13, %s1383_s13   ;;  %s1177_s12 = sphi %s1217_s12, %s1382_s12  }
   0x4   : > { %p26_p0 = scmp.ge.s32.totalorder %s25_s17, 16  ;;  %p975_p1 = scmp.ge.s32.totalorder %s1193_s16, 1 }
   0x5   : > { %p177_p2 = scmp.lt.s32.totalorder %s1193_s16, 33 }
   0x6   : > { %s1387_s17 = smov (%p26_p0, %s25_s17), 0  ;;  %s1389_s18 = smov (!%p26_p0, %s32_s18), %s1189_s15 }
   0x7   : > { %p178_p3 = pnand %p975_p1, %p177_p2  ;;  %p34_p4 = scmp.ge.s32.totalorder %s1389_s18, 2 }
   0x8   : > { %v981_v0 = vld [vmem:[%s1379_s1 + $0x4] sm:$0xf] (!%p178_p3)  ;;  %vm274_vm0 = vcmask (!%p178_p3), 1043456   ;;  %v245_v1 = vld [vmem:[%s1379_s1] sm:$0xf] (!%p178_p3)  ;;  %v1195_v2 = vmov (!%p178_p3), 0.0  }
   0x9   : > { %s1391_s18 = smov (%p34_p4, %s1389_s18), 0  ;;  %181 = sbr.rel (%p178_p3) target bundleno = 286 (0x11e), region = 32 }
   0xa   : > { %1047 = vmatprep.subr.bf16.mxu0 (!%p178_p3), %v1195_v2  ;;  %v276_v3 = vsel (!%p178_p3), %vm274_vm0, %v981_v0, 0  ;;  %1053 = vmatprep.subr.bf16.mxu1 (!%p178_p3), %v1195_v2  ;;  %v322_v4 = vsel (!%p178_p3), %vm274_vm0, %v245_v1, 0  ;;  %p215_p5 = scmp.lt.s32.totalorder (!%p178_p3), %s1181_s13, 1  ;;  %vm1196_vm1 = vmmov (!%p178_p3), 0   ;;  %s1026_s23 = smul.u32 (!%p178_p3), 12, %s1177_s12  ;;  %vm270_vm2 = vcmask (!%p178_p3), 64512  }
   0xb   : > { %1048 = vmatpush3.bf16.msra.mxu0 (!%p178_p3), %v276_v3  ;;  %1054 = vmatpush3.bf16.msra.mxu1 (!%p178_p3), %v322_v4  ;;  %v991_v5 = vld [vmem:[%s1379_s1 + $0xc] sm:$0xf] (!%p178_p3)  ;;  %v986_v19 = vld [vmem:[%s1379_s1 + $0x8] sm:$0xf] (!%p178_p3)  ;;  %vm257_vm3 = vsmask.f32 (!%p178_p3), 7424 }
   0xc   : > { %1049 = vmatprep.mubr.msk.bf16.mxu0 (!%p178_p3), %vm1196_vm1, %v1195_v2  ;;  %1055 = vmatprep.mubr.msk.bf16.mxu1 (!%p178_p3), %vm1196_vm1, %v1195_v2  ;;  %v441_v10 = vsel (!%p178_p3), %vm274_vm0, %v991_v5, 0  ;;  %v1002_v23 = vld [vmem:[%s1379_s1 + $0x14] sm:$0xf] (!%p178_p3)  ;;  %v379_v27 = vsel (!%p178_p3), %vm274_vm0, %v986_v19, 0  ;;  %vm371_vm4 = vcmask (!%p178_p3), 1046528   ;;  %p229_p6 = scmp.lt.s32.totalorder (!%p178_p3), %s1177_s12, 15 }
   0xd   : > { %1059 = vmatprep.subr.bf16.mxu0 (!%p178_p3), %v1195_v2  ;;  %1065 = vmatprep.subr.bf16.mxu1 (!%p178_p3), %v1195_v2  ;;  %v573_v32 = vsel (!%p178_p3), %vm274_vm0, %v1002_v23, 0  ;;  %v997_v37 = vld [vmem:[%s1379_s1 + $0x10] sm:$0xf] (!%p178_p3)  ;;  %v1013_v46 = vld [vmem:[%s1379_s1 + $0x1c] sm:$0xf] (!%p178_p3)  ;;  %vm831_vm5 = vcmask (!%p178_p3), 60416  }
   0xe   : > { %v515_v47 = vsel (!%p178_p3), %vm274_vm0, %v997_v37, 0  ;;  %v709_v52 = vsel (!%p178_p3), %vm274_vm0, %v1013_v46, 0  ;;  %v1007_v55 = vld [vmem:[%s1379_s1 + $0x18] sm:$0xf] (!%p178_p3)  ;;  %v1018_v62 = vld [vmem:[%s1379_s1 + $0x20] sm:$0xf] (!%p178_p3) }
   0xf   : > { %v635_v59 = vsel (!%p178_p3), %vm274_vm0, %v1007_v55, 0  ;;  %v767_v1 = vsel (!%p178_p3), %vm274_vm0, %v1018_v62, 0 }
  0x10   : > { %s1393_s13 = smov (!%p215_p5, %s1181_s13), 1  ;;  %s1395_s12 = smov (!%p229_p6, %s1177_s12), 15 }
  0x11   : > { %s1101_s24 = smul.u32 216, %s1393_s13 }
  0x13   : > { %s219_s27 = scalar_lea.vmem %s1378_s0, %s1101_s24  ;;  %s978_s24 = sshll.u32 %s1393_s13, 5 }
  0x14   : > { %s1275_s30 = scalar_lea.vmem %s219_s27, %s1026_s23  ;;  %s977_s23 = sshll.u32 %s1395_s12, 1 }
  0x15   : > { %v243_v6 = vld [vmem:[%s1275_s30] sm:$0xf]  ;;  %v244_v7 = vld [vmem:[%s1275_s30 + $0x4] sm:$0xf]  ;;  %v994_v15 = vld [vmem:[%s1275_s30 + $0xc] sm:$0xf]  ;;  %s236_s25 = sadd.s32 %s978_s24, %s977_s23 }
  0x16   : > { %v982_v8 = vcombine.low %v243_v6, %v244_v7  ;;  %v1145_v9 = vld [vmem:[%s1275_s30 + $0x8] ss:$0 sps:$4 sm:$0x11]   ;;  %v365_v14 = vld [vmem:[%s1275_s30] sm:$0xe]  ;;  %v1147_v28 = vld [vmem:[%s1275_s30 + $0xc] sm:$0xff]  }
  0x17   : > { %v266_v13 = vshll.u32 %v1145_v9, 16  ;;  %v995_v16 = vld [vmem:[%s1275_s30 + $0x10] sm:$0xf]  ;;  %v1001_v20 = vld [vmem:[%s1275_s30 + $0xc] sm:$0xe]  ;;  %v987_v22 = vcombine.low %v365_v14, %v244_v7  ;;  %v373_v34 = vrot.slane %v1145_v9, 1 }
  0x18   : > { %v259_v11 = vshrl.u32 %v982_v8, 16  ;;  %v261_v12 = vshll.u32 %v982_v8, 16  ;;  %1056 = vmatmul.mubr.msk.bf16.vlgmr.msra.gmra.mrb[0].mxu1 %vm270_vm2, %v982_v8  ;;  %v998_v24 = vcombine.low %v994_v15, %v995_v16  ;;  %v1010_v25 = vld [vmem:[%s1275_s30 + $0x18] sm:$0xf]  ;;  %v1297_v26 = vld [vmem:[%s1275_s30 + $0x1c] sm:$0xf]  ;;  %v1003_v30 = vcombine.low %v1001_v20, %v995_v16 }
  0x19   : > { %1066 = vmatpush3.bf16.msra.mxu1 %v441_v10  ;;  %1067 = vmatprep.mubr.msk.bf16.mxu1 %vm1196_vm1, %v1195_v2  ;;  %v268_v18 = vrot.slane %v266_v13, 1  ;;  %v1014_v31 = vcombine.low %v1010_v25, %v1297_v26  ;;  %v372_v33 = vrot.slane %v987_v22, 1  ;;  %v1149_v35 = vld [vmem:[%s1275_s30 + $0x14] ss:$0 sps:$4 sm:$0x11]   ;;  %v1151_v63 = vld [vmem:[%s1275_s30 + $0x18] sm:$0xff]  }
  0x1a   : > { %v263_v17 = vrot.slane %v261_v12, 1  ;;  %1077 = vmatprep.subr.bf16.mxu1 %v1195_v2  ;;  %v502_v36 = vshll.u32 %v998_v24, 16  ;;  %v566_v38 = vrot.slane %v1003_v30, 1  ;;  %v567_v39 = vrot.slane %v1149_v35, 1  ;;  %v1017_v61 = vld [vmem:[%s1275_s30 + $0x18] sm:$0xe] }
  0x1b   : > { %v1153_v40 = vld [vmem:[%s1275_s30 + $0x20] ss:$0 sps:$4 sm:$0x11]   ;;  %v696_v41 = vshll.u32 %v1014_v31, 16  ;;  %v374_v42 = vsel %vm371_vm4, %v372_v33, %v373_v34  ;;  %v500_v43 = vshrl.u32 %v998_v24, 16  ;;  %v507_v45 = vshll.u32 %v1149_v35, 16 }
  0x1c   : > { %v264_v21 = vor.u32 %v263_v17, %v259_v11  ;;  %v504_v44 = vrot.slane %v502_v36, 1  ;;  %v568_v48 = vsel %vm371_vm4, %v566_v38, %v567_v39  ;;  %v694_v49 = vshrl.u32 %v1014_v31, 16  ;;  %s979_s28 = sshll.u32 %s236_s25, 2 }
  0x1d   : > { %v698_v50 = vrot.slane %v696_v41, 1  ;;  %v701_v51 = vshll.u32 %v1153_v40, 16  ;;  %v509_v54 = vrot.slane %v507_v45, 1  ;;  %v1019_v0 = vcombine.low %v1017_v61, %v1297_v26  ;;  %s238_s12 = scalar_lea.vmem %s1381_s3, %s979_s28 }
  0x1e   : > { %v269_v29 = vsel %vm257_vm3, %v264_v21, %v268_v18  ;;  %v505_v53 = vor.u32 %v504_v44, %v500_v43  ;;  %v761_v4 = vrot.slane %v1153_v40, 1 }
  0x1f   : > { %1050 = vmatmul.mubr.msk.bf16.vlgmr.msra.gmra.mrb[0].mxu0 %vm270_vm2, %v269_v29  ;;  %v699_v56 = vor.u32 %v698_v50, %v694_v49  ;;  %v703_v57 = vrot.slane %v701_v51, 1  ;;  %v760_v3 = vrot.slane %v1019_v0, 1 }
  0x20   : > { %1060 = vmatpush3.bf16.msra.mxu0 %v379_v27  ;;  %1061 = vmatprep.mubr.msk.bf16.mxu0 %vm1196_vm1, %v1195_v2  ;;  %v510_v58 = vsel %vm257_vm3, %v505_v53, %v509_v54 }
  0x21   : > { %1071 = vmatprep.subr.bf16.mxu0 %v1195_v2  ;;  %1068 = vmatmul.mubr.msk.bf16.vlgmr.msra.gmra.mrb[4].mxu1 %vm270_vm2, %v1147_v28  ;;  %v704_v60 = vsel %vm257_vm3, %v699_v56, %v703_v57  ;;  %v762_v5 = vsel %vm371_vm4, %v760_v3, %v761_v4 }
  0x22   : > { %1078 = vmatpush3.bf16.msra.mxu1 %v573_v32  ;;  %1079 = vmatprep.mubr.msk.bf16.mxu1 %vm1196_vm1, %v1195_v2 }
  0x23   : > { %1089 = vmatprep.subr.bf16.mxu1 %v1195_v2 }
  0x27   : > { %1062 = vmatmul.mubr.msk.bf16.vlgmr.msra.gmra.mrb[4].mxu0 %vm270_vm2, %v374_v42 }
  0x28   : > { %1072 = vmatpush3.bf16.msra.mxu0 %v515_v47  ;;  %1073 = vmatprep.mubr.msk.bf16.mxu0 %vm1196_vm1, %v1195_v2 }
  0x29   : > { %1083 = vmatprep.subr.bf16.mxu0 %v1195_v2  ;;  %1080 = vmatmul.mubr.msk.bf16.vlgmr.msra.gmra.mrb[8].mxu1 %vm270_vm2, %v568_v48 }
  0x2a   : > { %1090 = vmatpush3.bf16.msra.mxu1 %v709_v52  ;;  %1091 = vmatprep.mubr.msk.bf16.mxu1 %vm1196_vm1, %v1195_v2  ;;  %v1021_v52 = vld [vmem:[%s1380_s2] ss:$0 sm:$0xff] }
  0x2f   : > { %1074 = vmatmul.mubr.msk.bf16.vlgmr.msra.gmra.mrb[8].mxu0 %vm270_vm2, %v510_v58 }
  0x30   : > { %1084 = vmatpush3.bf16.msra.mxu0 %v635_v59  ;;  %1085 = vmatprep.mubr.msk.bf16.mxu0 %vm1196_vm1, %v1195_v2 }
  0x31   : > { %1095 = vmatprep.subr.bf16.mxu0 %v1195_v2  ;;  %1092 = vmatmul.mubr.msk.bf16.vlgmr.msra.gmra.mrb[12].mxu1 %vm270_vm2, %v704_v60 }
  0x37   : > { %1086 = vmatmul.mubr.msk.bf16.vlgmr.msra.gmra.mrb[12].mxu0 %vm270_vm2, %v1151_v63 }
  0x38   : > { %1096 = vmatpush3.bf16.msra.mxu0 %v767_v1  ;;  %1097 = vmatprep.mubr.msk.bf16.mxu0 %vm1196_vm1, %v1195_v2 }
  0x3f   : > { %1098 = vmatmul.mubr.msk.bf16.vlgmr.msra.gmra.mrb[16].mxu0 %vm270_vm2, %v762_v5 }
  0xeb   : > { %v358_v6 = vpop.f32.mrb[0].mxu1 }
  0xec   : > { %v1057_v7 = vpop.f32.mrb[1].mxu1 }
  0xed   : > { %v361_v8 = vpop.f32.mrb[2].mxu1 }
  0xee   : > { %v1058_v9 = vpop.f32.mrb[3].mxu1 }
  0xf2   : > { %v312_v10 = vpop.f32.mrb[0].mxu0 }
  0xf3   : > { %v359_v11 = vadd.f32 %v358_v6, %v312_v10  ;;  %v1051_v12 = vpop.f32.mrb[1].mxu0 }
  0xf4   : > { %v315_v13 = vpop.f32.mrb[2].mxu0  ;;  %v477_v14 = vpop.f32.mrb[4].mxu1 }
  0xf5   : > { %v362_v15 = vadd.f32 %v361_v8, %v315_v13  ;;  %v1052_v16 = vpop.f32.mrb[3].mxu0  ;;  %v1069_v17 = vpop.f32.mrb[5].mxu1 }
  0xf6   : > { %v480_v18 = vpop.f32.mrb[6].mxu1 }
  0xf7   : > { %v1070_v2 = vpop.f32.mrb[7].mxu1 }
  0xfa   : > { %v415_v19 = vpop.f32.mrb[4].mxu0 }
  0xfb   : > { %v422_v20 = vadd.f32 %v415_v19, %v359_v11  ;;  %v1063_v21 = vpop.f32.mrb[5].mxu0 }
  0xfc   : > { %v418_v22 = vpop.f32.mrb[6].mxu0  ;;  %v609_v23 = vpop.f32.mrb[8].mxu1 }
  0xfd   : > { %v423_v24 = vadd.f32 %v418_v22, %v362_v15  ;;  %v484_v25 = vadd.f32 %v477_v14, %v422_v20  ;;  %v1064_v26 = vpop.f32.mrb[7].mxu0  ;;  %v1081_v27 = vpop.f32.mrb[9].mxu1 }
  0xfe   : > { %v612_v28 = vpop.f32.mrb[10].mxu1 }
  0xff   : > { %v485_v29 = vadd.f32 %v480_v18, %v423_v24  ;;  %v1082_v30 = vpop.f32.mrb[11].mxu1 }
 0x102   : > { %v551_v31 = vpop.f32.mrb[8].mxu0 }
 0x103   : > { %v558_v32 = vadd.f32 %v551_v31, %v484_v25  ;;  %v1075_v33 = vpop.f32.mrb[9].mxu0 }
 0x104   : > { %v554_v34 = vpop.f32.mrb[10].mxu0  ;;  %v745_v35 = vpop.f32.mrb[12].mxu1 }
 0x105   : > { %v559_v36 = vadd.f32 %v554_v34, %v485_v29  ;;  %v616_v37 = vadd.f32 %v609_v23, %v558_v32  ;;  %v1076_v38 = vpop.f32.mrb[11].mxu0  ;;  %v1093_v39 = vpop.f32.mrb[13].mxu1 }
 0x106   : > { %v748_v40 = vpop.f32.mrb[14].mxu1 }
 0x107   : > { %v617_v41 = vadd.f32 %v612_v28, %v559_v36  ;;  %v1094_v42 = vpop.f32.mrb[15].mxu1 }
 0x10a   : > { %v671_v43 = vpop.f32.mrb[12].mxu0 }
 0x10b   : > { %v678_v44 = vadd.f32 %v671_v43, %v616_v37  ;;  %v1087_v45 = vpop.f32.mrb[13].mxu0 }
 0x10c   : > { %v674_v46 = vpop.f32.mrb[14].mxu0 }
 0x10d   : > { %v679_v47 = vadd.f32 %v674_v46, %v617_v41  ;;  %v752_v48 = vadd.f32 %v745_v35, %v678_v44  ;;  %v1088_v49 = vpop.f32.mrb[15].mxu0 }
 0x10f   : > { %v753_v50 = vadd.f32 %v748_v40, %v679_v47 }
 0x112   : > { %v803_v51 = vpop.f32.mrb[16].mxu0 }
 0x113   : > { %v810_v53 = vadd.f32 %v803_v51, %v752_v48  ;;  %v1099_v54 = vpop.f32.mrb[17].mxu0 }
 0x114   : > { %v806_v55 = vpop.f32.mrb[18].mxu0 }
 0x115   : > { %v819_v56 = vadd.f32 %v1021_v52, %v810_v53  ;;  %v811_v57 = vadd.f32 %v806_v55, %v753_v50  ;;  %v1100_v58 = vpop.f32.mrb[19].mxu0 }
 0x117   : > { %v821_v59 = vmax.f32 %v819_v56, 0.0  ;;  %v820_v60 = vadd.f32 %v1021_v52, %v811_v57 }
 0x119   : > { %v1027_v61 = vpack.c.bf16 %v821_v59, %v821_v59  ;;  %v822_v62 = vmax.f32 %v820_v60, 0.0 }
 0x11b   : > { %832 = vst.msk [vmem:[%s238_s12] sm:$0xf] %vm831_vm5, %v1027_v61  ;;  %v1028_v63 = vpack.c.bf16 %v822_v62, %v822_v62 }
 0x11d   : > { %833 = vst.msk [vmem:[%s238_s12 + $0x4] sm:$0xf] %vm831_vm5, %v1028_v63 }
 0x11e PF: > { %s13_s16 = sadd.s32 1, %s1193_s16   ;;  %s1382_s12 = smov %s1185_s14 }
 0x11f   : > { %p10_p7 = scmp.ge.s32.totalorder %s13_s16, 34   ;;  %s1383_s13 = smov %s1189_s15 }
 0x120   : > { %s1384_s14 = smov %s1387_s17  ;;  %s1385_s15 = smov %s1391_s18 }
 0x121   :  { %12 = sbr.rel (!%p10_p7) target bundleno = 3 (0x3), region = 79 }

// kernel: flower_classifier_forward.8
= control target key start
LH: loop header
LB: loop body
LE: loop exit
PB: predicated region body
PF: predicated region fallthrough
CT: control target
= control target key end

     0   :  { %vm105_vm0 = vcmask 122880   ;;  %v1172_v18 = vmov 1983009808   ;;  %vm1036_vm1 = vcmask 1041409   ;;  %vm1039_vm2 = vcmask 1042434   ;;  %s2067_s0 = inlined_call_operand.vmem [shape: bf16[8,2,4,2,16], index: 0, kind: input, shape index: {}]   ;;  %s2068_s1 = inlined_call_operand.vmem [shape: bf16[8,4,16], index: 1, kind: output, shape index: {}]  }
   0x1   :  { %v1186_v0 = vld [vmem:[%s2067_s0] sm:$0x1]  ;;  %v1191_v1 = vld [vmem:[%s2067_s0 + $0x1] sm:$0x1]  ;;  %v1196_v2 = vld [vmem:[%s2067_s0 + $0x4] sm:$0x1]  ;;  %v1273_v19 = vunpack.c.l.s4 %v1172_v18 }
   0x2   :  { %v1201_v3 = vld [vmem:[%s2067_s0 + $0x5] sm:$0x1]  ;;  %v1206_v4 = vld [vmem:[%s2067_s0 + $0x2] sm:$0x1]  ;;  %v1211_v5 = vld [vmem:[%s2067_s0 + $0x3] sm:$0x1]  ;;  %v73_v43 = vmax.bf16 %v1196_v2, %v1186_v0 }
   0x3   :  { %v1216_v6 = vld [vmem:[%s2067_s0 + $0x6] sm:$0x1]  ;;  %v1221_v7 = vld [vmem:[%s2067_s0 + $0x7] sm:$0x1]  ;;  %v1226_v8 = vld [vmem:[%s2067_s0 + $0x8] sm:$0x1]  ;;  %v74_v44 = vmax.bf16 %v1201_v3, %v1191_v1 }
   0x4   :  { %v1231_v9 = vld [vmem:[%s2067_s0 + $0xc] sm:$0x1]  ;;  %v1236_v10 = vld [vmem:[%s2067_s0 + $0x9] sm:$0x1]  ;;  %v1241_v11 = vld [vmem:[%s2067_s0 + $0xa] sm:$0x1]  ;;  %v75_v52 = vmax.bf16 %v1216_v6, %v1206_v4  ;;  %v76_v53 = vmax.bf16 %v1221_v7, %v1211_v5 }
   0x5   :  { %v1246_v12 = vld [vmem:[%s2067_s0 + $0xb] sm:$0x1]  ;;  %v1251_v13 = vld [vmem:[%s2067_s0 + $0xd] sm:$0x1]  ;;  %v1256_v14 = vld [vmem:[%s2067_s0 + $0xe] sm:$0x1]  ;;  %v77_v54 = vmax.bf16 %v1231_v9, %v1226_v8 }
   0x6   :  { %v1261_v15 = vld [vmem:[%s2067_s0 + $0xf] sm:$0x1]  ;;  %v1266_v16 = vld [vmem:[%s2067_s0 + $0x10] sm:$0x1]  ;;  %v1271_v17 = vld [vmem:[%s2067_s0 + $0x14] sm:$0x1]  ;;  %v78_v59 = vmax.bf16 %v1251_v13, %v1236_v10  ;;  %v79_v60 = vmax.bf16 %v1256_v14, %v1241_v11 }
   0x7   :  { %2079 = vst [vmem:[#allocation2_spill] sm:$0xff] %v1273_v19  ;;  %v1278_v20 = vld [vmem:[%s2067_s0 + $0x11] sm:$0x1]  ;;  %v1283_v21 = vld [vmem:[%s2067_s0 + $0x12] sm:$0x1]  ;;  %vm1042_vm3 = vcmask 1043459  }
   0x8   :  { %v1288_v22 = vld [vmem:[%s2067_s0 + $0x13] sm:$0x1]  ;;  %v1293_v23 = vld [vmem:[%s2067_s0 + $0x15] sm:$0x1]  ;;  %v1298_v24 = vld [vmem:[%s2067_s0 + $0x16] sm:$0x1] }
   0x9   :  { %v1303_v25 = vld [vmem:[%s2067_s0 + $0x17] sm:$0x1]  ;;  %v1308_v26 = vld [vmem:[%s2067_s0 + $0x18] sm:$0x1]  ;;  %v1313_v27 = vld [vmem:[%s2067_s0 + $0x1c] sm:$0x1] }
   0xa   :  { %v1318_v28 = vld [vmem:[%s2067_s0 + $0x19] sm:$0x1]  ;;  %v1323_v29 = vld [vmem:[%s2067_s0 + $0x1a] sm:$0x1]  ;;  %v1328_v30 = vld [vmem:[%s2067_s0 + $0x1b] sm:$0x1] }
   0xb   :  { %v1333_v31 = vld [vmem:[%s2067_s0 + $0x1d] sm:$0x1]  ;;  %v1338_v32 = vld [vmem:[%s2067_s0 + $0x1e] sm:$0x1]  ;;  %v1343_v33 = vld [vmem:[%s2067_s0 + $0x1f] sm:$0x1] }
   0xc   :  { %v1348_v34 = vld [vmem:[%s2067_s0 + $0x20] sm:$0x1]  ;;  %v1353_v35 = vld [vmem:[%s2067_s0 + $0x24] sm:$0x1]  ;;  %v1358_v36 = vld [vmem:[%s2067_s0 + $0x21] sm:$0x1] }
   0xd   :  { %v1363_v37 = vld [vmem:[%s2067_s0 + $0x22] sm:$0x1]  ;;  %v1368_v38 = vld [vmem:[%s2067_s0 + $0x23] sm:$0x1]  ;;  %v1373_v39 = vld [vmem:[%s2067_s0 + $0x25] sm:$0x1] }
   0xe   :  { %v1378_v40 = vld [vmem:[%s2067_s0 + $0x26] sm:$0x1]  ;;  %v1383_v41 = vld [vmem:[%s2067_s0 + $0x27] sm:$0x1]  ;;  %v1388_v42 = vld [vmem:[%s2067_s0 + $0x28] sm:$0x1] }
   0xf   :  { %v1397_v46 = vld [vmem:[%s2067_s0 + $0x29] sm:$0x1]  ;;  %v1402_v47 = vld [vmem:[%s2067_s0 + $0x2a] sm:$0x1]  ;;  %v1407_v48 = vld [vmem:[%s2067_s0 + $0x2b] sm:$0x1] }
  0x10   :  { %v1412_v49 = vld [vmem:[%s2067_s0 + $0x2c] sm:$0x1]  ;;  %v1417_v50 = vld [vmem:[%s2067_s0 + $0x2d] sm:$0x1]  ;;  %v1422_v51 = vld [vmem:[%s2067_s0 + $0x2e] sm:$0x1] }
  0x11   :  { %v1434_v56 = vld [vmem:[%s2067_s0 + $0x2f] sm:$0x1]  ;;  %v1439_v57 = vld [vmem:[%s2067_s0 + $0x30] sm:$0x1]  ;;  %v1444_v58 = vld [vmem:[%s2067_s0 + $0x31] sm:$0x1] }
  0x12   :  { %2080 = vst [vmem:[#allocation3_spill] sm:$0xff] %v1439_v57  ;;  %2081 = vst [vmem:[#allocation4_spill] sm:$0xff] %v1444_v58  ;;  %v1457_v63 = vld [vmem:[%s2067_s0 + $0x32] sm:$0x1]  ;;  %v1462_v0 = vld [vmem:[%s2067_s0 + $0x33] sm:$0x1] }
  0x13   :  { %2082 = vst [vmem:[#allocation5_spill] sm:$0xff] %v1457_v63  ;;  %2083 = vst [vmem:[#allocation6_spill] sm:$0xff] %v1462_v0  ;;  %v1467_v1 = vld [vmem:[%s2067_s0 + $0x34] sm:$0x1]  ;;  %v1480_v6 = vld [vmem:[%s2067_s0 + $0x35] sm:$0x1] }
  0x14   :  { %2084 = vst [vmem:[#allocation7_spill] sm:$0xff] %v1480_v6  ;;  %v1485_v7 = vld [vmem:[%s2067_s0 + $0x36] sm:$0x1]  ;;  %v1490_v8 = vld [vmem:[%s2067_s0 + $0x37] sm:$0x1]  ;;  %vm1158_vm4 = vcmask 123904  }
  0x15   :  { %2085 = vst [vmem:[#allocation8_spill] sm:$0xff] %v1485_v7  ;;  %2086 = vst [vmem:[#allocation9_spill] sm:$0xff] %v1490_v8  ;;  %v1503_v14 = vld [vmem:[%s2067_s0 + $0x38] sm:$0x1]  ;;  %v1516_v13 = vld [vmem:[%s2067_s0 + $0x3c] sm:$0x1] }
  0x16   :  { %2087 = vst [vmem:[#allocation10_spill] sm:$0xff] %v1503_v14  ;;  %2088 = vst [vmem:[#allocation11_spill] sm:$0xff] %v1516_v13  ;;  %v108_v10 = vsel %vm105_vm0, %v73_v43, 4286644096  ;;  %v121_v55 = vsel %vm105_vm0, %v74_v44, 4286644096 }
  0x17   :  { %v110_v4 = vunpack.i.l.bf16 %v108_v10  ;;  %v111_v3 = vunpack.i.h.bf16 %v108_v10  ;;  %v123_v2 = vunpack.i.l.bf16 %v121_v55  ;;  %v124_v45 = vunpack.i.h.bf16 %v121_v55 }
  0x18   :  { %v134_v62 = vsel %vm105_vm0, %v75_v52, 4286644096  ;;  %v147_v11 = vsel %vm105_vm0, %v76_v53, 4286644096  ;;  %v160_v43 = vsel %vm105_vm0, %v77_v54, 4286644096 }
  0x19   :  { %v112_v61 = vmax.f32 %v110_v4, %v111_v3  ;;  %v136_v9 = vunpack.i.l.bf16 %v134_v62  ;;  %v137_v19 = vunpack.i.h.bf16 %v134_v62  ;;  %v149_v63 = vunpack.i.l.bf16 %v147_v11 }
  0x1a   :  { %v125_v5 = vmax.f32 %v123_v2, %v124_v45  ;;  %v150_v0 = vunpack.i.h.bf16 %v147_v11  ;;  %v173_v18 = vsel %vm105_vm0, %v78_v59, 4286644096  ;;  %v162_v13 = vunpack.i.l.bf16 %v160_v43 }
  0x1b   :  { %v113_v14 = vrot.slane %v112_v61, 4  ;;  %v138_v10 = vmax.f32 %v136_v9, %v137_v19  ;;  %v163_v44 = vunpack.i.h.bf16 %v160_v43  ;;  %v175_v7 = vunpack.i.l.bf16 %v173_v18 }
  0x1c   :  { %v126_v8 = vrot.slane %v125_v5, 4  ;;  %v151_v55 = vmax.f32 %v149_v63, %v150_v0  ;;  %v176_v52 = vunpack.i.h.bf16 %v173_v18  ;;  %v186_v62 = vsel %vm105_vm0, %v79_v60, 4286644096 }
  0x1d   :  { %v114_v58 = vmax.f32 %v112_v61, %v113_v14  ;;  %v139_v53 = vrot.slane %v138_v10, 4  ;;  %v164_v3 = vmax.f32 %v162_v13, %v163_v44  ;;  %v188_v11 = vunpack.i.l.bf16 %v186_v62 }
  0x1e   :  { %v127_v4 = vmax.f32 %v125_v5, %v126_v8  ;;  %v152_v45 = vrot.slane %v151_v55, 4  ;;  %v177_v2 = vmax.f32 %v175_v7, %v176_v52  ;;  %v189_v57 = vunpack.i.h.bf16 %v186_v62  ;;  %v1563_v62 = vld [vmem:[%s2067_s0 + $0x3e] sm:$0x1] }
  0x1f   :  { %v115_v54 = vrot.slane %v114_v58, 2  ;;  %v140_v6 = vmax.f32 %v138_v10, %v139_v53  ;;  %v165_v59 = vrot.slane %v164_v3, 4  ;;  %v2089_v63 = vmax.bf16 %v1261_v15, %v1246_v12  ;;  %v1553_v12 = vld [vmem:[%s2067_s0 + $0x3d] sm:$0x1] }
  0x20   :  { %v128_v19 = vrot.slane %v127_v4, 2  ;;  %v153_v9 = vmax.f32 %v151_v55, %v152_v45  ;;  %v178_v43 = vrot.slane %v177_v2, 4  ;;  %v190_v60 = vmax.f32 %v188_v11, %v189_v57  ;;  %v1548_v55 = vld [vmem:[%s2067_s0 + $0x39] sm:$0x1] }
  0x21   :  { %v199_v61 = vsel %vm105_vm0, %v2089_v63, 4286644096  ;;  %v116_v0 = vmax.f32 %v114_v58, %v115_v54  ;;  %v141_v13 = vrot.slane %v140_v6, 2  ;;  %v166_v14 = vmax.f32 %v164_v3, %v165_v59  ;;  %v1570_v54 = vld [vmem:[%s2067_s0 + $0x3b] sm:$0x1] }
  0x22   :  { %v129_v5 = vmax.f32 %v127_v4, %v128_v19  ;;  %v154_v8 = vrot.slane %v153_v9, 2  ;;  %v179_v7 = vmax.f32 %v177_v2, %v178_v43  ;;  %v201_v18 = vunpack.i.l.bf16 %v199_v61  ;;  %v1575_v59 = vld [vmem:[%s2067_s0 + $0x3f] sm:$0x1] }
  0x23   :  { %v117_v44 = vrot.slane %v116_v0, 1  ;;  %v142_v10 = vmax.f32 %v140_v6, %v141_v13  ;;  %v167_v52 = vrot.slane %v166_v14, 2  ;;  %v191_v53 = vrot.slane %v190_v60, 4  ;;  %v1558_v6 = vld [vmem:[%s2067_s0 + $0x3a] sm:$0x1] }
  0x24   :  { %v130_v15 = vrot.slane %v129_v5, 1  ;;  %v155_v57 = vmax.f32 %v153_v9, %v154_v8  ;;  %v180_v58 = vrot.slane %v179_v7, 2  ;;  %v202_v3 = vunpack.i.h.bf16 %v199_v61 }
  0x25   :  { %v1565_v4 = vmax.f32 %v116_v0, %v117_v44  ;;  %v143_v45 = vrot.slane %v142_v10, 1  ;;  %v168_v2 = vmax.f32 %v166_v14, %v167_v52  ;;  %v192_v11 = vmax.f32 %v190_v60, %v191_v53 }
  0x26   :  { %v1577_v19 = vmax.f32 %v129_v5, %v130_v15  ;;  %v156_v9 = vrot.slane %v155_v57, 1  ;;  %v181_v43 = vmax.f32 %v179_v7, %v180_v58  ;;  %v203_v63 = vmax.f32 %v201_v18, %v202_v3 }
  0x27   :  { %v102_v61 = vmax.bf16 %v1553_v12, %v1548_v55  ;;  %v1581_v0 = vmax.f32 %v142_v10, %v143_v45  ;;  %v169_v13 = vrot.slane %v168_v2, 1  ;;  %v193_v14 = vrot.slane %v192_v11, 2 }
  0x28   :  { %v1585_v8 = vmax.f32 %v155_v57, %v156_v9  ;;  %v182_v44 = vrot.slane %v181_v43, 1  ;;  %v204_v52 = vrot.slane %v203_v63, 4  ;;  %v2090_v10 = vmax.bf16 %v1271_v17, %v1266_v16 }
  0x29   :  { %v194_v18 = vmax.f32 %v192_v11, %v193_v14  ;;  %v1601_v9 = vmax.f32 %v168_v2, %v169_v13  ;;  %v2091_v11 = vmax.bf16 %v1293_v23, %v1278_v20  ;;  %v2093_v2 = vmax.bf16 %v1303_v25, %v1288_v22 }
  0x2a   :  { %v212_v53 = vsel %vm105_vm0, %v2090_v10, 4286644096  ;;  %v205_v58 = vmax.f32 %v203_v63, %v204_v52  ;;  %v1607_v17 = vmax.f32 %v181_v43, %v182_v44  ;;  %v2092_v63 = vmax.bf16 %v1298_v24, %v1283_v21 }
  0x2b   :  { %v214_v3 = vunpack.i.l.bf16 %v212_v53  ;;  %v215_v7 = vunpack.i.h.bf16 %v212_v53  ;;  %v225_v16 = vsel %vm105_vm0, %v2091_v11, 4286644096  ;;  %v195_v5 = vrot.slane %v194_v18, 1 }
  0x2c   :  { %v206_v14 = vrot.slane %v205_v58, 2  ;;  %v227_v10 = vunpack.i.l.bf16 %v225_v16  ;;  %v228_v15 = vunpack.i.h.bf16 %v225_v16  ;;  %v238_v52 = vsel %vm105_vm0, %v2092_v63, 4286644096 }
  0x2d   :  { %v216_v57 = vmax.f32 %v214_v3, %v215_v7  ;;  %v251_v13 = vsel %vm105_vm0, %v2093_v2, 4286644096  ;;  %v240_v53 = vunpack.i.l.bf16 %v238_v52  ;;  %v241_v43 = vunpack.i.h.bf16 %v238_v52 }
  0x2e   :  { %v207_v20 = vmax.f32 %v205_v58, %v206_v14  ;;  %v229_v23 = vmax.f32 %v227_v10, %v228_v15  ;;  %v253_v16 = vunpack.i.l.bf16 %v251_v13  ;;  %v254_v7 = vunpack.i.h.bf16 %v251_v13 }
  0x2f   :  { %v217_v11 = vrot.slane %v216_v57, 4  ;;  %v242_v21 = vmax.f32 %v240_v53, %v241_v43  ;;  %v2094_v24 = vmax.bf16 %v1313_v27, %v1308_v26  ;;  %v1623_v14 = vmax.f32 %v194_v18, %v195_v5 }
  0x30   :  { %v208_v3 = vrot.slane %v207_v20, 1  ;;  %v230_v45 = vrot.slane %v229_v23, 4  ;;  %v255_v63 = vmax.f32 %v253_v16, %v254_v7  ;;  %v2095_v2 = vmax.bf16 %v1333_v31, %v1318_v28 }
  0x31   :  { %v264_v22 = vsel %vm105_vm0, %v2094_v24, 4286644096  ;;  %v218_v25 = vmax.f32 %v216_v57, %v217_v11  ;;  %v243_v52 = vrot.slane %v242_v21, 4  ;;  %v2096_v18 = vmax.bf16 %v1338_v32, %v1323_v29 }
  0x32   :  { %v266_v58 = vunpack.i.l.bf16 %v264_v22  ;;  %v267_v15 = vunpack.i.h.bf16 %v264_v22  ;;  %v231_v10 = vmax.f32 %v229_v23, %v230_v45  ;;  %v277_v13 = vsel %vm105_vm0, %v2095_v2, 4286644096 }
  0x33   :  { %v219_v44 = vrot.slane %v218_v25, 2  ;;  %v256_v53 = vrot.slane %v255_v63, 4  ;;  %v279_v60 = vunpack.i.l.bf16 %v277_v13  ;;  %v1629_v26 = vmax.f32 %v207_v20, %v208_v3 }
  0x34   :  { %v268_v43 = vmax.f32 %v266_v58, %v267_v15  ;;  %v232_v27 = vrot.slane %v231_v10, 2  ;;  %v244_v57 = vmax.f32 %v242_v21, %v243_v52  ;;  %v280_v11 = vunpack.i.h.bf16 %v277_v13 }
  0x35   :  { %v220_v16 = vmax.f32 %v218_v25, %v219_v44  ;;  %v257_v7 = vmax.f32 %v255_v63, %v256_v53  ;;  %v290_v45 = vsel %vm105_vm0, %v2096_v18, 4286644096  ;;  %v2097_v44 = vmax.bf16 %v1343_v33, %v1328_v30 }
  0x36   :  { %v269_v5 = vrot.slane %v268_v43, 4  ;;  %v233_v28 = vmax.f32 %v231_v10, %v232_v27  ;;  %v245_v31 = vrot.slane %v244_v57, 2  ;;  %v281_v23 = vmax.f32 %v279_v60, %v280_v11 }
  0x37   :  { %v292_v24 = vunpack.i.l.bf16 %v290_v45  ;;  %v221_v22 = vrot.slane %v220_v16, 1  ;;  %v258_v58 = vrot.slane %v257_v7, 2  ;;  %v293_v20 = vunpack.i.h.bf16 %v290_v45 }
  0x38   :  { %v270_v15 = vmax.f32 %v268_v43, %v269_v5  ;;  %v234_v3 = vrot.slane %v233_v28, 1  ;;  %v246_v2 = vmax.f32 %v244_v57, %v245_v31  ;;  %v282_v21 = vrot.slane %v281_v23, 4 }
  0x39   :  { %v303_v25 = vsel %vm105_vm0, %v2097_v44, 4286644096  ;;  %v184_v29 = vpack.i.bf16 %v1607_v17, %v1607_v17  ;;  %v259_v32 = vmax.f32 %v257_v7, %v258_v58  ;;  %v294_v10 = vmax.f32 %v292_v24, %v293_v20 }
  0x3a   :  { %v271_v63 = vrot.slane %v270_v15, 2  ;;  %v1641_v60 = vmax.f32 %v220_v16, %v221_v22  ;;  %v247_v52 = vrot.slane %v246_v2, 1  ;;  %v283_v13 = vmax.f32 %v281_v23, %v282_v21 }
  0x3b   :  { %v305_v53 = vunpack.i.l.bf16 %v303_v25  ;;  %v1643_v43 = vmax.f32 %v233_v28, %v234_v3  ;;  %v260_v27 = vrot.slane %v259_v32, 1  ;;  %v295_v11 = vrot.slane %v294_v10, 4 }
  0x3c   :  { %v272_v57 = vmax.f32 %v270_v15, %v271_v63  ;;  %v197_v30 = vpack.i.bf16 %v1623_v14, %v1623_v14  ;;  %v210_v33 = vpack.i.bf16 %v1629_v26, %v1629_v26  ;;  %v284_v5 = vrot.slane %v283_v13, 2 }
  0x3d   :  { %v306_v7 = vunpack.i.h.bf16 %v303_v25  ;;  %v1649_v18 = vmax.f32 %v246_v2, %v247_v52  ;;  %v296_v45 = vmax.f32 %v294_v10, %v295_v11  ;;  %v2098_v31 = vmax.bf16 %v1353_v35, %v1348_v34 }
  0x3e   :  { %v273_v16 = vrot.slane %v272_v57, 1  ;;  %v1655_v23 = vmax.f32 %v259_v32, %v260_v27  ;;  %v285_v24 = vmax.f32 %v283_v13, %v284_v5  ;;  %v223_v15 = vpack.i.bf16 %v1641_v60, %v1641_v60 }
  0x3f   :  { %v316_v28 = vsel %vm105_vm0, %v2098_v31, 4286644096  ;;  %v307_v22 = vmax.f32 %v305_v53, %v306_v7  ;;  %v236_v20 = vpack.i.bf16 %v1643_v43, %v1643_v43  ;;  %v297_v3 = vrot.slane %v296_v45, 2 }
  0x40   :  { %v318_v58 = vunpack.i.l.bf16 %v316_v28  ;;  %v319_v2 = vunpack.i.h.bf16 %v316_v28  ;;  %v1661_v21 = vmax.f32 %v272_v57, %v273_v16  ;;  %v2099_v34 = vmax.bf16 %v1373_v39, %v1358_v36 }
  0x41   :  { %v308_v44 = vrot.slane %v307_v22, 4  ;;  %v2100_v25 = vmax.bf16 %v1378_v40, %v1363_v37  ;;  %v249_v63 = vpack.i.bf16 %v1649_v18, %v1649_v18  ;;  %v286_v10 = vrot.slane %v285_v24, 1 }
  0x42   :  { %v329_v35 = vsel %vm105_vm0, %v2099_v34, 4286644096  ;;  %v320_v52 = vmax.f32 %v318_v58, %v319_v2  ;;  %v262_v53 = vpack.i.bf16 %v1655_v23, %v1655_v23  ;;  %v298_v36 = vmax.f32 %v296_v45, %v297_v3 }
  0x43   :  { %v342_v32 = vsel %vm105_vm0, %v2100_v25, 4286644096  ;;  %v331_v13 = vunpack.i.l.bf16 %v329_v35  ;;  %v309_v27 = vmax.f32 %v307_v22, %v308_v44  ;;  %v332_v57 = vunpack.i.h.bf16 %v329_v35 }
  0x44   :  { %v344_v11 = vunpack.i.l.bf16 %v342_v32  ;;  %v321_v39 = vrot.slane %v320_v52, 4  ;;  %v345_v5 = vunpack.i.h.bf16 %v342_v32  ;;  %v2101_v37 = vmax.bf16 %v1383_v41, %v1368_v38 }
  0x45   :  { %v275_v7 = vpack.i.bf16 %v1661_v21, %v1661_v21  ;;  %v310_v16 = vrot.slane %v309_v27, 2  ;;  %v333_v31 = vmax.f32 %v331_v13, %v332_v57  ;;  %v1681_v58 = vmax.f32 %v285_v24, %v286_v10 }
  0x46   :  { %v355_v40 = vsel %vm105_vm0, %v2101_v37, 4286644096  ;;  %v322_v2 = vmax.f32 %v320_v52, %v321_v39  ;;  %v346_v22 = vmax.f32 %v344_v11, %v345_v5  ;;  %v2102_v3 = vmax.bf16 %v1412_v49, %v1388_v42 }
  0x47   :  { %v357_v28 = vunpack.i.l.bf16 %v355_v40  ;;  %v358_v44 = vunpack.i.h.bf16 %v355_v40  ;;  %v311_v34 = vmax.f32 %v309_v27, %v310_v16  ;;  %v334_v45 = vrot.slane %v333_v31, 4 }
  0x48   :  { %v368_v38 = vsel %vm105_vm0, %v2102_v3, 4286644096  ;;  %v2103_v41 = vmax.bf16 %v1417_v50, %v1397_v46  ;;  %v299_v25 = vrot.slane %v298_v36, 1  ;;  %v323_v32 = vrot.slane %v322_v2, 2 }
  0x49   :  { %v347_v13 = vrot.slane %v346_v22, 4  ;;  %v359_v24 = vmax.f32 %v357_v28, %v358_v44  ;;  %v312_v10 = vrot.slane %v311_v34, 1  ;;  %v335_v52 = vmax.f32 %v333_v31, %v334_v45 }
  0x4a   :  { %v381_v35 = vsel %vm105_vm0, %v2103_v41, 4286644096  ;;  %v370_v57 = vunpack.i.l.bf16 %v368_v38  ;;  %v371_v11 = vunpack.i.h.bf16 %v368_v38  ;;  %v324_v27 = vmax.f32 %v322_v2, %v323_v32 }
  0x4b   :  { %v348_v39 = vmax.f32 %v346_v22, %v347_v13  ;;  %v360_v5 = vrot.slane %v359_v24, 4  ;;  %v383_v37 = vunpack.i.l.bf16 %v381_v35  ;;  %v336_v49 = vrot.slane %v335_v52, 2 }
  0x4c   :  { %v372_v40 = vmax.f32 %v370_v57, %v371_v11  ;;  %v384_v46 = vunpack.i.h.bf16 %v381_v35  ;;  %v325_v50 = vrot.slane %v324_v27, 1  ;;  %v2104_v28 = vmax.bf16 %v1422_v51, %v1402_v47 }
  0x4d   :  { %v349_v16 = vrot.slane %v348_v39, 2  ;;  %v361_v3 = vmax.f32 %v359_v24, %v360_v5  ;;  %v1697_v44 = vmax.f32 %v298_v36, %v299_v25  ;;  %v337_v2 = vmax.f32 %v335_v52, %v336_v49 }
  0x4e   :  { %v394_v31 = vsel %vm105_vm0, %v2104_v28, 4286644096  ;;  %v373_v22 = vrot.slane %v372_v40, 4  ;;  %v385_v45 = vmax.f32 %v383_v37, %v384_v46  ;;  %v1699_v38 = vmax.f32 %v311_v34, %v312_v10  ;;  %v2106_v28 = vld [vmem:[#allocation3_spill] sm:$0xff] }
  0x4f   :  { %v350_v41 = vmax.f32 %v348_v39, %v349_v16  ;;  %v362_v32 = vrot.slane %v361_v3, 2  ;;  %v396_v13 = vunpack.i.l.bf16 %v394_v31  ;;  %v338_v57 = vrot.slane %v337_v2, 1 }
  0x50   :  { %v374_v35 = vmax.f32 %v372_v40, %v373_v22  ;;  %v386_v11 = vrot.slane %v385_v45, 4  ;;  %v397_v42 = vunpack.i.h.bf16 %v394_v31  ;;  %v1701_v24 = vmax.f32 %v324_v27, %v325_v50 }
  0x51   :  { %v351_v5 = vrot.slane %v350_v41, 1  ;;  %v363_v47 = vmax.f32 %v361_v3, %v362_v32  ;;  %v2105_v51 = vmax.bf16 %v1434_v56, %v1407_v48  ;;  %v1711_v37 = vmax.f32 %v337_v2, %v338_v57 }
  0x52   :  { %v375_v25 = vrot.slane %v374_v35, 2  ;;  %v387_v10 = vmax.f32 %v385_v45, %v386_v11  ;;  %v398_v52 = vmax.f32 %v396_v13, %v397_v42  ;;  %v2107_v42 = vmax.bf16 %v1467_v1, %v2106_v28  ;;  %v2108_v11 = vld [vmem:[#allocation7_spill] sm:$0xff] }
  0x53   :  { %v407_v36 = vsel %vm105_vm0, %v2105_v51, 4286644096  ;;  %v364_v40 = vrot.slane %v363_v47, 1  ;;  %v1715_v56 = vmax.f32 %v350_v41, %v351_v5  ;;  %v2109_v51 = vld [vmem:[#allocation4_spill] sm:$0xff]  ;;  %v2120_v55 = vmax.bf16 %v1563_v62, %v1558_v6 }
  0x54   :  { %v409_v27 = vunpack.i.l.bf16 %v407_v36  ;;  %v410_v49 = vunpack.i.h.bf16 %v407_v36  ;;  %v376_v46 = vmax.f32 %v374_v35, %v375_v25  ;;  %v388_v50 = vrot.slane %v387_v10, 2 }
  0x55   :  { %v399_v16 = vrot.slane %v398_v52, 4  ;;  %v420_v31 = vsel %vm105_vm0, %v2107_v42, 4286644096  ;;  %v2110_v36 = vmax.bf16 %v2108_v11, %v2109_v51  ;;  %v1727_v5 = vmax.f32 %v363_v47, %v364_v40 }
  0x56   :  { %v411_v3 = vmax.f32 %v409_v27, %v410_v49  ;;  %v377_v22 = vrot.slane %v376_v46, 1  ;;  %v389_v2 = vmax.f32 %v387_v10, %v388_v50  ;;  %v422_v32 = vunpack.i.l.bf16 %v420_v31  ;;  %v2112_v50 = vld [vmem:[#allocation5_spill] sm:$0xff] }
  0x57   :  { %v400_v45 = vmax.f32 %v398_v52, %v399_v16  ;;  %v423_v35 = vunpack.i.h.bf16 %v420_v31  ;;  %v433_v41 = vsel %vm105_vm0, %v2110_v36, 4286644096  ;;  %v2111_v52 = vld [vmem:[#allocation8_spill] sm:$0xff]  ;;  %v498_v12 = vsel %vm105_vm0, %v2120_v55, 4286644096 }
  0x58   :  { %v412_v57 = vrot.slane %v411_v3, 4  ;;  %v390_v25 = vrot.slane %v389_v2, 1  ;;  %v435_v27 = vunpack.i.l.bf16 %v433_v41  ;;  %v436_v10 = vunpack.i.h.bf16 %v433_v41 }
  0x59   :  { %v401_v1 = vrot.slane %v400_v45, 2  ;;  %v424_v28 = vmax.f32 %v422_v32, %v423_v35  ;;  %v2113_v16 = vmax.bf16 %v2111_v52, %v2112_v50  ;;  %v1735_v13 = vmax.f32 %v376_v46, %v377_v22  ;;  %v2115_v35 = vld [vmem:[#allocation6_spill] sm:$0xff]  ;;  %v2117_v50 = vld [vmem:[#allocation11_spill] sm:$0xff] }
  0x5a   :  { %v413_v49 = vmax.f32 %v411_v3, %v412_v57  ;;  %v437_v36 = vmax.f32 %v435_v27, %v436_v10  ;;  %v1739_v32 = vmax.f32 %v389_v2, %v390_v25  ;;  %v2114_v57 = vld [vmem:[#allocation9_spill] sm:$0xff]  ;;  %v2121_v6 = vmax.bf16 %v1575_v59, %v1570_v54 }
  0x5b   :  { %v446_v42 = vsel %vm105_vm0, %v2113_v16, 4286644096  ;;  %v402_v11 = vmax.f32 %v400_v45, %v401_v1  ;;  %v425_v40 = vrot.slane %v424_v28, 4  ;;  %v2116_v41 = vmax.bf16 %v2114_v57, %v2115_v35  ;;  %v2118_v16 = vld [vmem:[#allocation10_spill] sm:$0xff] }
  0x5c   :  { %v448_v51 = vunpack.i.l.bf16 %v446_v42  ;;  %v414_v47 = vrot.slane %v413_v49, 2  ;;  %v449_v48 = vunpack.i.h.bf16 %v446_v42  ;;  %v2119_v46 = vmax.bf16 %v2117_v50, %v2118_v16 }
  0x5d   :  { %v459_v52 = vsel %vm105_vm0, %v2116_v41, 4286644096  ;;  %v403_v45 = vrot.slane %v402_v11, 1  ;;  %v426_v1 = vmax.f32 %v424_v28, %v425_v40  ;;  %v438_v31 = vrot.slane %v437_v36, 4 }
  0x5e   :  { %v472_v22 = vsel %vm105_vm0, %v2119_v46, 4286644096  ;;  %v450_v27 = vmax.f32 %v448_v51, %v449_v48  ;;  %v461_v42 = vunpack.i.l.bf16 %v459_v52  ;;  %v462_v2 = vunpack.i.h.bf16 %v459_v52 }
  0x5f   :  { %v474_v25 = vunpack.i.l.bf16 %v472_v22  ;;  %v415_v3 = vmax.f32 %v413_v49, %v414_v47  ;;  %v427_v39 = vrot.slane %v426_v1, 2  ;;  %v439_v57 = vmax.f32 %v437_v36, %v438_v31 }
  0x60   :  { %v451_v35 = vrot.slane %v450_v27, 4  ;;  %v463_v50 = vmax.f32 %v461_v42, %v462_v2  ;;  %v475_v16 = vunpack.i.h.bf16 %v472_v22  ;;  %v485_v48 = vsel %vm105_vm0, %v102_v61, 4286644096 }
  0x61   :  { %v1757_v28 = vmax.f32 %v402_v11, %v403_v45  ;;  %v428_v51 = vmax.f32 %v426_v1, %v427_v39  ;;  %v440_v40 = vrot.slane %v439_v57, 2  ;;  %v487_v47 = vunpack.i.l.bf16 %v485_v48 }
  0x62   :  { %v452_v52 = vmax.f32 %v450_v27, %v451_v35  ;;  %v464_v46 = vrot.slane %v463_v50, 4  ;;  %v476_v49 = vmax.f32 %v474_v25, %v475_v16  ;;  %v488_v31 = vunpack.i.h.bf16 %v485_v48 }
  0x63   :  { %v416_v36 = vrot.slane %v415_v3, 1  ;;  %v429_v10 = vrot.slane %v428_v51, 1  ;;  %v441_v34 = vmax.f32 %v439_v57, %v440_v40  ;;  %v405_v61 = vpack.i.bf16 %v1757_v28, %v1757_v28 }
  0x64   :  { %v453_v41 = vrot.slane %v452_v52, 2  ;;  %v465_v42 = vmax.f32 %v463_v50, %v464_v46  ;;  %v477_v22 = vrot.slane %v476_v49, 4  ;;  %v489_v2 = vmax.f32 %v487_v47, %v488_v31 }
  0x65   :  { %v442_v39 = vrot.slane %v441_v34, 1  ;;  %v500_v45 = vunpack.i.l.bf16 %v498_v12  ;;  %v501_v35 = vunpack.i.h.bf16 %v498_v12  ;;  %v1765_v57 = vmax.f32 %v415_v3, %v416_v36 }
  0x66   :  { %v454_v11 = vmax.f32 %v452_v52, %v453_v41  ;;  %v466_v1 = vrot.slane %v465_v42, 2  ;;  %v478_v27 = vmax.f32 %v476_v49, %v477_v22  ;;  %v490_v25 = vrot.slane %v489_v2, 4 }
  0x67   :  { %v1767_v50 = vmax.f32 %v428_v51, %v429_v10  ;;  %v511_v62 = vsel %vm105_vm0, %v2121_v6, 4286644096  ;;  %v502_v47 = vmax.f32 %v500_v45, %v501_v35  ;;  %v443_v41 = vmax.f32 %v441_v34, %v442_v39 }
  0x68   :  { %v455_v16 = vrot.slane %v454_v11, 1  ;;  %v467_v48 = vmax.f32 %v465_v42, %v466_v1  ;;  %v479_v40 = vrot.slane %v478_v27, 2  ;;  %v491_v46 = vmax.f32 %v489_v2, %v490_v25  ;;  %v2123_v25 = vld [vmem:[#allocation2_spill] sm:$0xff] }
  0x69   :  { %v513_v31 = vunpack.i.l.bf16 %v511_v62  ;;  %v514_v49 = vunpack.i.h.bf16 %v511_v62  ;;  %v503_v36 = vrot.slane %v502_v47, 4  ;;  %v418_v10 = vpack.i.bf16 %v1765_v57, %v1765_v57 }
  0x6a   :  { %v456_v52 = vmax.f32 %v454_v11, %v455_v16  ;;  %v468_v22 = vrot.slane %v467_v48, 1  ;;  %v480_v55 = vmax.f32 %v478_v27, %v479_v40  ;;  %v492_v3 = vrot.slane %v491_v46, 2 }
  0x6b   :  { %v431_v54 = vpack.i.bf16 %v1767_v50, %v1767_v50  ;;  %v515_v59 = vmax.f32 %v513_v31, %v514_v49  ;;  %v2122_v51 = vlaneseq  ;;  %v504_v34 = vmax.f32 %v502_v47, %v503_v36 }
  0x6c   :  { %v469_v12 = vmax.f32 %v467_v48, %v468_v22  ;;  %v481_v2 = vrot.slane %v480_v55, 1  ;;  %v493_v45 = vmax.f32 %v491_v46, %v492_v3  ;;  %v444_v39 = vpack.i.bf16 %v443_v41, %v443_v41 }
  0x6d   :  { %v559_v42 = vshrl.u32 %v2122_v51, 7  ;;  %v457_v11 = vpack.i.bf16 %v456_v52, %v456_v52  ;;  %v516_v1 = vrot.slane %v515_v59, 4  ;;  %v2124_v27 = vunpack.c.0.s8 %v2123_v25 }
  0x6e   :  { %v470_v16 = vpack.i.bf16 %v469_v12, %v469_v12  ;;  %v482_v6 = vmax.f32 %v480_v55, %v481_v2  ;;  %v494_v57 = vrot.slane %v493_v45, 1  ;;  %v505_v62 = vrot.slane %v504_v34, 2 }
  0x6f   :  { %v1780_v35 = vsub.s32 %v2124_v27, %v559_v42  ;;  %v517_v40 = vmax.f32 %v515_v59, %v516_v1  ;;  %v2125_v50 = vpack.i.bf16 %v1565_v4, %v1565_v4  ;;  %v2126_v46 = vpack.i.bf16 %v1577_v19, %v1577_v19 }
  0x70   :  { %v2127_v41 = vpack.i.bf16 %v1581_v0, %v1581_v0  ;;  %v483_v31 = vpack.i.bf16 %v482_v6, %v482_v6  ;;  %v495_v49 = vmax.f32 %v493_v45, %v494_v57  ;;  %v506_v22 = vmax.f32 %v504_v34, %v505_v62 }
  0x71   :  { %v1786_v48 = vrot.slane %v2125_v50, %v1780_v35  ;;  %v1792_v47 = vrot.slane %v2126_v46, %v1780_v35  ;;  %v2128_v4 = vpack.i.bf16 %v1585_v8, %v1585_v8  ;;  %v518_v3 = vrot.slane %v517_v40, 2 }
  0x72   :  { %v1798_v52 = vrot.slane %v2127_v41, %v1780_v35  ;;  %v2129_v19 = vpack.i.bf16 %v1601_v9, %v1601_v9  ;;  %v1816_v0 = vrot.slane %v184_v29, %v1780_v35  ;;  %v1822_v8 = vrot.slane %v197_v30, %v1780_v35 }
  0x73   :  { %v1804_v55 = vrot.slane %v2128_v4, %v1780_v35  ;;  %v496_v59 = vpack.i.bf16 %v495_v49, %v495_v49  ;;  %v507_v51 = vrot.slane %v506_v22, 1  ;;  %v1828_v9 = vrot.slane %v210_v33, %v1780_v35 }
  0x74   :  { %v1810_v36 = vrot.slane %v2129_v19, %v1780_v35  ;;  %v1834_v17 = vrot.slane %v223_v15, %v1780_v35  ;;  %v519_v29 = vmax.f32 %v517_v40, %v518_v3  ;;  %v1840_v14 = vrot.slane %v236_v20, %v1780_v35 }
  0x75   :  { %v1846_v26 = vrot.slane %v249_v63, %v1780_v35  ;;  %v1852_v60 = vrot.slane %v262_v53, %v1780_v35  ;;  %v508_v30 = vmax.f32 %v506_v22, %v507_v51  ;;  %v1858_v43 = vrot.slane %v275_v7, %v1780_v35 }
  0x76   :  { %v2130_v33 = vpack.i.bf16 %v1681_v58, %v1681_v58  ;;  %v2131_v15 = vpack.i.bf16 %v1697_v44, %v1697_v44  ;;  %v520_v20 = vrot.slane %v519_v29, 1  ;;  %v2132_v63 = vpack.i.bf16 %v1699_v38, %v1699_v38 }
  0x77   :  { %v2133_v53 = vpack.i.bf16 %v1701_v24, %v1701_v24  ;;  %v2134_v58 = vpack.i.bf16 %v1711_v37, %v1711_v37  ;;  %v509_v42 = vpack.i.bf16 %v508_v30, %v508_v30  ;;  %v2135_v12 = vpack.i.bf16 %v1715_v56, %v1715_v56 }
  0x78   :  { %v1864_v18 = vrot.slane %v2130_v33, %v1780_v35  ;;  %v1870_v23 = vrot.slane %v2131_v15, %v1780_v35  ;;  %v1876_v21 = vrot.slane %v2132_v63, %v1780_v35  ;;  %v2136_v2 = vpack.i.bf16 %v1727_v5, %v1727_v5 }
  0x79   :  { %v1882_v7 = vrot.slane %v2133_v53, %v1780_v35  ;;  %v1888_v44 = vrot.slane %v2134_v58, %v1780_v35  ;;  %v1894_v38 = vrot.slane %v2135_v12, %v1780_v35  ;;  %v2137_v45 = vpack.i.bf16 %v1735_v13, %v1735_v13 }
  0x7a   :  { %v1900_v24 = vrot.slane %v2136_v2, %v1780_v35  ;;  %v521_v34 = vmax.f32 %v519_v29, %v520_v20  ;;  %v2138_v1 = vpack.i.bf16 %v1739_v32, %v1739_v32  ;;  %v1918_v5 = vrot.slane %v405_v61, %v1780_v35 }
  0x7b   :  { %v1906_v37 = vrot.slane %v2137_v45, %v1780_v35  ;;  %v1921_v25 = vrot.slane %v418_v10, %v1780_v35  ;;  %v1924_v13 = vrot.slane %v431_v54, %v1780_v35  ;;  %v1927_v27 = vrot.slane %v444_v39, %v1780_v35 }
  0x7c   :  { %v1912_v56 = vrot.slane %v2138_v1, %v1780_v35  ;;  %v1930_v6 = vrot.slane %v457_v11, %v1780_v35  ;;  %v1933_v32 = vrot.slane %v470_v16, %v1780_v35  ;;  %v522_v57 = vpack.i.bf16 %v521_v34, %v521_v34 }
  0x7d   :  { %v1936_v28 = vrot.slane %v483_v31, %v1780_v35  ;;  %v1939_v61 = vrot.slane %v496_v59, %v1780_v35  ;;  %v1942_v10 = vrot.slane %v509_v42, %v1780_v35  ;;  %v785_v54 = vrot.slane %v1786_v48, %v1780_v35 }
  0x7e   :  { %v792_v39 = vrot.slane %v1792_v47, %v1780_v35  ;;  %v799_v11 = vrot.slane %v1798_v52, %v1780_v35  ;;  %v806_v16 = vrot.slane %v1804_v55, %v1780_v35  ;;  %v1953_v62 = vrot.slane %v522_v57, %v1780_v35 }
  0x7f   :  { %v813_v40 = vrot.slane %v1810_v36, %v1780_v35  ;;  %v820_v50 = vrot.slane %v1816_v0, %v1780_v35  ;;  %v827_v48 = vrot.slane %v1822_v8, %v1780_v35  ;;  %v834_v46 = vrot.slane %v1828_v9, %v1780_v35 }
  0x80   :  { %v841_v47 = vrot.slane %v1834_v17, %v1780_v35  ;;  %v848_v41 = vrot.slane %v1840_v14, %v1780_v35  ;;  %v855_v52 = vrot.slane %v1846_v26, %v1780_v35  ;;  %v862_v31 = vrot.slane %v1852_v60, %v1780_v35 }
  0x81   :  { %v869_v49 = vrot.slane %v1858_v43, %v1780_v35  ;;  %v876_v22 = vrot.slane %v1864_v18, %v1780_v35  ;;  %v883_v4 = vrot.slane %v1870_v23, %v1780_v35  ;;  %v890_v55 = vrot.slane %v1876_v21, %v1780_v35 }
  0x82   :  { %v897_v3 = vrot.slane %v1882_v7, %v1780_v35  ;;  %v904_v19 = vrot.slane %v1888_v44, %v1780_v35  ;;  %v911_v36 = vrot.slane %v1894_v38, %v1780_v35  ;;  %v918_v0 = vrot.slane %v1900_v24, %v1780_v35 }
  0x83   :  { %v925_v8 = vrot.slane %v1906_v37, %v1780_v35  ;;  %v932_v59 = vrot.slane %v1912_v56, %v1780_v35  ;;  %v939_v51 = vrot.slane %v1918_v5, %v1780_v35  ;;  %v946_v9 = vrot.slane %v1921_v25, %v1780_v35 }
  0x84   :  { %v953_v17 = vrot.slane %v1924_v13, %v1780_v35  ;;  %v960_v29 = vrot.slane %v1927_v27, %v1780_v35  ;;  %v967_v14 = vrot.slane %v1930_v6, %v1780_v35  ;;  %v974_v26 = vrot.slane %v1933_v32, %v1780_v35 }
  0x85   :  { %v981_v60 = vrot.slane %v1936_v28, %v1780_v35  ;;  %v988_v30 = vrot.slane %v1939_v61, %v1780_v35  ;;  %v995_v43 = vrot.slane %v1942_v10, %v1780_v35  ;;  %v1002_v33 = vrot.slane %v1953_v62, %v1780_v35 }
  0x86   :  { %v1003_v18 = vunpack.c.l.b16 %v785_v54  ;;  %v1004_v15 = vunpack.c.l.b16 %v792_v39  ;;  %v1005_v23 = vunpack.c.l.b16 %v799_v11  ;;  %v1006_v20 = vunpack.c.l.b16 %v806_v16 }
  0x87   :  { %v1007_v63 = vunpack.c.l.b16 %v813_v40  ;;  %v1008_v21 = vunpack.c.l.b16 %v820_v50  ;;  %v1009_v53 = vunpack.c.l.b16 %v827_v48  ;;  %v1010_v7 = vunpack.c.l.b16 %v834_v46 }
  0x88   :  { %v1011_v58 = vunpack.c.l.b16 %v841_v47  ;;  %v1012_v44 = vunpack.c.l.b16 %v848_v41  ;;  %v1013_v42 = vunpack.c.l.b16 %v855_v52  ;;  %v1014_v12 = vunpack.c.l.b16 %v862_v31 }
  0x89   :  { %v1015_v38 = vunpack.c.l.b16 %v869_v49  ;;  %v1016_v2 = vunpack.c.l.b16 %v876_v22  ;;  %v1017_v24 = vunpack.c.l.b16 %v883_v4  ;;  %v1018_v45 = vunpack.c.l.b16 %v890_v55 }
  0x8a   :  { %v1019_v37 = vunpack.c.l.b16 %v897_v3  ;;  %v1020_v34 = vunpack.c.l.b16 %v904_v19  ;;  %v1021_v1 = vunpack.c.l.b16 %v911_v36  ;;  %v1022_v56 = vunpack.c.l.b16 %v918_v0 }
  0x8b   :  { %v1023_v5 = vunpack.c.l.b16 %v925_v8  ;;  %v1024_v25 = vunpack.c.l.b16 %v932_v59  ;;  %v1025_v13 = vunpack.c.l.b16 %v939_v51  ;;  %v1026_v27 = vunpack.c.l.b16 %v946_v9 }
  0x8c   :  { %v1027_v6 = vunpack.c.l.b16 %v953_v17  ;;  %v1028_v32 = vunpack.c.l.b16 %v960_v29  ;;  %v1029_v57 = vunpack.c.l.b16 %v967_v14  ;;  %v1030_v28 = vunpack.c.l.b16 %v974_v26 }
  0x8d   :  { %v1031_v61 = vunpack.c.l.b16 %v981_v60  ;;  %v1032_v10 = vunpack.c.l.b16 %v988_v30  ;;  %v1033_v54 = vunpack.c.l.b16 %v995_v43  ;;  %v1034_v39 = vunpack.c.l.b16 %v1002_v33 }
  0x8e   :  { %v1035_v11 = vrot.slane %v1004_v15, 7  ;;  %v1038_v16 = vrot.slane %v1005_v23, 6  ;;  %v1041_v62 = vrot.slane %v1006_v20, 5  ;;  %v1044_v40 = vrot.slane %v1008_v21, 7 }
  0x8f   :  { %v1046_v50 = vrot.slane %v1009_v53, 6  ;;  %v1048_v48 = vrot.slane %v1010_v7, 5  ;;  %v1050_v46 = vrot.slane %v1012_v44, 7  ;;  %v1052_v41 = vrot.slane %v1013_v42, 6 }
  0x90   :  { %v1037_v47 = vsel %vm1036_vm1, %v1035_v11, %v1003_v18  ;;  %v1054_v52 = vrot.slane %v1014_v12, 5  ;;  %v1056_v31 = vrot.slane %v1016_v2, 7  ;;  %v1045_v22 = vsel %vm1036_vm1, %v1044_v40, %v1007_v63 }
  0x91   :  { %v1040_v49 = vsel %vm1039_vm2, %v1038_v16, %v1037_v47  ;;  %v1051_v4 = vsel %vm1036_vm1, %v1050_v46, %v1011_v58  ;;  %v1058_v55 = vrot.slane %v1017_v24, 6  ;;  %v1047_v19 = vsel %vm1039_vm2, %v1046_v50, %v1045_v22 }
  0x92   :  { %v1043_v3 = vsel %vm1042_vm3, %v1041_v62, %v1040_v49  ;;  %v1053_v36 = vsel %vm1039_vm2, %v1052_v41, %v1051_v4  ;;  %v1057_v0 = vsel %vm1036_vm1, %v1056_v31, %v1015_v38  ;;  %v1049_v8 = vsel %vm1042_vm3, %v1048_v48, %v1047_v19 }
  0x93   :  { %v1055_v59 = vsel %vm1042_vm3, %v1054_v52, %v1053_v36  ;;  %v1059_v51 = vsel %vm1039_vm2, %v1058_v55, %v1057_v0  ;;  %v1060_v9 = vrot.slane %v1018_v45, 5  ;;  %v1062_v17 = vrot.slane %v1020_v34, 7 }
  0x94   :  { %v1064_v29 = vrot.slane %v1021_v1, 6  ;;  %v1066_v14 = vrot.slane %v1022_v56, 5  ;;  %v1068_v26 = vrot.slane %v1024_v25, 7  ;;  %v1070_v30 = vrot.slane %v1025_v13, 6 }
  0x95   :  { %v1061_v60 = vsel %vm1042_vm3, %v1060_v9, %v1059_v51  ;;  %v1072_v43 = vrot.slane %v1026_v27, 5  ;;  %v1074_v33 = vrot.slane %v1028_v32, 7  ;;  %v1063_v18 = vsel %vm1036_vm1, %v1062_v17, %v1019_v37 }
  0x96   :  { %v1069_v15 = vsel %vm1036_vm1, %v1068_v26, %v1023_v5  ;;  %v1076_v23 = vrot.slane %v1029_v57, 6  ;;  %v1078_v20 = vrot.slane %v1030_v28, 5  ;;  %v1065_v63 = vsel %vm1039_vm2, %v1064_v29, %v1063_v18 }
  0x97   :  { %v1071_v21 = vsel %vm1039_vm2, %v1070_v30, %v1069_v15  ;;  %v1075_v53 = vsel %vm1036_vm1, %v1074_v33, %v1027_v6  ;;  %v1080_v7 = vrot.slane %v1032_v10, 7  ;;  %v1067_v58 = vsel %vm1042_vm3, %v1066_v14, %v1065_v63 }
  0x98   :  { %v1073_v44 = vsel %vm1042_vm3, %v1072_v43, %v1071_v21  ;;  %v1077_v42 = vsel %vm1039_vm2, %v1076_v23, %v1075_v53  ;;  %v1082_v12 = vrot.slane %v1033_v54, 6  ;;  %v1084_v24 = vrot.slane %v1034_v39, 5 }
  0x99   :  { %v1079_v38 = vsel %vm1042_vm3, %v1078_v20, %v1077_v42  ;;  %v1081_v2 = vsel %vm1036_vm1, %v1080_v7, %v1031_v61  ;;  %v1086_v45 = vpack.c.b16 %v1043_v3, %v1043_v3  ;;  %v1087_v34 = vpack.c.b16 %v1049_v8, %v1049_v8 }
  0x9a   :  { %v1083_v37 = vsel %vm1039_vm2, %v1082_v12, %v1081_v2  ;;  %v1088_v1 = vpack.c.b16 %v1055_v59, %v1055_v59  ;;  %v1089_v56 = vpack.c.b16 %v1061_v60, %v1061_v60  ;;  %v1090_v25 = vpack.c.b16 %v1067_v58, %v1067_v58 }
  0x9b   :  { %v1085_v5 = vsel %vm1042_vm3, %v1084_v24, %v1083_v37  ;;  %v1091_v13 = vpack.c.b16 %v1073_v44, %v1073_v44  ;;  %v1092_v27 = vpack.c.b16 %v1079_v38, %v1079_v38  ;;  %v1100_v32 = vrot.slane %v1086_v45, %v1780_v35 }
  0x9c   :  { %v1093_v6 = vpack.c.b16 %v1085_v5, %v1085_v5  ;;  %v1107_v57 = vrot.slane %v1087_v34, %v1780_v35  ;;  %v1114_v28 = vrot.slane %v1088_v1, %v1780_v35  ;;  %v1121_v61 = vrot.slane %v1089_v56, %v1780_v35 }
  0x9d   :  { %v1128_v10 = vrot.slane %v1090_v25, %v1780_v35  ;;  %v1135_v54 = vrot.slane %v1091_v13, %v1780_v35  ;;  %v1142_v39 = vrot.slane %v1092_v27, %v1780_v35  ;;  %1159 = vst.msk [vmem:[%s2068_s1] sm:$0x3] %vm1158_vm4, %v1100_v32 }
  0x9e   :  { %v1149_v11 = vrot.slane %v1093_v6, %v1780_v35  ;;  %1160 = vst.msk [vmem:[%s2068_s1 + $0x2] sm:$0x3] %vm1158_vm4, %v1107_v57  ;;  %1161 = vst.msk [vmem:[%s2068_s1 + $0x4] sm:$0x3] %vm1158_vm4, %v1114_v28 }
  0x9f   :  { %1162 = vst.msk [vmem:[%s2068_s1 + $0x6] sm:$0x3] %vm1158_vm4, %v1121_v61  ;;  %1163 = vst.msk [vmem:[%s2068_s1 + $0x8] sm:$0x3] %vm1158_vm4, %v1128_v10 }
  0xa0   :  { %1164 = vst.msk [vmem:[%s2068_s1 + $0xa] sm:$0x3] %vm1158_vm4, %v1135_v54  ;;  %1165 = vst.msk [vmem:[%s2068_s1 + $0xc] sm:$0x3] %vm1158_vm4, %v1142_v39 }
  0xa1   :  { %1166 = vst.msk [vmem:[%s2068_s1 + $0xe] sm:$0x3] %vm1158_vm4, %v1149_v11 }

// kernel: flower_classifier_forward.6
= control target key start
LH: loop header
LB: loop body
LE: loop exit
PB: predicated region body
PF: predicated region fallthrough
CT: control target
= control target key end

     0   :  { %vm393_vm0 = vcmask 57344   ;;  %vm2571_vm1 = vcmask 1041409   ;;  %vm2573_vm2 = vcmask 1042434   ;;  %vm2575_vm3 = vcmask 1043459   ;;  %s6417_s0 = inlined_call_operand.vmem [shape: bf16[16,2,8,2,8], index: 0, kind: input, shape index: {}]   ;;  %s6418_s1 = inlined_call_operand.vmem [shape: bf16[16,8,8], index: 1, kind: output, shape index: {}]  }
   0x1   :  { %v2884_v0 = vld [vmem:[%s6417_s0] sm:$0x1]  ;;  %v2889_v1 = vld [vmem:[%s6417_s0 + $0x1] sm:$0x1]  ;;  %v2894_v2 = vld [vmem:[%s6417_s0 + $0x2] sm:$0x1] }
   0x2   :  { %v2899_v3 = vld [vmem:[%s6417_s0 + $0x3] sm:$0x1]  ;;  %v2904_v4 = vld [vmem:[%s6417_s0 + $0x8] sm:$0x1]  ;;  %v2909_v5 = vld [vmem:[%s6417_s0 + $0x9] sm:$0x1] }
   0x3   :  { %v2914_v6 = vld [vmem:[%s6417_s0 + $0xa] sm:$0x1]  ;;  %v2919_v7 = vld [vmem:[%s6417_s0 + $0xb] sm:$0x1]  ;;  %v2924_v8 = vld [vmem:[%s6417_s0 + $0x4] sm:$0x1] }
   0x4   :  { %v2929_v9 = vld [vmem:[%s6417_s0 + $0x5] sm:$0x1]  ;;  %v2934_v10 = vld [vmem:[%s6417_s0 + $0x6] sm:$0x1]  ;;  %v2939_v11 = vld [vmem:[%s6417_s0 + $0x7] sm:$0x1] }
   0x5   :  { %6733 = vst [vmem:[#allocation2_spill] sm:$0xff] %v2929_v9  ;;  %6734 = vst [vmem:[#allocation3_spill] sm:$0xff] %v2934_v10  ;;  %v2944_v12 = vld [vmem:[%s6417_s0 + $0xc] sm:$0x1]  ;;  %v2949_v13 = vld [vmem:[%s6417_s0 + $0xd] sm:$0x1] }
   0x6   :  { %6735 = vst [vmem:[#allocation4_spill] sm:$0xff] %v2939_v11  ;;  %6736 = vst [vmem:[#allocation5_spill] sm:$0xff] %v2949_v13  ;;  %v2954_v14 = vld [vmem:[%s6417_s0 + $0xe] sm:$0x1]  ;;  %v2959_v15 = vld [vmem:[%s6417_s0 + $0xf] sm:$0x1] }
   0x7   :  { %6737 = vst [vmem:[#allocation6_spill] sm:$0xff] %v2954_v14  ;;  %6738 = vst [vmem:[#allocation7_spill] sm:$0xff] %v2959_v15  ;;  %v2964_v16 = vld [vmem:[%s6417_s0 + $0x10] sm:$0x1]  ;;  %v2969_v17 = vld [vmem:[%s6417_s0 + $0x11] sm:$0x1] }
   0x8   :  { %6739 = vst [vmem:[#allocation8_spill] sm:$0xff] %v2964_v16  ;;  %6740 = vst [vmem:[#allocation9_spill] sm:$0xff] %v2969_v17  ;;  %v2974_v18 = vld [vmem:[%s6417_s0 + $0x12] sm:$0x1]  ;;  %v2979_v19 = vld [vmem:[%s6417_s0 + $0x13] sm:$0x1] }
   0x9   :  { %6741 = vst [vmem:[#allocation10_spill] sm:$0xff] %v2974_v18  ;;  %6742 = vst [vmem:[#allocation11_spill] sm:$0xff] %v2979_v19  ;;  %v2984_v20 = vld [vmem:[%s6417_s0 + $0x18] sm:$0x1]  ;;  %v2989_v21 = vld [vmem:[%s6417_s0 + $0x19] sm:$0x1] }
   0xa   :  { %6743 = vst [vmem:[#allocation12_spill] sm:$0xff] %v2984_v20  ;;  %6744 = vst [vmem:[#allocation13_spill] sm:$0xff] %v2989_v21  ;;  %v2994_v22 = vld [vmem:[%s6417_s0 + $0x1a] sm:$0x1]  ;;  %v2999_v23 = vld [vmem:[%s6417_s0 + $0x1b] sm:$0x1] }
   0xb   :  { %6745 = vst [vmem:[#allocation14_spill] sm:$0xff] %v2994_v22  ;;  %6746 = vst [vmem:[#allocation15_spill] sm:$0xff] %v2999_v23  ;;  %v3004_v24 = vld [vmem:[%s6417_s0 + $0x14] sm:$0x1]  ;;  %v3009_v25 = vld [vmem:[%s6417_s0 + $0x15] sm:$0x1] }
   0xc   :  { %6747 = vst [vmem:[#allocation16_spill] sm:$0xff] %v3004_v24  ;;  %6748 = vst [vmem:[#allocation17_spill] sm:$0xff] %v3009_v25  ;;  %v3014_v26 = vld [vmem:[%s6417_s0 + $0x16] sm:$0x1]  ;;  %v3019_v27 = vld [vmem:[%s6417_s0 + $0x17] sm:$0x1] }
   0xd   :  { %6749 = vst [vmem:[#allocation18_spill] sm:$0xff] %v3014_v26  ;;  %6750 = vst [vmem:[#allocation19_spill] sm:$0xff] %v3019_v27  ;;  %v3024_v28 = vld [vmem:[%s6417_s0 + $0x1c] sm:$0x1]  ;;  %v3029_v29 = vld [vmem:[%s6417_s0 + $0x1d] sm:$0x1] }
   0xe   :  { %6751 = vst [vmem:[#allocation20_spill] sm:$0xff] %v3024_v28  ;;  %6752 = vst [vmem:[#allocation21_spill] sm:$0xff] %v3029_v29  ;;  %v3034_v30 = vld [vmem:[%s6417_s0 + $0x1e] sm:$0x1]  ;;  %v3039_v31 = vld [vmem:[%s6417_s0 + $0x1f] sm:$0x1] }
   0xf   :  { %6753 = vst [vmem:[#allocation22_spill] sm:$0xff] %v3034_v30  ;;  %6754 = vst [vmem:[#allocation23_spill] sm:$0xff] %v3039_v31  ;;  %v3044_v32 = vld [vmem:[%s6417_s0 + $0x20] sm:$0x1]  ;;  %v3049_v33 = vld [vmem:[%s6417_s0 + $0x21] sm:$0x1] }
  0x10   :  { %6755 = vst [vmem:[#allocation24_spill] sm:$0xff] %v3044_v32  ;;  %6756 = vst [vmem:[#allocation25_spill] sm:$0xff] %v3049_v33  ;;  %v3054_v34 = vld [vmem:[%s6417_s0 + $0x22] sm:$0x1]  ;;  %v3059_v35 = vld [vmem:[%s6417_s0 + $0x23] sm:$0x1] }
  0x11   :  { %6757 = vst [vmem:[#allocation26_spill] sm:$0xff] %v3054_v34  ;;  %6758 = vst [vmem:[#allocation27_spill] sm:$0xff] %v3059_v35  ;;  %v3064_v36 = vld [vmem:[%s6417_s0 + $0x28] sm:$0x1]  ;;  %v3069_v37 = vld [vmem:[%s6417_s0 + $0x29] sm:$0x1] }
  0x12   :  { %6759 = vst [vmem:[#allocation28_spill] sm:$0xff] %v3064_v36  ;;  %6760 = vst [vmem:[#allocation29_spill] sm:$0xff] %v3069_v37  ;;  %v3074_v38 = vld [vmem:[%s6417_s0 + $0x2a] sm:$0x1]  ;;  %v3079_v39 = vld [vmem:[%s6417_s0 + $0x2b] sm:$0x1] }
  0x13   :  { %6761 = vst [vmem:[#allocation30_spill] sm:$0xff] %v3074_v38  ;;  %6762 = vst [vmem:[#allocation31_spill] sm:$0xff] %v3079_v39  ;;  %v3084_v40 = vld [vmem:[%s6417_s0 + $0x24] sm:$0x1]  ;;  %v3089_v41 = vld [vmem:[%s6417_s0 + $0x25] sm:$0x1] }
  0x14   :  { %6763 = vst [vmem:[#allocation32_spill] sm:$0xff] %v3084_v40  ;;  %6764 = vst [vmem:[#allocation33_spill] sm:$0xff] %v3089_v41  ;;  %v3094_v42 = vld [vmem:[%s6417_s0 + $0x26] sm:$0x1]  ;;  %v3099_v43 = vld [vmem:[%s6417_s0 + $0x27] sm:$0x1] }
  0x15   :  { %6765 = vst [vmem:[#allocation34_spill] sm:$0xff] %v3094_v42  ;;  %6766 = vst [vmem:[#allocation35_spill] sm:$0xff] %v3099_v43  ;;  %v3104_v44 = vld [vmem:[%s6417_s0 + $0x2c] sm:$0x1]  ;;  %v3109_v45 = vld [vmem:[%s6417_s0 + $0x2d] sm:$0x1] }
  0x16   :  { %6767 = vst [vmem:[#allocation36_spill] sm:$0xff] %v3104_v44  ;;  %6768 = vst [vmem:[#allocation37_spill] sm:$0xff] %v3109_v45  ;;  %v3114_v46 = vld [vmem:[%s6417_s0 + $0x2e] sm:$0x1]  ;;  %v3119_v47 = vld [vmem:[%s6417_s0 + $0x2f] sm:$0x1] }
  0x17   :  { %6769 = vst [vmem:[#allocation38_spill] sm:$0xff] %v3114_v46  ;;  %6770 = vst [vmem:[#allocation39_spill] sm:$0xff] %v3119_v47  ;;  %v3132_v52 = vld [vmem:[%s6417_s0 + $0x30] sm:$0x1]  ;;  %v3137_v53 = vld [vmem:[%s6417_s0 + $0x31] sm:$0x1] }
  0x18   :  { %6771 = vst [vmem:[#allocation40_spill] sm:$0xff] %v3132_v52  ;;  %6772 = vst [vmem:[#allocation41_spill] sm:$0xff] %v3137_v53  ;;  %v3142_v54 = vld [vmem:[%s6417_s0 + $0x32] sm:$0x1]  ;;  %v3147_v55 = vld [vmem:[%s6417_s0 + $0x33] sm:$0x1] }
  0x19   :  { %6773 = vst [vmem:[#allocation42_spill] sm:$0xff] %v3142_v54  ;;  %6774 = vst [vmem:[#allocation43_spill] sm:$0xff] %v3147_v55  ;;  %v3152_v56 = vld [vmem:[%s6417_s0 + $0x38] sm:$0x1]  ;;  %v3157_v57 = vld [vmem:[%s6417_s0 + $0x39] sm:$0x1] }
  0x1a   :  { %6775 = vst [vmem:[#allocation44_spill] sm:$0xff] %v3152_v56  ;;  %6776 = vst [vmem:[#allocation45_spill] sm:$0xff] %v3157_v57  ;;  %v3162_v58 = vld [vmem:[%s6417_s0 + $0x3a] sm:$0x1]  ;;  %v3167_v59 = vld [vmem:[%s6417_s0 + $0x3b] sm:$0x1] }
  0x1b   :  { %6777 = vst [vmem:[#allocation46_spill] sm:$0xff] %v3162_v58  ;;  %6778 = vst [vmem:[#allocation47_spill] sm:$0xff] %v3167_v59  ;;  %v3180_v51 = vld [vmem:[%s6417_s0 + $0x34] sm:$0x1]  ;;  %v3185_v50 = vld [vmem:[%s6417_s0 + $0x35] sm:$0x1] }
  0x1c   :  { %6779 = vst [vmem:[#allocation48_spill] sm:$0xff] %v3180_v51  ;;  %6780 = vst [vmem:[#allocation49_spill] sm:$0xff] %v3185_v50  ;;  %v3190_v61 = vld [vmem:[%s6417_s0 + $0x36] sm:$0x1]  ;;  %v3195_v62 = vld [vmem:[%s6417_s0 + $0x37] sm:$0x1] }
  0x1d   :  { %6781 = vst [vmem:[#allocation50_spill] sm:$0xff] %v3190_v61  ;;  %6782 = vst [vmem:[#allocation51_spill] sm:$0xff] %v3195_v62  ;;  %v3200_v63 = vld [vmem:[%s6417_s0 + $0x3c] sm:$0x1]  ;;  %v3205_v60 = vld [vmem:[%s6417_s0 + $0x3d] sm:$0x1] }
  0x1e   :  { %6783 = vst [vmem:[#allocation52_spill] sm:$0xff] %v3200_v63  ;;  %6784 = vst [vmem:[#allocation53_spill] sm:$0xff] %v3205_v60  ;;  %v3210_v49 = vld [vmem:[%s6417_s0 + $0x3e] sm:$0x1]  ;;  %v3215_v48 = vld [vmem:[%s6417_s0 + $0x3f] sm:$0x1] }
  0x1f   :  { %6785 = vst [vmem:[#allocation54_spill] sm:$0xff] %v3210_v49  ;;  %6786 = vst [vmem:[#allocation55_spill] sm:$0xff] %v3215_v48  ;;  %v3228_v9 = vld [vmem:[%s6417_s0 + $0x40] sm:$0x1]  ;;  %v3233_v13 = vld [vmem:[%s6417_s0 + $0x41] sm:$0x1] }
  0x20   :  { %6787 = vst [vmem:[#allocation56_spill] sm:$0xff] %v3228_v9  ;;  %6788 = vst [vmem:[#allocation57_spill] sm:$0xff] %v3233_v13  ;;  %v3238_v15 = vld [vmem:[%s6417_s0 + $0x42] sm:$0x1]  ;;  %v3243_v10 = vld [vmem:[%s6417_s0 + $0x43] sm:$0x1] }
  0x21   :  { %6789 = vst [vmem:[#allocation58_spill] sm:$0xff] %v3238_v15  ;;  %6790 = vst [vmem:[#allocation59_spill] sm:$0xff] %v3243_v10  ;;  %v3248_v14 = vld [vmem:[%s6417_s0 + $0x48] sm:$0x1]  ;;  %v3253_v11 = vld [vmem:[%s6417_s0 + $0x49] sm:$0x1] }
  0x22   :  { %6791 = vst [vmem:[#allocation60_spill] sm:$0xff] %v3248_v14  ;;  %6792 = vst [vmem:[#allocation61_spill] sm:$0xff] %v3253_v11  ;;  %v3258_v19 = vld [vmem:[%s6417_s0 + $0x4a] sm:$0x1]  ;;  %v3263_v23 = vld [vmem:[%s6417_s0 + $0x4b] sm:$0x1] }
  0x23   :  { %6793 = vst [vmem:[#allocation62_spill] sm:$0xff] %v3258_v19  ;;  %6794 = vst [vmem:[#allocation63_spill] sm:$0xff] %v3263_v23  ;;  %v3276_v16 = vld [vmem:[%s6417_s0 + $0x44] sm:$0x1]  ;;  %v3281_v20 = vld [vmem:[%s6417_s0 + $0x45] sm:$0x1] }
  0x24   :  { %6795 = vst [vmem:[#allocation64_spill] sm:$0xff] %v3276_v16  ;;  %6796 = vst [vmem:[#allocation65_spill] sm:$0xff] %v3281_v20  ;;  %v3286_v22 = vld [vmem:[%s6417_s0 + $0x46] sm:$0x1]  ;;  %v3291_v17 = vld [vmem:[%s6417_s0 + $0x47] sm:$0x1] }
  0x25   :  { %6797 = vst [vmem:[#allocation66_spill] sm:$0xff] %v3286_v22  ;;  %6798 = vst [vmem:[#allocation67_spill] sm:$0xff] %v3291_v17  ;;  %v3296_v21 = vld [vmem:[%s6417_s0 + $0x4c] sm:$0x1]  ;;  %v3301_v18 = vld [vmem:[%s6417_s0 + $0x4d] sm:$0x1] }
  0x26   :  { %6799 = vst [vmem:[#allocation68_spill] sm:$0xff] %v3296_v21  ;;  %6800 = vst [vmem:[#allocation69_spill] sm:$0xff] %v3301_v18  ;;  %v3306_v27 = vld [vmem:[%s6417_s0 + $0x4e] sm:$0x1]  ;;  %v3311_v31 = vld [vmem:[%s6417_s0 + $0x4f] sm:$0x1] }
  0x27   :  { %6801 = vst [vmem:[#allocation70_spill] sm:$0xff] %v3306_v27  ;;  %6802 = vst [vmem:[#allocation71_spill] sm:$0xff] %v3311_v31  ;;  %v3324_v24 = vld [vmem:[%s6417_s0 + $0x50] sm:$0x1]  ;;  %v3329_v28 = vld [vmem:[%s6417_s0 + $0x51] sm:$0x1] }
  0x28   :  { %6803 = vst [vmem:[#allocation72_spill] sm:$0xff] %v3324_v24  ;;  %6804 = vst [vmem:[#allocation73_spill] sm:$0xff] %v3329_v28  ;;  %v3334_v30 = vld [vmem:[%s6417_s0 + $0x52] sm:$0x1]  ;;  %v3339_v25 = vld [vmem:[%s6417_s0 + $0x53] sm:$0x1] }
  0x29   :  { %6805 = vst [vmem:[#allocation74_spill] sm:$0xff] %v3334_v30  ;;  %6806 = vst [vmem:[#allocation75_spill] sm:$0xff] %v3339_v25  ;;  %v3344_v29 = vld [vmem:[%s6417_s0 + $0x58] sm:$0x1]  ;;  %v3349_v26 = vld [vmem:[%s6417_s0 + $0x59] sm:$0x1] }
  0x2a   :  { %6807 = vst [vmem:[#allocation76_spill] sm:$0xff] %v3344_v29  ;;  %6808 = vst [vmem:[#allocation77_spill] sm:$0xff] %v3349_v26  ;;  %v3354_v35 = vld [vmem:[%s6417_s0 + $0x5a] sm:$0x1]  ;;  %v3359_v39 = vld [vmem:[%s6417_s0 + $0x5b] sm:$0x1] }
  0x2b   :  { %6809 = vst [vmem:[#allocation78_spill] sm:$0xff] %v3354_v35  ;;  %6810 = vst [vmem:[#allocation79_spill] sm:$0xff] %v3359_v39  ;;  %v3372_v32 = vld [vmem:[%s6417_s0 + $0x54] sm:$0x1]  ;;  %v3377_v36 = vld [vmem:[%s6417_s0 + $0x55] sm:$0x1] }
  0x2c   :  { %6811 = vst [vmem:[#allocation80_spill] sm:$0xff] %v3372_v32  ;;  %6812 = vst [vmem:[#allocation81_spill] sm:$0xff] %v3377_v36  ;;  %v3382_v38 = vld [vmem:[%s6417_s0 + $0x56] sm:$0x1]  ;;  %v3387_v33 = vld [vmem:[%s6417_s0 + $0x57] sm:$0x1] }
  0x2d   :  { %6813 = vst [vmem:[#allocation82_spill] sm:$0xff] %v3382_v38  ;;  %6814 = vst [vmem:[#allocation83_spill] sm:$0xff] %v3387_v33  ;;  %v3392_v37 = vld [vmem:[%s6417_s0 + $0x5c] sm:$0x1]  ;;  %v3397_v34 = vld [vmem:[%s6417_s0 + $0x5d] sm:$0x1] }
  0x2e   :  { %6815 = vst [vmem:[#allocation84_spill] sm:$0xff] %v3392_v37  ;;  %6816 = vst [vmem:[#allocation85_spill] sm:$0xff] %v3397_v34  ;;  %v3402_v43 = vld [vmem:[%s6417_s0 + $0x5e] sm:$0x1]  ;;  %v3407_v47 = vld [vmem:[%s6417_s0 + $0x5f] sm:$0x1] }
  0x2f   :  { %6817 = vst [vmem:[#allocation86_spill] sm:$0xff] %v3402_v43  ;;  %6818 = vst [vmem:[#allocation87_spill] sm:$0xff] %v3407_v47  ;;  %v3420_v40 = vld [vmem:[%s6417_s0 + $0x60] sm:$0x1]  ;;  %v3425_v44 = vld [vmem:[%s6417_s0 + $0x61] sm:$0x1] }
  0x30   :  { %6819 = vst [vmem:[#allocation88_spill] sm:$0xff] %v3420_v40  ;;  %6820 = vst [vmem:[#allocation89_spill] sm:$0xff] %v3425_v44  ;;  %v3430_v46 = vld [vmem:[%s6417_s0 + $0x62] sm:$0x1]  ;;  %v3435_v41 = vld [vmem:[%s6417_s0 + $0x63] sm:$0x1] }
  0x31   :  { %6821 = vst [vmem:[#allocation90_spill] sm:$0xff] %v3430_v46  ;;  %6822 = vst [vmem:[#allocation91_spill] sm:$0xff] %v3435_v41  ;;  %v3440_v45 = vld [vmem:[%s6417_s0 + $0x68] sm:$0x1]  ;;  %v3445_v42 = vld [vmem:[%s6417_s0 + $0x69] sm:$0x1] }
  0x32   :  { %6823 = vst [vmem:[#allocation92_spill] sm:$0xff] %v3440_v45  ;;  %6824 = vst [vmem:[#allocation93_spill] sm:$0xff] %v3445_v42  ;;  %v3450_v55 = vld [vmem:[%s6417_s0 + $0x6a] sm:$0x1]  ;;  %v3455_v59 = vld [vmem:[%s6417_s0 + $0x6b] sm:$0x1] }
  0x33   :  { %6825 = vst [vmem:[#allocation94_spill] sm:$0xff] %v3450_v55  ;;  %6826 = vst [vmem:[#allocation95_spill] sm:$0xff] %v3455_v59  ;;  %v3468_v52 = vld [vmem:[%s6417_s0 + $0x64] sm:$0x1]  ;;  %v3473_v56 = vld [vmem:[%s6417_s0 + $0x65] sm:$0x1] }
  0x34   :  { %6827 = vst [vmem:[#allocation96_spill] sm:$0xff] %v3468_v52  ;;  %6828 = vst [vmem:[#allocation97_spill] sm:$0xff] %v3473_v56  ;;  %v3478_v58 = vld [vmem:[%s6417_s0 + $0x66] sm:$0x1]  ;;  %v3483_v53 = vld [vmem:[%s6417_s0 + $0x67] sm:$0x1] }
  0x35   :  { %6829 = vst [vmem:[#allocation98_spill] sm:$0xff] %v3478_v58  ;;  %6830 = vst [vmem:[#allocation99_spill] sm:$0xff] %v3483_v53  ;;  %v3488_v57 = vld [vmem:[%s6417_s0 + $0x6c] sm:$0x1]  ;;  %v3493_v54 = vld [vmem:[%s6417_s0 + $0x6d] sm:$0x1] }
  0x36   :  { %6831 = vst [vmem:[#allocation100_spill] sm:$0xff] %v3488_v57  ;;  %6832 = vst [vmem:[#allocation101_spill] sm:$0xff] %v3493_v54  ;;  %v3498_v62 = vld [vmem:[%s6417_s0 + $0x6e] sm:$0x1]  ;;  %v3503_v48 = vld [vmem:[%s6417_s0 + $0x6f] sm:$0x1] }
  0x37   :  { %6833 = vst [vmem:[#allocation102_spill] sm:$0xff] %v3498_v62  ;;  %6834 = vst [vmem:[#allocation103_spill] sm:$0xff] %v3503_v48  ;;  %v3516_v51 = vld [vmem:[%s6417_s0 + $0x70] sm:$0x1]  ;;  %v3521_v63 = vld [vmem:[%s6417_s0 + $0x71] sm:$0x1] }
  0x38   :  { %6835 = vst [vmem:[#allocation104_spill] sm:$0xff] %v3516_v51  ;;  %6836 = vst [vmem:[#allocation105_spill] sm:$0xff] %v3521_v63  ;;  %v3526_v49 = vld [vmem:[%s6417_s0 + $0x72] sm:$0x1]  ;;  %v3531_v50 = vld [vmem:[%s6417_s0 + $0x73] sm:$0x1] }
  0x39   :  { %6837 = vst [vmem:[#allocation106_spill] sm:$0xff] %v3526_v49  ;;  %6838 = vst [vmem:[#allocation107_spill] sm:$0xff] %v3531_v50  ;;  %v3536_v60 = vld [vmem:[%s6417_s0 + $0x78] sm:$0x1]  ;;  %v3541_v61 = vld [vmem:[%s6417_s0 + $0x79] sm:$0x1] }
  0x3a   :  { %6839 = vst [vmem:[#allocation108_spill] sm:$0xff] %v3536_v60  ;;  %6840 = vst [vmem:[#allocation109_spill] sm:$0xff] %v3541_v61  ;;  %v3546_v10 = vld [vmem:[%s6417_s0 + $0x7a] sm:$0x1]  ;;  %v3551_v23 = vld [vmem:[%s6417_s0 + $0x7b] sm:$0x1] }
  0x3b   :  { %6841 = vst [vmem:[#allocation110_spill] sm:$0xff] %v3546_v10  ;;  %6842 = vst [vmem:[#allocation111_spill] sm:$0xff] %v3551_v23  ;;  %v3564_v9 = vld [vmem:[%s6417_s0 + $0x74] sm:$0x1]  ;;  %v3569_v14 = vld [vmem:[%s6417_s0 + $0x75] sm:$0x1] }
  0x3c   :  { %6843 = vst [vmem:[#allocation112_spill] sm:$0xff] %v3564_v9  ;;  %6844 = vst [vmem:[#allocation113_spill] sm:$0xff] %v3569_v14  ;;  %v3574_v19 = vld [vmem:[%s6417_s0 + $0x76] sm:$0x1]  ;;  %v3579_v13 = vld [vmem:[%s6417_s0 + $0x77] sm:$0x1] }
  0x3d   :  { %6845 = vst [vmem:[#allocation114_spill] sm:$0xff] %v3574_v19  ;;  %6846 = vst [vmem:[#allocation115_spill] sm:$0xff] %v3579_v13  ;;  %v3584_v11 = vld [vmem:[%s6417_s0 + $0x7c] sm:$0x1]  ;;  %v3589_v15 = vld [vmem:[%s6417_s0 + $0x7d] sm:$0x1] }
  0x3e   :  { %6847 = vst [vmem:[#allocation116_spill] sm:$0xff] %v3584_v11  ;;  %6848 = vst [vmem:[#allocation117_spill] sm:$0xff] %v3589_v15  ;;  %v3594_v17 = vld [vmem:[%s6417_s0 + $0x7e] sm:$0x1]  ;;  %v3599_v31 = vld [vmem:[%s6417_s0 + $0x7f] sm:$0x1] }
  0x3f   :  { %6849 = vst [vmem:[#allocation118_spill] sm:$0xff] %v3594_v17  ;;  %6850 = vst [vmem:[#allocation119_spill] sm:$0xff] %v3599_v31  ;;  %v3612_v16 = vld [vmem:[%s6417_s0 + $0x80] sm:$0x1]  ;;  %v3617_v21 = vld [vmem:[%s6417_s0 + $0x81] sm:$0x1] }
  0x40   :  { %6851 = vst [vmem:[#allocation120_spill] sm:$0xff] %v3612_v16  ;;  %6852 = vst [vmem:[#allocation121_spill] sm:$0xff] %v3617_v21  ;;  %v3622_v27 = vld [vmem:[%s6417_s0 + $0x82] sm:$0x1]  ;;  %v3627_v20 = vld [vmem:[%s6417_s0 + $0x83] sm:$0x1] }
  0x41   :  { %6853 = vst [vmem:[#allocation122_spill] sm:$0xff] %v3622_v27  ;;  %6854 = vst [vmem:[#allocation123_spill] sm:$0xff] %v3627_v20  ;;  %v3632_v18 = vld [vmem:[%s6417_s0 + $0x88] sm:$0x1]  ;;  %v3637_v22 = vld [vmem:[%s6417_s0 + $0x89] sm:$0x1] }
  0x42   :  { %6855 = vst [vmem:[#allocation124_spill] sm:$0xff] %v3632_v18  ;;  %6856 = vst [vmem:[#allocation125_spill] sm:$0xff] %v3637_v22  ;;  %v3642_v25 = vld [vmem:[%s6417_s0 + $0x8a] sm:$0x1]  ;;  %v3647_v39 = vld [vmem:[%s6417_s0 + $0x8b] sm:$0x1] }
  0x43   :  { %6857 = vst [vmem:[#allocation126_spill] sm:$0xff] %v3642_v25  ;;  %6858 = vst [vmem:[#allocation127_spill] sm:$0xff] %v3647_v39  ;;  %v3660_v24 = vld [vmem:[%s6417_s0 + $0x84] sm:$0x1]  ;;  %v3665_v29 = vld [vmem:[%s6417_s0 + $0x85] sm:$0x1] }
  0x44   :  { %6859 = vst [vmem:[#allocation128_spill] sm:$0xff] %v3660_v24  ;;  %6860 = vst [vmem:[#allocation129_spill] sm:$0xff] %v3665_v29  ;;  %v3670_v35 = vld [vmem:[%s6417_s0 + $0x86] sm:$0x1]  ;;  %v3675_v28 = vld [vmem:[%s6417_s0 + $0x87] sm:$0x1] }
  0x45   :  { %6861 = vst [vmem:[#allocation130_spill] sm:$0xff] %v3670_v35  ;;  %6862 = vst [vmem:[#allocation131_spill] sm:$0xff] %v3675_v28  ;;  %v3680_v26 = vld [vmem:[%s6417_s0 + $0x8c] sm:$0x1]  ;;  %v3685_v30 = vld [vmem:[%s6417_s0 + $0x8d] sm:$0x1] }
  0x46   :  { %6863 = vst [vmem:[#allocation132_spill] sm:$0xff] %v3680_v26  ;;  %6864 = vst [vmem:[#allocation133_spill] sm:$0xff] %v3685_v30  ;;  %v3690_v33 = vld [vmem:[%s6417_s0 + $0x8e] sm:$0x1]  ;;  %v3695_v47 = vld [vmem:[%s6417_s0 + $0x8f] sm:$0x1] }
  0x47   :  { %6865 = vst [vmem:[#allocation134_spill] sm:$0xff] %v3690_v33  ;;  %6866 = vst [vmem:[#allocation135_spill] sm:$0xff] %v3695_v47  ;;  %v3708_v32 = vld [vmem:[%s6417_s0 + $0x90] sm:$0x1]  ;;  %v3713_v37 = vld [vmem:[%s6417_s0 + $0x91] sm:$0x1] }
  0x48   :  { %6867 = vst [vmem:[#allocation136_spill] sm:$0xff] %v3708_v32  ;;  %6868 = vst [vmem:[#allocation137_spill] sm:$0xff] %v3713_v37  ;;  %v3718_v43 = vld [vmem:[%s6417_s0 + $0x92] sm:$0x1]  ;;  %v3723_v36 = vld [vmem:[%s6417_s0 + $0x93] sm:$0x1] }
  0x49   :  { %6869 = vst [vmem:[#allocation138_spill] sm:$0xff] %v3718_v43  ;;  %6870 = vst [vmem:[#allocation139_spill] sm:$0xff] %v3723_v36  ;;  %v3728_v34 = vld [vmem:[%s6417_s0 + $0x98] sm:$0x1]  ;;  %v3733_v38 = vld [vmem:[%s6417_s0 + $0x99] sm:$0x1] }
  0x4a   :  { %6871 = vst [vmem:[#allocation140_spill] sm:$0xff] %v3728_v34  ;;  %6872 = vst [vmem:[#allocation141_spill] sm:$0xff] %v3733_v38  ;;  %v3738_v41 = vld [vmem:[%s6417_s0 + $0x9a] sm:$0x1]  ;;  %v3743_v59 = vld [vmem:[%s6417_s0 + $0x9b] sm:$0x1] }
  0x4b   :  { %6873 = vst [vmem:[#allocation142_spill] sm:$0xff] %v3738_v41  ;;  %6874 = vst [vmem:[#allocation143_spill] sm:$0xff] %v3743_v59  ;;  %v3756_v40 = vld [vmem:[%s6417_s0 + $0x94] sm:$0x1]  ;;  %v3761_v45 = vld [vmem:[%s6417_s0 + $0x95] sm:$0x1] }
  0x4c   :  { %6875 = vst [vmem:[#allocation144_spill] sm:$0xff] %v3756_v40  ;;  %6876 = vst [vmem:[#allocation145_spill] sm:$0xff] %v3761_v45  ;;  %v3766_v55 = vld [vmem:[%s6417_s0 + $0x96] sm:$0x1]  ;;  %v3771_v44 = vld [vmem:[%s6417_s0 + $0x97] sm:$0x1] }
  0x4d   :  { %6877 = vst [vmem:[#allocation146_spill] sm:$0xff] %v3766_v55  ;;  %6878 = vst [vmem:[#allocation147_spill] sm:$0xff] %v3771_v44  ;;  %v3776_v42 = vld [vmem:[%s6417_s0 + $0x9c] sm:$0x1]  ;;  %v3781_v46 = vld [vmem:[%s6417_s0 + $0x9d] sm:$0x1] }
  0x4e   :  { %6879 = vst [vmem:[#allocation148_spill] sm:$0xff] %v3776_v42  ;;  %6880 = vst [vmem:[#allocation149_spill] sm:$0xff] %v3781_v46  ;;  %v3786_v53 = vld [vmem:[%s6417_s0 + $0x9e] sm:$0x1]  ;;  %v3791_v48 = vld [vmem:[%s6417_s0 + $0x9f] sm:$0x1] }
  0x4f   :  { %6881 = vst [vmem:[#allocation150_spill] sm:$0xff] %v3786_v53  ;;  %6882 = vst [vmem:[#allocation151_spill] sm:$0xff] %v3791_v48  ;;  %v3804_v52 = vld [vmem:[%s6417_s0 + $0xa0] sm:$0x1]  ;;  %v3809_v57 = vld [vmem:[%s6417_s0 + $0xa1] sm:$0x1] }
  0x50   :  { %6883 = vst [vmem:[#allocation152_spill] sm:$0xff] %v3804_v52  ;;  %6884 = vst [vmem:[#allocation153_spill] sm:$0xff] %v3809_v57  ;;  %v3814_v62 = vld [vmem:[%s6417_s0 + $0xa2] sm:$0x1]  ;;  %v3819_v56 = vld [vmem:[%s6417_s0 + $0xa3] sm:$0x1] }
  0x51   :  { %6885 = vst [vmem:[#allocation154_spill] sm:$0xff] %v3814_v62  ;;  %6886 = vst [vmem:[#allocation155_spill] sm:$0xff] %v3819_v56  ;;  %v3824_v54 = vld [vmem:[%s6417_s0 + $0xa8] sm:$0x1]  ;;  %v3829_v58 = vld [vmem:[%s6417_s0 + $0xa9] sm:$0x1] }
  0x52   :  { %6887 = vst [vmem:[#allocation156_spill] sm:$0xff] %v3824_v54  ;;  %6888 = vst [vmem:[#allocation157_spill] sm:$0xff] %v3829_v58  ;;  %v3834_v50 = vld [vmem:[%s6417_s0 + $0xaa] sm:$0x1]  ;;  %v3839_v23 = vld [vmem:[%s6417_s0 + $0xab] sm:$0x1] }
  0x53   :  { %6889 = vst [vmem:[#allocation158_spill] sm:$0xff] %v3834_v50  ;;  %6890 = vst [vmem:[#allocation159_spill] sm:$0xff] %v3839_v23  ;;  %v3852_v51 = vld [vmem:[%s6417_s0 + $0xa4] sm:$0x1]  ;;  %v3857_v60 = vld [vmem:[%s6417_s0 + $0xa5] sm:$0x1] }
  0x54   :  { %6891 = vst [vmem:[#allocation160_spill] sm:$0xff] %v3852_v51  ;;  %6892 = vst [vmem:[#allocation161_spill] sm:$0xff] %v3857_v60  ;;  %v3862_v10 = vld [vmem:[%s6417_s0 + $0xa6] sm:$0x1]  ;;  %v3867_v63 = vld [vmem:[%s6417_s0 + $0xa7] sm:$0x1] }
  0x55   :  { %6893 = vst [vmem:[#allocation162_spill] sm:$0xff] %v3862_v10  ;;  %6894 = vst [vmem:[#allocation163_spill] sm:$0xff] %v3867_v63  ;;  %v3872_v61 = vld [vmem:[%s6417_s0 + $0xac] sm:$0x1]  ;;  %v3877_v49 = vld [vmem:[%s6417_s0 + $0xad] sm:$0x1] }
  0x56   :  { %6895 = vst [vmem:[#allocation164_spill] sm:$0xff] %v3872_v61  ;;  %6896 = vst [vmem:[#allocation165_spill] sm:$0xff] %v3877_v49  ;;  %v3882_v13 = vld [vmem:[%s6417_s0 + $0xae] sm:$0x1]  ;;  %v3887_v31 = vld [vmem:[%s6417_s0 + $0xaf] sm:$0x1] }
  0x57   :  { %6897 = vst [vmem:[#allocation166_spill] sm:$0xff] %v3882_v13  ;;  %6898 = vst [vmem:[#allocation167_spill] sm:$0xff] %v3887_v31  ;;  %v3900_v9 = vld [vmem:[%s6417_s0 + $0xb0] sm:$0x1]  ;;  %v3905_v11 = vld [vmem:[%s6417_s0 + $0xb1] sm:$0x1] }
  0x58   :  { %6899 = vst [vmem:[#allocation168_spill] sm:$0xff] %v3905_v11  ;;  %v3910_v17 = vld [vmem:[%s6417_s0 + $0xb2] sm:$0x1]  ;;  %v3915_v14 = vld [vmem:[%s6417_s0 + $0xb3] sm:$0x1]  ;;  %vm2577_vm4 = vcmask 1044484  }
  0x59   :  { %6900 = vst [vmem:[#allocation169_spill] sm:$0xff] %v3910_v17  ;;  %6901 = vst [vmem:[#allocation170_spill] sm:$0xff] %v3915_v14  ;;  %v3920_v15 = vld [vmem:[%s6417_s0 + $0xb8] sm:$0x1]  ;;  %v3925_v19 = vld [vmem:[%s6417_s0 + $0xb9] sm:$0x1] }
  0x5a   :  { %6902 = vst [vmem:[#allocation171_spill] sm:$0xff] %v3925_v19  ;;  %v3930_v20 = vld [vmem:[%s6417_s0 + $0xba] sm:$0x1]  ;;  %v3935_v39 = vld [vmem:[%s6417_s0 + $0xbb] sm:$0x1]  ;;  %vm2579_vm5 = vcmask 1045509  }
  0x5b   :  { %6903 = vst [vmem:[#allocation172_spill] sm:$0xff] %v3930_v20  ;;  %6904 = vst [vmem:[#allocation173_spill] sm:$0xff] %v3935_v39  ;;  %v3948_v16 = vld [vmem:[%s6417_s0 + $0xb4] sm:$0x1]  ;;  %v3953_v18 = vld [vmem:[%s6417_s0 + $0xb5] sm:$0x1] }
  0x5c   :  { %6905 = vst [vmem:[#allocation174_spill] sm:$0xff] %v3948_v16  ;;  %6906 = vst [vmem:[#allocation175_spill] sm:$0xff] %v3953_v18  ;;  %v3958_v25 = vld [vmem:[%s6417_s0 + $0xb6] sm:$0x1]  ;;  %v3963_v21 = vld [vmem:[%s6417_s0 + $0xb7] sm:$0x1] }
  0x5d   :  { %6907 = vst [vmem:[#allocation176_spill] sm:$0xff] %v3958_v25  ;;  %6908 = vst [vmem:[#allocation177_spill] sm:$0xff] %v3963_v21  ;;  %v3968_v22 = vld [vmem:[%s6417_s0 + $0xbc] sm:$0x1]  ;;  %v3973_v27 = vld [vmem:[%s6417_s0 + $0xbd] sm:$0x1] }
  0x5e   :  { %6909 = vst [vmem:[#allocation178_spill] sm:$0xff] %v3973_v27  ;;  %v3978_v28 = vld [vmem:[%s6417_s0 + $0xbe] sm:$0x1]  ;;  %v3983_v47 = vld [vmem:[%s6417_s0 + $0xbf] sm:$0x1]  ;;  %vm2581_vm6 = vcmask 1046534  }
  0x5f   :  { %6910 = vst [vmem:[#allocation179_spill] sm:$0xff] %v3978_v28  ;;  %6911 = vst [vmem:[#allocation180_spill] sm:$0xff] %v3983_v47  ;;  %v3996_v24 = vld [vmem:[%s6417_s0 + $0xc0] sm:$0x1]  ;;  %v4001_v26 = vld [vmem:[%s6417_s0 + $0xc1] sm:$0x1]  ;;  %v6948_v28 = vmax.bf16 %v2904_v4, %v2884_v0  ;;  %v6951_v0 = vmax.bf16 %v2919_v7, %v2899_v3 }
  0x60   :  { %v4006_v33 = vld [vmem:[%s6417_s0 + $0xc2] sm:$0x1]  ;;  %v4011_v29 = vld [vmem:[%s6417_s0 + $0xc3] sm:$0x1]  ;;  %v4016_v30 = vld [vmem:[%s6417_s0 + $0xc8] sm:$0x1] }
  0x61   :  { %6912 = vst [vmem:[#allocation181_spill] sm:$0xff] %v4006_v33  ;;  %6913 = vst [vmem:[#allocation182_spill] sm:$0xff] %v4011_v29  ;;  %v4021_v35 = vld [vmem:[%s6417_s0 + $0xc9] sm:$0x1]  ;;  %v4026_v36 = vld [vmem:[%s6417_s0 + $0xca] sm:$0x1] }
  0x62   :  { %v4031_v59 = vld [vmem:[%s6417_s0 + $0xcb] sm:$0x1]  ;;  %v4044_v32 = vld [vmem:[%s6417_s0 + $0xc4] sm:$0x1]  ;;  %v4049_v34 = vld [vmem:[%s6417_s0 + $0xc5] sm:$0x1] }
  0x63   :  { %6914 = vst [vmem:[#allocation183_spill] sm:$0xff] %v4031_v59  ;;  %v4054_v41 = vld [vmem:[%s6417_s0 + $0xc6] sm:$0x1]  ;;  %v4059_v37 = vld [vmem:[%s6417_s0 + $0xc7] sm:$0x1]  ;;  %vm2583_vm7 = vcmask 1047559  }
  0x64   :  { %6915 = vst [vmem:[#allocation184_spill] sm:$0xff] %v4054_v41  ;;  %6916 = vst [vmem:[#allocation185_spill] sm:$0xff] %v4059_v37  ;;  %v4064_v38 = vld [vmem:[%s6417_s0 + $0xcc] sm:$0x1]  ;;  %v4069_v43 = vld [vmem:[%s6417_s0 + $0xcd] sm:$0x1] }
  0x65   :  { %v4074_v44 = vld [vmem:[%s6417_s0 + $0xce] sm:$0x1]  ;;  %v4079_v48 = vld [vmem:[%s6417_s0 + $0xcf] sm:$0x1]  ;;  %v4092_v40 = vld [vmem:[%s6417_s0 + $0xd0] sm:$0x1] }
  0x66   :  { %6917 = vst [vmem:[#allocation186_spill] sm:$0xff] %v4079_v48  ;;  %v4097_v42 = vld [vmem:[%s6417_s0 + $0xd1] sm:$0x1]  ;;  %v4102_v53 = vld [vmem:[%s6417_s0 + $0xd2] sm:$0x1]  ;;  %vm2722_vm8 = vcmask 60416  }
  0x67   :  { %6918 = vst [vmem:[#allocation187_spill] sm:$0xff] %v4102_v53  ;;  %v4107_v46 = vld [vmem:[%s6417_s0 + $0xd3] sm:$0x1]  ;;  %v4112_v45 = vld [vmem:[%s6417_s0 + $0xd8] sm:$0x1] }
  0x68   :  { %6919 = vst [vmem:[#allocation188_spill] sm:$0xff] %v4107_v46  ;;  %v4117_v55 = vld [vmem:[%s6417_s0 + $0xd9] sm:$0x1]  ;;  %v4122_v56 = vld [vmem:[%s6417_s0 + $0xda] sm:$0x1] }
  0x69   :  { %v4127_v23 = vld [vmem:[%s6417_s0 + $0xdb] sm:$0x1]  ;;  %v4140_v52 = vld [vmem:[%s6417_s0 + $0xd4] sm:$0x1]  ;;  %v4145_v54 = vld [vmem:[%s6417_s0 + $0xd5] sm:$0x1] }
  0x6a   :  { %6920 = vst [vmem:[#allocation189_spill] sm:$0xff] %v4127_v23  ;;  %v4150_v50 = vld [vmem:[%s6417_s0 + $0xd6] sm:$0x1]  ;;  %v4155_v57 = vld [vmem:[%s6417_s0 + $0xd7] sm:$0x1] }
  0x6b   :  { %6921 = vst [vmem:[#allocation190_spill] sm:$0xff] %v4150_v50  ;;  %6922 = vst [vmem:[#allocation191_spill] sm:$0xff] %v4155_v57  ;;  %v4160_v58 = vld [vmem:[%s6417_s0 + $0xdc] sm:$0x1]  ;;  %v4165_v62 = vld [vmem:[%s6417_s0 + $0xdd] sm:$0x1] }
  0x6c   :  { %v4170_v63 = vld [vmem:[%s6417_s0 + $0xde] sm:$0x1]  ;;  %v4175_v31 = vld [vmem:[%s6417_s0 + $0xdf] sm:$0x1]  ;;  %v4188_v51 = vld [vmem:[%s6417_s0 + $0xe0] sm:$0x1] }
  0x6d   :  { %6923 = vst [vmem:[#allocation192_spill] sm:$0xff] %v4175_v31  ;;  %v4193_v61 = vld [vmem:[%s6417_s0 + $0xe1] sm:$0x1]  ;;  %v4198_v13 = vld [vmem:[%s6417_s0 + $0xe2] sm:$0x1] }
  0x6e   :  { %6924 = vst [vmem:[#allocation193_spill] sm:$0xff] %v4198_v13  ;;  %v4203_v60 = vld [vmem:[%s6417_s0 + $0xe3] sm:$0x1]  ;;  %v4208_v49 = vld [vmem:[%s6417_s0 + $0xe8] sm:$0x1] }
  0x6f   :  { %6925 = vst [vmem:[#allocation194_spill] sm:$0xff] %v4203_v60  ;;  %v4213_v10 = vld [vmem:[%s6417_s0 + $0xe9] sm:$0x1]  ;;  %v4226_v11 = vld [vmem:[%s6417_s0 + $0xe4] sm:$0x1]  ;;  %v6950_v60 = vmax.bf16 %v2914_v6, %v2894_v2 }
  0x70   :  { %v4231_v19 = vld [vmem:[%s6417_s0 + $0xe5] sm:$0x1]  ;;  %v4236_v39 = vld [vmem:[%s6417_s0 + $0xe6] sm:$0x1]  ;;  %v4241_v17 = vld [vmem:[%s6417_s0 + $0xe7] sm:$0x1] }
  0x71   :  { %6926 = vst [vmem:[#allocation195_spill] sm:$0xff] %v4231_v19  ;;  %6927 = vst [vmem:[#allocation196_spill] sm:$0xff] %v4236_v39  ;;  %v4246_v20 = vld [vmem:[%s6417_s0 + $0xea] sm:$0x1]  ;;  %v4251_v14 = vld [vmem:[%s6417_s0 + $0xeb] sm:$0x1] }
  0x72   :  { %6928 = vst [vmem:[#allocation197_spill] sm:$0xff] %v4241_v17  ;;  %6929 = vst [vmem:[#allocation198_spill] sm:$0xff] %v4251_v14  ;;  %v4256_v21 = vld [vmem:[%s6417_s0 + $0xec] sm:$0x1]  ;;  %v4269_v27 = vld [vmem:[%s6417_s0 + $0xed] sm:$0x1] }
  0x73   :  { %v4274_v16 = vld [vmem:[%s6417_s0 + $0xee] sm:$0x1]  ;;  %v4279_v25 = vld [vmem:[%s6417_s0 + $0xef] sm:$0x1]  ;;  %v4292_v59 = vld [vmem:[%s6417_s0 + $0xf0] sm:$0x1] }
  0x74   :  { %6930 = vst [vmem:[#allocation199_spill] sm:$0xff] %v4274_v16  ;;  %6931 = vst [vmem:[#allocation200_spill] sm:$0xff] %v4279_v25  ;;  %v4297_v33 = vld [vmem:[%s6417_s0 + $0xf1] sm:$0x1]  ;;  %v4302_v18 = vld [vmem:[%s6417_s0 + $0xf2] sm:$0x1] }
  0x75   :  { %6932 = vst [vmem:[#allocation201_spill] sm:$0xff] %v4292_v59  ;;  %6933 = vst [vmem:[#allocation202_spill] sm:$0xff] %v4297_v33  ;;  %v4315_v48 = vld [vmem:[%s6417_s0 + $0xf3] sm:$0x1]  ;;  %v4320_v41 = vld [vmem:[%s6417_s0 + $0xf4] sm:$0x1] }
  0x76   :  { %6934 = vst [vmem:[#allocation203_spill] sm:$0xff] %v4302_v18  ;;  %6935 = vst [vmem:[#allocation204_spill] sm:$0xff] %v4315_v48  ;;  %v4325_v29 = vld [vmem:[%s6417_s0 + $0xf5] sm:$0x1]  ;;  %v4338_v23 = vld [vmem:[%s6417_s0 + $0xf6] sm:$0x1] }
  0x77   :  { %6936 = vst [vmem:[#allocation205_spill] sm:$0xff] %v4320_v41  ;;  %6937 = vst [vmem:[#allocation206_spill] sm:$0xff] %v4325_v29  ;;  %v4343_v53 = vld [vmem:[%s6417_s0 + $0xf7] sm:$0x1]  ;;  %v4348_v37 = vld [vmem:[%s6417_s0 + $0xf8] sm:$0x1] }
  0x78   :  { %6938 = vst [vmem:[#allocation207_spill] sm:$0xff] %v4338_v23  ;;  %6939 = vst [vmem:[#allocation208_spill] sm:$0xff] %v4343_v53  ;;  %v4361_v31 = vld [vmem:[%s6417_s0 + $0xf9] sm:$0x1]  ;;  %v4366_v50 = vld [vmem:[%s6417_s0 + $0xfa] sm:$0x1] }
  0x79   :  { %6940 = vst [vmem:[#allocation209_spill] sm:$0xff] %v4348_v37  ;;  %6941 = vst [vmem:[#allocation210_spill] sm:$0xff] %v4361_v31  ;;  %v4371_v46 = vld [vmem:[%s6417_s0 + $0xfb] sm:$0x1]  ;;  %v4384_v14 = vld [vmem:[%s6417_s0 + $0xfc] sm:$0x1] }
  0x7a   :  { %6942 = vst [vmem:[#allocation211_spill] sm:$0xff] %v4366_v50  ;;  %6943 = vst [vmem:[#allocation212_spill] sm:$0xff] %v4371_v46  ;;  %v4389_v13 = vld [vmem:[%s6417_s0 + $0xfd] sm:$0x1]  ;;  %v4394_v57 = vld [vmem:[%s6417_s0 + $0xfe] sm:$0x1]  ;;  %v6949_v50 = vmax.bf16 %v2909_v5, %v2889_v1  ;;  %v6952_v5 = vmax.bf16 %v2944_v12, %v2924_v8 }
  0x7b   :  { %6944 = vst [vmem:[#allocation213_spill] sm:$0xff] %v4384_v14  ;;  %6945 = vst [vmem:[#allocation214_spill] sm:$0xff] %v4389_v13  ;;  %v4407_v25 = vld [vmem:[%s6417_s0 + $0xff] sm:$0x1]  ;;  %v396_v18 = vsel %vm393_vm0, %v6948_v28, 4286644096 }
  0x7c   :  { %6946 = vst [vmem:[#allocation215_spill] sm:$0xff] %v4394_v57  ;;  %6947 = vst [vmem:[#allocation216_spill] sm:$0xff] %v4407_v25  ;;  %v398_v48 = vunpack.i.l.bf16 %v396_v18  ;;  %v399_v46 = vunpack.i.h.bf16 %v396_v18  ;;  %v409_v39 = vsel %vm393_vm0, %v6949_v50, 4286644096  ;;  %v422_v23 = vsel %vm393_vm0, %v6950_v60, 4286644096 }
  0x7d   :  { %v411_v41 = vunpack.i.l.bf16 %v409_v39  ;;  %v412_v47 = vunpack.i.h.bf16 %v409_v39  ;;  %v435_v4 = vsel %vm393_vm0, %v6951_v0, 4286644096  ;;  %v424_v17 = vunpack.i.l.bf16 %v422_v23  ;;  %v6953_v50 = vld [vmem:[#allocation5_spill] sm:$0xff]  ;;  %v6954_v2 = vld [vmem:[#allocation2_spill] sm:$0xff]  ;;  %v6957_v8 = vld [vmem:[#allocation3_spill] sm:$0xff] }
  0x7e   :  { %v400_v28 = vmax.f32 %v398_v48, %v399_v46  ;;  %v425_v18 = vunpack.i.h.bf16 %v422_v23  ;;  %v437_v53 = vunpack.i.l.bf16 %v435_v4  ;;  %v438_v1 = vunpack.i.h.bf16 %v435_v4  ;;  %v6956_v13 = vld [vmem:[#allocation6_spill] sm:$0xff] }
  0x7f   :  { %v413_v25 = vmax.f32 %v411_v41, %v412_v47  ;;  %v448_v39 = vsel %vm393_vm0, %v6952_v5, 4286644096  ;;  %v6955_v6 = vmax.bf16 %v6953_v50, %v6954_v2  ;;  %v6958_v12 = vmax.bf16 %v6956_v13, %v6957_v8 }
  0x80   :  { %v401_v57 = vrot.slane %v400_v28, 4  ;;  %v426_v3 = vmax.f32 %v424_v17, %v425_v18  ;;  %v450_v7 = vunpack.i.l.bf16 %v448_v39  ;;  %v451_v0 = vunpack.i.h.bf16 %v448_v39 }
  0x81   :  { %v461_v60 = vsel %vm393_vm0, %v6955_v6, 4286644096  ;;  %v414_v46 = vrot.slane %v413_v25, 4  ;;  %v439_v48 = vmax.f32 %v437_v53, %v438_v1  ;;  %v474_v5 = vsel %vm393_vm0, %v6958_v12, 4286644096 }
  0x82   :  { %v463_v23 = vunpack.i.l.bf16 %v461_v60  ;;  %v464_v29 = vunpack.i.h.bf16 %v461_v60  ;;  %v402_v41 = vmax.f32 %v400_v28, %v401_v57  ;;  %v427_v47 = vrot.slane %v426_v3, 4  ;;  %v6959_v60 = vld [vmem:[#allocation7_spill] sm:$0xff]  ;;  %v6960_v57 = vld [vmem:[#allocation4_spill] sm:$0xff] }
  0x83   :  { %v452_v4 = vmax.f32 %v450_v7, %v451_v0  ;;  %v415_v14 = vmax.f32 %v413_v25, %v414_v46  ;;  %v440_v50 = vrot.slane %v439_v48, 4  ;;  %v476_v6 = vunpack.i.l.bf16 %v474_v5 }
  0x84   :  { %v465_v2 = vmax.f32 %v463_v23, %v464_v29  ;;  %v403_v33 = vrot.slane %v402_v41, 2  ;;  %v428_v17 = vmax.f32 %v426_v3, %v427_v47  ;;  %v477_v39 = vunpack.i.h.bf16 %v474_v5 }
  0x85   :  { %v453_v18 = vrot.slane %v452_v4, 4  ;;  %v416_v31 = vrot.slane %v415_v14, 2  ;;  %v441_v53 = vmax.f32 %v439_v48, %v440_v50  ;;  %v6961_v28 = vmax.bf16 %v6959_v60, %v6960_v57 }
  0x86   :  { %v466_v1 = vrot.slane %v465_v2, 4  ;;  %v404_v0 = vmax.f32 %v402_v41, %v403_v33  ;;  %v429_v13 = vrot.slane %v428_v17, 2  ;;  %v478_v12 = vmax.f32 %v476_v6, %v477_v39 }
  0x87   :  { %v487_v7 = vsel %vm393_vm0, %v6961_v28, 4286644096  ;;  %v454_v8 = vmax.f32 %v452_v4, %v453_v18  ;;  %v417_v25 = vmax.f32 %v415_v14, %v416_v31  ;;  %v442_v46 = vrot.slane %v441_v53, 2 }
  0x88   :  { %v467_v29 = vmax.f32 %v465_v2, %v466_v1  ;;  %v489_v23 = vunpack.i.l.bf16 %v487_v7  ;;  %v405_v59 = vrot.slane %v404_v0, 1  ;;  %v430_v3 = vmax.f32 %v428_v17, %v429_v13 }
  0x89   :  { %v455_v47 = vrot.slane %v454_v8, 2  ;;  %v479_v5 = vrot.slane %v478_v12, 4  ;;  %v418_v37 = vrot.slane %v417_v25, 1  ;;  %v443_v48 = vmax.f32 %v441_v53, %v442_v46 }
  0x8a   :  { %v468_v50 = vrot.slane %v467_v29, 2  ;;  %v490_v16 = vunpack.i.h.bf16 %v487_v7  ;;  %v406_v19 = vmax.f32 %v404_v0, %v405_v59  ;;  %v431_v60 = vrot.slane %v430_v3, 1  ;;  %v6963_v0 = vld [vmem:[#allocation12_spill] sm:$0xff] }
  0x8b   :  { %v456_v57 = vmax.f32 %v454_v8, %v455_v47  ;;  %v480_v28 = vmax.f32 %v478_v12, %v479_v5  ;;  %v419_v33 = vmax.f32 %v417_v25, %v418_v37  ;;  %v444_v41 = vrot.slane %v443_v48, 1  ;;  %v6964_v8 = vld [vmem:[#allocation8_spill] sm:$0xff]  ;;  %v6968_v47 = vld [vmem:[#allocation13_spill] sm:$0xff] }
  0x8c   :  { %v469_v4 = vmax.f32 %v467_v29, %v468_v50  ;;  %v491_v6 = vmax.f32 %v489_v23, %v490_v16  ;;  %v4449_v14 = vpack.i.bf16 %v406_v19, %v406_v19  ;;  %v432_v31 = vmax.f32 %v430_v3, %v431_v60  ;;  %v6969_v5 = vld [vmem:[#allocation9_spill] sm:$0xff] }
  0x8d   :  { %v457_v2 = vrot.slane %v456_v57, 1  ;;  %v481_v18 = vrot.slane %v480_v28, 2  ;;  %v4451_v17 = vpack.i.bf16 %v419_v33, %v419_v33  ;;  %v445_v39 = vmax.f32 %v443_v48, %v444_v41 }
  0x8e   :  { %v470_v1 = vrot.slane %v469_v4, 1  ;;  %v492_v53 = vrot.slane %v491_v6, 4  ;;  %v4453_v13 = vpack.i.bf16 %v432_v31, %v432_v31  ;;  %v6965_v37 = vmax.bf16 %v6963_v0, %v6964_v8 }
  0x8f   :  { %v458_v59 = vmax.f32 %v456_v57, %v457_v2  ;;  %v482_v7 = vmax.f32 %v480_v28, %v481_v18  ;;  %v4459_v16 = vpack.i.bf16 %v445_v39, %v445_v39  ;;  %v6970_v48 = vmax.bf16 %v6968_v47, %v6969_v5  ;;  %v6972_v2 = vld [vmem:[#allocation14_spill] sm:$0xff]  ;;  %v6975_v39 = vld [vmem:[#allocation15_spill] sm:$0xff] }
  0x90   :  { %6962 = vst [vmem:[#allocation5_spill] sm:$0xff] %v4453_v13  ;;  %v500_v12 = vsel %vm393_vm0, %v6965_v37, 4286644096  ;;  %v471_v19 = vmax.f32 %v469_v4, %v470_v1  ;;  %v493_v25 = vmax.f32 %v491_v6, %v492_v53  ;;  %v6973_v4 = vld [vmem:[#allocation10_spill] sm:$0xff]  ;;  %v6976_v1 = vld [vmem:[#allocation11_spill] sm:$0xff] }
  0x91   :  { %6966 = vst [vmem:[#allocation2_spill] sm:$0xff] %v4459_v16  ;;  %v502_v46 = vunpack.i.l.bf16 %v500_v12  ;;  %v4461_v29 = vpack.i.bf16 %v458_v59, %v458_v59  ;;  %v483_v23 = vrot.slane %v482_v7, 1  ;;  %v503_v3 = vunpack.i.h.bf16 %v500_v12 }
  0x92   :  { %v513_v50 = vsel %vm393_vm0, %v6970_v48, 4286644096  ;;  %v4467_v60 = vpack.i.bf16 %v471_v19, %v471_v19  ;;  %v494_v57 = vrot.slane %v493_v25, 2  ;;  %v6974_v6 = vmax.bf16 %v6972_v2, %v6973_v4  ;;  %v6979_v48 = vld [vmem:[#allocation20_spill] sm:$0xff] }
  0x93   :  { %6967 = vst [vmem:[#allocation6_spill] sm:$0xff] %v4461_v29  ;;  %v515_v28 = vunpack.i.l.bf16 %v513_v50  ;;  %v516_v33 = vunpack.i.h.bf16 %v513_v50  ;;  %v484_v41 = vmax.f32 %v482_v7, %v483_v23  ;;  %v504_v31 = vmax.f32 %v502_v46, %v503_v3  ;;  %v6980_v50 = vld [vmem:[#allocation16_spill] sm:$0xff] }
  0x94   :  { %6971 = vst [vmem:[#allocation3_spill] sm:$0xff] %v4467_v60  ;;  %v526_v18 = vsel %vm393_vm0, %v6974_v6, 4286644096  ;;  %v6977_v53 = vmax.bf16 %v6975_v39, %v6976_v1  ;;  %v495_v0 = vmax.f32 %v493_v25, %v494_v57  ;;  %v6981_v2 = vmax.bf16 %v6979_v48, %v6980_v50 }
  0x95   :  { %v517_v8 = vmax.f32 %v515_v28, %v516_v33  ;;  %v528_v37 = vunpack.i.l.bf16 %v526_v18  ;;  %v529_v12 = vunpack.i.h.bf16 %v526_v18  ;;  %v4477_v19 = vpack.i.bf16 %v484_v41, %v484_v41  ;;  %v6982_v41 = vld [vmem:[#allocation21_spill] sm:$0xff] }
  0x96   :  { %v539_v59 = vsel %vm393_vm0, %v6977_v53, 4286644096  ;;  %v505_v47 = vrot.slane %v504_v31, 4  ;;  %v496_v46 = vrot.slane %v495_v0, 1  ;;  %v552_v4 = vsel %vm393_vm0, %v6981_v2, 4286644096 }
  0x97   :  { %6978 = vst [vmem:[#allocation7_spill] sm:$0xff] %v4477_v19  ;;  %v541_v5 = vunpack.i.l.bf16 %v539_v59  ;;  %v542_v7 = vunpack.i.h.bf16 %v539_v59  ;;  %v518_v23 = vrot.slane %v517_v8, 4  ;;  %v530_v3 = vmax.f32 %v528_v37, %v529_v12  ;;  %v6983_v18 = vld [vmem:[#allocation17_spill] sm:$0xff] }
  0x98   :  { %v506_v6 = vmax.f32 %v504_v31, %v505_v47  ;;  %v554_v1 = vunpack.i.l.bf16 %v552_v4  ;;  %v555_v25 = vunpack.i.h.bf16 %v552_v4  ;;  %v497_v57 = vmax.f32 %v495_v0, %v496_v46  ;;  %v6986_v0 = vld [vmem:[#allocation22_spill] sm:$0xff] }
  0x99   :  { %v543_v39 = vmax.f32 %v541_v5, %v542_v7  ;;  %v519_v28 = vmax.f32 %v517_v8, %v518_v23  ;;  %v531_v33 = vrot.slane %v530_v3, 4  ;;  %v6984_v53 = vmax.bf16 %v6982_v41, %v6983_v18  ;;  %v6987_v8 = vld [vmem:[#allocation18_spill] sm:$0xff] }
  0x9a   :  { %v507_v19 = vrot.slane %v506_v6, 2  ;;  %v556_v37 = vmax.f32 %v554_v1, %v555_v25  ;;  %v4487_v29 = vpack.i.bf16 %v497_v57, %v497_v57  ;;  %v6988_v46 = vmax.bf16 %v6986_v0, %v6987_v8 }
  0x9b   :  { %v565_v59 = vsel %vm393_vm0, %v6984_v53, 4286644096  ;;  %v544_v60 = vrot.slane %v543_v39, 4  ;;  %v520_v48 = vrot.slane %v519_v28, 2  ;;  %v532_v50 = vmax.f32 %v530_v3, %v531_v33  ;;  %v6989_v33 = vld [vmem:[#allocation23_spill] sm:$0xff] }
  0x9c   :  { %v567_v12 = vunpack.i.l.bf16 %v565_v59  ;;  %6985 = vst [vmem:[#allocation4_spill] sm:$0xff] %v4487_v29  ;;  %v568_v31 = vunpack.i.h.bf16 %v565_v59  ;;  %v508_v47 = vmax.f32 %v506_v6, %v507_v19  ;;  %v557_v7 = vrot.slane %v556_v37, 4  ;;  %v6990_v19 = vld [vmem:[#allocation19_spill] sm:$0xff] }
  0x9d   :  { %v545_v5 = vmax.f32 %v543_v39, %v544_v60  ;;  %v578_v23 = vsel %vm393_vm0, %v6988_v46, 4286644096  ;;  %v521_v2 = vmax.f32 %v519_v28, %v520_v48  ;;  %v533_v4 = vrot.slane %v532_v50, 2 }
  0x9e   :  { %v569_v41 = vmax.f32 %v567_v12, %v568_v31  ;;  %v580_v18 = vunpack.i.l.bf16 %v578_v23  ;;  %v509_v53 = vrot.slane %v508_v47, 1  ;;  %v558_v25 = vmax.f32 %v556_v37, %v557_v7 }
  0x9f   :  { %v546_v1 = vrot.slane %v545_v5, 2  ;;  %v581_v57 = vunpack.i.h.bf16 %v578_v23  ;;  %v522_v29 = vrot.slane %v521_v2, 1  ;;  %v534_v16 = vmax.f32 %v532_v50, %v533_v4 }
  0xa0   :  { %v570_v3 = vrot.slane %v569_v41, 4  ;;  %v6991_v60 = vmax.bf16 %v6989_v33, %v6990_v19  ;;  %v510_v39 = vmax.f32 %v508_v47, %v509_v53  ;;  %v559_v0 = vrot.slane %v558_v25, 2  ;;  %v6995_v53 = vld [vmem:[#allocation24_spill] sm:$0xff] }
  0xa1   :  { %v547_v59 = vmax.f32 %v545_v5, %v546_v1  ;;  %v582_v8 = vmax.f32 %v580_v18, %v581_v57  ;;  %v523_v28 = vmax.f32 %v521_v2, %v522_v29  ;;  %v535_v48 = vrot.slane %v534_v16, 1  ;;  %v6994_v5 = vld [vmem:[#allocation28_spill] sm:$0xff] }
  0xa2   :  { %v591_v6 = vsel %vm393_vm0, %v6991_v60, 4286644096  ;;  %v571_v12 = vmax.f32 %v569_v41, %v570_v3  ;;  %v4497_v46 = vpack.i.bf16 %v510_v39, %v510_v39  ;;  %v560_v7 = vmax.f32 %v558_v25, %v559_v0 }
  0xa3   :  { %v593_v31 = vunpack.i.l.bf16 %v591_v6  ;;  %v548_v37 = vrot.slane %v547_v59, 1  ;;  %v583_v23 = vrot.slane %v582_v8, 4  ;;  %v4499_v50 = vpack.i.bf16 %v523_v28, %v523_v28  ;;  %v7000_v28 = vld [vmem:[#allocation25_spill] sm:$0xff] }
  0xa4   :  { %6992 = vst [vmem:[#allocation12_spill] sm:$0xff] %v4497_v46  ;;  %v536_v4 = vmax.f32 %v534_v16, %v535_v48  ;;  %v572_v13 = vrot.slane %v571_v12, 2  ;;  %v594_v33 = vunpack.i.h.bf16 %v591_v6  ;;  %v561_v60 = vrot.slane %v560_v7, 1 }
  0xa5   :  { %6993 = vst [vmem:[#allocation8_spill] sm:$0xff] %v4499_v50  ;;  %v549_v19 = vmax.f32 %v547_v59, %v548_v37  ;;  %v584_v47 = vmax.f32 %v582_v8, %v583_v23  ;;  %v6996_v18 = vmax.bf16 %v6994_v5, %v6995_v53  ;;  %v6999_v59 = vld [vmem:[#allocation29_spill] sm:$0xff]  ;;  %v7002_v37 = vld [vmem:[#allocation30_spill] sm:$0xff] }
  0xa6   :  { %v4505_v2 = vpack.i.bf16 %v536_v4, %v536_v4  ;;  %v573_v41 = vmax.f32 %v571_v12, %v572_v13  ;;  %v595_v1 = vmax.f32 %v593_v31, %v594_v33  ;;  %v562_v3 = vmax.f32 %v560_v7, %v561_v60  ;;  %v7003_v23 = vld [vmem:[#allocation26_spill] sm:$0xff] }
  0xa7   :  { %v604_v29 = vsel %vm393_vm0, %v6996_v18, 4286644096  ;;  %v4507_v25 = vpack.i.bf16 %v549_v19, %v549_v19  ;;  %v585_v39 = vrot.slane %v584_v47, 2  ;;  %v7001_v8 = vmax.bf16 %v6999_v59, %v7000_v28  ;;  %v7006_v59 = vld [vmem:[#allocation31_spill] sm:$0xff] }
  0xa8   :  { %6997 = vst [vmem:[#allocation13_spill] sm:$0xff] %v4505_v2  ;;  %v606_v57 = vunpack.i.l.bf16 %v604_v29  ;;  %v607_v16 = vunpack.i.h.bf16 %v604_v29  ;;  %v574_v0 = vrot.slane %v573_v41, 1  ;;  %v596_v6 = vrot.slane %v595_v1, 4  ;;  %v7007_v28 = vld [vmem:[#allocation27_spill] sm:$0xff] }
  0xa9   :  { %6998 = vst [vmem:[#allocation9_spill] sm:$0xff] %v4507_v25  ;;  %v617_v48 = vsel %vm393_vm0, %v7001_v8, 4286644096  ;;  %v7004_v5 = vmax.bf16 %v7002_v37, %v7003_v23  ;;  %v4517_v13 = vpack.i.bf16 %v562_v3, %v562_v3  ;;  %v586_v12 = vmax.f32 %v584_v47, %v585_v39 }
  0xaa   :  { %v608_v31 = vmax.f32 %v606_v57, %v607_v16  ;;  %v619_v33 = vunpack.i.l.bf16 %v617_v48  ;;  %v575_v7 = vmax.f32 %v573_v41, %v574_v0  ;;  %v597_v19 = vmax.f32 %v595_v1, %v596_v6  ;;  %v7010_v0 = vld [vmem:[#allocation36_spill] sm:$0xff] }
  0xab   :  { %v630_v4 = vsel %vm393_vm0, %v7004_v5, 4286644096  ;;  %7005 = vst [vmem:[#allocation14_spill] sm:$0xff] %v4517_v13  ;;  %v620_v60 = vunpack.i.h.bf16 %v617_v48  ;;  %v587_v18 = vrot.slane %v586_v12, 1  ;;  %v7008_v8 = vmax.bf16 %v7006_v59, %v7007_v28  ;;  %v7011_v6 = vld [vmem:[#allocation32_spill] sm:$0xff]  ;;  %v7013_v13 = vld [vmem:[#allocation37_spill] sm:$0xff] }
  0xac   :  { %v632_v53 = vunpack.i.l.bf16 %v630_v4  ;;  %v609_v29 = vrot.slane %v608_v31, 4  ;;  %v633_v25 = vunpack.i.h.bf16 %v630_v4  ;;  %v4523_v37 = vpack.i.bf16 %v575_v7, %v575_v7  ;;  %v7014_v59 = vld [vmem:[#allocation33_spill] sm:$0xff] }
  0xad   :  { %v643_v2 = vsel %vm393_vm0, %v7008_v8, 4286644096  ;;  %v598_v23 = vrot.slane %v597_v19, 2  ;;  %v621_v3 = vmax.f32 %v619_v33, %v620_v60  ;;  %v588_v47 = vmax.f32 %v586_v12, %v587_v18 }
  0xae   :  { %7009 = vst [vmem:[#allocation10_spill] sm:$0xff] %v4523_v37  ;;  %v645_v5 = vunpack.i.l.bf16 %v643_v2  ;;  %v610_v57 = vmax.f32 %v608_v31, %v609_v29  ;;  %v634_v39 = vmax.f32 %v632_v53, %v633_v25  ;;  %v646_v41 = vunpack.i.h.bf16 %v643_v2 }
  0xaf   :  { %v599_v1 = vmax.f32 %v597_v19, %v598_v23  ;;  %v622_v16 = vrot.slane %v621_v3, 4  ;;  %v7012_v48 = vmax.bf16 %v7010_v0, %v7011_v6  ;;  %v7015_v28 = vmax.bf16 %v7013_v13, %v7014_v59 }
  0xb0   :  { %v4533_v8 = vpack.i.bf16 %v588_v47, %v588_v47  ;;  %v611_v33 = vrot.slane %v610_v57, 2  ;;  %v635_v60 = vrot.slane %v634_v39, 4  ;;  %v647_v12 = vmax.f32 %v645_v5, %v646_v41  ;;  %v7017_v47 = vld [vmem:[#allocation38_spill] sm:$0xff] }
  0xb1   :  { %v656_v4 = vsel %vm393_vm0, %v7012_v48, 4286644096  ;;  %v669_v7 = vsel %vm393_vm0, %v7015_v28, 4286644096  ;;  %v600_v31 = vrot.slane %v599_v1, 1  ;;  %v623_v25 = vmax.f32 %v621_v3, %v622_v16 }
  0xb2   :  { %7016 = vst [vmem:[#allocation15_spill] sm:$0xff] %v4533_v8  ;;  %v658_v2 = vunpack.i.l.bf16 %v656_v4  ;;  %v659_v19 = vunpack.i.h.bf16 %v656_v4  ;;  %v612_v53 = vmax.f32 %v610_v57, %v611_v33  ;;  %v636_v18 = vmax.f32 %v634_v39, %v635_v60  ;;  %v7018_v8 = vld [vmem:[#allocation34_spill] sm:$0xff] }
  0xb3   :  { %v648_v29 = vrot.slane %v647_v12, 4  ;;  %v671_v23 = vunpack.i.l.bf16 %v669_v7  ;;  %v601_v0 = vmax.f32 %v599_v1, %v600_v31  ;;  %v624_v6 = vrot.slane %v623_v25, 2 }
  0xb4   :  { %v660_v48 = vmax.f32 %v658_v2, %v659_v19  ;;  %v672_v37 = vunpack.i.h.bf16 %v669_v7  ;;  %v613_v13 = vrot.slane %v612_v53, 1  ;;  %v637_v59 = vrot.slane %v636_v18, 2 }
  0xb5   :  { %v649_v28 = vmax.f32 %v647_v12, %v648_v29  ;;  %v7019_v50 = vmax.bf16 %v7017_v47, %v7018_v8  ;;  %v4539_v41 = vpack.i.bf16 %v601_v0, %v601_v0  ;;  %v625_v3 = vmax.f32 %v623_v25, %v624_v6  ;;  %v7022_v8 = vld [vmem:[#allocation39_spill] sm:$0xff] }
  0xb6   :  { %v661_v16 = vrot.slane %v660_v48, 4  ;;  %v673_v57 = vmax.f32 %v671_v23, %v672_v37  ;;  %v614_v39 = vmax.f32 %v612_v53, %v613_v13  ;;  %v638_v4 = vmax.f32 %v636_v18, %v637_v59  ;;  %v7023_v47 = vld [vmem:[#allocation35_spill] sm:$0xff] }
  0xb7   :  { %v682_v5 = vsel %vm393_vm0, %v7019_v50, 4286644096  ;;  %7020 = vst [vmem:[#allocation11_spill] sm:$0xff] %v4539_v41  ;;  %v650_v33 = vrot.slane %v649_v28, 2  ;;  %v626_v60 = vrot.slane %v625_v3, 1  ;;  %v7024_v50 = vmax.bf16 %v7022_v8, %v7023_v47  ;;  %v7027_v8 = vld [vmem:[#allocation44_spill] sm:$0xff] }
  0xb8   :  { %v684_v1 = vunpack.i.l.bf16 %v682_v5  ;;  %v662_v31 = vmax.f32 %v660_v48, %v661_v16  ;;  %v674_v7 = vrot.slane %v673_v57, 4  ;;  %v685_v2 = vunpack.i.h.bf16 %v682_v5  ;;  %v7028_v47 = vld [vmem:[#allocation40_spill] sm:$0xff]  ;;  %v7046_v41 = vld [vmem:[#allocation53_spill] sm:$0xff] }
  0xb9   :  { %v4541_v19 = vpack.i.bf16 %v614_v39, %v614_v39  ;;  %v639_v12 = vrot.slane %v638_v4, 1  ;;  %v651_v29 = vmax.f32 %v649_v28, %v650_v33  ;;  %v695_v0 = vsel %vm393_vm0, %v7024_v50, 4286644096 }
  0xba   :  { %v627_v25 = vmax.f32 %v625_v3, %v626_v60  ;;  %v663_v6 = vrot.slane %v662_v31, 2  ;;  %v675_v37 = vmax.f32 %v673_v57, %v674_v7  ;;  %v686_v53 = vmax.f32 %v684_v1, %v685_v2 }
  0xbb   :  { %7021 = vst [vmem:[#allocation20_spill] sm:$0xff] %v4541_v19  ;;  %v640_v18 = vmax.f32 %v638_v4, %v639_v12  ;;  %v652_v23 = vrot.slane %v651_v29, 1  ;;  %v697_v13 = vunpack.i.l.bf16 %v695_v0  ;;  %v698_v59 = vunpack.i.h.bf16 %v695_v0  ;;  %v7032_v0 = vld [vmem:[#allocation41_spill] sm:$0xff] }
  0xbc   :  { %v4547_v48 = vpack.i.bf16 %v627_v25, %v627_v25  ;;  %v664_v5 = vmax.f32 %v662_v31, %v663_v6  ;;  %v676_v16 = vrot.slane %v675_v37, 2  ;;  %v687_v39 = vrot.slane %v686_v53, 4  ;;  %v7031_v31 = vld [vmem:[#allocation45_spill] sm:$0xff] }
  0xbd   :  { %v4549_v19 = vpack.i.bf16 %v640_v18, %v640_v18  ;;  %v653_v28 = vmax.f32 %v651_v29, %v652_v23  ;;  %v699_v33 = vmax.f32 %v697_v13, %v698_v59  ;;  %v7029_v50 = vmax.bf16 %v7027_v8, %v7028_v47 }
  0xbe   :  { %7025 = vst [vmem:[#allocation16_spill] sm:$0xff] %v4547_v48  ;;  %v665_v57 = vrot.slane %v664_v5, 1  ;;  %v677_v1 = vmax.f32 %v675_v37, %v676_v16  ;;  %v688_v4 = vmax.f32 %v686_v53, %v687_v39  ;;  %v7033_v25 = vmax.bf16 %v7031_v31, %v7032_v0  ;;  %v7035_v37 = vld [vmem:[#allocation42_spill] sm:$0xff] }
  0xbf   :  { %7026 = vst [vmem:[#allocation21_spill] sm:$0xff] %v4549_v19  ;;  %v708_v3 = vsel %vm393_vm0, %v7029_v50, 4286644096  ;;  %v4555_v7 = vpack.i.bf16 %v653_v28, %v653_v28  ;;  %v700_v2 = vrot.slane %v699_v33, 4  ;;  %v7034_v50 = vld [vmem:[#allocation46_spill] sm:$0xff] }
  0xc0   :  { %v710_v60 = vunpack.i.l.bf16 %v708_v3  ;;  %v711_v12 = vunpack.i.h.bf16 %v708_v3  ;;  %v721_v6 = vsel %vm393_vm0, %v7033_v25, 4286644096  ;;  %v666_v29 = vmax.f32 %v664_v5, %v665_v57 }
  0xc1   :  { %7030 = vst [vmem:[#allocation17_spill] sm:$0xff] %v4555_v7  ;;  %v678_v18 = vrot.slane %v677_v1, 1  ;;  %v689_v23 = vrot.slane %v688_v4, 2  ;;  %v723_v13 = vunpack.i.l.bf16 %v721_v6  ;;  %v701_v59 = vmax.f32 %v699_v33, %v700_v2  ;;  %v7039_v33 = vld [vmem:[#allocation47_spill] sm:$0xff] }
  0xc2   :  { %v712_v8 = vmax.f32 %v710_v60, %v711_v12  ;;  %v724_v47 = vunpack.i.h.bf16 %v721_v6  ;;  %v7036_v53 = vmax.bf16 %v7034_v50, %v7035_v37  ;;  %v4565_v39 = vpack.i.bf16 %v666_v29, %v666_v29  ;;  %v7040_v60 = vld [vmem:[#allocation43_spill] sm:$0xff]  ;;  %v7042_v6 = vld [vmem:[#allocation52_spill] sm:$0xff] }
  0xc3   :  { %v679_v28 = vmax.f32 %v677_v1, %v678_v18  ;;  %v690_v3 = vmax.f32 %v688_v4, %v689_v23  ;;  %v702_v31 = vrot.slane %v701_v59, 2  ;;  %v7041_v2 = vmax.bf16 %v7039_v33, %v7040_v60  ;;  %v7043_v50 = vld [vmem:[#allocation48_spill] sm:$0xff] }
  0xc4   :  { %v734_v16 = vsel %vm393_vm0, %v7036_v53, 4286644096  ;;  %7037 = vst [vmem:[#allocation22_spill] sm:$0xff] %v4565_v39  ;;  %v713_v0 = vrot.slane %v712_v8, 4  ;;  %v725_v25 = vmax.f32 %v723_v13, %v724_v47  ;;  %v7044_v37 = vmax.bf16 %v7042_v6, %v7043_v50  ;;  %v7047_v6 = vld [vmem:[#allocation49_spill] sm:$0xff] }
  0xc5   :  { %v736_v7 = vunpack.i.l.bf16 %v734_v16  ;;  %v737_v5 = vunpack.i.h.bf16 %v734_v16  ;;  %v4567_v57 = vpack.i.bf16 %v679_v28, %v679_v28  ;;  %v691_v19 = vrot.slane %v690_v3, 1 }
  0xc6   :  { %v747_v12 = vsel %vm393_vm0, %v7041_v2, 4286644096  ;;  %v760_v29 = vsel %vm393_vm0, %v7044_v37, 4286644096  ;;  %v703_v1 = vmax.f32 %v701_v59, %v702_v31  ;;  %v714_v4 = vmax.f32 %v712_v8, %v713_v0 }
  0xc7   :  { %7038 = vst [vmem:[#allocation18_spill] sm:$0xff] %v4567_v57  ;;  %v726_v18 = vrot.slane %v725_v25, 4  ;;  %v738_v23 = vmax.f32 %v736_v7, %v737_v5  ;;  %v692_v53 = vmax.f32 %v690_v3, %v691_v19  ;;  %v749_v13 = vunpack.i.l.bf16 %v747_v12 }
  0xc8   :  { %v750_v47 = vunpack.i.h.bf16 %v747_v12  ;;  %v762_v16 = vunpack.i.l.bf16 %v760_v29  ;;  %v704_v28 = vrot.slane %v703_v1, 1  ;;  %v715_v57 = vrot.slane %v714_v4, 2 }
  0xc9   :  { %v727_v39 = vmax.f32 %v725_v25, %v726_v18  ;;  %v739_v48 = vrot.slane %v738_v23, 4  ;;  %v4577_v33 = vpack.i.bf16 %v692_v53, %v692_v53  ;;  %v763_v2 = vunpack.i.h.bf16 %v760_v29 }
  0xca   :  { %v751_v60 = vmax.f32 %v749_v13, %v750_v47  ;;  %v7048_v50 = vmax.bf16 %v7046_v41, %v7047_v6  ;;  %v705_v8 = vmax.f32 %v703_v1, %v704_v28  ;;  %v716_v31 = vmax.f32 %v714_v4, %v715_v57  ;;  %v7051_v41 = vld [vmem:[#allocation50_spill] sm:$0xff] }
  0xcb   :  { %7045 = vst [vmem:[#allocation23_spill] sm:$0xff] %v4577_v33  ;;  %v728_v7 = vrot.slane %v727_v39, 2  ;;  %v740_v19 = vmax.f32 %v738_v23, %v739_v48  ;;  %v764_v0 = vmax.f32 %v762_v16, %v763_v2  ;;  %v7050_v33 = vld [vmem:[#allocation54_spill] sm:$0xff] }
  0xcc   :  { %v773_v59 = vsel %vm393_vm0, %v7048_v50, 4286644096  ;;  %v752_v3 = vrot.slane %v751_v60, 4  ;;  %v4583_v37 = vpack.i.bf16 %v705_v8, %v705_v8  ;;  %v717_v25 = vrot.slane %v716_v31, 1 }
  0xcd   :  { %v775_v5 = vunpack.i.l.bf16 %v773_v59  ;;  %v776_v12 = vunpack.i.h.bf16 %v773_v59  ;;  %v729_v18 = vmax.f32 %v727_v39, %v728_v7  ;;  %v741_v53 = vrot.slane %v740_v19, 2  ;;  %v7055_v7 = vld [vmem:[#allocation51_spill] sm:$0xff] }
  0xce   :  { %7049 = vst [vmem:[#allocation19_spill] sm:$0xff] %v4583_v37  ;;  %v753_v13 = vmax.f32 %v751_v60, %v752_v3  ;;  %v765_v29 = vrot.slane %v764_v0, 4  ;;  %v7052_v6 = vmax.bf16 %v7050_v33, %v7051_v41  ;;  %v718_v57 = vmax.f32 %v716_v31, %v717_v25  ;;  %v7054_v60 = vld [vmem:[#allocation55_spill] sm:$0xff]  ;;  %v7078_v37 = vld [vmem:[#allocation69_spill] sm:$0xff] }
  0xcf   :  { %v777_v47 = vmax.f32 %v775_v5, %v776_v12  ;;  %v730_v4 = vrot.slane %v729_v18, 1  ;;  %v742_v48 = vmax.f32 %v740_v19, %v741_v53  ;;  %v7056_v3 = vmax.bf16 %v7054_v60, %v7055_v7  ;;  %v7060_v60 = vld [vmem:[#allocation56_spill] sm:$0xff] }
  0xd0   :  { %v786_v1 = vsel %vm393_vm0, %v7052_v6, 4286644096  ;;  %v754_v16 = vrot.slane %v753_v13, 2  ;;  %v766_v28 = vmax.f32 %v764_v0, %v765_v29  ;;  %v4589_v59 = vpack.i.bf16 %v718_v57, %v718_v57 }
  0xd1   :  { %v788_v23 = vunpack.i.l.bf16 %v786_v1  ;;  %v778_v2 = vrot.slane %v777_v47, 4  ;;  %v789_v50 = vunpack.i.h.bf16 %v786_v1  ;;  %v731_v39 = vmax.f32 %v729_v18, %v730_v4 }
  0xd2   :  { %7053 = vst [vmem:[#allocation28_spill] sm:$0xff] %v4589_v59  ;;  %v743_v8 = vrot.slane %v742_v48, 1  ;;  %v799_v5 = vsel %vm393_vm0, %v7056_v3, 4286644096  ;;  %v755_v33 = vmax.f32 %v753_v13, %v754_v16  ;;  %v767_v12 = vrot.slane %v766_v28, 2  ;;  %v7059_v59 = vld [vmem:[#allocation60_spill] sm:$0xff] }
  0xd3   :  { %v779_v41 = vmax.f32 %v777_v47, %v778_v2  ;;  %v790_v31 = vmax.f32 %v788_v23, %v789_v50  ;;  %v4595_v25 = vpack.i.bf16 %v731_v39, %v731_v39  ;;  %v801_v53 = vunpack.i.l.bf16 %v799_v5  ;;  %v7062_v16 = vld [vmem:[#allocation61_spill] sm:$0xff] }
  0xd4   :  { %v744_v19 = vmax.f32 %v742_v48, %v743_v8  ;;  %v802_v0 = vunpack.i.h.bf16 %v799_v5  ;;  %v756_v29 = vrot.slane %v755_v33, 1  ;;  %v768_v6 = vmax.f32 %v766_v28, %v767_v12  ;;  %v7063_v47 = vld [vmem:[#allocation57_spill] sm:$0xff] }
  0xd5   :  { %7057 = vst [vmem:[#allocation24_spill] sm:$0xff] %v4595_v25  ;;  %v780_v1 = vrot.slane %v779_v41, 2  ;;  %v791_v57 = vrot.slane %v790_v31, 4  ;;  %v7061_v7 = vmax.bf16 %v7059_v59, %v7060_v60  ;;  %v7064_v23 = vmax.bf16 %v7062_v16, %v7063_v47  ;;  %v7066_v25 = vld [vmem:[#allocation62_spill] sm:$0xff] }
  0xd6   :  { %v4597_v18 = vpack.i.bf16 %v744_v19, %v744_v19  ;;  %v803_v4 = vmax.f32 %v801_v53, %v802_v0  ;;  %v757_v48 = vmax.f32 %v755_v33, %v756_v29  ;;  %v769_v50 = vrot.slane %v768_v6, 1  ;;  %v7067_v16 = vld [vmem:[#allocation58_spill] sm:$0xff] }
  0xd7   :  { %v812_v13 = vsel %vm393_vm0, %v7061_v7, 4286644096  ;;  %v825_v2 = vsel %vm393_vm0, %v7064_v23, 4286644096  ;;  %v781_v39 = vmax.f32 %v779_v41, %v780_v1  ;;  %v792_v8 = vmax.f32 %v790_v31, %v791_v57 }
  0xd8   :  { %7058 = vst [vmem:[#allocation29_spill] sm:$0xff] %v4597_v18  ;;  %v804_v28 = vrot.slane %v803_v4, 4  ;;  %v814_v3 = vunpack.i.l.bf16 %v812_v13  ;;  %v815_v5 = vunpack.i.h.bf16 %v812_v13  ;;  %v827_v12 = vunpack.i.l.bf16 %v825_v2 }
  0xd9   :  { %v4607_v19 = vpack.i.bf16 %v757_v48, %v757_v48  ;;  %v770_v53 = vmax.f32 %v768_v6, %v769_v50  ;;  %v782_v0 = vrot.slane %v781_v39, 1  ;;  %v793_v59 = vrot.slane %v792_v8, 2 }
  0xda   :  { %v805_v60 = vmax.f32 %v803_v4, %v804_v28  ;;  %v816_v7 = vmax.f32 %v814_v3, %v815_v5  ;;  %v828_v18 = vunpack.i.h.bf16 %v825_v2  ;;  %v7068_v47 = vmax.bf16 %v7066_v25, %v7067_v16  ;;  %v7071_v4 = vld [vmem:[#allocation63_spill] sm:$0xff]  ;;  %v7074_v25 = vld [vmem:[#allocation68_spill] sm:$0xff] }
  0xdb   :  { %7065 = vst [vmem:[#allocation25_spill] sm:$0xff] %v4607_v19  ;;  %v4613_v29 = vpack.i.bf16 %v770_v53, %v770_v53  ;;  %v783_v41 = vmax.f32 %v781_v39, %v782_v0  ;;  %v794_v31 = vmax.f32 %v792_v8, %v793_v59  ;;  %v7072_v28 = vld [vmem:[#allocation59_spill] sm:$0xff]  ;;  %v7075_v5 = vld [vmem:[#allocation64_spill] sm:$0xff] }
  0xdc   :  { %v838_v33 = vsel %vm393_vm0, %v7068_v47, 4286644096  ;;  %v806_v57 = vrot.slane %v805_v60, 2  ;;  %v817_v13 = vrot.slane %v816_v7, 4  ;;  %v829_v23 = vmax.f32 %v827_v12, %v828_v18 }
  0xdd   :  { %7069 = vst [vmem:[#allocation30_spill] sm:$0xff] %v4613_v29  ;;  %v840_v1 = vunpack.i.l.bf16 %v838_v33  ;;  %v841_v48 = vunpack.i.h.bf16 %v838_v33  ;;  %v4615_v6 = vpack.i.bf16 %v783_v41, %v783_v41  ;;  %v795_v50 = vrot.slane %v794_v31, 1 }
  0xde   :  { %v7073_v2 = vmax.bf16 %v7071_v4, %v7072_v28  ;;  %v7076_v16 = vmax.bf16 %v7074_v25, %v7075_v5  ;;  %v807_v39 = vmax.f32 %v805_v60, %v806_v57  ;;  %v818_v8 = vmax.f32 %v816_v7, %v817_v13  ;;  %v7079_v25 = vld [vmem:[#allocation65_spill] sm:$0xff] }
  0xdf   :  { %7070 = vst [vmem:[#allocation26_spill] sm:$0xff] %v4615_v6  ;;  %v830_v0 = vrot.slane %v829_v23, 4  ;;  %v842_v59 = vmax.f32 %v840_v1, %v841_v48  ;;  %v796_v47 = vmax.f32 %v794_v31, %v795_v50  ;;  %v7080_v5 = vmax.bf16 %v7078_v37, %v7079_v25  ;;  %v7083_v37 = vld [vmem:[#allocation66_spill] sm:$0xff] }
  0xe0   :  { %v851_v3 = vsel %vm393_vm0, %v7073_v2, 4286644096  ;;  %v864_v53 = vsel %vm393_vm0, %v7076_v16, 4286644096  ;;  %v808_v41 = vrot.slane %v807_v39, 1  ;;  %v819_v6 = vrot.slane %v818_v8, 2 }
  0xe1   :  { %v853_v18 = vunpack.i.l.bf16 %v851_v3  ;;  %v854_v12 = vunpack.i.h.bf16 %v851_v3  ;;  %v866_v33 = vunpack.i.l.bf16 %v864_v53  ;;  %v831_v29 = vmax.f32 %v829_v23, %v830_v0 }
  0xe2   :  { %v843_v19 = vrot.slane %v842_v59, 4  ;;  %v4625_v4 = vpack.i.bf16 %v796_v47, %v796_v47  ;;  %v867_v2 = vunpack.i.h.bf16 %v864_v53  ;;  %v877_v60 = vsel %vm393_vm0, %v7080_v5, 4286644096 }
  0xe3   :  { %v855_v28 = vmax.f32 %v853_v18, %v854_v12  ;;  %v809_v7 = vmax.f32 %v807_v39, %v808_v41  ;;  %v820_v57 = vmax.f32 %v818_v8, %v819_v6  ;;  %v832_v1 = vrot.slane %v831_v29, 2 }
  0xe4   :  { %7077 = vst [vmem:[#allocation31_spill] sm:$0xff] %v4625_v4  ;;  %v844_v31 = vmax.f32 %v842_v59, %v843_v19  ;;  %v868_v48 = vmax.f32 %v866_v33, %v867_v2  ;;  %v879_v50 = vunpack.i.l.bf16 %v877_v60  ;;  %v880_v3 = vunpack.i.h.bf16 %v877_v60  ;;  %v7082_v4 = vld [vmem:[#allocation70_spill] sm:$0xff] }
  0xe5   :  { %v856_v13 = vrot.slane %v855_v28, 4  ;;  %v4631_v16 = vpack.i.bf16 %v809_v7, %v809_v7  ;;  %v821_v23 = vrot.slane %v820_v57, 1  ;;  %v833_v0 = vmax.f32 %v831_v29, %v832_v1  ;;  %v7087_v1 = vld [vmem:[#allocation67_spill] sm:$0xff] }
  0xe6   :  { %v845_v47 = vrot.slane %v844_v31, 2  ;;  %v869_v53 = vrot.slane %v868_v48, 4  ;;  %v881_v12 = vmax.f32 %v879_v50, %v880_v3  ;;  %v7084_v25 = vmax.bf16 %v7082_v4, %v7083_v37 }
  0xe7   :  { %7081 = vst [vmem:[#allocation27_spill] sm:$0xff] %v4631_v16  ;;  %v857_v18 = vmax.f32 %v855_v28, %v856_v13  ;;  %v822_v6 = vmax.f32 %v820_v57, %v821_v23  ;;  %v834_v8 = vrot.slane %v833_v0, 1  ;;  %v7086_v28 = vld [vmem:[#allocation71_spill] sm:$0xff]  ;;  %v7110_v16 = vld [vmem:[#allocation85_spill] sm:$0xff] }
  0xe8   :  { %v890_v39 = vsel %vm393_vm0, %v7084_v25, 4286644096  ;;  %v846_v19 = vmax.f32 %v844_v31, %v845_v47  ;;  %v870_v41 = vmax.f32 %v868_v48, %v869_v53  ;;  %v882_v2 = vrot.slane %v881_v12, 4 }
  0xe9   :  { %v892_v59 = vunpack.i.l.bf16 %v890_v39  ;;  %v858_v33 = vrot.slane %v857_v18, 2  ;;  %v893_v5 = vunpack.i.h.bf16 %v890_v39  ;;  %v4637_v60 = vpack.i.bf16 %v822_v6, %v822_v6 }
  0xea   :  { %v835_v29 = vmax.f32 %v833_v0, %v834_v8  ;;  %v847_v7 = vrot.slane %v846_v19, 1  ;;  %v7088_v13 = vmax.bf16 %v7086_v28, %v7087_v1  ;;  %v871_v3 = vrot.slane %v870_v41, 2  ;;  %v7092_v28 = vld [vmem:[#allocation72_spill] sm:$0xff] }
  0xeb   :  { %7085 = vst [vmem:[#allocation36_spill] sm:$0xff] %v4637_v60  ;;  %v859_v4 = vmax.f32 %v857_v18, %v858_v33  ;;  %v883_v37 = vmax.f32 %v881_v12, %v882_v2  ;;  %v894_v57 = vmax.f32 %v892_v59, %v893_v5  ;;  %v7091_v60 = vld [vmem:[#allocation76_spill] sm:$0xff]  ;;  %v7094_v33 = vld [vmem:[#allocation77_spill] sm:$0xff] }
  0xec   :  { %v903_v50 = vsel %vm393_vm0, %v7088_v13, 4286644096  ;;  %v4643_v23 = vpack.i.bf16 %v835_v29, %v835_v29  ;;  %v848_v31 = vmax.f32 %v846_v19, %v847_v7  ;;  %v872_v25 = vmax.f32 %v870_v41, %v871_v3  ;;  %v7095_v12 = vld [vmem:[#allocation73_spill] sm:$0xff] }
  0xed   :  { %v905_v47 = vunpack.i.l.bf16 %v903_v50  ;;  %v906_v48 = vunpack.i.h.bf16 %v903_v50  ;;  %v860_v53 = vrot.slane %v859_v4, 1  ;;  %v884_v39 = vrot.slane %v883_v37, 2 }
  0xee   :  { %7089 = vst [vmem:[#allocation32_spill] sm:$0xff] %v4643_v23  ;;  %v895_v6 = vrot.slane %v894_v57, 4  ;;  %v4645_v0 = vpack.i.bf16 %v848_v31, %v848_v31  ;;  %v7093_v1 = vmax.bf16 %v7091_v60, %v7092_v28  ;;  %v7096_v59 = vmax.bf16 %v7094_v33, %v7095_v12  ;;  %v7098_v23 = vld [vmem:[#allocation78_spill] sm:$0xff] }
  0xef   :  { %v907_v8 = vmax.f32 %v905_v47, %v906_v48  ;;  %v861_v19 = vmax.f32 %v859_v4, %v860_v53  ;;  %v873_v5 = vrot.slane %v872_v25, 1  ;;  %v885_v29 = vmax.f32 %v883_v37, %v884_v39  ;;  %v7099_v33 = vld [vmem:[#allocation74_spill] sm:$0xff] }
  0xf0   :  { %7090 = vst [vmem:[#allocation37_spill] sm:$0xff] %v4645_v0  ;;  %v916_v18 = vsel %vm393_vm0, %v7093_v1, 4286644096  ;;  %v929_v2 = vsel %vm393_vm0, %v7096_v59, 4286644096  ;;  %v896_v7 = vmax.f32 %v894_v57, %v895_v6  ;;  %v7100_v12 = vmax.bf16 %v7098_v23, %v7099_v33  ;;  %v7106_v23 = vld [vmem:[#allocation84_spill] sm:$0xff] }
  0xf1   :  { %v908_v41 = vrot.slane %v907_v8, 4  ;;  %v918_v13 = vunpack.i.l.bf16 %v916_v18  ;;  %v919_v50 = vunpack.i.h.bf16 %v916_v18  ;;  %v931_v3 = vunpack.i.l.bf16 %v929_v2 }
  0xf2   :  { %v4655_v31 = vpack.i.bf16 %v861_v19, %v861_v19  ;;  %v874_v47 = vmax.f32 %v872_v25, %v873_v5  ;;  %v886_v48 = vrot.slane %v885_v29, 1  ;;  %v897_v60 = vrot.slane %v896_v7, 2 }
  0xf3   :  { %v909_v28 = vmax.f32 %v907_v8, %v908_v41  ;;  %v920_v1 = vmax.f32 %v918_v13, %v919_v50  ;;  %v932_v0 = vunpack.i.h.bf16 %v929_v2  ;;  %v942_v4 = vsel %vm393_vm0, %v7100_v12, 4286644096  ;;  %v7103_v8 = vld [vmem:[#allocation79_spill] sm:$0xff]  ;;  %v7107_v50 = vld [vmem:[#allocation80_spill] sm:$0xff] }
  0xf4   :  { %7097 = vst [vmem:[#allocation33_spill] sm:$0xff] %v4655_v31  ;;  %v4661_v53 = vpack.i.bf16 %v874_v47, %v874_v47  ;;  %v887_v37 = vmax.f32 %v885_v29, %v886_v48  ;;  %v898_v57 = vmax.f32 %v896_v7, %v897_v60  ;;  %v944_v39 = vunpack.i.l.bf16 %v942_v4  ;;  %v7104_v41 = vld [vmem:[#allocation75_spill] sm:$0xff] }
  0xf5   :  { %v910_v6 = vrot.slane %v909_v28, 2  ;;  %v921_v18 = vrot.slane %v920_v1, 4  ;;  %v933_v59 = vmax.f32 %v931_v3, %v932_v0  ;;  %v945_v19 = vunpack.i.h.bf16 %v942_v4 }
  0xf6   :  { %7101 = vst [vmem:[#allocation38_spill] sm:$0xff] %v4661_v53  ;;  %v4663_v25 = vpack.i.bf16 %v887_v37, %v887_v37  ;;  %v899_v5 = vrot.slane %v898_v57, 1  ;;  %v7105_v2 = vmax.bf16 %v7103_v8, %v7104_v41  ;;  %v7108_v33 = vmax.bf16 %v7106_v23, %v7107_v50  ;;  %v7111_v23 = vld [vmem:[#allocation81_spill] sm:$0xff] }
  0xf7   :  { %v911_v29 = vmax.f32 %v909_v28, %v910_v6  ;;  %v922_v7 = vmax.f32 %v920_v1, %v921_v18  ;;  %v934_v48 = vrot.slane %v933_v59, 4  ;;  %v946_v60 = vmax.f32 %v944_v39, %v945_v19 }
  0xf8   :  { %7102 = vst [vmem:[#allocation34_spill] sm:$0xff] %v4663_v25  ;;  %v955_v13 = vsel %vm393_vm0, %v7105_v2, 4286644096  ;;  %v968_v47 = vsel %vm393_vm0, %v7108_v33, 4286644096  ;;  %v900_v12 = vmax.f32 %v898_v57, %v899_v5  ;;  %v7112_v50 = vmax.bf16 %v7110_v16, %v7111_v23  ;;  %v7115_v16 = vld [vmem:[#allocation82_spill] sm:$0xff] }
  0xf9   :  { %v957_v0 = vunpack.i.l.bf16 %v955_v13  ;;  %v958_v3 = vunpack.i.h.bf16 %v955_v13  ;;  %v970_v4 = vunpack.i.l.bf16 %v968_v47  ;;  %v912_v37 = vrot.slane %v911_v29, 1 }
  0xfa   :  { %v923_v25 = vrot.slane %v922_v7, 2  ;;  %v935_v53 = vmax.f32 %v933_v59, %v934_v48  ;;  %v947_v31 = vrot.slane %v946_v60, 4  ;;  %v4673_v8 = vpack.i.bf16 %v900_v12, %v900_v12 }
  0xfb   :  { %v959_v41 = vmax.f32 %v957_v0, %v958_v3  ;;  %v971_v2 = vunpack.i.h.bf16 %v968_v47  ;;  %v981_v28 = vsel %vm393_vm0, %v7112_v50, 4286644096  ;;  %v913_v1 = vmax.f32 %v911_v29, %v912_v37 }
  0xfc   :  { %7109 = vst [vmem:[#allocation39_spill] sm:$0xff] %v4673_v8  ;;  %v924_v6 = vmax.f32 %v922_v7, %v923_v25  ;;  %v936_v39 = vrot.slane %v935_v53, 2  ;;  %v948_v57 = vmax.f32 %v946_v60, %v947_v31  ;;  %v983_v5 = vunpack.i.l.bf16 %v981_v28  ;;  %v7114_v8 = vld [vmem:[#allocation86_spill] sm:$0xff] }
  0xfd   :  { %v960_v18 = vrot.slane %v959_v41, 4  ;;  %v972_v19 = vmax.f32 %v970_v4, %v971_v2  ;;  %v984_v13 = vunpack.i.h.bf16 %v981_v28  ;;  %v4679_v33 = vpack.i.bf16 %v913_v1, %v913_v1 }
  0xfe   :  { %v925_v59 = vrot.slane %v924_v6, 1  ;;  %v937_v48 = vmax.f32 %v935_v53, %v936_v39  ;;  %v949_v12 = vrot.slane %v948_v57, 2  ;;  %v7116_v23 = vmax.bf16 %v7114_v8, %v7115_v16  ;;  %v7119_v39 = vld [vmem:[#allocation83_spill] sm:$0xff] }
  0xff   :  { %7113 = vst [vmem:[#allocation35_spill] sm:$0xff] %v4679_v33  ;;  %v961_v0 = vmax.f32 %v959_v41, %v960_v18  ;;  %v973_v47 = vrot.slane %v972_v19, 4  ;;  %v985_v3 = vmax.f32 %v983_v5, %v984_v13  ;;  %v7118_v41 = vld [vmem:[#allocation87_spill] sm:$0xff]  ;;  %v7142_v33 = vld [vmem:[#allocation101_spill] sm:$0xff] }
 0x100   :  { %v994_v29 = vsel %vm393_vm0, %v7116_v23, 4286644096  ;;  %v926_v25 = vmax.f32 %v924_v6, %v925_v59  ;;  %v938_v7 = vrot.slane %v937_v48, 1  ;;  %v950_v31 = vmax.f32 %v948_v57, %v949_v12 }
 0x101   :  { %v996_v60 = vunpack.i.l.bf16 %v994_v29  ;;  %v962_v4 = vrot.slane %v961_v0, 2  ;;  %v974_v37 = vmax.f32 %v972_v19, %v973_v47  ;;  %v986_v2 = vrot.slane %v985_v3, 4 }
 0x102   :  { %v997_v50 = vunpack.i.h.bf16 %v994_v29  ;;  %v4685_v28 = vpack.i.bf16 %v926_v25, %v926_v25  ;;  %v939_v53 = vmax.f32 %v937_v48, %v938_v7  ;;  %v951_v1 = vrot.slane %v950_v31, 1 }
 0x103   :  { %v7120_v18 = vmax.bf16 %v7118_v41, %v7119_v39  ;;  %v963_v8 = vmax.f32 %v961_v0, %v962_v4  ;;  %v975_v13 = vrot.slane %v974_v37, 2  ;;  %v987_v16 = vmax.f32 %v985_v3, %v986_v2  ;;  %v7124_v41 = vld [vmem:[#allocation88_spill] sm:$0xff]  ;;  %v7126_v4 = vld [vmem:[#allocation93_spill] sm:$0xff] }
 0x104   :  { %7117 = vst [vmem:[#allocation44_spill] sm:$0xff] %v4685_v28  ;;  %v998_v6 = vmax.f32 %v996_v60, %v997_v50  ;;  %v4691_v59 = vpack.i.bf16 %v939_v53, %v939_v53  ;;  %v952_v57 = vmax.f32 %v950_v31, %v951_v1  ;;  %v7123_v28 = vld [vmem:[#allocation92_spill] sm:$0xff]  ;;  %v7127_v3 = vld [vmem:[#allocation89_spill] sm:$0xff] }
 0x105   :  { %v1007_v5 = vsel %vm393_vm0, %v7120_v18, 4286644096  ;;  %v964_v47 = vrot.slane %v963_v8, 1  ;;  %v976_v23 = vmax.f32 %v974_v37, %v975_v13  ;;  %v988_v29 = vrot.slane %v987_v16, 2 }
 0x106   :  { %7121 = vst [vmem:[#allocation40_spill] sm:$0xff] %v4691_v59  ;;  %v1009_v12 = vunpack.i.l.bf16 %v1007_v5  ;;  %v1010_v19 = vunpack.i.h.bf16 %v1007_v5  ;;  %v999_v25 = vrot.slane %v998_v6, 4  ;;  %v4693_v48 = vpack.i.bf16 %v952_v57, %v952_v57  ;;  %v7130_v59 = vld [vmem:[#allocation94_spill] sm:$0xff] }
 0x107   :  { %v7125_v39 = vmax.bf16 %v7123_v28, %v7124_v41  ;;  %v7128_v60 = vmax.bf16 %v7126_v4, %v7127_v3  ;;  %v965_v31 = vmax.f32 %v963_v8, %v964_v47  ;;  %v977_v50 = vrot.slane %v976_v23, 1  ;;  %v7131_v4 = vld [vmem:[#allocation90_spill] sm:$0xff] }
 0x108   :  { %7122 = vst [vmem:[#allocation45_spill] sm:$0xff] %v4693_v48  ;;  %v1011_v7 = vmax.f32 %v1009_v12, %v1010_v19  ;;  %v989_v53 = vmax.f32 %v987_v16, %v988_v29  ;;  %v1000_v1 = vmax.f32 %v998_v6, %v999_v25  ;;  %v7132_v3 = vmax.bf16 %v7130_v59, %v7131_v4  ;;  %v7138_v59 = vld [vmem:[#allocation100_spill] sm:$0xff] }
 0x109   :  { %v1020_v0 = vsel %vm393_vm0, %v7125_v39, 4286644096  ;;  %v1033_v2 = vsel %vm393_vm0, %v7128_v60, 4286644096  ;;  %v4703_v57 = vpack.i.bf16 %v965_v31, %v965_v31  ;;  %v978_v12 = vmax.f32 %v976_v23, %v977_v50 }
 0x10a   :  { %v1012_v37 = vrot.slane %v1011_v7, 4  ;;  %v1022_v18 = vunpack.i.l.bf16 %v1020_v0  ;;  %v1023_v5 = vunpack.i.h.bf16 %v1020_v0  ;;  %v1035_v13 = vunpack.i.l.bf16 %v1033_v2 }
 0x10b   :  { %7129 = vst [vmem:[#allocation41_spill] sm:$0xff] %v4703_v57  ;;  %v990_v19 = vrot.slane %v989_v53, 1  ;;  %v1001_v28 = vrot.slane %v1000_v1, 2  ;;  %v1036_v48 = vunpack.i.h.bf16 %v1033_v2  ;;  %v1046_v8 = vsel %vm393_vm0, %v7132_v3, 4286644096 }
 0x10c   :  { %v1013_v41 = vmax.f32 %v1011_v7, %v1012_v37  ;;  %v1024_v39 = vmax.f32 %v1022_v18, %v1023_v5  ;;  %v4709_v47 = vpack.i.bf16 %v978_v12, %v978_v12  ;;  %v1048_v29 = vunpack.i.l.bf16 %v1046_v8  ;;  %v7135_v7 = vld [vmem:[#allocation95_spill] sm:$0xff]  ;;  %v7139_v5 = vld [vmem:[#allocation96_spill] sm:$0xff] }
 0x10d   :  { %v991_v16 = vmax.f32 %v989_v53, %v990_v19  ;;  %v1002_v6 = vmax.f32 %v1000_v1, %v1001_v28  ;;  %v1037_v60 = vmax.f32 %v1035_v13, %v1036_v48  ;;  %v1049_v31 = vunpack.i.h.bf16 %v1046_v8  ;;  %v7136_v37 = vld [vmem:[#allocation91_spill] sm:$0xff] }
 0x10e   :  { %7133 = vst [vmem:[#allocation46_spill] sm:$0xff] %v4709_v47  ;;  %v1014_v25 = vrot.slane %v1013_v41, 2  ;;  %v1025_v0 = vrot.slane %v1024_v39, 4  ;;  %v7137_v2 = vmax.bf16 %v7135_v7, %v7136_v37  ;;  %v7140_v4 = vmax.bf16 %v7138_v59, %v7139_v5  ;;  %v7143_v59 = vld [vmem:[#allocation97_spill] sm:$0xff] }
 0x10f   :  { %v4711_v23 = vpack.i.bf16 %v991_v16, %v991_v16  ;;  %v1003_v50 = vrot.slane %v1002_v6, 1  ;;  %v1038_v19 = vrot.slane %v1037_v60, 4  ;;  %v1050_v28 = vmax.f32 %v1048_v29, %v1049_v31 }
 0x110   :  { %v1059_v18 = vsel %vm393_vm0, %v7137_v2, 4286644096  ;;  %v1072_v12 = vsel %vm393_vm0, %v7140_v4, 4286644096  ;;  %v1015_v53 = vmax.f32 %v1013_v41, %v1014_v25  ;;  %v1026_v1 = vmax.f32 %v1024_v39, %v1025_v0 }
 0x111   :  { %7134 = vst [vmem:[#allocation42_spill] sm:$0xff] %v4711_v23  ;;  %v1004_v3 = vmax.f32 %v1002_v6, %v1003_v50  ;;  %v1061_v48 = vunpack.i.l.bf16 %v1059_v18  ;;  %v1062_v13 = vunpack.i.h.bf16 %v1059_v18  ;;  %v1074_v8 = vunpack.i.l.bf16 %v1072_v12 }
 0x112   :  { %v1016_v16 = vrot.slane %v1015_v53, 1  ;;  %v1027_v23 = vrot.slane %v1026_v1, 2  ;;  %v1039_v47 = vmax.f32 %v1037_v60, %v1038_v19  ;;  %v1051_v57 = vrot.slane %v1050_v28, 4 }
 0x113   :  { %v4721_v7 = vpack.i.bf16 %v1004_v3, %v1004_v3  ;;  %v1063_v37 = vmax.f32 %v1061_v48, %v1062_v13  ;;  %v1075_v2 = vunpack.i.h.bf16 %v1072_v12  ;;  %v7144_v5 = vmax.bf16 %v7142_v33, %v7143_v59  ;;  %v7147_v33 = vld [vmem:[#allocation98_spill] sm:$0xff] }
 0x114   :  { %v1017_v39 = vmax.f32 %v1015_v53, %v1016_v16  ;;  %v1028_v25 = vmax.f32 %v1026_v1, %v1027_v23  ;;  %v1040_v29 = vrot.slane %v1039_v47, 2  ;;  %v1052_v6 = vmax.f32 %v1050_v28, %v1051_v57 }
 0x115   :  { %7141 = vst [vmem:[#allocation47_spill] sm:$0xff] %v4721_v7  ;;  %v1085_v41 = vsel %vm393_vm0, %v7144_v5, 4286644096  ;;  %v1064_v0 = vrot.slane %v1063_v37, 4  ;;  %v1076_v31 = vmax.f32 %v1074_v8, %v1075_v2  ;;  %v7146_v7 = vld [vmem:[#allocation102_spill] sm:$0xff] }
 0x116   :  { %v1087_v50 = vunpack.i.l.bf16 %v1085_v41  ;;  %v1088_v18 = vunpack.i.h.bf16 %v1085_v41  ;;  %v4727_v4 = vpack.i.bf16 %v1017_v39, %v1017_v39  ;;  %v1029_v60 = vrot.slane %v1028_v25, 1 }
 0x117   :  { %v1041_v19 = vmax.f32 %v1039_v47, %v1040_v29  ;;  %v1053_v3 = vrot.slane %v1052_v6, 2  ;;  %v1065_v48 = vmax.f32 %v1063_v37, %v1064_v0  ;;  %v1077_v12 = vrot.slane %v1076_v31, 4  ;;  %v7150_v37 = vld [vmem:[#allocation103_spill] sm:$0xff] }
 0x118   :  { %7145 = vst [vmem:[#allocation43_spill] sm:$0xff] %v4727_v4  ;;  %v1089_v13 = vmax.f32 %v1087_v50, %v1088_v18  ;;  %v7148_v59 = vmax.bf16 %v7146_v7, %v7147_v33  ;;  %v1030_v23 = vmax.f32 %v1028_v25, %v1029_v60  ;;  %v7151_v29 = vld [vmem:[#allocation99_spill] sm:$0xff]  ;;  %v7174_v4 = vld [vmem:[#allocation117_spill] sm:$0xff] }
 0x119   :  { %v1042_v1 = vrot.slane %v1041_v19, 1  ;;  %v1054_v57 = vmax.f32 %v1052_v6, %v1053_v3  ;;  %v1066_v8 = vrot.slane %v1065_v48, 2  ;;  %v1078_v16 = vmax.f32 %v1076_v31, %v1077_v12 }
 0x11a   :  { %v1098_v53 = vsel %vm393_vm0, %v7148_v59, 4286644096  ;;  %v1090_v2 = vrot.slane %v1089_v13, 4  ;;  %v4733_v41 = vpack.i.bf16 %v1030_v23, %v1030_v23  ;;  %v7152_v0 = vmax.bf16 %v7150_v37, %v7151_v29  ;;  %v7156_v37 = vld [vmem:[#allocation104_spill] sm:$0xff] }
 0x11b   :  { %v1100_v28 = vunpack.i.l.bf16 %v1098_v53  ;;  %v1101_v5 = vunpack.i.h.bf16 %v1098_v53  ;;  %v1043_v47 = vmax.f32 %v1041_v19, %v1042_v1  ;;  %v1055_v39 = vrot.slane %v1054_v57, 1 }
 0x11c   :  { %7149 = vst [vmem:[#allocation52_spill] sm:$0xff] %v4733_v41  ;;  %v1111_v50 = vsel %vm393_vm0, %v7152_v0, 4286644096  ;;  %v1067_v7 = vmax.f32 %v1065_v48, %v1066_v8  ;;  %v1079_v18 = vrot.slane %v1078_v16, 2  ;;  %v1091_v33 = vmax.f32 %v1089_v13, %v1090_v2  ;;  %v7155_v41 = vld [vmem:[#allocation108_spill] sm:$0xff]  ;;  %v7158_v8 = vld [vmem:[#allocation109_spill] sm:$0xff] }
 0x11d   :  { %v1102_v25 = vmax.f32 %v1100_v28, %v1101_v5  ;;  %v4739_v60 = vpack.i.bf16 %v1043_v47, %v1043_v47  ;;  %v1056_v6 = vmax.f32 %v1054_v57, %v1055_v39  ;;  %v1113_v3 = vunpack.i.l.bf16 %v1111_v50  ;;  %v7159_v13 = vld [vmem:[#allocation105_spill] sm:$0xff] }
 0x11e   :  { %v1114_v31 = vunpack.i.h.bf16 %v1111_v50  ;;  %v1068_v12 = vrot.slane %v1067_v7, 1  ;;  %v1080_v59 = vmax.f32 %v1078_v16, %v1079_v18  ;;  %v1092_v53 = vrot.slane %v1091_v33, 2 }
 0x11f   :  { %7153 = vst [vmem:[#allocation48_spill] sm:$0xff] %v4739_v60  ;;  %v1103_v23 = vrot.slane %v1102_v25, 4  ;;  %v4741_v19 = vpack.i.bf16 %v1056_v6, %v1056_v6  ;;  %v7157_v29 = vmax.bf16 %v7155_v41, %v7156_v37  ;;  %v7160_v28 = vmax.bf16 %v7158_v8, %v7159_v13  ;;  %v7162_v60 = vld [vmem:[#allocation110_spill] sm:$0xff] }
 0x120   :  { %v1115_v1 = vmax.f32 %v1113_v3, %v1114_v31  ;;  %v1069_v57 = vmax.f32 %v1067_v7, %v1068_v12  ;;  %v1081_v5 = vrot.slane %v1080_v59, 1  ;;  %v1093_v47 = vmax.f32 %v1091_v33, %v1092_v53  ;;  %v7163_v8 = vld [vmem:[#allocation106_spill] sm:$0xff] }
 0x121   :  { %7154 = vst [vmem:[#allocation53_spill] sm:$0xff] %v4741_v19  ;;  %v1124_v48 = vsel %vm393_vm0, %v7157_v29, 4286644096  ;;  %v1137_v2 = vsel %vm393_vm0, %v7160_v28, 4286644096  ;;  %v1104_v39 = vmax.f32 %v1102_v25, %v1103_v23  ;;  %v7164_v13 = vmax.bf16 %v7162_v60, %v7163_v8  ;;  %v7170_v60 = vld [vmem:[#allocation116_spill] sm:$0xff] }
 0x122   :  { %v1116_v16 = vrot.slane %v1115_v1, 4  ;;  %v1126_v0 = vunpack.i.l.bf16 %v1124_v48  ;;  %v1127_v50 = vunpack.i.h.bf16 %v1124_v48  ;;  %v1139_v18 = vunpack.i.l.bf16 %v1137_v2 }
 0x123   :  { %v4751_v6 = vpack.i.bf16 %v1069_v57, %v1069_v57  ;;  %v1082_v3 = vmax.f32 %v1080_v59, %v1081_v5  ;;  %v1094_v31 = vrot.slane %v1093_v47, 1  ;;  %v1105_v41 = vrot.slane %v1104_v39, 2 }
 0x124   :  { %v1117_v37 = vmax.f32 %v1115_v1, %v1116_v16  ;;  %v1128_v29 = vmax.f32 %v1126_v0, %v1127_v50  ;;  %v1140_v19 = vunpack.i.h.bf16 %v1137_v2  ;;  %v1150_v7 = vsel %vm393_vm0, %v7164_v13, 4286644096  ;;  %v7167_v1 = vld [vmem:[#allocation111_spill] sm:$0xff]  ;;  %v7171_v50 = vld [vmem:[#allocation112_spill] sm:$0xff] }
 0x125   :  { %7161 = vst [vmem:[#allocation49_spill] sm:$0xff] %v4751_v6  ;;  %v4757_v12 = vpack.i.bf16 %v1082_v3, %v1082_v3  ;;  %v1095_v33 = vmax.f32 %v1093_v47, %v1094_v31  ;;  %v1106_v25 = vmax.f32 %v1104_v39, %v1105_v41  ;;  %v1152_v53 = vunpack.i.l.bf16 %v1150_v7  ;;  %v7168_v16 = vld [vmem:[#allocation107_spill] sm:$0xff] }
 0x126   :  { %v1118_v23 = vrot.slane %v1117_v37, 2  ;;  %v1129_v48 = vrot.slane %v1128_v29, 4  ;;  %v1141_v28 = vmax.f32 %v1139_v18, %v1140_v19  ;;  %v1153_v57 = vunpack.i.h.bf16 %v1150_v7 }
 0x127   :  { %7165 = vst [vmem:[#allocation54_spill] sm:$0xff] %v4757_v12  ;;  %v4759_v59 = vpack.i.bf16 %v1095_v33, %v1095_v33  ;;  %v1107_v5 = vrot.slane %v1106_v25, 1  ;;  %v7169_v2 = vmax.bf16 %v7167_v1, %v7168_v16  ;;  %v7172_v8 = vmax.bf16 %v7170_v60, %v7171_v50  ;;  %v7175_v60 = vld [vmem:[#allocation113_spill] sm:$0xff] }
 0x128   :  { %v1119_v47 = vmax.f32 %v1117_v37, %v1118_v23  ;;  %v1130_v39 = vmax.f32 %v1128_v29, %v1129_v48  ;;  %v1142_v31 = vrot.slane %v1141_v28, 4  ;;  %v1154_v41 = vmax.f32 %v1152_v53, %v1153_v57 }
 0x129   :  { %7166 = vst [vmem:[#allocation50_spill] sm:$0xff] %v4759_v59  ;;  %v1163_v0 = vsel %vm393_vm0, %v7169_v2, 4286644096  ;;  %v1176_v3 = vsel %vm393_vm0, %v7172_v8, 4286644096  ;;  %v1108_v13 = vmax.f32 %v1106_v25, %v1107_v5  ;;  %v7176_v50 = vmax.bf16 %v7174_v4, %v7175_v60  ;;  %v7179_v4 = vld [vmem:[#allocation114_spill] sm:$0xff] }
 0x12a   :  { %v1165_v19 = vunpack.i.l.bf16 %v1163_v0  ;;  %v1166_v18 = vunpack.i.h.bf16 %v1163_v0  ;;  %v1178_v7 = vunpack.i.l.bf16 %v1176_v3  ;;  %v1120_v33 = vrot.slane %v1119_v47, 1 }
 0x12b   :  { %v1131_v59 = vrot.slane %v1130_v39, 2  ;;  %v1143_v12 = vmax.f32 %v1141_v28, %v1142_v31  ;;  %v1155_v6 = vrot.slane %v1154_v41, 4  ;;  %v4769_v1 = vpack.i.bf16 %v1108_v13, %v1108_v13 }
 0x12c   :  { %v1167_v16 = vmax.f32 %v1165_v19, %v1166_v18  ;;  %v1179_v2 = vunpack.i.h.bf16 %v1176_v3  ;;  %v1189_v37 = vsel %vm393_vm0, %v7176_v50, 4286644096  ;;  %v1121_v29 = vmax.f32 %v1119_v47, %v1120_v33 }
 0x12d   :  { %7173 = vst [vmem:[#allocation55_spill] sm:$0xff] %v4769_v1  ;;  %v1132_v23 = vmax.f32 %v1130_v39, %v1131_v59  ;;  %v1144_v53 = vrot.slane %v1143_v12, 2  ;;  %v1156_v25 = vmax.f32 %v1154_v41, %v1155_v6  ;;  %v1191_v5 = vunpack.i.l.bf16 %v1189_v37  ;;  %v7178_v1 = vld [vmem:[#allocation118_spill] sm:$0xff] }
 0x12e   :  { %v1168_v48 = vrot.slane %v1167_v16, 4  ;;  %v1180_v57 = vmax.f32 %v1178_v7, %v1179_v2  ;;  %v1192_v0 = vunpack.i.h.bf16 %v1189_v37  ;;  %v4775_v8 = vpack.i.bf16 %v1121_v29, %v1121_v29 }
 0x12f   :  { %v1133_v28 = vrot.slane %v1132_v23, 1  ;;  %v1145_v31 = vmax.f32 %v1143_v12, %v1144_v53  ;;  %v1157_v13 = vrot.slane %v1156_v25, 2  ;;  %v7180_v60 = vmax.bf16 %v7178_v1, %v7179_v4  ;;  %v7183_v53 = vld [vmem:[#allocation115_spill] sm:$0xff] }
 0x130   :  { %7177 = vst [vmem:[#allocation51_spill] sm:$0xff] %v4775_v8  ;;  %v1169_v19 = vmax.f32 %v1167_v16, %v1168_v48  ;;  %v1181_v3 = vrot.slane %v1180_v57, 4  ;;  %v1193_v18 = vmax.f32 %v1191_v5, %v1192_v0  ;;  %v7182_v16 = vld [vmem:[#allocation119_spill] sm:$0xff]  ;;  %v7206_v8 = vld [vmem:[#allocation133_spill] sm:$0xff] }
 0x131   :  { %v1202_v47 = vsel %vm393_vm0, %v7180_v60, 4286644096  ;;  %v1134_v59 = vmax.f32 %v1132_v23, %v1133_v28  ;;  %v1146_v39 = vrot.slane %v1145_v31, 1  ;;  %v1158_v6 = vmax.f32 %v1156_v25, %v1157_v13 }
 0x132   :  { %v1204_v41 = vunpack.i.l.bf16 %v1202_v47  ;;  %v1170_v7 = vrot.slane %v1169_v19, 2  ;;  %v1182_v33 = vmax.f32 %v1180_v57, %v1181_v3  ;;  %v1194_v2 = vrot.slane %v1193_v18, 4 }
 0x133   :  { %v1205_v50 = vunpack.i.h.bf16 %v1202_v47  ;;  %v4781_v37 = vpack.i.bf16 %v1134_v59, %v1134_v59  ;;  %v1147_v12 = vmax.f32 %v1145_v31, %v1146_v39  ;;  %v1159_v29 = vrot.slane %v1158_v6, 1 }
 0x134   :  { %v7184_v48 = vmax.bf16 %v7182_v16, %v7183_v53  ;;  %v1171_v1 = vmax.f32 %v1169_v19, %v1170_v7  ;;  %v1183_v0 = vrot.slane %v1182_v33, 2  ;;  %v1195_v4 = vmax.f32 %v1193_v18, %v1194_v2  ;;  %v7188_v16 = vld [vmem:[#allocation120_spill] sm:$0xff]  ;;  %v7190_v7 = vld [vmem:[#allocation125_spill] sm:$0xff] }
 0x135   :  { %7181 = vst [vmem:[#allocation60_spill] sm:$0xff] %v4781_v37  ;;  %v1206_v23 = vmax.f32 %v1204_v41, %v1205_v50  ;;  %v4787_v28 = vpack.i.bf16 %v1147_v12, %v1147_v12  ;;  %v1160_v25 = vmax.f32 %v1158_v6, %v1159_v29  ;;  %v7187_v37 = vld [vmem:[#allocation124_spill] sm:$0xff]  ;;  %v7191_v18 = vld [vmem:[#allocation121_spill] sm:$0xff] }
 0x136   :  { %v1215_v5 = vsel %vm393_vm0, %v7184_v48, 4286644096  ;;  %v1172_v3 = vrot.slane %v1171_v1, 1  ;;  %v1184_v60 = vmax.f32 %v1182_v33, %v1183_v0  ;;  %v1196_v47 = vrot.slane %v1195_v4, 2 }
 0x137   :  { %7185 = vst [vmem:[#allocation56_spill] sm:$0xff] %v4787_v28  ;;  %v1217_v13 = vunpack.i.l.bf16 %v1215_v5  ;;  %v1218_v57 = vunpack.i.h.bf16 %v1215_v5  ;;  %v1207_v59 = vrot.slane %v1206_v23, 4  ;;  %v4789_v31 = vpack.i.bf16 %v1160_v25, %v1160_v25  ;;  %v7194_v28 = vld [vmem:[#allocation126_spill] sm:$0xff] }
 0x138   :  { %v7189_v53 = vmax.bf16 %v7187_v37, %v7188_v16  ;;  %v7192_v41 = vmax.bf16 %v7190_v7, %v7191_v18  ;;  %v1173_v6 = vmax.f32 %v1171_v1, %v1172_v3  ;;  %v1185_v50 = vrot.slane %v1184_v60, 1  ;;  %v7195_v7 = vld [vmem:[#allocation122_spill] sm:$0xff] }
 0x139   :  { %7186 = vst [vmem:[#allocation61_spill] sm:$0xff] %v4789_v31  ;;  %v1219_v39 = vmax.f32 %v1217_v13, %v1218_v57  ;;  %v1197_v12 = vmax.f32 %v1195_v4, %v1196_v47  ;;  %v1208_v29 = vmax.f32 %v1206_v23, %v1207_v59  ;;  %v7196_v18 = vmax.bf16 %v7194_v28, %v7195_v7  ;;  %v7202_v28 = vld [vmem:[#allocation132_spill] sm:$0xff] }
 0x13a   :  { %v1228_v19 = vsel %vm393_vm0, %v7189_v53, 4286644096  ;;  %v1241_v2 = vsel %vm393_vm0, %v7192_v41, 4286644096  ;;  %v4799_v25 = vpack.i.bf16 %v1173_v6, %v1173_v6  ;;  %v1186_v13 = vmax.f32 %v1184_v60, %v1185_v50 }
 0x13b   :  { %v1220_v33 = vrot.slane %v1219_v39, 4  ;;  %v1230_v48 = vunpack.i.l.bf16 %v1228_v19  ;;  %v1231_v5 = vunpack.i.h.bf16 %v1228_v19  ;;  %v1243_v0 = vunpack.i.l.bf16 %v1241_v2 }
 0x13c   :  { %7193 = vst [vmem:[#allocation57_spill] sm:$0xff] %v4799_v25  ;;  %v1198_v57 = vrot.slane %v1197_v12, 1  ;;  %v1209_v37 = vrot.slane %v1208_v29, 2  ;;  %v1244_v31 = vunpack.i.h.bf16 %v1241_v2  ;;  %v1254_v1 = vsel %vm393_vm0, %v7196_v18, 4286644096 }
 0x13d   :  { %v1221_v16 = vmax.f32 %v1219_v39, %v1220_v33  ;;  %v1232_v53 = vmax.f32 %v1230_v48, %v1231_v5  ;;  %v4805_v3 = vpack.i.bf16 %v1186_v13, %v1186_v13  ;;  %v1256_v47 = vunpack.i.l.bf16 %v1254_v1  ;;  %v7199_v39 = vld [vmem:[#allocation127_spill] sm:$0xff]  ;;  %v7203_v5 = vld [vmem:[#allocation128_spill] sm:$0xff] }
 0x13e   :  { %v1199_v4 = vmax.f32 %v1197_v12, %v1198_v57  ;;  %v1210_v23 = vmax.f32 %v1208_v29, %v1209_v37  ;;  %v1245_v41 = vmax.f32 %v1243_v0, %v1244_v31  ;;  %v1257_v6 = vunpack.i.h.bf16 %v1254_v1  ;;  %v7200_v33 = vld [vmem:[#allocation123_spill] sm:$0xff] }
 0x13f   :  { %7197 = vst [vmem:[#allocation62_spill] sm:$0xff] %v4805_v3  ;;  %v1222_v59 = vrot.slane %v1221_v16, 2  ;;  %v1233_v19 = vrot.slane %v1232_v53, 4  ;;  %v7201_v2 = vmax.bf16 %v7199_v39, %v7200_v33  ;;  %v7204_v7 = vmax.bf16 %v7202_v28, %v7203_v5  ;;  %v7207_v28 = vld [vmem:[#allocation129_spill] sm:$0xff] }
 0x140   :  { %v4807_v60 = vpack.i.bf16 %v1199_v4, %v1199_v4  ;;  %v1211_v50 = vrot.slane %v1210_v23, 1  ;;  %v1246_v57 = vrot.slane %v1245_v41, 4  ;;  %v1258_v37 = vmax.f32 %v1256_v47, %v1257_v6 }
 0x141   :  { %v1267_v48 = vsel %vm393_vm0, %v7201_v2, 4286644096  ;;  %v1280_v13 = vsel %vm393_vm0, %v7204_v7, 4286644096  ;;  %v1223_v12 = vmax.f32 %v1221_v16, %v1222_v59  ;;  %v1234_v29 = vmax.f32 %v1232_v53, %v1233_v19 }
 0x142   :  { %7198 = vst [vmem:[#allocation58_spill] sm:$0xff] %v4807_v60  ;;  %v1212_v18 = vmax.f32 %v1210_v23, %v1211_v50  ;;  %v1269_v31 = vunpack.i.l.bf16 %v1267_v48  ;;  %v1270_v0 = vunpack.i.h.bf16 %v1267_v48  ;;  %v1282_v1 = vunpack.i.l.bf16 %v1280_v13 }
 0x143   :  { %v1224_v4 = vrot.slane %v1223_v12, 1  ;;  %v1235_v60 = vrot.slane %v1234_v29, 2  ;;  %v1247_v3 = vmax.f32 %v1245_v41, %v1246_v57  ;;  %v1259_v25 = vrot.slane %v1258_v37, 4 }
 0x144   :  { %v4817_v39 = vpack.i.bf16 %v1212_v18, %v1212_v18  ;;  %v1271_v33 = vmax.f32 %v1269_v31, %v1270_v0  ;;  %v1283_v2 = vunpack.i.h.bf16 %v1280_v13  ;;  %v7208_v5 = vmax.bf16 %v7206_v8, %v7207_v28  ;;  %v7211_v8 = vld [vmem:[#allocation130_spill] sm:$0xff] }
 0x145   :  { %v1225_v53 = vmax.f32 %v1223_v12, %v1224_v4  ;;  %v1236_v59 = vmax.f32 %v1234_v29, %v1235_v60  ;;  %v1248_v47 = vrot.slane %v1247_v3, 2  ;;  %v1260_v23 = vmax.f32 %v1258_v37, %v1259_v25 }
 0x146   :  { %7205 = vst [vmem:[#allocation63_spill] sm:$0xff] %v4817_v39  ;;  %v1293_v16 = vsel %vm393_vm0, %v7208_v5, 4286644096  ;;  %v1272_v19 = vrot.slane %v1271_v33, 4  ;;  %v1284_v6 = vmax.f32 %v1282_v1, %v1283_v2  ;;  %v7210_v39 = vld [vmem:[#allocation134_spill] sm:$0xff] }
 0x147   :  { %v1295_v50 = vunpack.i.l.bf16 %v1293_v16  ;;  %v1296_v48 = vunpack.i.h.bf16 %v1293_v16  ;;  %v4823_v7 = vpack.i.bf16 %v1225_v53, %v1225_v53  ;;  %v1237_v41 = vrot.slane %v1236_v59, 1 }
 0x148   :  { %v1249_v57 = vmax.f32 %v1247_v3, %v1248_v47  ;;  %v1261_v18 = vrot.slane %v1260_v23, 2  ;;  %v1273_v31 = vmax.f32 %v1271_v33, %v1272_v19  ;;  %v1285_v13 = vrot.slane %v1284_v6, 4  ;;  %v7214_v33 = vld [vmem:[#allocation135_spill] sm:$0xff] }
 0x149   :  { %7209 = vst [vmem:[#allocation59_spill] sm:$0xff] %v4823_v7  ;;  %v1297_v0 = vmax.f32 %v1295_v50, %v1296_v48  ;;  %v7212_v28 = vmax.bf16 %v7210_v39, %v7211_v8  ;;  %v1238_v60 = vmax.f32 %v1236_v59, %v1237_v41  ;;  %v7215_v47 = vld [vmem:[#allocation131_spill] sm:$0xff]  ;;  %v7238_v7 = vld [vmem:[#allocation149_spill] sm:$0xff] }
 0x14a   :  { %v1250_v29 = vrot.slane %v1249_v57, 1  ;;  %v1262_v25 = vmax.f32 %v1260_v23, %v1261_v18  ;;  %v1274_v1 = vrot.slane %v1273_v31, 2  ;;  %v1286_v4 = vmax.f32 %v1284_v6, %v1285_v13 }
 0x14b   :  { %v1306_v12 = vsel %vm393_vm0, %v7212_v28, 4286644096  ;;  %v1298_v2 = vrot.slane %v1297_v0, 4  ;;  %v4829_v16 = vpack.i.bf16 %v1238_v60, %v1238_v60  ;;  %v7216_v19 = vmax.bf16 %v7214_v33, %v7215_v47  ;;  %v7220_v33 = vld [vmem:[#allocation136_spill] sm:$0xff] }
 0x14c   :  { %v1308_v37 = vunpack.i.l.bf16 %v1306_v12  ;;  %v1309_v5 = vunpack.i.h.bf16 %v1306_v12  ;;  %v1251_v3 = vmax.f32 %v1249_v57, %v1250_v29  ;;  %v1263_v53 = vrot.slane %v1262_v25, 1 }
 0x14d   :  { %7213 = vst [vmem:[#allocation68_spill] sm:$0xff] %v4829_v16  ;;  %v1319_v50 = vsel %vm393_vm0, %v7216_v19, 4286644096  ;;  %v1275_v39 = vmax.f32 %v1273_v31, %v1274_v1  ;;  %v1287_v48 = vrot.slane %v1286_v4, 2  ;;  %v1299_v8 = vmax.f32 %v1297_v0, %v1298_v2  ;;  %v7219_v16 = vld [vmem:[#allocation140_spill] sm:$0xff]  ;;  %v7222_v1 = vld [vmem:[#allocation141_spill] sm:$0xff] }
 0x14e   :  { %v1310_v59 = vmax.f32 %v1308_v37, %v1309_v5  ;;  %v4835_v41 = vpack.i.bf16 %v1251_v3, %v1251_v3  ;;  %v1264_v23 = vmax.f32 %v1262_v25, %v1263_v53  ;;  %v1321_v18 = vunpack.i.l.bf16 %v1319_v50  ;;  %v7223_v0 = vld [vmem:[#allocation137_spill] sm:$0xff] }
 0x14f   :  { %v1322_v6 = vunpack.i.h.bf16 %v1319_v50  ;;  %v1276_v13 = vrot.slane %v1275_v39, 1  ;;  %v1288_v28 = vmax.f32 %v1286_v4, %v1287_v48  ;;  %v1300_v12 = vrot.slane %v1299_v8, 2 }
 0x150   :  { %7217 = vst [vmem:[#allocation64_spill] sm:$0xff] %v4835_v41  ;;  %v1311_v60 = vrot.slane %v1310_v59, 4  ;;  %v4837_v57 = vpack.i.bf16 %v1264_v23, %v1264_v23  ;;  %v7221_v47 = vmax.bf16 %v7219_v16, %v7220_v33  ;;  %v7224_v37 = vmax.bf16 %v7222_v1, %v7223_v0  ;;  %v7226_v41 = vld [vmem:[#allocation142_spill] sm:$0xff] }
 0x151   :  { %v1323_v29 = vmax.f32 %v1321_v18, %v1322_v6  ;;  %v1277_v25 = vmax.f32 %v1275_v39, %v1276_v13  ;;  %v1289_v5 = vrot.slane %v1288_v28, 1  ;;  %v1301_v3 = vmax.f32 %v1299_v8, %v1300_v12  ;;  %v7227_v1 = vld [vmem:[#allocation138_spill] sm:$0xff] }
 0x152   :  { %7218 = vst [vmem:[#allocation69_spill] sm:$0xff] %v4837_v57  ;;  %v1332_v31 = vsel %vm393_vm0, %v7221_v47, 4286644096  ;;  %v1345_v2 = vsel %vm393_vm0, %v7224_v37, 4286644096  ;;  %v1312_v53 = vmax.f32 %v1310_v59, %v1311_v60  ;;  %v7228_v0 = vmax.bf16 %v7226_v41, %v7227_v1  ;;  %v7234_v41 = vld [vmem:[#allocation148_spill] sm:$0xff] }
 0x153   :  { %v1324_v4 = vrot.slane %v1323_v29, 4  ;;  %v1334_v19 = vunpack.i.l.bf16 %v1332_v31  ;;  %v1335_v50 = vunpack.i.h.bf16 %v1332_v31  ;;  %v1347_v48 = vunpack.i.l.bf16 %v1345_v2 }
 0x154   :  { %v4847_v23 = vpack.i.bf16 %v1277_v25, %v1277_v25  ;;  %v1290_v18 = vmax.f32 %v1288_v28, %v1289_v5  ;;  %v1302_v6 = vrot.slane %v1301_v3, 1  ;;  %v1313_v16 = vrot.slane %v1312_v53, 2 }
 0x155   :  { %v1325_v33 = vmax.f32 %v1323_v29, %v1324_v4  ;;  %v1336_v47 = vmax.f32 %v1334_v19, %v1335_v50  ;;  %v1348_v57 = vunpack.i.h.bf16 %v1345_v2  ;;  %v1358_v39 = vsel %vm393_vm0, %v7228_v0, 4286644096  ;;  %v7231_v29 = vld [vmem:[#allocation143_spill] sm:$0xff]  ;;  %v7235_v50 = vld [vmem:[#allocation144_spill] sm:$0xff] }
 0x156   :  { %7225 = vst [vmem:[#allocation65_spill] sm:$0xff] %v4847_v23  ;;  %v4853_v13 = vpack.i.bf16 %v1290_v18, %v1290_v18  ;;  %v1303_v8 = vmax.f32 %v1301_v3, %v1302_v6  ;;  %v1314_v59 = vmax.f32 %v1312_v53, %v1313_v16  ;;  %v1360_v12 = vunpack.i.l.bf16 %v1358_v39  ;;  %v7232_v4 = vld [vmem:[#allocation139_spill] sm:$0xff] }
 0x157   :  { %v1326_v60 = vrot.slane %v1325_v33, 2  ;;  %v1337_v31 = vrot.slane %v1336_v47, 4  ;;  %v1349_v37 = vmax.f32 %v1347_v48, %v1348_v57  ;;  %v1361_v25 = vunpack.i.h.bf16 %v1358_v39 }
 0x158   :  { %7229 = vst [vmem:[#allocation70_spill] sm:$0xff] %v4853_v13  ;;  %v4855_v28 = vpack.i.bf16 %v1303_v8, %v1303_v8  ;;  %v1315_v5 = vrot.slane %v1314_v59, 1  ;;  %v7233_v2 = vmax.bf16 %v7231_v29, %v7232_v4  ;;  %v7236_v1 = vmax.bf16 %v7234_v41, %v7235_v50  ;;  %v7239_v41 = vld [vmem:[#allocation145_spill] sm:$0xff] }
 0x159   :  { %v1327_v3 = vmax.f32 %v1325_v33, %v1326_v60  ;;  %v1338_v53 = vmax.f32 %v1336_v47, %v1337_v31  ;;  %v1350_v6 = vrot.slane %v1349_v37, 4  ;;  %v1362_v16 = vmax.f32 %v1360_v12, %v1361_v25 }
 0x15a   :  { %7230 = vst [vmem:[#allocation66_spill] sm:$0xff] %v4855_v28  ;;  %v1371_v19 = vsel %vm393_vm0, %v7233_v2, 4286644096  ;;  %v1384_v18 = vsel %vm393_vm0, %v7236_v1, 4286644096  ;;  %v1316_v0 = vmax.f32 %v1314_v59, %v1315_v5  ;;  %v7240_v50 = vmax.bf16 %v7238_v7, %v7239_v41  ;;  %v7243_v7 = vld [vmem:[#allocation146_spill] sm:$0xff] }
 0x15b   :  { %v1373_v57 = vunpack.i.l.bf16 %v1371_v19  ;;  %v1374_v48 = vunpack.i.h.bf16 %v1371_v19  ;;  %v1386_v39 = vunpack.i.l.bf16 %v1384_v18  ;;  %v1328_v8 = vrot.slane %v1327_v3, 1 }
 0x15c   :  { %v1339_v28 = vrot.slane %v1338_v53, 2  ;;  %v1351_v13 = vmax.f32 %v1349_v37, %v1350_v6  ;;  %v1363_v23 = vrot.slane %v1362_v16, 4  ;;  %v4865_v29 = vpack.i.bf16 %v1316_v0, %v1316_v0 }
 0x15d   :  { %v1375_v4 = vmax.f32 %v1373_v57, %v1374_v48  ;;  %v1387_v2 = vunpack.i.h.bf16 %v1384_v18  ;;  %v1397_v33 = vsel %vm393_vm0, %v7240_v50, 4286644096  ;;  %v1329_v47 = vmax.f32 %v1327_v3, %v1328_v8 }
 0x15e   :  { %7237 = vst [vmem:[#allocation71_spill] sm:$0xff] %v4865_v29  ;;  %v1340_v60 = vmax.f32 %v1338_v53, %v1339_v28  ;;  %v1352_v12 = vrot.slane %v1351_v13, 2  ;;  %v1364_v59 = vmax.f32 %v1362_v16, %v1363_v23  ;;  %v1399_v5 = vunpack.i.l.bf16 %v1397_v33  ;;  %v7242_v29 = vld [vmem:[#allocation150_spill] sm:$0xff] }
 0x15f   :  { %v1376_v31 = vrot.slane %v1375_v4, 4  ;;  %v1388_v25 = vmax.f32 %v1386_v39, %v1387_v2  ;;  %v1400_v19 = vunpack.i.h.bf16 %v1397_v33  ;;  %v4871_v1 = vpack.i.bf16 %v1329_v47, %v1329_v47 }
 0x160   :  { %v1341_v37 = vrot.slane %v1340_v60, 1  ;;  %v1353_v6 = vmax.f32 %v1351_v13, %v1352_v12  ;;  %v1365_v0 = vrot.slane %v1364_v59, 2  ;;  %v7244_v41 = vmax.bf16 %v7242_v29, %v7243_v7  ;;  %v7247_v12 = vld [vmem:[#allocation147_spill] sm:$0xff] }
 0x161   :  { %7241 = vst [vmem:[#allocation67_spill] sm:$0xff] %v4871_v1  ;;  %v1377_v57 = vmax.f32 %v1375_v4, %v1376_v31  ;;  %v1389_v18 = vrot.slane %v1388_v25, 4  ;;  %v1401_v48 = vmax.f32 %v1399_v5, %v1400_v19  ;;  %v7246_v4 = vld [vmem:[#allocation151_spill] sm:$0xff]  ;;  %v7270_v1 = vld [vmem:[#allocation165_spill] sm:$0xff] }
 0x162   :  { %v1410_v3 = vsel %vm393_vm0, %v7244_v41, 4286644096  ;;  %v1342_v28 = vmax.f32 %v1340_v60, %v1341_v37  ;;  %v1354_v53 = vrot.slane %v1353_v6, 1  ;;  %v1366_v23 = vmax.f32 %v1364_v59, %v1365_v0 }
 0x163   :  { %v1412_v16 = vunpack.i.l.bf16 %v1410_v3  ;;  %v1378_v39 = vrot.slane %v1377_v57, 2  ;;  %v1390_v8 = vmax.f32 %v1388_v25, %v1389_v18  ;;  %v1402_v2 = vrot.slane %v1401_v48, 4 }
 0x164   :  { %v1413_v50 = vunpack.i.h.bf16 %v1410_v3  ;;  %v4877_v33 = vpack.i.bf16 %v1342_v28, %v1342_v28  ;;  %v1355_v13 = vmax.f32 %v1353_v6, %v1354_v53  ;;  %v1367_v47 = vrot.slane %v1366_v23, 1 }
 0x165   :  { %v7248_v31 = vmax.bf16 %v7246_v4, %v7247_v12  ;;  %v1379_v29 = vmax.f32 %v1377_v57, %v1378_v39  ;;  %v1391_v19 = vrot.slane %v1390_v8, 2  ;;  %v1403_v7 = vmax.f32 %v1401_v48, %v1402_v2  ;;  %v7252_v4 = vld [vmem:[#allocation152_spill] sm:$0xff]  ;;  %v7254_v39 = vld [vmem:[#allocation157_spill] sm:$0xff] }
 0x166   :  { %7245 = vst [vmem:[#allocation76_spill] sm:$0xff] %v4877_v33  ;;  %v1414_v60 = vmax.f32 %v1412_v16, %v1413_v50  ;;  %v4883_v37 = vpack.i.bf16 %v1355_v13, %v1355_v13  ;;  %v1368_v59 = vmax.f32 %v1366_v23, %v1367_v47  ;;  %v7251_v33 = vld [vmem:[#allocation156_spill] sm:$0xff]  ;;  %v7255_v48 = vld [vmem:[#allocation153_spill] sm:$0xff] }
 0x167   :  { %v1423_v5 = vsel %vm393_vm0, %v7248_v31, 4286644096  ;;  %v1380_v18 = vrot.slane %v1379_v29, 1  ;;  %v1392_v41 = vmax.f32 %v1390_v8, %v1391_v19  ;;  %v1404_v3 = vrot.slane %v1403_v7, 2 }
 0x168   :  { %7249 = vst [vmem:[#allocation72_spill] sm:$0xff] %v4883_v37  ;;  %v1425_v0 = vunpack.i.l.bf16 %v1423_v5  ;;  %v1426_v25 = vunpack.i.h.bf16 %v1423_v5  ;;  %v1415_v28 = vrot.slane %v1414_v60, 4  ;;  %v4885_v6 = vpack.i.bf16 %v1368_v59, %v1368_v59  ;;  %v7258_v37 = vld [vmem:[#allocation158_spill] sm:$0xff] }
 0x169   :  { %v7253_v12 = vmax.bf16 %v7251_v33, %v7252_v4  ;;  %v7256_v16 = vmax.bf16 %v7254_v39, %v7255_v48  ;;  %v1381_v23 = vmax.f32 %v1379_v29, %v1380_v18  ;;  %v1393_v50 = vrot.slane %v1392_v41, 1  ;;  %v7259_v39 = vld [vmem:[#allocation154_spill] sm:$0xff] }
 0x16a   :  { %7250 = vst [vmem:[#allocation77_spill] sm:$0xff] %v4885_v6  ;;  %v1427_v53 = vmax.f32 %v1425_v0, %v1426_v25  ;;  %v1405_v13 = vmax.f32 %v1403_v7, %v1404_v3  ;;  %v1416_v47 = vmax.f32 %v1414_v60, %v1415_v28  ;;  %v7260_v48 = vmax.bf16 %v7258_v37, %v7259_v39  ;;  %v7266_v37 = vld [vmem:[#allocation164_spill] sm:$0xff] }
 0x16b   :  { %v1436_v57 = vsel %vm393_vm0, %v7253_v12, 4286644096  ;;  %v1449_v2 = vsel %vm393_vm0, %v7256_v16, 4286644096  ;;  %v4895_v59 = vpack.i.bf16 %v1381_v23, %v1381_v23  ;;  %v1394_v0 = vmax.f32 %v1392_v41, %v1393_v50 }
 0x16c   :  { %v1428_v8 = vrot.slane %v1427_v53, 4  ;;  %v1438_v31 = vunpack.i.l.bf16 %v1436_v57  ;;  %v1439_v5 = vunpack.i.h.bf16 %v1436_v57  ;;  %v1451_v19 = vunpack.i.l.bf16 %v1449_v2 }
 0x16d   :  { %7257 = vst [vmem:[#allocation73_spill] sm:$0xff] %v4895_v59  ;;  %v1406_v25 = vrot.slane %v1405_v13, 1  ;;  %v1417_v33 = vrot.slane %v1416_v47, 2  ;;  %v1452_v6 = vunpack.i.h.bf16 %v1449_v2  ;;  %v1462_v29 = vsel %vm393_vm0, %v7260_v48, 4286644096 }
 0x16e   :  { %v1429_v4 = vmax.f32 %v1427_v53, %v1428_v8  ;;  %v1440_v12 = vmax.f32 %v1438_v31, %v1439_v5  ;;  %v4901_v18 = vpack.i.bf16 %v1394_v0, %v1394_v0  ;;  %v1464_v3 = vunpack.i.l.bf16 %v1462_v29  ;;  %v7263_v53 = vld [vmem:[#allocation159_spill] sm:$0xff]  ;;  %v7267_v5 = vld [vmem:[#allocation160_spill] sm:$0xff] }
 0x16f   :  { %v1407_v7 = vmax.f32 %v1405_v13, %v1406_v25  ;;  %v1418_v60 = vmax.f32 %v1416_v47, %v1417_v33  ;;  %v1453_v16 = vmax.f32 %v1451_v19, %v1452_v6  ;;  %v1465_v23 = vunpack.i.h.bf16 %v1462_v29  ;;  %v7264_v8 = vld [vmem:[#allocation155_spill] sm:$0xff]  ;;  %v7453_v46 = vld [vmem:[#allocation72_spill] sm:$0xff] }
 0x170   :  { %7261 = vst [vmem:[#allocation78_spill] sm:$0xff] %v4901_v18  ;;  %v1430_v28 = vrot.slane %v1429_v4, 2  ;;  %v1441_v57 = vrot.slane %v1440_v12, 4  ;;  %v7265_v2 = vmax.bf16 %v7263_v53, %v7264_v8  ;;  %v7268_v39 = vmax.bf16 %v7266_v37, %v7267_v5  ;;  %v7271_v37 = vld [vmem:[#allocation161_spill] sm:$0xff] }
 0x171   :  { %v4903_v41 = vpack.i.bf16 %v1407_v7, %v1407_v7  ;;  %v1419_v50 = vrot.slane %v1418_v60, 1  ;;  %v1454_v25 = vrot.slane %v1453_v16, 4  ;;  %v1466_v33 = vmax.f32 %v1464_v3, %v1465_v23 }
 0x172   :  { %v1475_v31 = vsel %vm393_vm0, %v7265_v2, 4286644096  ;;  %v1488_v0 = vsel %vm393_vm0, %v7268_v39, 4286644096  ;;  %v1431_v13 = vmax.f32 %v1429_v4, %v1430_v28  ;;  %v1442_v47 = vmax.f32 %v1440_v12, %v1441_v57 }
 0x173   :  { %7262 = vst [vmem:[#allocation74_spill] sm:$0xff] %v4903_v41  ;;  %v1420_v48 = vmax.f32 %v1418_v60, %v1419_v50  ;;  %v1477_v6 = vunpack.i.l.bf16 %v1475_v31  ;;  %v1478_v19 = vunpack.i.h.bf16 %v1475_v31  ;;  %v1490_v29 = vunpack.i.l.bf16 %v1488_v0 }
 0x174   :  { %v1432_v7 = vrot.slane %v1431_v13, 1  ;;  %v1443_v41 = vrot.slane %v1442_v47, 2  ;;  %v1455_v18 = vmax.f32 %v1453_v16, %v1454_v25  ;;  %v1467_v59 = vrot.slane %v1466_v33, 4 }
 0x175   :  { %v4913_v53 = vpack.i.bf16 %v1420_v48, %v1420_v48  ;;  %v1479_v8 = vmax.f32 %v1477_v6, %v1478_v19  ;;  %v1491_v2 = vunpack.i.h.bf16 %v1488_v0  ;;  %v7272_v5 = vmax.bf16 %v7270_v1, %v7271_v37  ;;  %v7274_v1 = vld [vmem:[#allocation162_spill] sm:$0xff] }
 0x176   :  { %v1433_v12 = vmax.f32 %v1431_v13, %v1432_v7  ;;  %v1444_v28 = vmax.f32 %v1442_v47, %v1443_v41  ;;  %v1456_v3 = vrot.slane %v1455_v18, 2  ;;  %v1468_v60 = vmax.f32 %v1466_v33, %v1467_v59 }
 0x177   :  { %7269 = vst [vmem:[#allocation79_spill] sm:$0xff] %v4913_v53  ;;  %v1501_v4 = vsel %vm393_vm0, %v7272_v5, 4286644096  ;;  %v1480_v57 = vrot.slane %v1479_v8, 4  ;;  %v1492_v23 = vmax.f32 %v1490_v29, %v1491_v2  ;;  %v7273_v53 = vld [vmem:[#allocation166_spill] sm:$0xff] }
 0x178   :  { %v1503_v50 = vunpack.i.l.bf16 %v1501_v4  ;;  %v1504_v31 = vunpack.i.h.bf16 %v1501_v4  ;;  %v4919_v39 = vpack.i.bf16 %v1433_v12, %v1433_v12  ;;  %v1445_v16 = vrot.slane %v1444_v28, 1 }
 0x179   :  { %v1457_v25 = vmax.f32 %v1455_v18, %v1456_v3  ;;  %v1469_v48 = vrot.slane %v1468_v60, 2  ;;  %v1481_v6 = vmax.f32 %v1479_v8, %v1480_v57  ;;  %v1493_v0 = vrot.slane %v1492_v23, 4  ;;  %v7276_v8 = vld [vmem:[#allocation167_spill] sm:$0xff] }
 0x17a   :  { %v1505_v19 = vmax.f32 %v1503_v50, %v1504_v31  ;;  %v7275_v37 = vmax.bf16 %v7273_v53, %v7274_v1  ;;  %v1446_v41 = vmax.f32 %v1444_v28, %v1445_v16  ;;  %v7277_v3 = vld [vmem:[#allocation163_spill] sm:$0xff] }
 0x17b   :  { %v1458_v47 = vrot.slane %v1457_v25, 1  ;;  %v1470_v59 = vmax.f32 %v1468_v60, %v1469_v48  ;;  %v1482_v29 = vrot.slane %v1481_v6, 2  ;;  %v1494_v7 = vmax.f32 %v1492_v23, %v1493_v0 }
 0x17c   :  { %v1514_v13 = vsel %vm393_vm0, %v7275_v37, 4286644096  ;;  %v1506_v2 = vrot.slane %v1505_v19, 4  ;;  %v4925_v4 = vpack.i.bf16 %v1446_v41, %v1446_v41  ;;  %v7278_v57 = vmax.bf16 %v7276_v8, %v7277_v3 }
 0x17d   :  { %v1516_v33 = vunpack.i.l.bf16 %v1514_v13  ;;  %v1517_v5 = vunpack.i.h.bf16 %v1514_v13  ;;  %v1459_v18 = vmax.f32 %v1457_v25, %v1458_v47  ;;  %v1471_v12 = vrot.slane %v1470_v59, 1 }
 0x17e   :  { %v1527_v50 = vsel %vm393_vm0, %v7278_v57, 4286644096  ;;  %v1483_v53 = vmax.f32 %v1481_v6, %v1482_v29  ;;  %v1495_v31 = vrot.slane %v1494_v7, 2  ;;  %v1507_v1 = vmax.f32 %v1505_v19, %v1506_v2  ;;  %v7281_v29 = vld [vmem:[#allocation171_spill] sm:$0xff]  ;;  %v7282_v19 = vld [vmem:[#allocation168_spill] sm:$0xff] }
 0x17f   :  { %v1518_v28 = vmax.f32 %v1516_v33, %v1517_v5  ;;  %v4931_v16 = vpack.i.bf16 %v1459_v18, %v1459_v18  ;;  %v1472_v60 = vmax.f32 %v1470_v59, %v1471_v12  ;;  %v1529_v48 = vunpack.i.l.bf16 %v1527_v50 }
 0x180   :  { %v1530_v23 = vunpack.i.h.bf16 %v1527_v50  ;;  %v1484_v0 = vrot.slane %v1483_v53, 1  ;;  %v1496_v37 = vmax.f32 %v1494_v7, %v1495_v31  ;;  %v1508_v13 = vrot.slane %v1507_v1, 2 }
 0x181   :  { %v1519_v41 = vrot.slane %v1518_v28, 4  ;;  %v4933_v25 = vpack.i.bf16 %v1472_v60, %v1472_v60  ;;  %v7280_v8 = vmax.bf16 %v3920_v15, %v3900_v9  ;;  %v7283_v33 = vmax.bf16 %v7281_v29, %v7282_v19  ;;  %v7286_v29 = vld [vmem:[#allocation169_spill] sm:$0xff] }
 0x182   :  { %v1531_v47 = vmax.f32 %v1529_v48, %v1530_v23  ;;  %v1485_v59 = vmax.f32 %v1483_v53, %v1484_v0  ;;  %v1497_v5 = vrot.slane %v1496_v37, 1  ;;  %v1509_v18 = vmax.f32 %v1507_v1, %v1508_v13 }
 0x183   :  { %7279 = vst [vmem:[#allocation75_spill] sm:$0xff] %v4933_v25  ;;  %v1540_v6 = vsel %vm393_vm0, %v7280_v8, 4286644096  ;;  %v1553_v2 = vsel %vm393_vm0, %v7283_v33, 4286644096  ;;  %v1520_v12 = vmax.f32 %v1518_v28, %v1519_v41  ;;  %v7285_v25 = vld [vmem:[#allocation172_spill] sm:$0xff] }
 0x184   :  { %v1532_v7 = vrot.slane %v1531_v47, 4  ;;  %v1542_v3 = vunpack.i.l.bf16 %v1540_v6  ;;  %v1543_v57 = vunpack.i.h.bf16 %v1540_v6  ;;  %v1555_v50 = vunpack.i.l.bf16 %v1553_v2 }
 0x185   :  { %v4943_v31 = vpack.i.bf16 %v1485_v59, %v1485_v59  ;;  %v1498_v60 = vmax.f32 %v1496_v37, %v1497_v5  ;;  %v1510_v48 = vrot.slane %v1509_v18, 1  ;;  %v1521_v9 = vrot.slane %v1520_v12, 2 }
 0x186   :  { %v1533_v15 = vmax.f32 %v1531_v47, %v1532_v7  ;;  %v1544_v23 = vmax.f32 %v1542_v3, %v1543_v57  ;;  %v1556_v8 = vunpack.i.h.bf16 %v1553_v2  ;;  %v7287_v19 = vmax.bf16 %v7285_v25, %v7286_v29  ;;  %v7290_v47 = vld [vmem:[#allocation173_spill] sm:$0xff]  ;;  %v7291_v7 = vld [vmem:[#allocation170_spill] sm:$0xff] }
 0x187   :  { %7284 = vst [vmem:[#allocation84_spill] sm:$0xff] %v4943_v31  ;;  %v4949_v0 = vpack.i.bf16 %v1498_v60, %v1498_v60  ;;  %v1511_v1 = vmax.f32 %v1509_v18, %v1510_v48  ;;  %v1522_v28 = vmax.f32 %v1520_v12, %v1521_v9  ;;  %v7292_v2 = vmax.bf16 %v7290_v47, %v7291_v7  ;;  %v7293_v25 = vld [vmem:[#allocation174_spill] sm:$0xff] }
 0x188   :  { %v1566_v53 = vsel %vm393_vm0, %v7287_v19, 4286644096  ;;  %v1534_v41 = vrot.slane %v1533_v15, 2  ;;  %v1545_v6 = vrot.slane %v1544_v23, 4  ;;  %v1557_v33 = vmax.f32 %v1555_v50, %v1556_v8  ;;  %v7296_v31 = vld [vmem:[#allocation178_spill] sm:$0xff] }
 0x189   :  { %7288 = vst [vmem:[#allocation80_spill] sm:$0xff] %v4949_v0  ;;  %v1568_v13 = vunpack.i.l.bf16 %v1566_v53  ;;  %v1569_v59 = vunpack.i.h.bf16 %v1566_v53  ;;  %v4951_v37 = vpack.i.bf16 %v1511_v1, %v1511_v1  ;;  %v1523_v5 = vrot.slane %v1522_v28, 1 }
 0x18a   :  { %v1579_v3 = vsel %vm393_vm0, %v7292_v2, 4286644096  ;;  %v7294_v57 = vmax.bf16 %v3968_v22, %v7293_v25  ;;  %v1535_v18 = vmax.f32 %v1533_v15, %v1534_v41  ;;  %v1546_v12 = vmax.f32 %v1544_v23, %v1545_v6  ;;  %v7297_v22 = vld [vmem:[#allocation175_spill] sm:$0xff] }
 0x18b   :  { %7289 = vst [vmem:[#allocation85_spill] sm:$0xff] %v4951_v37  ;;  %v1558_v48 = vrot.slane %v1557_v33, 4  ;;  %v1570_v9 = vmax.f32 %v1568_v13, %v1569_v59  ;;  %v1524_v29 = vmax.f32 %v1522_v28, %v1523_v5  ;;  %v1581_v50 = vunpack.i.l.bf16 %v1579_v3 }
 0x18c   :  { %v1592_v60 = vsel %vm393_vm0, %v7294_v57, 4286644096  ;;  %v1582_v8 = vunpack.i.h.bf16 %v1579_v3  ;;  %v1536_v53 = vrot.slane %v1535_v18, 1  ;;  %v1547_v1 = vrot.slane %v1546_v12, 2 }
 0x18d   :  { %v1594_v19 = vunpack.i.l.bf16 %v1592_v60  ;;  %v1559_v37 = vmax.f32 %v1557_v33, %v1558_v48  ;;  %v1571_v0 = vrot.slane %v1570_v9, 4  ;;  %v4961_v47 = vpack.i.bf16 %v1524_v29, %v1524_v29 }
 0x18e   :  { %v1583_v7 = vmax.f32 %v1581_v50, %v1582_v8  ;;  %v1595_v2 = vunpack.i.h.bf16 %v1592_v60  ;;  %v7298_v25 = vmax.bf16 %v7296_v31, %v7297_v22  ;;  %v1537_v23 = vmax.f32 %v1535_v18, %v1536_v53  ;;  %v7300_v31 = vld [vmem:[#allocation176_spill] sm:$0xff] }
 0x18f   :  { %7295 = vst [vmem:[#allocation81_spill] sm:$0xff] %v4961_v47  ;;  %v1548_v41 = vmax.f32 %v1546_v12, %v1547_v1  ;;  %v1560_v13 = vrot.slane %v1559_v37, 2  ;;  %v1572_v28 = vmax.f32 %v1570_v9, %v1571_v0  ;;  %v7299_v47 = vld [vmem:[#allocation179_spill] sm:$0xff] }
 0x190   :  { %v1605_v15 = vsel %vm393_vm0, %v7298_v25, 4286644096  ;;  %v1584_v6 = vrot.slane %v1583_v7, 4  ;;  %v1596_v59 = vmax.f32 %v1594_v19, %v1595_v2  ;;  %v4967_v57 = vpack.i.bf16 %v1537_v23, %v1537_v23 }
 0x191   :  { %v1607_v5 = vunpack.i.l.bf16 %v1605_v15  ;;  %v1608_v3 = vunpack.i.h.bf16 %v1605_v15  ;;  %v1549_v33 = vrot.slane %v1548_v41, 1  ;;  %v1561_v48 = vmax.f32 %v1559_v37, %v1560_v13  ;;  %v7303_v13 = vld [vmem:[#allocation177_spill] sm:$0xff] }
 0x192   :  { %v1573_v29 = vrot.slane %v1572_v28, 2  ;;  %v1585_v50 = vmax.f32 %v1583_v7, %v1584_v6  ;;  %v1597_v60 = vrot.slane %v1596_v59, 4  ;;  %v7301_v22 = vmax.bf16 %v7299_v47, %v7300_v31  ;;  %v7302_v7 = vld [vmem:[#allocation180_spill] sm:$0xff] }
 0x193   :  { %v1609_v8 = vmax.f32 %v1607_v5, %v1608_v3  ;;  %v1550_v12 = vmax.f32 %v1548_v41, %v1549_v33  ;;  %v1562_v53 = vrot.slane %v1561_v48, 1  ;;  %v7304_v6 = vmax.bf16 %v7302_v7, %v7303_v13 }
 0x194   :  { %v1618_v18 = vsel %vm393_vm0, %v7301_v22, 4286644096  ;;  %v1574_v0 = vmax.f32 %v1572_v28, %v1573_v29  ;;  %v1586_v19 = vrot.slane %v1585_v50, 2  ;;  %v1598_v1 = vmax.f32 %v1596_v59, %v1597_v60 }
 0x195   :  { %v1620_v9 = vunpack.i.l.bf16 %v1618_v18  ;;  %v1610_v2 = vrot.slane %v1609_v8, 4  ;;  %v1621_v25 = vunpack.i.h.bf16 %v1618_v18  ;;  %v4973_v15 = vpack.i.bf16 %v1550_v12, %v1550_v12 }
 0x196   :  { %v1563_v37 = vmax.f32 %v1561_v48, %v1562_v53  ;;  %v1575_v23 = vrot.slane %v1574_v0, 1  ;;  %v1631_v5 = vsel %vm393_vm0, %v7304_v6, 4286644096  ;;  %v1587_v47 = vmax.f32 %v1585_v50, %v1586_v19 }
 0x197   :  { %v1599_v3 = vrot.slane %v1598_v1, 2  ;;  %v1611_v31 = vmax.f32 %v1609_v8, %v1610_v2  ;;  %v1622_v41 = vmax.f32 %v1620_v9, %v1621_v25  ;;  %v1633_v29 = vunpack.i.l.bf16 %v1631_v5 }
 0x198   :  { %v4979_v33 = vpack.i.bf16 %v1563_v37, %v1563_v37  ;;  %v1576_v28 = vmax.f32 %v1574_v0, %v1575_v23  ;;  %v1634_v59 = vunpack.i.h.bf16 %v1631_v5  ;;  %v1588_v60 = vrot.slane %v1587_v47, 1 }
 0x199   :  { %v1600_v22 = vmax.f32 %v1598_v1, %v1599_v3  ;;  %v1612_v18 = vrot.slane %v1611_v31, 2  ;;  %v1623_v12 = vrot.slane %v1622_v41, 4  ;;  %v7305_v7 = vmax.bf16 %v4016_v30, %v3996_v24 }
 0x19a   :  { %v4981_v48 = vpack.i.bf16 %v1576_v28, %v1576_v28  ;;  %v1635_v53 = vmax.f32 %v1633_v29, %v1634_v59  ;;  %v7306_v8 = vmax.bf16 %v4021_v35, %v4001_v26  ;;  %v1589_v0 = vmax.f32 %v1587_v47, %v1588_v60  ;;  %v7307_v26 = vld [vmem:[#allocation181_spill] sm:$0xff] }
 0x19b   :  { %v1644_v50 = vsel %vm393_vm0, %v7305_v7, 4286644096  ;;  %v1601_v19 = vrot.slane %v1600_v22, 1  ;;  %v1613_v2 = vmax.f32 %v1611_v31, %v1612_v18  ;;  %v1624_v25 = vmax.f32 %v1622_v41, %v1623_v12 }
 0x19c   :  { %v1657_v9 = vsel %vm393_vm0, %v7306_v8, 4286644096  ;;  %v1636_v1 = vrot.slane %v1635_v53, 4  ;;  %v1646_v37 = vunpack.i.l.bf16 %v1644_v50  ;;  %v1647_v23 = vunpack.i.h.bf16 %v1644_v50 }
 0x19d   :  { %v1659_v13 = vunpack.i.l.bf16 %v1657_v9  ;;  %v4991_v6 = vpack.i.bf16 %v1589_v0, %v1589_v0  ;;  %v1602_v5 = vmax.f32 %v1600_v22, %v1601_v19  ;;  %v1614_v3 = vrot.slane %v1613_v2, 1  ;;  %v7310_v0 = vld [vmem:[#allocation182_spill] sm:$0xff] }
 0x19e   :  { %v1625_v24 = vrot.slane %v1624_v25, 2  ;;  %v1637_v30 = vmax.f32 %v1635_v53, %v1636_v1  ;;  %v1648_v28 = vmax.f32 %v1646_v37, %v1647_v23  ;;  %v1660_v29 = vunpack.i.h.bf16 %v1657_v9  ;;  %v7309_v53 = vld [vmem:[#allocation183_spill] sm:$0xff] }
 0x19f   :  { %v7308_v35 = vmax.bf16 %v4026_v36, %v7307_v26  ;;  %v4997_v59 = vpack.i.bf16 %v1602_v5, %v1602_v5  ;;  %v1615_v31 = vmax.f32 %v1613_v2, %v1614_v3  ;;  %v7311_v9 = vmax.bf16 %v7309_v53, %v7310_v0 }
 0x1a0   :  { %v1626_v41 = vmax.f32 %v1624_v25, %v1625_v24  ;;  %v1638_v18 = vrot.slane %v1637_v30, 2  ;;  %v1649_v12 = vrot.slane %v1648_v28, 4  ;;  %v1661_v7 = vmax.f32 %v1659_v13, %v1660_v29 }
 0x1a1   :  { %v1670_v47 = vsel %vm393_vm0, %v7308_v35, 4286644096  ;;  %v4999_v22 = vpack.i.bf16 %v1615_v31, %v1615_v31  ;;  %v1683_v19 = vsel %vm393_vm0, %v7311_v9, 4286644096  ;;  %v7312_v36 = vmax.bf16 %v4064_v38, %v4044_v32 }
 0x1a2   :  { %v1672_v60 = vunpack.i.l.bf16 %v1670_v47  ;;  %v1673_v50 = vunpack.i.h.bf16 %v1670_v47  ;;  %v1627_v8 = vrot.slane %v1626_v41, 1  ;;  %v1639_v2 = vmax.f32 %v1637_v30, %v1638_v18 }
 0x1a3   :  { %v1696_v1 = vsel %vm393_vm0, %v7312_v36, 4286644096  ;;  %v1650_v25 = vmax.f32 %v1648_v28, %v1649_v12  ;;  %v1662_v37 = vrot.slane %v1661_v7, 4  ;;  %v1685_v13 = vunpack.i.l.bf16 %v1683_v19 }
 0x1a4   :  { %v1674_v23 = vmax.f32 %v1672_v60, %v1673_v50  ;;  %v1628_v5 = vmax.f32 %v1626_v41, %v1627_v8  ;;  %v1686_v3 = vunpack.i.h.bf16 %v1683_v19  ;;  %v1698_v24 = vunpack.i.l.bf16 %v1696_v1 }
 0x1a5   :  { %v1640_v29 = vrot.slane %v1639_v2, 1  ;;  %v1651_v26 = vrot.slane %v1650_v25, 2  ;;  %v1663_v35 = vmax.f32 %v1661_v7, %v1662_v37  ;;  %v1699_v0 = vunpack.i.h.bf16 %v1696_v1 }
 0x1a6   :  { %v1675_v47 = vrot.slane %v1674_v23, 4  ;;  %v5009_v31 = vpack.i.bf16 %v1628_v5, %v1628_v5  ;;  %v1687_v53 = vmax.f32 %v1685_v13, %v1686_v3  ;;  %v7313_v32 = vmax.bf16 %v4069_v43, %v4049_v34  ;;  %v7314_v34 = vld [vmem:[#allocation184_spill] sm:$0xff] }
 0x1a7   :  { %v1641_v30 = vmax.f32 %v1639_v2, %v1640_v29  ;;  %v1652_v28 = vmax.f32 %v1650_v25, %v1651_v26  ;;  %v1664_v60 = vrot.slane %v1663_v35, 2  ;;  %v1700_v12 = vmax.f32 %v1698_v24, %v1699_v0 }
 0x1a8   :  { %v1709_v38 = vsel %vm393_vm0, %v7313_v32, 4286644096  ;;  %v1676_v41 = vmax.f32 %v1674_v23, %v1675_v47  ;;  %v1688_v18 = vrot.slane %v1687_v53, 4  ;;  %v7315_v43 = vmax.bf16 %v4074_v44, %v7314_v34 }
 0x1a9   :  { %v1711_v50 = vunpack.i.l.bf16 %v1709_v38  ;;  %v1712_v8 = vunpack.i.h.bf16 %v1709_v38  ;;  %v5015_v9 = vpack.i.bf16 %v1641_v30, %v1641_v30  ;;  %v1653_v7 = vrot.slane %v1652_v28, 1  ;;  %v7317_v38 = vld [vmem:[#allocation185_spill] sm:$0xff] }
 0x1aa   :  { %v1665_v19 = vmax.f32 %v1663_v35, %v1664_v60  ;;  %v1677_v36 = vrot.slane %v1676_v41, 2  ;;  %v1689_v37 = vmax.f32 %v1687_v53, %v1688_v18  ;;  %v1701_v1 = vrot.slane %v1700_v12, 4  ;;  %v7316_v53 = vld [vmem:[#allocation186_spill] sm:$0xff] }
 0x1ab   :  { %v1713_v5 = vmax.f32 %v1711_v50, %v1712_v8  ;;  %v1722_v2 = vsel %vm393_vm0, %v7315_v43, 4286644096  ;;  %v1654_v25 = vmax.f32 %v1652_v28, %v1653_v7  ;;  %v7318_v30 = vmax.bf16 %v7316_v53, %v7317_v38 }
 0x1ac   :  { %v1666_v13 = vrot.slane %v1665_v19, 1  ;;  %v1678_v23 = vmax.f32 %v1676_v41, %v1677_v36  ;;  %v1724_v3 = vunpack.i.l.bf16 %v1722_v2  ;;  %v1690_v24 = vrot.slane %v1689_v37, 2 }
 0x1ad   :  { %v1702_v29 = vmax.f32 %v1700_v12, %v1701_v1  ;;  %v1714_v26 = vrot.slane %v1713_v5, 4  ;;  %v1725_v47 = vunpack.i.h.bf16 %v1722_v2  ;;  %v5021_v0 = vpack.i.bf16 %v1654_v25, %v1654_v25 }
 0x1ae   :  { %v1667_v35 = vmax.f32 %v1665_v19, %v1666_v13  ;;  %v1679_v32 = vrot.slane %v1678_v23, 1  ;;  %v1735_v60 = vsel %vm393_vm0, %v7318_v30, 4286644096  ;;  %v1691_v44 = vmax.f32 %v1689_v37, %v1690_v24 }
 0x1af   :  { %v1703_v18 = vrot.slane %v1702_v29, 2  ;;  %v1715_v50 = vmax.f32 %v1713_v5, %v1714_v26  ;;  %v1726_v28 = vmax.f32 %v1724_v3, %v1725_v47  ;;  %v1737_v7 = vunpack.i.l.bf16 %v1735_v60 }
 0x1b0   :  { %v5027_v8 = vpack.i.bf16 %v1667_v35, %v1667_v35  ;;  %v1680_v41 = vmax.f32 %v1678_v23, %v1679_v32  ;;  %v1738_v12 = vunpack.i.h.bf16 %v1735_v60  ;;  %v1692_v36 = vrot.slane %v1691_v44, 1 }
 0x1b1   :  { %v1704_v1 = vmax.f32 %v1702_v29, %v1703_v18  ;;  %v1716_v34 = vrot.slane %v1715_v50, 2  ;;  %v1727_v43 = vrot.slane %v1726_v28, 4  ;;  %v7319_v25 = vmax.bf16 %v4112_v45, %v4092_v40 }
 0x1b2   :  { %v5029_v19 = vpack.i.bf16 %v1680_v41, %v1680_v41  ;;  %v1739_v2 = vmax.f32 %v1737_v7, %v1738_v12  ;;  %v7320_v5 = vmax.bf16 %v4117_v55, %v4097_v42  ;;  %v1693_v23 = vmax.f32 %v1691_v44, %v1692_v36  ;;  %v7321_v42 = vld [vmem:[#allocation187_spill] sm:$0xff] }
 0x1b3   :  { %v1748_v37 = vsel %vm393_vm0, %v7319_v25, 4286644096  ;;  %v1705_v3 = vrot.slane %v1704_v1, 1  ;;  %v1717_v24 = vmax.f32 %v1715_v50, %v1716_v34  ;;  %v1728_v26 = vmax.f32 %v1726_v28, %v1727_v43 }
 0x1b4   :  { %v1761_v13 = vsel %vm393_vm0, %v7320_v5, 4286644096  ;;  %v1740_v29 = vrot.slane %v1739_v2, 4  ;;  %v1750_v47 = vunpack.i.l.bf16 %v1748_v37  ;;  %v1751_v35 = vunpack.i.h.bf16 %v1748_v37  ;;  %v7324_v37 = vld [vmem:[#allocation188_spill] sm:$0xff] }
 0x1b5   :  { %v1763_v32 = vunpack.i.l.bf16 %v1761_v13  ;;  %v5039_v53 = vpack.i.bf16 %v1693_v23, %v1693_v23  ;;  %v1706_v38 = vmax.f32 %v1704_v1, %v1705_v3  ;;  %v1718_v30 = vrot.slane %v1717_v24, 1 }
 0x1b6   :  { %v1729_v40 = vrot.slane %v1728_v26, 2  ;;  %v1741_v45 = vmax.f32 %v1739_v2, %v1740_v29  ;;  %v1752_v60 = vmax.f32 %v1750_v47, %v1751_v35  ;;  %v1764_v18 = vunpack.i.h.bf16 %v1761_v13  ;;  %v7323_v2 = vld [vmem:[#allocation189_spill] sm:$0xff] }
 0x1b7   :  { %v7322_v55 = vmax.bf16 %v4122_v56, %v7321_v42  ;;  %v5045_v41 = vpack.i.bf16 %v1706_v38, %v1706_v38  ;;  %v1719_v50 = vmax.f32 %v1717_v24, %v1718_v30  ;;  %v7325_v5 = vmax.bf16 %v7323_v2, %v7324_v37 }
 0x1b8   :  { %v1730_v28 = vmax.f32 %v1728_v26, %v1729_v40  ;;  %v1742_v12 = vrot.slane %v1741_v45, 2  ;;  %v1753_v36 = vrot.slane %v1752_v60, 4  ;;  %v1765_v34 = vmax.f32 %v1763_v32, %v1764_v18 }
 0x1b9   :  { %v1774_v44 = vsel %vm393_vm0, %v7322_v55, 4286644096  ;;  %v5047_v1 = vpack.i.bf16 %v1719_v50, %v1719_v50  ;;  %v1787_v13 = vsel %vm393_vm0, %v7325_v5, 4286644096  ;;  %v7326_v56 = vmax.bf16 %v4160_v58, %v4140_v52 }
 0x1ba   :  { %v1776_v7 = vunpack.i.l.bf16 %v1774_v44  ;;  %v1777_v43 = vunpack.i.h.bf16 %v1774_v44  ;;  %v1731_v25 = vrot.slane %v1730_v28, 1  ;;  %v1743_v3 = vmax.f32 %v1741_v45, %v1742_v12 }
 0x1bb   :  { %v1800_v23 = vsel %vm393_vm0, %v7326_v56, 4286644096  ;;  %v1754_v24 = vmax.f32 %v1752_v60, %v1753_v36  ;;  %v1766_v26 = vrot.slane %v1765_v34, 4  ;;  %v1789_v35 = vunpack.i.l.bf16 %v1787_v13 }
 0x1bc   :  { %v1778_v29 = vmax.f32 %v1776_v7, %v1777_v43  ;;  %v1732_v47 = vmax.f32 %v1730_v28, %v1731_v25  ;;  %v1790_v32 = vunpack.i.h.bf16 %v1787_v13  ;;  %v1802_v38 = vunpack.i.l.bf16 %v1800_v23 }
 0x1bd   :  { %v1744_v30 = vrot.slane %v1743_v3, 1  ;;  %v1755_v40 = vrot.slane %v1754_v24, 2  ;;  %v1767_v18 = vmax.f32 %v1765_v34, %v1766_v26  ;;  %v1803_v50 = vunpack.i.h.bf16 %v1800_v23 }
 0x1be   :  { %v1779_v42 = vrot.slane %v1778_v29, 4  ;;  %v5057_v55 = vpack.i.bf16 %v1732_v47, %v1732_v47  ;;  %v1791_v44 = vmax.f32 %v1789_v35, %v1790_v32  ;;  %v7327_v52 = vmax.bf16 %v4165_v62, %v4145_v54  ;;  %v7328_v54 = vld [vmem:[#allocation190_spill] sm:$0xff] }
 0x1bf   :  { %v1745_v45 = vmax.f32 %v1743_v3, %v1744_v30  ;;  %v1756_v60 = vmax.f32 %v1754_v24, %v1755_v40  ;;  %v1768_v7 = vrot.slane %v1767_v18, 2  ;;  %v1804_v36 = vmax.f32 %v1802_v38, %v1803_v50  ;;  %v7331_v50 = vld [vmem:[#allocation191_spill] sm:$0xff] }
 0x1c0   :  { %v1813_v58 = vsel %vm393_vm0, %v7327_v52, 4286644096  ;;  %v1780_v28 = vmax.f32 %v1778_v29, %v1779_v42  ;;  %v1792_v12 = vrot.slane %v1791_v44, 4  ;;  %v7329_v62 = vmax.bf16 %v4170_v63, %v7328_v54 }
 0x1c1   :  { %v1815_v43 = vunpack.i.l.bf16 %v1813_v58  ;;  %v1816_v25 = vunpack.i.h.bf16 %v1813_v58  ;;  %v5063_v2 = vpack.i.bf16 %v1745_v45, %v1745_v45  ;;  %v1757_v34 = vrot.slane %v1756_v60, 1 }
 0x1c2   :  { %v1769_v37 = vmax.f32 %v1767_v18, %v1768_v7  ;;  %v1781_v5 = vrot.slane %v1780_v28, 2  ;;  %v1793_v13 = vmax.f32 %v1791_v44, %v1792_v12  ;;  %v1805_v56 = vrot.slane %v1804_v36, 4  ;;  %v7330_v44 = vld [vmem:[#allocation192_spill] sm:$0xff] }
 0x1c3   :  { %v1817_v23 = vmax.f32 %v1815_v43, %v1816_v25  ;;  %v1826_v3 = vsel %vm393_vm0, %v7329_v62, 4286644096  ;;  %v1758_v24 = vmax.f32 %v1756_v60, %v1757_v34  ;;  %v7332_v52 = vmax.bf16 %v7330_v44, %v7331_v50 }
 0x1c4   :  { %v1770_v26 = vrot.slane %v1769_v37, 1  ;;  %v1782_v29 = vmax.f32 %v1780_v28, %v1781_v5  ;;  %v1828_v47 = vunpack.i.l.bf16 %v1826_v3  ;;  %v1794_v35 = vrot.slane %v1793_v13, 2 }
 0x1c5   :  { %v1806_v32 = vmax.f32 %v1804_v36, %v1805_v56  ;;  %v1818_v38 = vrot.slane %v1817_v23, 4  ;;  %v1829_v30 = vunpack.i.h.bf16 %v1826_v3  ;;  %v5069_v40 = vpack.i.bf16 %v1758_v24, %v1758_v24 }
 0x1c6   :  { %v1771_v18 = vmax.f32 %v1769_v37, %v1770_v26  ;;  %v1783_v42 = vrot.slane %v1782_v29, 1  ;;  %v1839_v58 = vsel %vm393_vm0, %v7332_v52, 4286644096  ;;  %v1795_v63 = vmax.f32 %v1793_v13, %v1794_v35 }
 0x1c7   :  { %v1807_v45 = vrot.slane %v1806_v32, 2  ;;  %v1819_v7 = vmax.f32 %v1817_v23, %v1818_v38  ;;  %v1830_v60 = vmax.f32 %v1828_v47, %v1829_v30  ;;  %v1841_v43 = vunpack.i.l.bf16 %v1839_v58 }
 0x1c8   :  { %v5075_v12 = vpack.i.bf16 %v1771_v18, %v1771_v18  ;;  %v1784_v28 = vmax.f32 %v1782_v29, %v1783_v42  ;;  %v1842_v36 = vunpack.i.h.bf16 %v1839_v58  ;;  %v1796_v25 = vrot.slane %v1795_v63, 1 }
 0x1c9   :  { %v1808_v34 = vmax.f32 %v1806_v32, %v1807_v45  ;;  %v1820_v5 = vrot.slane %v1819_v7, 2  ;;  %v1831_v56 = vrot.slane %v1830_v60, 4  ;;  %v7333_v62 = vmax.bf16 %v4208_v49, %v4188_v51 }
 0x1ca   :  { %v5077_v37 = vpack.i.bf16 %v1784_v28, %v1784_v28  ;;  %v1843_v54 = vmax.f32 %v1841_v43, %v1842_v36  ;;  %v7334_v23 = vmax.bf16 %v4213_v10, %v4193_v61  ;;  %v1797_v24 = vmax.f32 %v1795_v63, %v1796_v25  ;;  %v7336_v10 = vld [vmem:[#allocation193_spill] sm:$0xff] }
 0x1cb   :  { %v1852_v13 = vsel %vm393_vm0, %v7333_v62, 4286644096  ;;  %v1809_v26 = vrot.slane %v1808_v34, 1  ;;  %v1821_v29 = vmax.f32 %v1819_v7, %v1820_v5  ;;  %v1832_v47 = vmax.f32 %v1830_v60, %v1831_v56  ;;  %v7340_v56 = vld [vmem:[#allocation198_spill] sm:$0xff] }
 0x1cc   :  { %v1865_v3 = vsel %vm393_vm0, %v7334_v23, 4286644096  ;;  %v1844_v35 = vrot.slane %v1843_v54, 4  ;;  %v1854_v32 = vunpack.i.l.bf16 %v1852_v13  ;;  %v1855_v38 = vunpack.i.h.bf16 %v1852_v13 }
 0x1cd   :  { %v1867_v30 = vunpack.i.l.bf16 %v1865_v3  ;;  %v5087_v18 = vpack.i.bf16 %v1797_v24, %v1797_v24  ;;  %v1810_v42 = vmax.f32 %v1808_v34, %v1809_v26  ;;  %v1822_v44 = vrot.slane %v1821_v29, 1 }
 0x1ce   :  { %v1833_v49 = vrot.slane %v1832_v47, 2  ;;  %v1845_v51 = vmax.f32 %v1843_v54, %v1844_v35  ;;  %v1856_v50 = vmax.f32 %v1854_v32, %v1855_v38  ;;  %v1868_v52 = vunpack.i.h.bf16 %v1865_v3  ;;  %v7341_v54 = vld [vmem:[#allocation194_spill] sm:$0xff] }
 0x1cf   :  { %7335 = vst [vmem:[#allocation86_spill] sm:$0xff] %v5087_v18  ;;  %v7337_v61 = vmax.bf16 %v4246_v20, %v7336_v10  ;;  %v5093_v63 = vpack.i.bf16 %v1810_v42, %v1810_v42  ;;  %v1823_v45 = vmax.f32 %v1821_v29, %v1822_v44  ;;  %v7342_v62 = vmax.bf16 %v7340_v56, %v7341_v54 }
 0x1d0   :  { %v1834_v7 = vmax.f32 %v1832_v47, %v1833_v49  ;;  %v1846_v28 = vrot.slane %v1845_v51, 2  ;;  %v1857_v43 = vrot.slane %v1856_v50, 4  ;;  %v1869_v36 = vmax.f32 %v1867_v30, %v1868_v52 }
 0x1d1   :  { %v1878_v58 = vsel %vm393_vm0, %v7337_v61, 4286644096  ;;  %7338 = vst [vmem:[#allocation82_spill] sm:$0xff] %v5093_v63  ;;  %v5095_v34 = vpack.i.bf16 %v1823_v45, %v1823_v45  ;;  %v1891_v13 = vsel %vm393_vm0, %v7342_v62, 4286644096  ;;  %v7343_v20 = vmax.bf16 %v4256_v21, %v4226_v11  ;;  %v7345_v11 = vld [vmem:[#allocation195_spill] sm:$0xff] }
 0x1d2   :  { %v1880_v60 = vunpack.i.l.bf16 %v1878_v58  ;;  %v1881_v25 = vunpack.i.h.bf16 %v1878_v58  ;;  %v1835_v5 = vrot.slane %v1834_v7, 1  ;;  %v1847_v3 = vmax.f32 %v1845_v51, %v1846_v28 }
 0x1d3   :  { %7339 = vst [vmem:[#allocation87_spill] sm:$0xff] %v5095_v34  ;;  %v1904_v23 = vsel %vm393_vm0, %v7343_v20, 4286644096  ;;  %v1858_v24 = vmax.f32 %v1856_v50, %v1857_v43  ;;  %v1870_v26 = vrot.slane %v1869_v36, 4  ;;  %v1893_v35 = vunpack.i.l.bf16 %v1891_v13 }
 0x1d4   :  { %v1882_v29 = vmax.f32 %v1880_v60, %v1881_v25  ;;  %v1836_v47 = vmax.f32 %v1834_v7, %v1835_v5  ;;  %v1894_v32 = vunpack.i.h.bf16 %v1891_v13  ;;  %v1906_v38 = vunpack.i.l.bf16 %v1904_v23 }
 0x1d5   :  { %v1848_v30 = vrot.slane %v1847_v3, 1  ;;  %v1859_v42 = vrot.slane %v1858_v24, 2  ;;  %v1871_v44 = vmax.f32 %v1869_v36, %v1870_v26  ;;  %v1907_v61 = vunpack.i.h.bf16 %v1904_v23  ;;  %v7347_v23 = vld [vmem:[#allocation199_spill] sm:$0xff] }
 0x1d6   :  { %v1883_v49 = vrot.slane %v1882_v29, 4  ;;  %v5105_v52 = vpack.i.bf16 %v1836_v47, %v1836_v47  ;;  %v1895_v10 = vmax.f32 %v1893_v35, %v1894_v32  ;;  %v7346_v21 = vmax.bf16 %v4269_v27, %v7345_v11  ;;  %v7348_v27 = vld [vmem:[#allocation196_spill] sm:$0xff]  ;;  %v7351_v11 = vld [vmem:[#allocation197_spill] sm:$0xff] }
 0x1d7   :  { %v1849_v50 = vmax.f32 %v1847_v3, %v1848_v30  ;;  %v1860_v58 = vmax.f32 %v1858_v24, %v1859_v42  ;;  %v1872_v45 = vrot.slane %v1871_v44, 2  ;;  %v1908_v28 = vmax.f32 %v1906_v38, %v1907_v61 }
 0x1d8   :  { %7344 = vst [vmem:[#allocation83_spill] sm:$0xff] %v5105_v52  ;;  %v1917_v51 = vsel %vm393_vm0, %v7346_v21, 4286644096  ;;  %v1884_v7 = vmax.f32 %v1882_v29, %v1883_v49  ;;  %v1896_v60 = vrot.slane %v1895_v10, 4  ;;  %v7349_v26 = vmax.bf16 %v7347_v23, %v7348_v27 }
 0x1d9   :  { %v1919_v43 = vunpack.i.l.bf16 %v1917_v51  ;;  %v1920_v25 = vunpack.i.h.bf16 %v1917_v51  ;;  %v5111_v5 = vpack.i.bf16 %v1849_v50, %v1849_v50  ;;  %v1861_v36 = vrot.slane %v1860_v58, 1 }
 0x1da   :  { %v1873_v56 = vmax.f32 %v1871_v44, %v1872_v45  ;;  %v1885_v54 = vrot.slane %v1884_v7, 2  ;;  %v1897_v62 = vmax.f32 %v1895_v10, %v1896_v60  ;;  %v1909_v13 = vrot.slane %v1908_v28, 4  ;;  %v7350_v10 = vld [vmem:[#allocation200_spill] sm:$0xff] }
 0x1db   :  { %v1921_v20 = vmax.f32 %v1919_v43, %v1920_v25  ;;  %v1930_v3 = vsel %vm393_vm0, %v7349_v26, 4286644096  ;;  %v1862_v24 = vmax.f32 %v1860_v58, %v1861_v36  ;;  %v7352_v21 = vmax.bf16 %v7350_v10, %v7351_v11  ;;  %v7353_v26 = vld [vmem:[#allocation209_spill] sm:$0xff] }
 0x1dc   :  { %v1874_v47 = vrot.slane %v1873_v56, 1  ;;  %v1886_v29 = vmax.f32 %v1884_v7, %v1885_v54  ;;  %v1932_v35 = vunpack.i.l.bf16 %v1930_v3  ;;  %v1898_v32 = vrot.slane %v1897_v62, 2 }
 0x1dd   :  { %v1910_v38 = vmax.f32 %v1908_v28, %v1909_v13  ;;  %v1922_v30 = vrot.slane %v1921_v20, 4  ;;  %v1933_v42 = vunpack.i.h.bf16 %v1930_v3  ;;  %v5117_v49 = vpack.i.bf16 %v1862_v24, %v1862_v24  ;;  %v7354_v3 = vld [vmem:[#allocation201_spill] sm:$0xff] }
 0x1de   :  { %v1875_v44 = vmax.f32 %v1873_v56, %v1874_v47  ;;  %v1887_v61 = vrot.slane %v1886_v29, 1  ;;  %v1943_v51 = vsel %vm393_vm0, %v7352_v21, 4286644096  ;;  %v1899_v50 = vmax.f32 %v1897_v62, %v1898_v32  ;;  %v7356_v47 = vld [vmem:[#allocation210_spill] sm:$0xff] }
 0x1df   :  { %v1911_v45 = vrot.slane %v1910_v38, 2  ;;  %v1923_v60 = vmax.f32 %v1921_v20, %v1922_v30  ;;  %v1934_v58 = vmax.f32 %v1932_v35, %v1933_v42  ;;  %v1945_v25 = vunpack.i.l.bf16 %v1943_v51  ;;  %v7357_v20 = vld [vmem:[#allocation202_spill] sm:$0xff] }
 0x1e0   :  { %v5123_v43 = vpack.i.bf16 %v1875_v44, %v1875_v44  ;;  %v1888_v7 = vmax.f32 %v1886_v29, %v1887_v61  ;;  %v1946_v28 = vunpack.i.h.bf16 %v1943_v51  ;;  %v1900_v36 = vrot.slane %v1899_v50, 1 }
 0x1e1   :  { %v1912_v54 = vmax.f32 %v1910_v38, %v1911_v45  ;;  %v1924_v13 = vrot.slane %v1923_v60, 2  ;;  %v1935_v23 = vrot.slane %v1934_v58, 4  ;;  %v7355_v24 = vmax.bf16 %v7353_v26, %v7354_v3  ;;  %v7360_v3 = vld [vmem:[#allocation211_spill] sm:$0xff] }
 0x1e2   :  { %v5125_v56 = vpack.i.bf16 %v1888_v7, %v1888_v7  ;;  %v1947_v27 = vmax.f32 %v1945_v25, %v1946_v28  ;;  %v7358_v35 = vmax.bf16 %v7356_v47, %v7357_v20  ;;  %v1901_v29 = vmax.f32 %v1899_v50, %v1900_v36 }
 0x1e3   :  { %v1956_v62 = vsel %vm393_vm0, %v7355_v24, 4286644096  ;;  %v1913_v30 = vrot.slane %v1912_v54, 1  ;;  %v1925_v42 = vmax.f32 %v1923_v60, %v1924_v13  ;;  %v1936_v44 = vmax.f32 %v1934_v58, %v1935_v23  ;;  %v7361_v24 = vld [vmem:[#allocation203_spill] sm:$0xff] }
 0x1e4   :  { %v1969_v32 = vsel %vm393_vm0, %v7358_v35, 4286644096  ;;  %v1948_v38 = vrot.slane %v1947_v27, 4  ;;  %v1958_v61 = vunpack.i.l.bf16 %v1956_v62  ;;  %v1959_v10 = vunpack.i.h.bf16 %v1956_v62 }
 0x1e5   :  { %v1971_v11 = vunpack.i.l.bf16 %v1969_v32  ;;  %v5135_v21 = vpack.i.bf16 %v1901_v29, %v1901_v29  ;;  %v1914_v51 = vmax.f32 %v1912_v54, %v1913_v30  ;;  %v1926_v45 = vrot.slane %v1925_v42, 1  ;;  %v7366_v30 = vld [vmem:[#allocation204_spill] sm:$0xff] }
 0x1e6   :  { %v1937_v7 = vrot.slane %v1936_v44, 2  ;;  %v1949_v25 = vmax.f32 %v1947_v27, %v1948_v38  ;;  %v1960_v28 = vmax.f32 %v1958_v61, %v1959_v10  ;;  %v1972_v26 = vunpack.i.h.bf16 %v1969_v32  ;;  %v7365_v27 = vld [vmem:[#allocation212_spill] sm:$0xff]  ;;  %v7368_v61 = vld [vmem:[#allocation213_spill] sm:$0xff] }
 0x1e7   :  { %7359 = vst [vmem:[#allocation92_spill] sm:$0xff] %v5135_v21  ;;  %v7362_v47 = vmax.bf16 %v7360_v3, %v7361_v24  ;;  %v5141_v36 = vpack.i.bf16 %v1914_v51, %v1914_v51  ;;  %v1927_v60 = vmax.f32 %v1925_v42, %v1926_v45  ;;  %v7367_v32 = vmax.bf16 %v7365_v27, %v7366_v30  ;;  %v7369_v10 = vld [vmem:[#allocation205_spill] sm:$0xff]  ;;  %v7372_v21 = vld [vmem:[#allocation214_spill] sm:$0xff] }
 0x1e8   :  { %v1938_v58 = vmax.f32 %v1936_v44, %v1937_v7  ;;  %v1950_v23 = vrot.slane %v1949_v25, 2  ;;  %v1961_v62 = vrot.slane %v1960_v28, 4  ;;  %v1973_v20 = vmax.f32 %v1971_v11, %v1972_v26 }
 0x1e9   :  { %v1982_v50 = vsel %vm393_vm0, %v7362_v47, 4286644096  ;;  %7363 = vst [vmem:[#allocation88_spill] sm:$0xff] %v5141_v36  ;;  %v5143_v54 = vpack.i.bf16 %v1927_v60, %v1927_v60  ;;  %v1995_v38 = vsel %vm393_vm0, %v7367_v32, 4286644096  ;;  %v7370_v3 = vmax.bf16 %v7368_v61, %v7369_v10  ;;  %v7373_v61 = vld [vmem:[#allocation206_spill] sm:$0xff] }
 0x1ea   :  { %v1984_v13 = vunpack.i.l.bf16 %v1982_v50  ;;  %v1985_v35 = vunpack.i.h.bf16 %v1982_v50  ;;  %v1939_v29 = vrot.slane %v1938_v58, 1  ;;  %v1951_v42 = vmax.f32 %v1949_v25, %v1950_v23 }
 0x1eb   :  { %7364 = vst [vmem:[#allocation93_spill] sm:$0xff] %v5143_v54  ;;  %v2008_v51 = vsel %vm393_vm0, %v7370_v3, 4286644096  ;;  %v1962_v44 = vmax.f32 %v1960_v28, %v1961_v62  ;;  %v1974_v45 = vrot.slane %v1973_v20, 4  ;;  %v1997_v11 = vunpack.i.l.bf16 %v1995_v38 }
 0x1ec   :  { %v1986_v7 = vmax.f32 %v1984_v13, %v1985_v35  ;;  %v1940_v24 = vmax.f32 %v1938_v58, %v1939_v29  ;;  %v1998_v26 = vunpack.i.h.bf16 %v1995_v38  ;;  %v2010_v47 = vunpack.i.l.bf16 %v2008_v51 }
 0x1ed   :  { %v1952_v50 = vrot.slane %v1951_v42, 1  ;;  %v1963_v60 = vrot.slane %v1962_v44, 2  ;;  %v1975_v54 = vmax.f32 %v1973_v20, %v1974_v45  ;;  %v2011_v32 = vunpack.i.h.bf16 %v2008_v51 }
 0x1ee   :  { %v1987_v36 = vrot.slane %v1986_v7, 4  ;;  %v5153_v27 = vpack.i.bf16 %v1940_v24, %v1940_v24  ;;  %v1999_v30 = vmax.f32 %v1997_v11, %v1998_v26  ;;  %v7374_v10 = vmax.bf16 %v7372_v21, %v7373_v61  ;;  %v7376_v21 = vld [vmem:[#allocation207_spill] sm:$0xff]  ;;  %v7464_v18 = vld [vmem:[#allocation92_spill] sm:$0xff] }
 0x1ef   :  { %v1953_v28 = vmax.f32 %v1951_v42, %v1952_v50  ;;  %v1964_v23 = vmax.f32 %v1962_v44, %v1963_v60  ;;  %v1976_v13 = vrot.slane %v1975_v54, 2  ;;  %v2012_v35 = vmax.f32 %v2010_v47, %v2011_v32 }
 0x1f0   :  { %7371 = vst [vmem:[#allocation89_spill] sm:$0xff] %v5153_v27  ;;  %v2021_v25 = vsel %vm393_vm0, %v7374_v10, 4286644096  ;;  %v1988_v58 = vmax.f32 %v1986_v7, %v1987_v36  ;;  %v2000_v62 = vrot.slane %v1999_v30, 4  ;;  %v7375_v27 = vld [vmem:[#allocation215_spill] sm:$0xff]  ;;  %v7465_v63 = vld [vmem:[#allocation88_spill] sm:$0xff] }
 0x1f1   :  { %v2023_v29 = vunpack.i.l.bf16 %v2021_v25  ;;  %v2024_v38 = vunpack.i.h.bf16 %v2021_v25  ;;  %v5159_v3 = vpack.i.bf16 %v1953_v28, %v1953_v28  ;;  %v1965_v20 = vrot.slane %v1964_v23, 1 }
 0x1f2   :  { %v1977_v45 = vmax.f32 %v1975_v54, %v1976_v13  ;;  %v1989_v24 = vrot.slane %v1988_v58, 2  ;;  %v2001_v11 = vmax.f32 %v1999_v30, %v2000_v62  ;;  %v2013_v51 = vrot.slane %v2012_v35, 4  ;;  %v7378_v30 = vld [vmem:[#allocation216_spill] sm:$0xff]  ;;  %v7466_v34 = vld [vmem:[#allocation93_spill] sm:$0xff] }
 0x1f3   :  { %v2025_v26 = vmax.f32 %v2023_v29, %v2024_v38  ;;  %v7377_v61 = vmax.bf16 %v7375_v27, %v7376_v21  ;;  %v1966_v44 = vmax.f32 %v1964_v23, %v1965_v20  ;;  %v7379_v13 = vld [vmem:[#allocation208_spill] sm:$0xff] }
 0x1f4   :  { %v1978_v50 = vrot.slane %v1977_v45, 1  ;;  %v1990_v36 = vmax.f32 %v1988_v58, %v1989_v24  ;;  %v2002_v47 = vrot.slane %v2001_v11, 2  ;;  %v2014_v60 = vmax.f32 %v2012_v35, %v2013_v51 }
 0x1f5   :  { %v2034_v42 = vsel %vm393_vm0, %v7377_v61, 4286644096  ;;  %v2026_v32 = vrot.slane %v2025_v26, 4  ;;  %v5165_v25 = vpack.i.bf16 %v1966_v44, %v1966_v44  ;;  %v7380_v62 = vmax.bf16 %v7378_v30, %v7379_v13  ;;  %v7384_v13 = vld [vmem:[#allocation6_spill] sm:$0xff] }
 0x1f6   :  { %v2036_v7 = vunpack.i.l.bf16 %v2034_v42  ;;  %v2037_v10 = vunpack.i.h.bf16 %v2034_v42  ;;  %v1979_v54 = vmax.f32 %v1977_v45, %v1978_v50  ;;  %v1991_v28 = vrot.slane %v1990_v36, 1 }
 0x1f7   :  { %v2047_v29 = vsel %vm393_vm0, %v7380_v62, 4286644096  ;;  %v2003_v27 = vmax.f32 %v2001_v11, %v2002_v47  ;;  %v2015_v38 = vrot.slane %v2014_v60, 2  ;;  %v2027_v21 = vmax.f32 %v2025_v26, %v2026_v32  ;;  %v7462_v62 = vld [vmem:[#allocation85_spill] sm:$0xff] }
 0x1f8   :  { %v2038_v23 = vmax.f32 %v2036_v7, %v2037_v10  ;;  %v5171_v20 = vpack.i.bf16 %v1979_v54, %v1979_v54  ;;  %v1992_v58 = vmax.f32 %v1990_v36, %v1991_v28  ;;  %v2049_v24 = vunpack.i.l.bf16 %v2047_v29  ;;  %v7382_v10 = vld [vmem:[#allocation5_spill] sm:$0xff] }
 0x1f9   :  { %v2050_v35 = vunpack.i.h.bf16 %v2047_v29  ;;  %v2004_v51 = vrot.slane %v2003_v27, 1  ;;  %v2016_v61 = vmax.f32 %v2014_v60, %v2015_v38  ;;  %v2028_v42 = vrot.slane %v2027_v21, 2  ;;  %v7383_v60 = vld [vmem:[#allocation2_spill] sm:$0xff]  ;;  %v7467_v52 = vld [vmem:[#allocation89_spill] sm:$0xff] }
 0x1fa   :  { %7381 = vst [vmem:[#allocation94_spill] sm:$0xff] %v5171_v20  ;;  %v2039_v44 = vrot.slane %v2038_v23, 4  ;;  %v5173_v45 = vpack.i.bf16 %v1992_v58, %v1992_v58 }
 0x1fb   :  { %v2051_v50 = vmax.f32 %v2049_v24, %v2050_v35  ;;  %v2005_v26 = vmax.f32 %v2003_v27, %v2004_v51  ;;  %v2017_v7 = vrot.slane %v2016_v61, 1  ;;  %v2029_v47 = vmax.f32 %v2027_v21, %v2028_v42  ;;  %v7385_v27 = vld [vmem:[#allocation3_spill] sm:$0xff]  ;;  %v7405_v42 = vld [vmem:[#allocation24_spill] sm:$0xff] }
 0x1fc   :  { %v2040_v32 = vmax.f32 %v2038_v23, %v2039_v44  ;;  %v7386_v23 = vld [vmem:[#allocation7_spill] sm:$0xff]  ;;  %v7452_v21 = vld [vmem:[#allocation76_spill] sm:$0xff] }
 0x1fd   :  { %v2052_v36 = vrot.slane %v2051_v50, 4  ;;  %v5185_v29 = vpack.i.bf16 %v2005_v26, %v2005_v26  ;;  %v2018_v38 = vmax.f32 %v2016_v61, %v2017_v7  ;;  %v2030_v58 = vrot.slane %v2029_v47, 1  ;;  %v7460_v26 = vld [vmem:[#allocation84_spill] sm:$0xff] }
 0x1fe   :  { %v2041_v24 = vrot.slane %v2040_v32, 2  ;;  %v7470_v7 = vcombine.low %v7382_v10, %v7382_v10  ;;  %v7477_v10 = vcombine.low %v7386_v23, %v7386_v23 }
 0x1ff   :  { %v2053_v35 = vmax.f32 %v2051_v50, %v2052_v36  ;;  %v5193_v54 = vpack.i.bf16 %v2018_v38, %v2018_v38  ;;  %v2031_v28 = vmax.f32 %v2029_v47, %v2030_v58  ;;  %v7461_v36 = vld [vmem:[#allocation80_spill] sm:$0xff]  ;;  %v7463_v47 = vld [vmem:[#allocation81_spill] sm:$0xff]  ;;  %v7469_v58 = vcombine.low %v4451_v17, %v4451_v17 }
 0x200   :  { %v2042_v11 = vmax.f32 %v2040_v32, %v2041_v24  ;;  %v7392_v32 = vld [vmem:[#allocation10_spill] sm:$0xff]  ;;  %v7471_v50 = vcombine.low %v7383_v60, %v7383_v60  ;;  %v7475_v17 = vcombine.low %v7385_v27, %v7385_v27 }
 0x201   :  { %v2054_v61 = vrot.slane %v2053_v35, 2  ;;  %v5203_v30 = vpack.i.bf16 %v2031_v28, %v2031_v28  ;;  %v7468_v28 = vcombine.low %v4449_v14, %v4449_v14  ;;  %v7473_v14 = vcombine.low %v7384_v13, %v7384_v13 }
 0x202   :  { %v2043_v44 = vrot.slane %v2042_v11, 1 }
 0x203   :  { %v2055_v24 = vmax.f32 %v2053_v35, %v2054_v61  ;;  %v7459_v61 = vld [vmem:[#allocation75_spill] sm:$0xff]  ;;  %v5444_v20 = vunpack.c.l.b16 %v7468_v28  ;;  %v5464_v28 = vunpack.c.l.b16 %v7473_v14 }
 0x204   :  { %v2044_v51 = vmax.f32 %v2042_v11, %v2043_v44  ;;  %v7479_v44 = vld [vmem:[#allocation4_spill] sm:$0xff] }
 0x205   :  { %v2056_v35 = vrot.slane %v2055_v24, 1  ;;  %7474 = vst [vmem:[#allocation91_spill] sm:$0xff] %v5464_v28  ;;  %v7480_v60 = vcombine.low %v7479_v44, %v7479_v44  ;;  %v7484_v28 = vld [vmem:[#allocation8_spill] sm:$0xff] }
 0x206   :  { %v5227_v11 = vpack.i.bf16 %v2044_v51, %v2044_v51  ;;  %v5454_v51 = vunpack.c.l.b16 %v7470_v7  ;;  %v5474_v7 = vunpack.c.l.b16 %v7477_v10  ;;  %v7485_v27 = vcombine.low %v7484_v28, %v7484_v28 }
 0x207   :  { %v2057_v38 = vmax.f32 %v2055_v24, %v2056_v35  ;;  %v5449_v24 = vunpack.c.l.b16 %v7469_v58  ;;  %v5469_v58 = vunpack.c.l.b16 %v7475_v17  ;;  %v7496_v28 = vcombine.low %v7392_v32, %v7392_v32 }
 0x208   :  { %7402 = vst [vmem:[#allocation90_spill] sm:$0xff] %v5227_v11  ;;  %v5459_v11 = vunpack.c.l.b16 %v7471_v50  ;;  %7478 = vst [vmem:[#allocation96_spill] sm:$0xff] %v5474_v7  ;;  %v5479_v50 = vunpack.c.l.b16 %v7480_v60  ;;  %v5489_v17 = vunpack.c.l.b16 %v7485_v27  ;;  %v7490_v7 = vld [vmem:[#allocation9_spill] sm:$0xff] }
 0x209   :  { %v5249_v35 = vpack.i.bf16 %v2057_v38, %v2057_v38  ;;  %v7451_v38 = vld [vmem:[#allocation67_spill] sm:$0xff]  ;;  %7476 = vst [vmem:[#allocation100_spill] sm:$0xff] %v5469_v58  ;;  %v7487_v58 = vld [vmem:[#allocation13_spill] sm:$0xff]  ;;  %v7491_v44 = vcombine.low %v7490_v7, %v7490_v7  ;;  %v5509_v27 = vunpack.c.l.b16 %v7496_v28 }
 0x20a   :  { %7472 = vst [vmem:[#allocation95_spill] sm:$0xff] %v5459_v11  ;;  %7481 = vst [vmem:[#allocation101_spill] sm:$0xff] %v5479_v50  ;;  %v7482_v11 = vld [vmem:[#allocation12_spill] sm:$0xff]  ;;  %v7488_v23 = vcombine.low %v7487_v58, %v7487_v58  ;;  %v7493_v50 = vld [vmem:[#allocation14_spill] sm:$0xff] }
 0x20b   :  { %v7483_v13 = vcombine.low %v7482_v11, %v7482_v11  ;;  %7486 = vst [vmem:[#allocation97_spill] sm:$0xff] %v5489_v17  ;;  %v5499_v60 = vunpack.c.l.b16 %v7491_v44  ;;  %v7494_v11 = vcombine.low %v7493_v50, %v7493_v50  ;;  %7497 = vst [vmem:[#allocation99_spill] sm:$0xff] %v5509_v27  ;;  %v7498_v17 = vld [vmem:[#allocation15_spill] sm:$0xff]  ;;  %v7510_v27 = vld [vmem:[#allocation21_spill] sm:$0xff] }
 0x20c   :  { %v5494_v10 = vunpack.c.l.b16 %v7488_v23  ;;  %v7499_v58 = vcombine.low %v7498_v17, %v7498_v17  ;;  %v7511_v17 = vcombine.low %v7510_v27, %v7510_v27 }
 0x20d   :  { %v5484_v14 = vunpack.c.l.b16 %v7483_v13  ;;  %7492 = vst [vmem:[#allocation98_spill] sm:$0xff] %v5499_v60  ;;  %v5504_v13 = vunpack.c.l.b16 %v7494_v11  ;;  %v7504_v60 = vld [vmem:[#allocation20_spill] sm:$0xff] }
 0x20e   :  { %7489 = vst [vmem:[#allocation102_spill] sm:$0xff] %v5494_v10  ;;  %v5514_v23 = vunpack.c.l.b16 %v7499_v58  ;;  %v7501_v10 = vld [vmem:[#allocation11_spill] sm:$0xff]  ;;  %v7505_v50 = vcombine.low %v7504_v60, %v7504_v60  ;;  %v5534_v58 = vunpack.c.l.b16 %v7511_v17 }
 0x20f   :  { %7495 = vst [vmem:[#allocation103_spill] sm:$0xff] %v5504_v13  ;;  %v7502_v7 = vcombine.low %v7501_v10, %v7501_v10  ;;  %v7507_v13 = vld [vmem:[#allocation16_spill] sm:$0xff] }
 0x210   :  { %7500 = vst [vmem:[#allocation108_spill] sm:$0xff] %v5514_v23  ;;  %v5524_v11 = vunpack.c.l.b16 %v7505_v50  ;;  %v7508_v32 = vcombine.low %v7507_v13, %v7507_v13  ;;  %7512 = vst [vmem:[#allocation110_spill] sm:$0xff] %v5534_v58  ;;  %v7513_v23 = vld [vmem:[#allocation17_spill] sm:$0xff]  ;;  %v7525_v58 = vld [vmem:[#allocation19_spill] sm:$0xff] }
 0x211   :  { %v5519_v44 = vunpack.c.l.b16 %v7502_v7  ;;  %v7514_v10 = vcombine.low %v7513_v23, %v7513_v23  ;;  %v7526_v23 = vcombine.low %v7525_v58, %v7525_v58 }
 0x212   :  { %7506 = vst [vmem:[#allocation109_spill] sm:$0xff] %v5524_v11  ;;  %v5529_v28 = vunpack.c.l.b16 %v7508_v32  ;;  %v7519_v11 = vld [vmem:[#allocation18_spill] sm:$0xff] }
 0x213   :  { %7503 = vst [vmem:[#allocation104_spill] sm:$0xff] %v5519_v44  ;;  %v5539_v7 = vunpack.c.l.b16 %v7514_v10  ;;  %v7516_v44 = vld [vmem:[#allocation22_spill] sm:$0xff]  ;;  %v7520_v13 = vcombine.low %v7519_v11, %v7519_v11  ;;  %v5559_v10 = vunpack.c.l.b16 %v7526_v23  ;;  %v7530_v11 = vcombine.low %v7405_v42, %v7405_v42 }
 0x214   :  { %7509 = vst [vmem:[#allocation105_spill] sm:$0xff] %v5529_v28  ;;  %v7517_v60 = vcombine.low %v7516_v44, %v7516_v44  ;;  %v7522_v28 = vld [vmem:[#allocation23_spill] sm:$0xff] }
 0x215   :  { %7515 = vst [vmem:[#allocation106_spill] sm:$0xff] %v5539_v7  ;;  %v5549_v32 = vunpack.c.l.b16 %v7520_v13  ;;  %v7523_v27 = vcombine.low %v7522_v28, %v7522_v28  ;;  %7527 = vst [vmem:[#allocation112_spill] sm:$0xff] %v5559_v10  ;;  %v7528_v7 = vld [vmem:[#allocation28_spill] sm:$0xff]  ;;  %v5569_v13 = vunpack.c.l.b16 %v7530_v11  ;;  %v7538_v10 = vld [vmem:[#allocation30_spill] sm:$0xff] }
 0x216   :  { %v5544_v50 = vunpack.c.l.b16 %v7517_v60  ;;  %v7529_v44 = vcombine.low %v7528_v7, %v7528_v7  ;;  %v7539_v7 = vcombine.low %v7538_v10, %v7538_v10 }
 0x217   :  { %7521 = vst [vmem:[#allocation107_spill] sm:$0xff] %v5549_v32  ;;  %v5554_v17 = vunpack.c.l.b16 %v7523_v27  ;;  %7531 = vst [vmem:[#allocation117_spill] sm:$0xff] %v5569_v13  ;;  %v7532_v32 = vld [vmem:[#allocation29_spill] sm:$0xff]  ;;  %v7544_v13 = vld [vmem:[#allocation31_spill] sm:$0xff] }
 0x218   :  { %7518 = vst [vmem:[#allocation111_spill] sm:$0xff] %v5544_v50  ;;  %v5564_v60 = vunpack.c.l.b16 %v7529_v44  ;;  %v7533_v28 = vcombine.low %v7532_v32, %v7532_v32  ;;  %v5584_v44 = vunpack.c.l.b16 %v7539_v7  ;;  %v7541_v50 = vld [vmem:[#allocation26_spill] sm:$0xff]  ;;  %v7545_v32 = vcombine.low %v7544_v13, %v7544_v13 }
 0x219   :  { %7524 = vst [vmem:[#allocation116_spill] sm:$0xff] %v5554_v17  ;;  %v7535_v17 = vld [vmem:[#allocation25_spill] sm:$0xff]  ;;  %v7542_v42 = vcombine.low %v7541_v50, %v7541_v50 }
 0x21a   :  { %v5574_v27 = vunpack.c.l.b16 %v7533_v28  ;;  %v7536_v58 = vcombine.low %v7535_v17, %v7535_v17  ;;  %7540 = vst [vmem:[#allocation114_spill] sm:$0xff] %v5584_v44  ;;  %v5594_v28 = vunpack.c.l.b16 %v7545_v32  ;;  %v7553_v44 = vld [vmem:[#allocation32_spill] sm:$0xff] }
 0x21b   :  { %v5589_v11 = vunpack.c.l.b16 %v7542_v42  ;;  %v7554_v50 = vcombine.low %v7553_v44, %v7553_v44 }
 0x21c   :  { %7534 = vst [vmem:[#allocation113_spill] sm:$0xff] %v5574_v27  ;;  %v5579_v23 = vunpack.c.l.b16 %v7536_v58  ;;  %7546 = vst [vmem:[#allocation115_spill] sm:$0xff] %v5594_v28  ;;  %v7547_v27 = vld [vmem:[#allocation27_spill] sm:$0xff]  ;;  %v7559_v28 = vld [vmem:[#allocation33_spill] sm:$0xff] }
 0x21d   :  { %7543 = vst [vmem:[#allocation119_spill] sm:$0xff] %v5589_v11  ;;  %v7548_v17 = vcombine.low %v7547_v27, %v7547_v27  ;;  %v5609_v42 = vunpack.c.l.b16 %v7554_v50  ;;  %v7556_v11 = vld [vmem:[#allocation37_spill] sm:$0xff]  ;;  %v7560_v27 = vcombine.low %v7559_v28, %v7559_v28 }
 0x21e   :  { %7537 = vst [vmem:[#allocation118_spill] sm:$0xff] %v5579_v23  ;;  %v7550_v23 = vld [vmem:[#allocation36_spill] sm:$0xff]  ;;  %v7557_v13 = vcombine.low %v7556_v11, %v7556_v11 }
 0x21f   :  { %v5599_v58 = vunpack.c.l.b16 %v7548_v17  ;;  %v7551_v10 = vcombine.low %v7550_v23, %v7550_v23  ;;  %7555 = vst [vmem:[#allocation125_spill] sm:$0xff] %v5609_v42  ;;  %v5619_v17 = vunpack.c.l.b16 %v7560_v27  ;;  %v7568_v42 = vld [vmem:[#allocation39_spill] sm:$0xff] }
 0x220   :  { %v5614_v32 = vunpack.c.l.b16 %v7557_v13  ;;  %v7569_v11 = vcombine.low %v7568_v42, %v7568_v42 }
 0x221   :  { %7549 = vst [vmem:[#allocation124_spill] sm:$0xff] %v5599_v58  ;;  %v5604_v7 = vunpack.c.l.b16 %v7551_v10  ;;  %7561 = vst [vmem:[#allocation126_spill] sm:$0xff] %v5619_v17  ;;  %v7562_v58 = vld [vmem:[#allocation38_spill] sm:$0xff]  ;;  %v7574_v17 = vld [vmem:[#allocation44_spill] sm:$0xff] }
 0x222   :  { %7558 = vst [vmem:[#allocation121_spill] sm:$0xff] %v5614_v32  ;;  %v7563_v23 = vcombine.low %v7562_v58, %v7562_v58  ;;  %v5634_v13 = vunpack.c.l.b16 %v7569_v11  ;;  %v7571_v32 = vld [vmem:[#allocation35_spill] sm:$0xff]  ;;  %v7575_v58 = vcombine.low %v7574_v17, %v7574_v17 }
 0x223   :  { %7552 = vst [vmem:[#allocation120_spill] sm:$0xff] %v5604_v7  ;;  %v7565_v7 = vld [vmem:[#allocation34_spill] sm:$0xff]  ;;  %v7572_v28 = vcombine.low %v7571_v32, %v7571_v32 }
 0x224   :  { %v5624_v10 = vunpack.c.l.b16 %v7563_v23  ;;  %v7566_v44 = vcombine.low %v7565_v7, %v7565_v7  ;;  %7570 = vst [vmem:[#allocation123_spill] sm:$0xff] %v5634_v13  ;;  %v5644_v23 = vunpack.c.l.b16 %v7575_v58  ;;  %v7583_v13 = vld [vmem:[#allocation41_spill] sm:$0xff] }
 0x225   :  { %v5639_v27 = vunpack.c.l.b16 %v7572_v28  ;;  %v7584_v32 = vcombine.low %v7583_v13, %v7583_v13 }
 0x226   :  { %7564 = vst [vmem:[#allocation122_spill] sm:$0xff] %v5624_v10  ;;  %v5629_v50 = vunpack.c.l.b16 %v7566_v44  ;;  %7576 = vst [vmem:[#allocation128_spill] sm:$0xff] %v5644_v23  ;;  %v7577_v10 = vld [vmem:[#allocation40_spill] sm:$0xff]  ;;  %v7589_v23 = vld [vmem:[#allocation42_spill] sm:$0xff] }
 0x227   :  { %7573 = vst [vmem:[#allocation132_spill] sm:$0xff] %v5639_v27  ;;  %v7578_v7 = vcombine.low %v7577_v10, %v7577_v10  ;;  %v5659_v28 = vunpack.c.l.b16 %v7584_v32  ;;  %v7586_v27 = vld [vmem:[#allocation46_spill] sm:$0xff]  ;;  %v7590_v10 = vcombine.low %v7589_v23, %v7589_v23 }
 0x228   :  { %7567 = vst [vmem:[#allocation127_spill] sm:$0xff] %v5629_v50  ;;  %v7580_v50 = vld [vmem:[#allocation45_spill] sm:$0xff]  ;;  %v7587_v17 = vcombine.low %v7586_v27, %v7586_v27 }
 0x229   :  { %v5649_v44 = vunpack.c.l.b16 %v7578_v7  ;;  %v7581_v42 = vcombine.low %v7580_v50, %v7580_v50  ;;  %7585 = vst [vmem:[#allocation134_spill] sm:$0xff] %v5659_v28  ;;  %v5669_v7 = vunpack.c.l.b16 %v7590_v10  ;;  %v7598_v28 = vld [vmem:[#allocation52_spill] sm:$0xff] }
 0x22a   :  { %v5664_v58 = vunpack.c.l.b16 %v7587_v17  ;;  %v7599_v27 = vcombine.low %v7598_v28, %v7598_v28 }
 0x22b   :  { %7579 = vst [vmem:[#allocation133_spill] sm:$0xff] %v5649_v44  ;;  %v5654_v11 = vunpack.c.l.b16 %v7581_v42  ;;  %7591 = vst [vmem:[#allocation135_spill] sm:$0xff] %v5669_v7  ;;  %v7592_v44 = vld [vmem:[#allocation47_spill] sm:$0xff]  ;;  %v7604_v7 = vld [vmem:[#allocation53_spill] sm:$0xff] }
 0x22c   :  { %7588 = vst [vmem:[#allocation130_spill] sm:$0xff] %v5664_v58  ;;  %v7593_v50 = vcombine.low %v7592_v44, %v7592_v44  ;;  %v5684_v17 = vunpack.c.l.b16 %v7599_v27  ;;  %v7601_v58 = vld [vmem:[#allocation48_spill] sm:$0xff]  ;;  %v7605_v44 = vcombine.low %v7604_v7, %v7604_v7 }
 0x22d   :  { %7582 = vst [vmem:[#allocation129_spill] sm:$0xff] %v5654_v11  ;;  %v7595_v11 = vld [vmem:[#allocation43_spill] sm:$0xff]  ;;  %v7602_v23 = vcombine.low %v7601_v58, %v7601_v58 }
 0x22e   :  { %v5674_v42 = vunpack.c.l.b16 %v7593_v50  ;;  %v7596_v13 = vcombine.low %v7595_v11, %v7595_v11  ;;  %7600 = vst [vmem:[#allocation136_spill] sm:$0xff] %v5684_v17  ;;  %v5694_v50 = vunpack.c.l.b16 %v7605_v44  ;;  %v7613_v17 = vld [vmem:[#allocation50_spill] sm:$0xff] }
 0x22f   :  { %v5689_v10 = vunpack.c.l.b16 %v7602_v23  ;;  %v7614_v58 = vcombine.low %v7613_v17, %v7613_v17 }
 0x230   :  { %7594 = vst [vmem:[#allocation131_spill] sm:$0xff] %v5674_v42  ;;  %v5679_v32 = vunpack.c.l.b16 %v7596_v13  ;;  %7606 = vst [vmem:[#allocation137_spill] sm:$0xff] %v5694_v50  ;;  %v7607_v42 = vld [vmem:[#allocation49_spill] sm:$0xff]  ;;  %v7619_v50 = vld [vmem:[#allocation51_spill] sm:$0xff] }
 0x231   :  { %7603 = vst [vmem:[#allocation141_spill] sm:$0xff] %v5689_v10  ;;  %v7608_v11 = vcombine.low %v7607_v42, %v7607_v42  ;;  %v5709_v23 = vunpack.c.l.b16 %v7614_v58  ;;  %v7616_v10 = vld [vmem:[#allocation55_spill] sm:$0xff]  ;;  %v7620_v42 = vcombine.low %v7619_v50, %v7619_v50 }
 0x232   :  { %7597 = vst [vmem:[#allocation140_spill] sm:$0xff] %v5679_v32  ;;  %v7610_v32 = vld [vmem:[#allocation54_spill] sm:$0xff]  ;;  %v7617_v7 = vcombine.low %v7616_v10, %v7616_v10 }
 0x233   :  { %v5699_v13 = vunpack.c.l.b16 %v7608_v11  ;;  %v7611_v28 = vcombine.low %v7610_v32, %v7610_v32  ;;  %7615 = vst [vmem:[#allocation143_spill] sm:$0xff] %v5709_v23  ;;  %v5719_v11 = vunpack.c.l.b16 %v7620_v42  ;;  %v7628_v23 = vld [vmem:[#allocation61_spill] sm:$0xff] }
 0x234   :  { %v5714_v44 = vunpack.c.l.b16 %v7617_v7  ;;  %v7629_v10 = vcombine.low %v7628_v23, %v7628_v23 }
 0x235   :  { %7609 = vst [vmem:[#allocation142_spill] sm:$0xff] %v5699_v13  ;;  %v5704_v27 = vunpack.c.l.b16 %v7611_v28  ;;  %7621 = vst [vmem:[#allocation148_spill] sm:$0xff] %v5719_v11  ;;  %v7622_v13 = vld [vmem:[#allocation60_spill] sm:$0xff]  ;;  %v7634_v11 = vld [vmem:[#allocation62_spill] sm:$0xff] }
 0x236   :  { %7618 = vst [vmem:[#allocation139_spill] sm:$0xff] %v5714_v44  ;;  %v7623_v32 = vcombine.low %v7622_v13, %v7622_v13  ;;  %v5734_v7 = vunpack.c.l.b16 %v7629_v10  ;;  %v7631_v44 = vld [vmem:[#allocation57_spill] sm:$0xff]  ;;  %v7635_v13 = vcombine.low %v7634_v11, %v7634_v11 }
 0x237   :  { %7612 = vst [vmem:[#allocation138_spill] sm:$0xff] %v5704_v27  ;;  %v7625_v27 = vld [vmem:[#allocation56_spill] sm:$0xff]  ;;  %v7632_v50 = vcombine.low %v7631_v44, %v7631_v44 }
 0x238   :  { %v5724_v28 = vunpack.c.l.b16 %v7623_v32  ;;  %v7626_v17 = vcombine.low %v7625_v27, %v7625_v27  ;;  %7630 = vst [vmem:[#allocation145_spill] sm:$0xff] %v5734_v7  ;;  %v5744_v32 = vunpack.c.l.b16 %v7635_v13  ;;  %v7643_v7 = vld [vmem:[#allocation59_spill] sm:$0xff] }
 0x239   :  { %v5739_v42 = vunpack.c.l.b16 %v7632_v50  ;;  %v7644_v44 = vcombine.low %v7643_v7, %v7643_v7 }
 0x23a   :  { %7624 = vst [vmem:[#allocation144_spill] sm:$0xff] %v5724_v28  ;;  %v5729_v58 = vunpack.c.l.b16 %v7626_v17  ;;  %7636 = vst [vmem:[#allocation146_spill] sm:$0xff] %v5744_v32  ;;  %v7637_v28 = vld [vmem:[#allocation58_spill] sm:$0xff]  ;;  %v7649_v32 = vld [vmem:[#allocation64_spill] sm:$0xff] }
 0x23b   :  { %7633 = vst [vmem:[#allocation150_spill] sm:$0xff] %v5739_v42  ;;  %v7638_v27 = vcombine.low %v7637_v28, %v7637_v28  ;;  %v5759_v50 = vunpack.c.l.b16 %v7644_v44  ;;  %v7646_v42 = vld [vmem:[#allocation68_spill] sm:$0xff]  ;;  %v7650_v28 = vcombine.low %v7649_v32, %v7649_v32 }
 0x23c   :  { %7627 = vst [vmem:[#allocation149_spill] sm:$0xff] %v5729_v58  ;;  %v7640_v58 = vld [vmem:[#allocation63_spill] sm:$0xff]  ;;  %v7647_v11 = vcombine.low %v7646_v42, %v7646_v42 }
 0x23d   :  { %v5749_v17 = vunpack.c.l.b16 %v7638_v27  ;;  %v7641_v23 = vcombine.low %v7640_v58, %v7640_v58  ;;  %7645 = vst [vmem:[#allocation156_spill] sm:$0xff] %v5759_v50  ;;  %v5769_v27 = vunpack.c.l.b16 %v7650_v28  ;;  %v7657_v50 = vld [vmem:[#allocation70_spill] sm:$0xff] }
 0x23e   :  { %v5764_v13 = vunpack.c.l.b16 %v7647_v11  ;;  %v7658_v42 = vcombine.low %v7657_v50, %v7657_v50  ;;  %v7668_v50 = vcombine.low %v7452_v21, %v7452_v21 }
 0x23f   :  { %7639 = vst [vmem:[#allocation151_spill] sm:$0xff] %v5749_v17  ;;  %v5754_v10 = vunpack.c.l.b16 %v7641_v23  ;;  %7651 = vst [vmem:[#allocation157_spill] sm:$0xff] %v5769_v27  ;;  %v7652_v17 = vld [vmem:[#allocation69_spill] sm:$0xff]  ;;  %v7663_v27 = vld [vmem:[#allocation71_spill] sm:$0xff] }
 0x240   :  { %7648 = vst [vmem:[#allocation152_spill] sm:$0xff] %v5764_v13  ;;  %v7653_v58 = vcombine.low %v7652_v17, %v7652_v17  ;;  %v5784_v11 = vunpack.c.l.b16 %v7658_v42  ;;  %v7660_v13 = vld [vmem:[#allocation66_spill] sm:$0xff]  ;;  %v7664_v17 = vcombine.low %v7663_v27, %v7663_v27  ;;  %v5804_v42 = vunpack.c.l.b16 %v7668_v50 }
 0x241   :  { %7642 = vst [vmem:[#allocation147_spill] sm:$0xff] %v5754_v10  ;;  %v7654_v10 = vld [vmem:[#allocation65_spill] sm:$0xff]  ;;  %v7661_v32 = vcombine.low %v7660_v13, %v7660_v13  ;;  %v7669_v13 = vcombine.low %v7453_v46, %v7453_v46 }
 0x242   :  { %v5774_v23 = vunpack.c.l.b16 %v7653_v58  ;;  %v7655_v7 = vcombine.low %v7654_v10, %v7654_v10  ;;  %7659 = vst [vmem:[#allocation158_spill] sm:$0xff] %v5784_v11  ;;  %v5794_v58 = vunpack.c.l.b16 %v7664_v17  ;;  %v7666_v10 = vcombine.low %v7451_v38, %v7451_v38  ;;  %v7676_v11 = vld [vmem:[#allocation74_spill] sm:$0xff] }
 0x243   :  { %v5789_v28 = vunpack.c.l.b16 %v7661_v32  ;;  %v5809_v32 = vunpack.c.l.b16 %v7669_v13  ;;  %v7677_v46 = vcombine.low %v7676_v11, %v7676_v11  ;;  %v7682_v11 = vcombine.low %v4931_v16, %v4931_v16 }
 0x244   :  { %v5779_v44 = vunpack.c.l.b16 %v7655_v7  ;;  %7665 = vst [vmem:[#allocation159_spill] sm:$0xff] %v5794_v58  ;;  %v5799_v7 = vunpack.c.l.b16 %v7666_v10  ;;  %v7672_v58 = vld [vmem:[#allocation73_spill] sm:$0xff]  ;;  %v7686_v16 = vcombine.low %v7462_v62, %v7462_v62  ;;  %v7690_v62 = vcombine.low %v4979_v33, %v4979_v33 }
 0x245   :  { %7662 = vst [vmem:[#allocation154_spill] sm:$0xff] %v5789_v28  ;;  %v7670_v28 = vld [vmem:[#allocation77_spill] sm:$0xff]  ;;  %v7673_v38 = vcombine.low %v7672_v58, %v7672_v58  ;;  %v5829_v13 = vunpack.c.l.b16 %v7677_v46  ;;  %v7680_v58 = vcombine.low %v4919_v39, %v4919_v39  ;;  %v5849_v46 = vunpack.c.l.b16 %v7682_v11 }
 0x246   :  { %7656 = vst [vmem:[#allocation153_spill] sm:$0xff] %v5779_v44  ;;  %7667 = vst [vmem:[#allocation155_spill] sm:$0xff] %v5799_v7  ;;  %v7671_v27 = vcombine.low %v7670_v28, %v7670_v28  ;;  %v7674_v7 = vld [vmem:[#allocation78_spill] sm:$0xff]  ;;  %v7678_v44 = vld [vmem:[#allocation79_spill] sm:$0xff]  ;;  %v7684_v39 = vcombine.low %v7460_v26, %v7460_v26  ;;  %v5869_v11 = vunpack.c.l.b16 %v7686_v16  ;;  %v7688_v26 = vcombine.low %v4967_v57, %v4967_v57 }
 0x247   :  { %v5819_v10 = vunpack.c.l.b16 %v7673_v38  ;;  %v7675_v21 = vcombine.low %v7674_v7, %v7674_v7  ;;  %v7679_v28 = vcombine.low %v7678_v44, %v7678_v44  ;;  %v5839_v38 = vunpack.c.l.b16 %v7680_v58 }
 0x248   :  { %v5814_v17 = vunpack.c.l.b16 %v7671_v27  ;;  %v7681_v7 = vcombine.low %v4925_v4, %v4925_v4  ;;  %v7683_v44 = vcombine.low %v7459_v61, %v7459_v61  ;;  %v5859_v58 = vunpack.c.l.b16 %v7684_v39 }
 0x249   :  { %v5824_v50 = vunpack.c.l.b16 %v7675_v21  ;;  %v5834_v27 = vunpack.c.l.b16 %v7679_v28  ;;  %v7685_v4 = vcombine.low %v7461_v36, %v7461_v36  ;;  %v7687_v61 = vcombine.low %v7463_v47, %v7463_v47 }
 0x24a   :  { %v5844_v21 = vunpack.c.l.b16 %v7681_v7  ;;  %v5854_v28 = vunpack.c.l.b16 %v7683_v44  ;;  %v5879_v39 = vunpack.c.l.b16 %v7688_v26  ;;  %v7689_v36 = vcombine.low %v4973_v15, %v4973_v15 }
 0x24b   :  { %v5864_v7 = vunpack.c.l.b16 %v7685_v4  ;;  %v5874_v44 = vunpack.c.l.b16 %v7687_v61  ;;  %v5889_v16 = vunpack.c.l.b16 %v7690_v62  ;;  %v7691_v47 = vcombine.low %v4981_v48, %v4981_v48 }
 0x24c   :  { %v5884_v4 = vunpack.c.l.b16 %v7689_v36  ;;  %v7692_v57 = vcombine.low %v4991_v6, %v4991_v6  ;;  %v7693_v15 = vcombine.low %v4997_v59, %v4997_v59  ;;  %v7694_v33 = vcombine.low %v4999_v22, %v4999_v22 }
 0x24d   :  { %v5894_v61 = vunpack.c.l.b16 %v7691_v47  ;;  %v7695_v48 = vcombine.low %v5009_v31, %v5009_v31  ;;  %v7696_v6 = vcombine.low %v5015_v9, %v5015_v9  ;;  %v7697_v59 = vcombine.low %v5021_v0, %v5021_v0 }
 0x24e   :  { %v5899_v26 = vunpack.c.l.b16 %v7692_v57  ;;  %v5904_v36 = vunpack.c.l.b16 %v7693_v15  ;;  %v5909_v62 = vunpack.c.l.b16 %v7694_v33  ;;  %v7698_v22 = vcombine.low %v5027_v8, %v5027_v8 }
 0x24f   :  { %v5914_v47 = vunpack.c.l.b16 %v7695_v48  ;;  %v5919_v57 = vunpack.c.l.b16 %v7696_v6  ;;  %v5924_v15 = vunpack.c.l.b16 %v7697_v59  ;;  %v7699_v31 = vcombine.low %v5029_v19, %v5029_v19 }
 0x250   :  { %v5929_v33 = vunpack.c.l.b16 %v7698_v22  ;;  %v7700_v9 = vcombine.low %v5039_v53, %v5039_v53  ;;  %v7701_v0 = vcombine.low %v5045_v41, %v5045_v41  ;;  %v7703_v8 = vcombine.low %v5047_v1, %v5047_v1 }
 0x251   :  { %v5934_v48 = vunpack.c.l.b16 %v7699_v31  ;;  %v7705_v19 = vcombine.low %v5057_v55, %v5057_v55  ;;  %v7707_v53 = vcombine.low %v5063_v2, %v5063_v2  ;;  %v7709_v41 = vcombine.low %v5069_v40, %v5069_v40 }
 0x252   :  { %v5939_v6 = vunpack.c.l.b16 %v7700_v9  ;;  %v5944_v59 = vunpack.c.l.b16 %v7701_v0  ;;  %v5949_v22 = vunpack.c.l.b16 %v7703_v8  ;;  %v7710_v1 = vcombine.low %v5075_v12, %v5075_v12 }
 0x253   :  { %v5954_v31 = vunpack.c.l.b16 %v7705_v19  ;;  %v5959_v9 = vunpack.c.l.b16 %v7707_v53  ;;  %v5964_v0 = vunpack.c.l.b16 %v7709_v41  ;;  %v7711_v55 = vcombine.low %v5077_v37, %v5077_v37 }
 0x254   :  { %7702 = vst [vmem:[#allocation164_spill] sm:$0xff] %v5944_v59  ;;  %7704 = vst [vmem:[#allocation160_spill] sm:$0xff] %v5949_v22  ;;  %v5969_v8 = vunpack.c.l.b16 %v7710_v1  ;;  %v7716_v22 = vld [vmem:[#allocation87_spill] sm:$0xff] }
 0x255   :  { %7706 = vst [vmem:[#allocation165_spill] sm:$0xff] %v5954_v31  ;;  %7708 = vst [vmem:[#allocation161_spill] sm:$0xff] %v5959_v9  ;;  %v5974_v19 = vunpack.c.l.b16 %v7711_v55  ;;  %v7712_v31 = vld [vmem:[#allocation86_spill] sm:$0xff]  ;;  %v7717_v12 = vcombine.low %v7716_v22, %v7716_v22  ;;  %v7718_v59 = vld [vmem:[#allocation83_spill] sm:$0xff]  ;;  %v7724_v22 = vcombine.low %v5123_v43, %v5123_v43  ;;  %v7728_v43 = vcombine.low %v7466_v34, %v7466_v34 }
 0x256   :  { %v7713_v2 = vcombine.low %v7712_v31, %v7712_v31  ;;  %v7714_v9 = vld [vmem:[#allocation82_spill] sm:$0xff]  ;;  %v7719_v37 = vcombine.low %v7718_v59, %v7718_v59  ;;  %v7721_v31 = vcombine.low %v5111_v5, %v5111_v5  ;;  %v7725_v59 = vcombine.low %v5125_v56, %v5125_v56 }
 0x257   :  { %v7715_v40 = vcombine.low %v7714_v9, %v7714_v9  ;;  %v5989_v1 = vunpack.c.l.b16 %v7717_v12  ;;  %v7723_v9 = vcombine.low %v5117_v49, %v5117_v49  ;;  %v6009_v12 = vunpack.c.l.b16 %v7724_v22 }
 0x258   :  { %v5979_v53 = vunpack.c.l.b16 %v7713_v2  ;;  %v5994_v55 = vunpack.c.l.b16 %v7719_v37  ;;  %v5999_v2 = vunpack.c.l.b16 %v7721_v31  ;;  %v6014_v37 = vunpack.c.l.b16 %v7725_v59 }
 0x259   :  { %v5984_v41 = vunpack.c.l.b16 %v7715_v40  ;;  %v6004_v40 = vunpack.c.l.b16 %v7723_v9  ;;  %v7726_v5 = vcombine.low %v7464_v18, %v7464_v18  ;;  %v7727_v49 = vcombine.low %v7465_v63, %v7465_v63 }
 0x25a   :  { %7720 = vst [vmem:[#allocation166_spill] sm:$0xff] %v5994_v55  ;;  %7722 = vst [vmem:[#allocation162_spill] sm:$0xff] %v5999_v2  ;;  %v6029_v22 = vunpack.c.l.b16 %v7728_v43  ;;  %v7730_v56 = vcombine.low %v7467_v52, %v7467_v52  ;;  %v7732_v18 = vcombine.low %v5159_v3, %v5159_v3  ;;  %v7734_v63 = vcombine.low %v5165_v25, %v5165_v25  ;;  %v7735_v2 = vld [vmem:[#allocation94_spill] sm:$0xff] }
 0x25b   :  { %v6019_v31 = vunpack.c.l.b16 %v7726_v5  ;;  %v6024_v9 = vunpack.c.l.b16 %v7727_v49  ;;  %v7736_v34 = vcombine.low %v7735_v2, %v7735_v2  ;;  %v7737_v52 = vcombine.low %v5173_v45, %v5173_v45  ;;  %v7753_v55 = vld [vmem:[#allocation110_spill] sm:$0xff] }
 0x25c   :  { %7729 = vst [vmem:[#allocation167_spill] sm:$0xff] %v6029_v22  ;;  %v6034_v59 = vunpack.c.l.b16 %v7730_v56  ;;  %v6039_v5 = vunpack.c.l.b16 %v7732_v18  ;;  %v6044_v49 = vunpack.c.l.b16 %v7734_v63  ;;  %v7738_v3 = vcombine.low %v5185_v29, %v5185_v29  ;;  %v7757_v22 = vld [vmem:[#allocation106_spill] sm:$0xff] }
 0x25d   :  { %v6049_v43 = vunpack.c.l.b16 %v7736_v34  ;;  %v6054_v56 = vunpack.c.l.b16 %v7737_v52  ;;  %v7739_v25 = vcombine.low %v5193_v54, %v5193_v54  ;;  %v7740_v2 = vcombine.low %v5203_v30, %v5203_v30 }
 0x25e   :  { %7731 = vst [vmem:[#allocation163_spill] sm:$0xff] %v6034_v59  ;;  %7733 = vst [vmem:[#allocation171_spill] sm:$0xff] %v6039_v5  ;;  %v6059_v18 = vunpack.c.l.b16 %v7738_v3  ;;  %v7742_v5 = vld [vmem:[#allocation90_spill] sm:$0xff]  ;;  %v7745_v29 = vcombine.low %v5249_v35, %v5249_v35  ;;  %v2572_v30 = vsel %vm2571_vm1, %v5449_v24, %v5444_v20 }
 0x25f   :  { %v6064_v63 = vunpack.c.l.b16 %v7739_v25  ;;  %v6069_v34 = vunpack.c.l.b16 %v7740_v2  ;;  %v7743_v45 = vcombine.low %v7742_v5, %v7742_v5  ;;  %v2574_v54 = vsel %vm2573_vm2, %v5454_v51, %v2572_v30  ;;  %v7747_v5 = vld [vmem:[#allocation97_spill] sm:$0xff]  ;;  %v7752_v24 = vld [vmem:[#allocation102_spill] sm:$0xff] }
 0x260   :  { %v6079_v3 = vunpack.c.l.b16 %v7745_v29  ;;  %v2585_v35 = vsel %vm2571_vm1, %v7747_v5, %v5484_v14  ;;  %v7748_v25 = vld [vmem:[#allocation109_spill] sm:$0xff]  ;;  %v7755_v5 = vld [vmem:[#allocation91_spill] sm:$0xff] }
 0x261   :  { %7741 = vst [vmem:[#allocation168_spill] sm:$0xff] %v6069_v34  ;;  %v6074_v52 = vunpack.c.l.b16 %v7743_v45  ;;  %v7749_v2 = vld [vmem:[#allocation105_spill] sm:$0xff]  ;;  %v2586_v59 = vsel %vm2573_vm2, %v7752_v24, %v2585_v35  ;;  %v7760_v24 = vld [vmem:[#allocation103_spill] sm:$0xff] }
 0x262   :  { %7746 = vst [vmem:[#allocation169_spill] sm:$0xff] %v6079_v3  ;;  %v2592_v45 = vsel %vm2571_vm1, %v7749_v2, %v7748_v25  ;;  %v7750_v29 = vld [vmem:[#allocation117_spill] sm:$0xff]  ;;  %v7756_v25 = vld [vmem:[#allocation98_spill] sm:$0xff] }
 0x263   :  { %7744 = vst [vmem:[#allocation172_spill] sm:$0xff] %v6074_v52  ;;  %v2599_v3 = vsel %vm2571_vm1, %v7750_v29, %v5564_v60  ;;  %v7751_v52 = vld [vmem:[#allocation95_spill] sm:$0xff]  ;;  %v2593_v51 = vsel %vm2573_vm2, %v7753_v55, %v2592_v45  ;;  %v7754_v30 = vld [vmem:[#allocation113_spill] sm:$0xff]  ;;  %v2587_v2 = vsel %vm2575_vm3, %v7756_v25, %v2586_v59  ;;  %v7758_v29 = vld [vmem:[#allocation118_spill] sm:$0xff] }
 0x264   :  { %v2576_v20 = vsel %vm2575_vm3, %v7751_v52, %v2574_v54  ;;  %v2600_v14 = vsel %vm2573_vm2, %v7754_v30, %v2599_v3  ;;  %v2594_v60 = vsel %vm2575_vm3, %v7757_v22, %v2593_v51  ;;  %v7759_v54 = vld [vmem:[#allocation100_spill] sm:$0xff]  ;;  %v2588_v55 = vsel %vm2577_vm4, %v7760_v24, %v2587_v2  ;;  %v7761_v45 = vld [vmem:[#allocation111_spill] sm:$0xff]  ;;  %v7762_v30 = vld [vmem:[#allocation114_spill] sm:$0xff] }
 0x265   :  { %v2578_v34 = vsel %vm2577_vm4, %v7755_v5, %v2576_v20  ;;  %v2601_v52 = vsel %vm2575_vm3, %v7758_v29, %v2600_v14  ;;  %v2595_v3 = vsel %vm2577_vm4, %v7761_v45, %v2594_v60  ;;  %v7763_v5 = vld [vmem:[#allocation96_spill] sm:$0xff]  ;;  %v7764_v25 = vld [vmem:[#allocation99_spill] sm:$0xff] }
 0x266   :  { %v2580_v35 = vsel %vm2579_vm5, %v7759_v54, %v2578_v34  ;;  %v2602_v20 = vsel %vm2577_vm4, %v7762_v30, %v2601_v52  ;;  %v2589_v22 = vsel %vm2579_vm5, %v7764_v25, %v2588_v55  ;;  %v7765_v51 = vld [vmem:[#allocation107_spill] sm:$0xff]  ;;  %v7767_v54 = vld [vmem:[#allocation101_spill] sm:$0xff]  ;;  %v7769_v60 = vld [vmem:[#allocation108_spill] sm:$0xff] }
 0x267   :  { %v2582_v59 = vsel %vm2581_vm6, %v7763_v5, %v2580_v35  ;;  %v2596_v14 = vsel %vm2579_vm5, %v7765_v51, %v2595_v3  ;;  %v7766_v29 = vld [vmem:[#allocation119_spill] sm:$0xff]  ;;  %v2590_v24 = vsel %vm2581_vm6, %v7769_v60, %v2589_v22  ;;  %v7770_v52 = vld [vmem:[#allocation116_spill] sm:$0xff]  ;;  %v7779_v22 = vld [vmem:[#allocation125_spill] sm:$0xff] }
 0x268   :  { %v2603_v34 = vsel %vm2579_vm5, %v7766_v29, %v2602_v20  ;;  %v6129_v2 = vsel %vm2583_vm7, %v7767_v54, %v2582_v59  ;;  %v2597_v45 = vsel %vm2581_vm6, %v7770_v52, %v2596_v14  ;;  %v7771_v35 = vld [vmem:[#allocation115_spill] sm:$0xff]  ;;  %v7772_v55 = vld [vmem:[#allocation104_spill] sm:$0xff]  ;;  %v7780_v14 = vld [vmem:[#allocation121_spill] sm:$0xff] }
 0x269   :  { %7768 = vst [vmem:[#allocation173_spill] sm:$0xff] %v6129_v2  ;;  %v2604_v30 = vsel %vm2581_vm6, %v7771_v35, %v2603_v34  ;;  %v6139_v5 = vsel %vm2583_vm7, %v7772_v55, %v2590_v24  ;;  %v7774_v3 = vld [vmem:[#allocation112_spill] sm:$0xff]  ;;  %v7782_v60 = vld [vmem:[#allocation133_spill] sm:$0xff]  ;;  %v7793_v2 = vld [vmem:[#allocation142_spill] sm:$0xff] }
 0x26a   :  { %7773 = vst [vmem:[#allocation170_spill] sm:$0xff] %v6139_v5  ;;  %v6143_v20 = vsel %vm2583_vm7, %v7774_v3, %v2597_v45  ;;  %v7776_v25 = vld [vmem:[#allocation124_spill] sm:$0xff]  ;;  %v7784_v35 = vld [vmem:[#allocation141_spill] sm:$0xff] }
 0x26b   :  { %7775 = vst [vmem:[#allocation174_spill] sm:$0xff] %v6143_v20  ;;  %v6147_v59 = vsel %vm2583_vm7, %v7776_v25, %v2604_v30  ;;  %v7778_v51 = vld [vmem:[#allocation120_spill] sm:$0xff]  ;;  %v7786_v3 = vld [vmem:[#allocation149_spill] sm:$0xff]  ;;  %v7787_v25 = vld [vmem:[#allocation126_spill] sm:$0xff] }
 0x26c   :  { %7777 = vst [vmem:[#allocation178_spill] sm:$0xff] %v6147_v59  ;;  %v2606_v29 = vsel %vm2571_vm1, %v7779_v22, %v7778_v51  ;;  %v7781_v34 = vld [vmem:[#allocation128_spill] sm:$0xff]  ;;  %v7788_v20 = vld [vmem:[#allocation129_spill] sm:$0xff] }
 0x26d   :  { %v2607_v54 = vsel %vm2573_vm2, %v7780_v14, %v2606_v29  ;;  %v2613_v24 = vsel %vm2571_vm1, %v7782_v60, %v7781_v34  ;;  %v7783_v52 = vld [vmem:[#allocation136_spill] sm:$0xff]  ;;  %v7789_v22 = vld [vmem:[#allocation137_spill] sm:$0xff]  ;;  %v7791_v60 = vld [vmem:[#allocation122_spill] sm:$0xff] }
 0x26e   :  { %v2620_v45 = vsel %vm2571_vm1, %v7784_v35, %v7783_v52  ;;  %v7785_v55 = vld [vmem:[#allocation144_spill] sm:$0xff]  ;;  %v2608_v59 = vsel %vm2575_vm3, %v7787_v25, %v2607_v54  ;;  %v2614_v51 = vsel %vm2573_vm2, %v7788_v20, %v2613_v24  ;;  %v7790_v14 = vld [vmem:[#allocation145_spill] sm:$0xff]  ;;  %v7792_v52 = vld [vmem:[#allocation134_spill] sm:$0xff] }
 0x26f   :  { %v2627_v30 = vsel %vm2571_vm1, %v7786_v3, %v7785_v55  ;;  %v2621_v29 = vsel %vm2573_vm2, %v7789_v22, %v2620_v45  ;;  %v2609_v5 = vsel %vm2577_vm4, %v7791_v60, %v2608_v59  ;;  %v2615_v35 = vsel %vm2575_vm3, %v7792_v52, %v2614_v51  ;;  %v7794_v3 = vld [vmem:[#allocation150_spill] sm:$0xff]  ;;  %v7795_v25 = vld [vmem:[#allocation127_spill] sm:$0xff] }
 0x270   :  { %v2628_v34 = vsel %vm2573_vm2, %v7790_v14, %v2627_v30  ;;  %v2622_v55 = vsel %vm2575_vm3, %v7793_v2, %v2621_v29  ;;  %v2610_v20 = vsel %vm2579_vm5, %v7795_v25, %v2609_v5  ;;  %v7796_v24 = vld [vmem:[#allocation130_spill] sm:$0xff]  ;;  %v7799_v60 = vld [vmem:[#allocation123_spill] sm:$0xff]  ;;  %v7803_v25 = vld [vmem:[#allocation132_spill] sm:$0xff] }
 0x271   :  { %v2629_v54 = vsel %vm2575_vm3, %v7794_v3, %v2628_v34  ;;  %v2616_v45 = vsel %vm2577_vm4, %v7796_v24, %v2615_v35  ;;  %v7797_v22 = vld [vmem:[#allocation138_spill] sm:$0xff]  ;;  %v2611_v51 = vsel %vm2581_vm6, %v7799_v60, %v2610_v20  ;;  %v7800_v52 = vld [vmem:[#allocation135_spill] sm:$0xff] }
 0x272   :  { %v2623_v30 = vsel %vm2577_vm4, %v7797_v22, %v2622_v55  ;;  %v7798_v14 = vld [vmem:[#allocation146_spill] sm:$0xff]  ;;  %v2617_v2 = vsel %vm2579_vm5, %v7800_v52, %v2616_v45  ;;  %v7801_v29 = vld [vmem:[#allocation143_spill] sm:$0xff]  ;;  %v6197_v35 = vsel %vm2583_vm7, %v7803_v25, %v2611_v51  ;;  %v7807_v45 = vld [vmem:[#allocation140_spill] sm:$0xff]  ;;  %v2648_v25 = vsel %vm2571_vm1, %v5849_v46, %v5844_v21 }
 0x273   :  { %v2630_v59 = vsel %vm2577_vm4, %v7798_v14, %v2629_v54  ;;  %v2624_v34 = vsel %vm2579_vm5, %v7801_v29, %v2623_v30  ;;  %v7802_v3 = vld [vmem:[#allocation151_spill] sm:$0xff]  ;;  %v7808_v30 = vld [vmem:[#allocation148_spill] sm:$0xff] }
 0x274   :  { %v2631_v5 = vsel %vm2579_vm5, %v7802_v3, %v2630_v59  ;;  %v7804_v55 = vld [vmem:[#allocation131_spill] sm:$0xff]  ;;  %v7809_v52 = vld [vmem:[#allocation156_spill] sm:$0xff] }
 0x275   :  { %v2618_v24 = vsel %vm2581_vm6, %v7804_v55, %v2617_v2  ;;  %v7805_v54 = vld [vmem:[#allocation139_spill] sm:$0xff]  ;;  %v7810_v29 = vld [vmem:[#allocation152_spill] sm:$0xff]  ;;  %v7811_v2 = vld [vmem:[#allocation157_spill] sm:$0xff]  ;;  %v2655_v55 = vsel %vm2571_vm1, %v5889_v16, %v5884_v4 }
 0x276   :  { %v2625_v22 = vsel %vm2581_vm6, %v7805_v54, %v2624_v34  ;;  %v7806_v20 = vld [vmem:[#allocation147_spill] sm:$0xff]  ;;  %v6207_v60 = vsel %vm2583_vm7, %v7807_v45, %v2618_v24  ;;  %v2634_v3 = vsel %vm2571_vm1, %v7811_v2, %v7810_v29  ;;  %v7812_v24 = vld [vmem:[#allocation153_spill] sm:$0xff]  ;;  %v7814_v16 = vld [vmem:[#allocation154_spill] sm:$0xff]  ;;  %v2662_v2 = vsel %vm2571_vm1, %v5929_v33, %v5924_v15 }
 0x277   :  { %v2632_v14 = vsel %vm2581_vm6, %v7806_v20, %v2631_v5  ;;  %v6211_v59 = vsel %vm2583_vm7, %v7808_v30, %v2625_v22  ;;  %v2635_v34 = vsel %vm2573_vm2, %v5774_v23, %v2634_v3  ;;  %v2641_v5 = vsel %vm2571_vm1, %v5809_v32, %v5804_v42  ;;  %v7813_v32 = vld [vmem:[#allocation158_spill] sm:$0xff]  ;;  %v7815_v45 = vld [vmem:[#allocation159_spill] sm:$0xff] }
 0x278   :  { %v6215_v51 = vsel %vm2583_vm7, %v7809_v52, %v2632_v14  ;;  %v2636_v54 = vsel %vm2575_vm3, %v7812_v24, %v2635_v34  ;;  %v2642_v22 = vsel %vm2573_vm2, %v5814_v17, %v2641_v5  ;;  %v2649_v23 = vsel %vm2573_vm2, %v5854_v28, %v2648_v25  ;;  %v7816_v52 = vld [vmem:[#allocation155_spill] sm:$0xff]  ;;  %v7821_v34 = vld [vmem:[#allocation168_spill] sm:$0xff]  ;;  %v7822_v25 = vld [vmem:[#allocation161_spill] sm:$0xff] }
 0x279   :  { %v2656_v42 = vsel %vm2573_vm2, %v5894_v61, %v2655_v55  ;;  %v2637_v20 = vsel %vm2577_vm4, %v7813_v32, %v2636_v54  ;;  %v2643_v21 = vsel %vm2575_vm3, %v5819_v10, %v2642_v22  ;;  %v2650_v46 = vsel %vm2575_vm3, %v5859_v58, %v2649_v23  ;;  %v7820_v3 = vld [vmem:[#allocation167_spill] sm:$0xff]  ;;  %v7823_v55 = vld [vmem:[#allocation166_spill] sm:$0xff]  ;;  %v7825_v54 = vld [vmem:[#allocation172_spill] sm:$0xff] }
 0x27a   :  { %v2657_v4 = vsel %vm2575_vm3, %v5899_v26, %v2656_v42  ;;  %v2638_v17 = vsel %vm2579_vm5, %v7814_v16, %v2637_v20  ;;  %v2644_v28 = vsel %vm2577_vm4, %v5824_v50, %v2643_v21  ;;  %v2651_v61 = vsel %vm2577_vm4, %v5864_v7, %v2650_v46  ;;  %v7824_v24 = vld [vmem:[#allocation163_spill] sm:$0xff]  ;;  %v7826_v23 = vld [vmem:[#allocation162_spill] sm:$0xff]  ;;  %v7828_v20 = vld [vmem:[#allocation169_spill] sm:$0xff] }
 0x27b   :  { %v2658_v14 = vsel %vm2577_vm4, %v5904_v36, %v2657_v4  ;;  %v2639_v10 = vsel %vm2581_vm6, %v7815_v45, %v2638_v17  ;;  %v2645_v58 = vsel %vm2579_vm5, %v5829_v13, %v2644_v28  ;;  %v2652_v26 = vsel %vm2579_vm5, %v5869_v11, %v2651_v61  ;;  %v7827_v42 = vld [vmem:[#allocation171_spill] sm:$0xff]  ;;  %v7829_v46 = vld [vmem:[#allocation173_spill] sm:$0xff]  ;;  %v7830_v16 = vld [vmem:[#allocation170_spill] sm:$0xff] }
 0x27c   :  { %v2659_v30 = vsel %vm2579_vm5, %v5909_v62, %v2658_v14  ;;  %v2640_v50 = vsel %vm2583_vm7, %v7816_v52, %v2639_v10  ;;  %v2646_v7 = vsel %vm2581_vm6, %v5834_v27, %v2645_v58  ;;  %v2653_v36 = vsel %vm2581_vm6, %v5874_v44, %v2652_v26  ;;  %v7831_v28 = vld [vmem:[#allocation174_spill] sm:$0xff] }
 0x27d   :  { %v2660_v29 = vsel %vm2581_vm6, %v5914_v47, %v2659_v30  ;;  %v2647_v13 = vsel %vm2583_vm7, %v5839_v38, %v2646_v7  ;;  %v2654_v11 = vsel %vm2583_vm7, %v5879_v39, %v2653_v36  ;;  %v2663_v27 = vsel %vm2573_vm2, %v5934_v48, %v2662_v2  ;;  %v7817_v48 = vld [vmem:[#allocation164_spill] sm:$0xff]  ;;  %v7832_v14 = vld [vmem:[#allocation178_spill] sm:$0xff] }
 0x27e   :  { %v2661_v62 = vsel %vm2583_vm7, %v5919_v57, %v2660_v29  ;;  %v2669_v44 = vsel %vm2571_vm1, %v5969_v8, %v5964_v0  ;;  %v2676_v38 = vsel %vm2571_vm1, %v6009_v12, %v6004_v40  ;;  %v2683_v39 = vsel %vm2571_vm1, %v6049_v43, %v6044_v49  ;;  %v7818_v12 = vld [vmem:[#allocation160_spill] sm:$0xff] }
 0x27f   :  { %v2664_v47 = vsel %vm2575_vm3, %v5939_v6, %v2663_v27  ;;  %v2670_v57 = vsel %vm2573_vm2, %v5974_v19, %v2669_v44  ;;  %v2677_v15 = vsel %vm2573_vm2, %v6014_v37, %v2676_v38  ;;  %v2684_v33 = vsel %vm2573_vm2, %v6054_v56, %v2683_v39  ;;  %v7819_v56 = vld [vmem:[#allocation165_spill] sm:$0xff] }
 0x280   :  { %v2665_v0 = vsel %vm2577_vm4, %v7817_v48, %v2664_v47  ;;  %v2671_v8 = vsel %vm2575_vm3, %v5979_v53, %v2670_v57  ;;  %v2678_v40 = vsel %vm2575_vm3, %v6019_v31, %v2677_v15  ;;  %v2685_v6 = vsel %vm2575_vm3, %v6059_v18, %v2684_v33 }
 0x281   :  { %v2666_v19 = vsel %vm2579_vm5, %v7818_v12, %v2665_v0  ;;  %v2672_v37 = vsel %vm2577_vm4, %v5984_v41, %v2671_v8  ;;  %v2679_v49 = vsel %vm2577_vm4, %v6024_v9, %v2678_v40  ;;  %v2686_v43 = vsel %vm2577_vm4, %v6064_v63, %v2685_v6 }
 0x282   :  { %v2667_v53 = vsel %vm2581_vm6, %v7819_v56, %v2666_v19  ;;  %v2673_v31 = vsel %vm2579_vm5, %v5989_v1, %v2672_v37  ;;  %v2680_v18 = vsel %vm2579_vm5, %v7820_v3, %v2679_v49  ;;  %v2687_v5 = vsel %vm2579_vm5, %v7821_v34, %v2686_v43 }
 0x283   :  { %v2668_v41 = vsel %vm2583_vm7, %v7822_v25, %v2667_v53  ;;  %v2674_v9 = vsel %vm2581_vm6, %v7823_v55, %v2673_v31  ;;  %v2681_v63 = vsel %vm2581_vm6, %v7824_v24, %v2680_v18  ;;  %v2688_v22 = vsel %vm2581_vm6, %v7825_v54, %v2687_v5 }
 0x284   :  { %v2675_v1 = vsel %vm2583_vm7, %v7826_v23, %v2674_v9  ;;  %v2682_v32 = vsel %vm2583_vm7, %v7827_v42, %v2681_v63  ;;  %v2689_v21 = vsel %vm2583_vm7, %v7828_v20, %v2688_v22  ;;  %v2690_v4 = vpack.c.b16 %v7829_v46, %v7829_v46 }
 0x285   :  { %v2691_v17 = vpack.c.b16 %v7830_v16, %v7830_v16  ;;  %v2692_v61 = vpack.c.b16 %v7831_v28, %v7831_v28  ;;  %v2693_v45 = vpack.c.b16 %v7832_v14, %v7832_v14  ;;  %v2694_v10 = vpack.c.b16 %v6197_v35, %v6197_v35 }
 0x286   :  { %v2695_v58 = vpack.c.b16 %v6207_v60, %v6207_v60  ;;  %v2696_v26 = vpack.c.b16 %v6211_v59, %v6211_v59  ;;  %v2697_v30 = vpack.c.b16 %v6215_v51, %v6215_v51  ;;  %v2698_v52 = vpack.c.b16 %v2640_v50, %v2640_v50  ;;  %2723 = vst.msk [vmem:[%s6418_s1] sm:$0xf] %vm2722_vm8, %v2690_v4 }
 0x287   :  { %v2699_v7 = vpack.c.b16 %v2647_v13, %v2647_v13  ;;  %v2700_v36 = vpack.c.b16 %v2654_v11, %v2654_v11  ;;  %v2701_v29 = vpack.c.b16 %v2661_v62, %v2661_v62  ;;  %v2702_v2 = vpack.c.b16 %v2668_v41, %v2668_v41  ;;  %2724 = vst.msk [vmem:[%s6418_s1 + $0x4] sm:$0xf] %vm2722_vm8, %v2691_v17 }
 0x288   :  { %v2703_v27 = vpack.c.b16 %v2675_v1, %v2675_v1  ;;  %v2704_v44 = vpack.c.b16 %v2682_v32, %v2682_v32  ;;  %v2705_v38 = vpack.c.b16 %v2689_v21, %v2689_v21  ;;  %2725 = vst.msk [vmem:[%s6418_s1 + $0x8] sm:$0xf] %vm2722_vm8, %v2692_v61  ;;  %2726 = vst.msk [vmem:[%s6418_s1 + $0xc] sm:$0xf] %vm2722_vm8, %v2693_v45 }
 0x289   :  { %2727 = vst.msk [vmem:[%s6418_s1 + $0x10] sm:$0xf] %vm2722_vm8, %v2694_v10  ;;  %2728 = vst.msk [vmem:[%s6418_s1 + $0x14] sm:$0xf] %vm2722_vm8, %v2695_v58 }
 0x28a   :  { %2729 = vst.msk [vmem:[%s6418_s1 + $0x18] sm:$0xf] %vm2722_vm8, %v2696_v26  ;;  %2730 = vst.msk [vmem:[%s6418_s1 + $0x1c] sm:$0xf] %vm2722_vm8, %v2697_v30 }
 0x28b   :  { %2731 = vst.msk [vmem:[%s6418_s1 + $0x20] sm:$0xf] %vm2722_vm8, %v2698_v52  ;;  %2732 = vst.msk [vmem:[%s6418_s1 + $0x24] sm:$0xf] %vm2722_vm8, %v2699_v7 }
 0x28c   :  { %2733 = vst.msk [vmem:[%s6418_s1 + $0x28] sm:$0xf] %vm2722_vm8, %v2700_v36  ;;  %2734 = vst.msk [vmem:[%s6418_s1 + $0x2c] sm:$0xf] %vm2722_vm8, %v2701_v29 }
 0x28d   :  { %2735 = vst.msk [vmem:[%s6418_s1 + $0x30] sm:$0xf] %vm2722_vm8, %v2702_v2  ;;  %2736 = vst.msk [vmem:[%s6418_s1 + $0x34] sm:$0xf] %vm2722_vm8, %v2703_v27 }
 0x28e   :  { %2737 = vst.msk [vmem:[%s6418_s1 + $0x38] sm:$0xf] %vm2722_vm8, %v2704_v44  ;;  %2738 = vst.msk [vmem:[%s6418_s1 + $0x3c] sm:$0xf] %vm2722_vm8, %v2705_v38 }

// kernel: flower_classifier_forward.9
= control target key start
LH: loop header
LB: loop body
LE: loop exit
PB: predicated region body
PF: predicated region fallthrough
CT: control target
= control target key end

     0   :  { %s368_s1 = inlined_call_operand.vmem [shape: bf16[256,128], index: 1, kind: input, shape index: {}]   ;;  %s369_s0 = inlined_call_operand.vmem [shape: bf16[8,256], index: 0, kind: input, shape index: {}]   ;;  %s370_s2 = inlined_call_operand.vmem [shape: f32[1,128], index: 2, kind: input, shape index: {}]   ;;  %s371_s3 = inlined_call_operand.vmem [shape: f32[8,128], index: 3, kind: output, shape index: {}]  }
   0x1   :  { %v269_v0 = vld [vmem:[%s368_s1 + $0x40] sm:$0xff]   ;;  %v271_v2 = vld [vmem:[%s368_s1 + $0x48] sm:$0xff]   ;;  %v273_v4 = vld [vmem:[%s368_s1 + $0x50] sm:$0xff]  }
   0x2   :  { %v270_v1 = vld [vmem:[%s368_s1] sm:$0xff]   ;;  %247 = vmatprep.subr.bf16.mxu0 %v269_v0  ;;  %v272_v3 = vld [vmem:[%s368_s1 + $0x8] sm:$0xff]   ;;  %v274_v5 = vld [vmem:[%s368_s1 + $0x10] sm:$0xff]  }
   0x3   :  { %248 = vmatpush3.bf16.msra.mxu0 %v270_v1  ;;  %v275_v6 = vld [vmem:[%s368_s1 + $0x58] sm:$0xff]   ;;  %v277_v8 = vld [vmem:[%s368_s1 + $0x60] sm:$0xff]   ;;  %v279_v10 = vld [vmem:[%s368_s1 + $0x68] sm:$0xff]  }
   0x4   :  { %249 = vmatprep.subr.bf16.mxu0 %v271_v2  ;;  %v276_v7 = vld [vmem:[%s368_s1 + $0x18] sm:$0xff]   ;;  %v278_v9 = vld [vmem:[%s368_s1 + $0x20] sm:$0xff]   ;;  %v280_v13 = vld [vmem:[%s368_s1 + $0x28] sm:$0xff]  }
   0x5   :  { %v21_v11 = vld [vmem:[%s369_s0] sm:$0xff]  ;;  %v281_v14 = vld [vmem:[%s368_s1 + $0x70] sm:$0xff]   ;;  %v283_v16 = vld [vmem:[%s368_s1 + $0x78] sm:$0xff]  }
   0x6   :  { %v229_v12 = vcombine.high %v21_v11, %v21_v11  ;;  %v282_v15 = vld [vmem:[%s368_s1 + $0x30] sm:$0xff]   ;;  %v284_v17 = vld [vmem:[%s368_s1 + $0x38] sm:$0xff]   ;;  %v228_v18 = vcombine.low %v21_v11, %v21_v11  ;;  %v246_v21 = vld [vmem:[%s370_s2] ss:$0 sm:$0xff] }
   0x7   :  { %250 = vmatpush3.bf16.msra.mxu0 %v272_v3 }
   0x8   :  { %251 = vmatprep.subr.bf16.mxu0 %v273_v4  ;;  %189 = vmatprep.mubr.bf16.mxu0 %v229_v12 }
   0xb   :  { %252 = vmatpush3.bf16.msra.mxu0 %v274_v5 }
   0xc   :  { %253 = vmatprep.subr.bf16.mxu0 %v275_v6 }
   0xf   :  { %254 = vmatpush3.bf16.msra.mxu0 %v276_v7 }
  0x10   :  { %255 = vmatprep.subr.bf16.mxu0 %v277_v8 }
  0x13   :  { %256 = vmatpush3.bf16.msra.mxu0 %v278_v9 }
  0x14   :  { %257 = vmatprep.subr.bf16.mxu0 %v279_v10 }
  0x17   :  { %258 = vmatpush3.bf16.msra.mxu0 %v280_v13 }
  0x18   :  { %259 = vmatprep.subr.bf16.mxu0 %v281_v14 }
  0x1b   :  { %260 = vmatpush3.bf16.msra.mxu0 %v282_v15 }
  0x1c   :  { %261 = vmatprep.subr.bf16.mxu0 %v283_v16 }
  0x1f   :  { %262 = vmatpush3.bf16.msra.mxu0 %v284_v17 }
  0x22   :  { %190 = vmatmul.mubr.bf16.vlgmr.msra.gmra.mrb[0].mxu0 %v228_v18 }
  0xf5   :  { %v263_v19 = vpop.f32.mrb[0].mxu0 }
  0xf6   :  { %v264_v20 = vpop.f32.mrb[1].mxu0 }
  0xf7   :  { %v265_v22 = vadd.f32 %v264_v20, %v263_v19  ;;  %v266_v23 = vpop.f32.mrb[2].mxu0 }
  0xf8   :  { %v267_v24 = vpop.f32.mrb[3].mxu0 }
  0xf9   :  { %v210_v25 = vadd.f32 %v265_v22, %v246_v21 }
  0xfb   :  { %211 = vmax.xlane.f32.xlu0 %v210_v25 }
 0x188   :  { %v212_v26 = vpop.xlane.xlu0 %211 }
 0x189   :  { %v213_v27 = vsub.f32 %v210_v25, %v212_v26 }
 0x18b   :  { %v214_v28 = vmul.f32 1.442695, %v213_v27 }
 0x18d   :  { %287 = vpow2.f32 %v214_v28 }
 0x197   :  { %v288_v29 = vpop.eup %287 }
 0x198   :  { %216 = vadd.xlane.f32.xlu0 %v288_v29 }
 0x225   :  { %v217_v30 = vpop.xlane.xlu0 %216 }
 0x226   :  { %289 = vrcp.f32 %v217_v30 }
 0x230   :  { %v290_v31 = vpop.eup %289 }
 0x231   :  { %v219_v32 = vmul.f32 %v290_v31, %v217_v30 }
 0x233   :  { %v220_v33 = vsub.f32 2.0, %v219_v32 }
 0x235   :  { %v221_v34 = vmul.f32 %v290_v31, %v220_v33 }
 0x237   :  { %v222_v35 = vmul.f32 %v288_v29, %v221_v34 }
 0x239   :  { %223 = vst [vmem:[%s371_s3] sm:$0xff] %v222_v35 }

</bundles_post_ra>
